<compile_context>
chip_gen: v5e
topology: v5e:2x2
jax: 0.10.0
libtpu: 0.0.40
codegen_flags: <defaults>
</compile_context>

<pallas_src>
import jax
import jax.numpy as jnp
from jax import lax
from jax.experimental import pallas as pl
from jax.experimental.pallas import tpu as pltpu


def _fold_bn(gamma, beta, mean, var, eps):
    scale = gamma / jnp.sqrt(var + eps)
    return scale, beta - mean * scale


def _pack_conv_weight(w_oihw, cp):
    # OIHW (Cout, Cin, 3, 3) -> (9, cp, cp) bf16 per-tap matrices, tap index
    # t = kh*3 + kw, entry [ci, co] = W[co, ci, kh, kw]; channels zero-padded.
    cout, cin, kh, kw = w_oihw.shape
    w_hwio = jnp.transpose(w_oihw, (2, 3, 1, 0)).astype(jnp.float32)   # (3,3,Ci,Co)
    w_pad = jnp.zeros((kh, kw, cp, cp), jnp.float32)
    w_pad = w_pad.at[:, :, :cin, :cout].set(w_hwio)
    return w_pad.reshape(kh * kw, cp, cp).astype(jnp.bfloat16)


def _pad_vec(v, cp):
    return jnp.zeros((1, cp), jnp.float32).at[0, :v.shape[0]].set(v.astype(jnp.float32))


def _spatial_index_planes(H, W, cp):
    # (2, H*W, cp) int32: plane 0 = spatial row h, plane 1 = spatial col w of
    # each flattened position. Constant across the grid (loaded once).
    h = jnp.repeat(jnp.arange(H, dtype=jnp.int32), W)
    w = jnp.tile(jnp.arange(W, dtype=jnp.int32), H)
    idx = jnp.stack([h, w], axis=0)[:, :, None]
    return jnp.broadcast_to(idx, (2, H * W, cp))


def _make_resblock_kernel(H, W, cp):
    HW = H * W

    def kernel(x_ref, idx_ref, w1_ref, s1_ref, b1_ref, w2_ref, s2_ref, b2_ref,
               out_ref):
        # x_ref   : (1, H*W, cp)  f32 activations (also the residual shortcut)
        # idx_ref : (2, H*W, cp)  i32 spatial (h, w) index planes
        # w*_ref  : (9, cp, cp)   bf16 per-tap conv weights
        # s*/b*   : (1, cp)       f32 folded eval-mode BatchNorm scale / bias
        # out_ref : (1, H*W, cp)  f32
        x = x_ref[0]                       # (HW, cp) f32
        h_idx = idx_ref[0]                 # (HW, cp) i32
        w_idx = idx_ref[1]                 # (HW, cp) i32

        # Border masks per tap (dh, dw); computed once, reused by both convs.
        def border_mask(dh, dw):
            conds = []
            if dh > 0:
                conds.append(h_idx < H - dh)
            elif dh < 0:
                conds.append(h_idx >= -dh)
            if dw > 0:
                conds.append(w_idx < W - dw)
            elif dw < 0:
                conds.append(w_idx >= -dw)
            if not conds:
                return None
            ok = conds[0]
            for c in conds[1:]:
                ok = ok & c
            return ok

        taps = [(dh, dw) for dh in (-1, 0, 1) for dw in (-1, 0, 1)]
        masks = {t: border_mask(*t) for t in taps}

        def conv3x3(a, w_ref):
            # 9 accumulating per-tap MXU dots; taps are in-register sublane
            # rolls of the flattened activations plus border masking (emulates
            # the 1-pixel zero padding).  bf16 operands, f32 accumulation.
            acc = jnp.zeros((HW, cp), jnp.float32)
            for dh, dw in taps:
                s = dh * W + dw            # flat row shift for this tap
                shifted = a if s == 0 else pltpu.roll(a, (-s) % HW, axis=0)
                ok = masks[(dh, dw)]
                if ok is not None:
                    shifted = jnp.where(ok, shifted, 0.0)
                t = (dh + 1) * 3 + (dw + 1)
                acc = acc + jnp.dot(shifted.astype(jnp.bfloat16), w_ref[t],
                                    preferred_element_type=jnp.float32)
            return acc

        # ---- conv1 -> BN1 (folded) -> ReLU ----
        y1 = conv3x3(x, w1_ref)
        y1 = jnp.maximum(y1 * s1_ref[...] + b1_ref[...], 0.0)

        # ---- conv2 -> BN2 (folded) -> + shortcut -> ReLU ----
        y2 = conv3x3(y1, w2_ref)
        y2 = y2 * s2_ref[...] + b2_ref[...] + x
        out_ref[0] = jnp.maximum(y2, 0.0)

    return kernel


def residual_block_flat(x_flat, idx, w1m, s1, b1, w2m, s2, b2, *, H, W):
    """Fused ResidualBlock on the flat NHWC layout: x_flat (N, H*W, cp) f32."""
    N, HW, cp = x_flat.shape
    kernel = _make_resblock_kernel(H, W, cp)
    return pl.pallas_call(
        kernel,
        out_shape=jax.ShapeDtypeStruct((N, HW, cp), jnp.float32),
        grid_spec=pltpu.PrefetchScalarGridSpec(
            num_scalar_prefetch=0,
            grid=(N,),
            in_specs=[
                pl.BlockSpec((1, HW, cp), lambda n: (n, 0, 0)),   # x
                pl.BlockSpec((2, HW, cp), lambda n: (0, 0, 0)),   # (h, w) index planes
                pl.BlockSpec((9, cp, cp), lambda n: (0, 0, 0)),   # conv1 taps (bf16)
                pl.BlockSpec((1, cp), lambda n: (0, 0)),          # scale1
                pl.BlockSpec((1, cp), lambda n: (0, 0)),          # bias1
                pl.BlockSpec((9, cp, cp), lambda n: (0, 0, 0)),   # conv2 taps (bf16)
                pl.BlockSpec((1, cp), lambda n: (0, 0)),          # scale2
                pl.BlockSpec((1, cp), lambda n: (0, 0)),          # bias2
            ],
            out_specs=pl.BlockSpec((1, HW, cp), lambda n: (n, 0, 0)),
        ),
        compiler_params=pltpu.CompilerParams(
            dimension_semantics=("parallel",),
            vmem_limit_bytes=32 * 1024 * 1024,
        ),
    )(x_flat, idx, w1m, s1, b1, w2m, s2, b2)


def residual_block(x_nchw, w1_oihw, gamma1, beta1, mean1, var1,
                   w2_oihw, gamma2, beta2, mean2, var2, *, eps=1e-5, lane=128):
    """ResidualBlock forward. x_nchw: (N, C, H, W) f32; conv weights OIHW."""
    N, C, H, W = x_nchw.shape
    cp = ((C + lane - 1) // lane) * lane       # channel pad -> lane-dense blocks

    s1, fb1 = _fold_bn(gamma1, beta1, mean1, var1, eps)
    s2, fb2 = _fold_bn(gamma2, beta2, mean2, var2, eps)

    # NCHW -> flat NHWC with channels zero-padded to a multiple of 128 (no-op
    # at real ResNet channel counts).  Done once at the network boundary only;
    # chained blocks should call residual_block_flat directly.
    x_nhwc = jnp.transpose(x_nchw, (0, 2, 3, 1)).astype(jnp.float32)
    x_flat = jnp.zeros((N, H * W, cp), jnp.float32).at[..., :C].set(
        x_nhwc.reshape(N, H * W, C))

    out_flat = residual_block_flat(
        x_flat, _spatial_index_planes(H, W, cp),
        _pack_conv_weight(w1_oihw, cp), _pad_vec(s1, cp), _pad_vec(fb1, cp),
        _pack_conv_weight(w2_oihw, cp), _pad_vec(s2, cp), _pad_vec(fb2, cp),
        H=H, W=W)

    out = out_flat[..., :C].reshape(N, H, W, C)
    return jnp.transpose(out, (0, 3, 1, 2))             # back to NCHW


def _reference(x_nchw, w1_oihw, gamma1, beta1, mean1, var1,
               w2_oihw, gamma2, beta2, mean2, var2, *, eps=1e-5,
               conv_dtype=jnp.float32):
    dn = ("NCHW", "OIHW", "NCHW")

    def conv(x, w):
        return lax.conv_general_dilated(
            x.astype(conv_dtype), w.astype(conv_dtype), (1, 1), "SAME",
            dimension_numbers=dn, preferred_element_type=jnp.float32)

    s1, fb1 = _fold_bn(gamma1, beta1, mean1, var1, eps)
    s2, fb2 = _fold_bn(gamma2, beta2, mean2, var2, eps)
    y = conv(x_nchw, w1_oihw)
    y = jnp.maximum(y * s1[None, :, None, None] + fb1[None, :, None, None], 0.0)
    y = conv(y, w2_oihw)
    y = y * s2[None, :, None, None] + fb2[None, :, None, None] + x_nchw
    return jnp.maximum(y, 0.0)


if __name__ == "__main__":
    key = jax.random.PRNGKey(0)
    k1, k2, kx = jax.random.split(key, 3)

    N, C, H, W = 2, 4, 16, 16          # in_channel == out_channel, stride=1
    eps = 1e-5

    # PyTorch-convention inputs: NCHW activations, OIHW conv weights (no bias).
    x = jax.random.normal(kx, (N, C, H, W), dtype=jnp.float32)
    w1 = 0.1 * jax.random.normal(k1, (C, C, 3, 3), dtype=jnp.float32)
    w2 = 0.1 * jax.random.normal(k2, (C, C, 3, 3), dtype=jnp.float32)

    gamma1 = 1.0 + 0.1 * jnp.arange(C, dtype=jnp.float32)
    beta1 = 0.05 * jnp.arange(C, dtype=jnp.float32)
    mean1 = 0.02 * jnp.arange(C, dtype=jnp.float32)
    var1 = 1.0 + 0.03 * jnp.arange(C, dtype=jnp.float32)

    gamma2 = 1.0 - 0.05 * jnp.arange(C, dtype=jnp.float32)
    beta2 = -0.02 * jnp.arange(C, dtype=jnp.float32)
    mean2 = -0.01 * jnp.arange(C, dtype=jnp.float32)
    var2 = 1.0 + 0.01 * jnp.arange(C, dtype=jnp.float32)

    out = residual_block(x, w1, gamma1, beta1, mean1, var1,
                         w2, gamma2, beta2, mean2, var2, eps=eps)
    out = jax.block_until_ready(out)
    assert out.shape == (N, C, H, W)

    # Reference with the same bf16-operand / f32-accumulation convs as the
    # kernel (tight tolerance: only accumulation order differs).
    ref_bf16 = _reference(x, w1, gamma1, beta1, mean1, var1,
                          w2, gamma2, beta2, mean2, var2, eps=eps,
                          conv_dtype=jnp.bfloat16)
    err_bf16 = float(jnp.max(jnp.abs(out - ref_bf16)))
    assert jnp.allclose(out, ref_bf16, atol=2e-3, rtol=2e-3), \
        f"max err vs bf16-operand reference {err_bf16}"

    # Full-f32 module reference (loose tolerance accounts for the bf16
    # quantization of the MXU operands).
    ref_f32 = _reference(x, w1, gamma1, beta1, mean1, var1,
                         w2, gamma2, beta2, mean2, var2, eps=eps,
                         conv_dtype=jnp.float32)
    err_f32 = float(jnp.max(jnp.abs(out - ref_f32)))
    assert jnp.allclose(out, ref_f32, atol=5e-2, rtol=5e-2), \
        f"max err vs f32 reference {err_f32}"

    print("KERNEL_OK")
</pallas_src>

<mosaic_0001>
module attributes {stable_mosaic.version = 11 : i64} {
  func.func @kernel(%arg0: i32, %arg1: memref<1x256x128xf32, #tpu.memory_space<vmem>>, %arg2: memref<2x256x128xi32, #tpu.memory_space<vmem>>, %arg3: memref<9x128x128xbf16, #tpu.memory_space<vmem>>, %arg4: memref<1x128xf32, #tpu.memory_space<vmem>>, %arg5: memref<1x128xf32, #tpu.memory_space<vmem>>, %arg6: memref<9x128x128xbf16, #tpu.memory_space<vmem>>, %arg7: memref<1x128xf32, #tpu.memory_space<vmem>>, %arg8: memref<1x128xf32, #tpu.memory_space<vmem>>, %arg9: memref<1x256x128xf32, #tpu.memory_space<vmem>>) attributes {dimension_semantics = [#tpu.dimension_semantics<parallel>], iteration_bounds = array<i64: 2>, scalar_prefetch = 0 : i64, scratch_operands = 0 : i64, tpu.core_type = #tpu.core_type<tc>, window_params = [{transform_indices = @transform_0, window_bounds = array<i64: 1, 256, 128>}, {pipeline_mode = #tpu.pipeline_mode<synchronous>, transform_indices = @transform_1, window_bounds = array<i64: 2, 256, 128>}, {pipeline_mode = #tpu.pipeline_mode<synchronous>, transform_indices = @transform_2, window_bounds = array<i64: 9, 128, 128>}, {pipeline_mode = #tpu.pipeline_mode<synchronous>, transform_indices = @transform_3, window_bounds = array<i64: 1, 128>}, {pipeline_mode = #tpu.pipeline_mode<synchronous>, transform_indices = @transform_4, window_bounds = array<i64: 1, 128>}, {pipeline_mode = #tpu.pipeline_mode<synchronous>, transform_indices = @transform_5, window_bounds = array<i64: 9, 128, 128>}, {pipeline_mode = #tpu.pipeline_mode<synchronous>, transform_indices = @transform_6, window_bounds = array<i64: 1, 128>}, {pipeline_mode = #tpu.pipeline_mode<synchronous>, transform_indices = @transform_7, window_bounds = array<i64: 1, 128>}, {transform_indices = @transform_8, window_bounds = array<i64: 1, 256, 128>}]} {
    %c0 = arith.constant 0 : index
    %c0_0 = arith.constant 0 : index
    %c0_1 = arith.constant 0 : index
    %0 = vector.load %arg1[%c0, %c0_0, %c0_1] : memref<1x256x128xf32, #tpu.memory_space<vmem>>, vector<1x256x128xf32>
    %1 = vector.shape_cast %0 : vector<1x256x128xf32> to vector<256x128xf32>
    %c0_2 = arith.constant 0 : index
    %c0_3 = arith.constant 0 : index
    %c0_4 = arith.constant 0 : index
    %2 = vector.load %arg2[%c0_2, %c0_3, %c0_4] : memref<2x256x128xi32, #tpu.memory_space<vmem>>, vector<1x256x128xi32>
    %3 = vector.shape_cast %2 : vector<1x256x128xi32> to vector<256x128xi32>
    %c1 = arith.constant 1 : index
    %c0_5 = arith.constant 0 : index
    %c0_6 = arith.constant 0 : index
    %4 = vector.load %arg2[%c1, %c0_5, %c0_6] : memref<2x256x128xi32, #tpu.memory_space<vmem>>, vector<1x256x128xi32>
    %5 = vector.shape_cast %4 : vector<1x256x128xi32> to vector<256x128xi32>
    %c1_i32 = arith.constant 1 : i32
    %6 = vector.broadcast %c1_i32 : i32 to vector<256x128xi32>
    %7 = arith.cmpi sge, %3, %6 : vector<256x128xi32>
    %c1_i32_7 = arith.constant 1 : i32
    %8 = vector.broadcast %c1_i32_7 : i32 to vector<256x128xi32>
    %9 = arith.cmpi sge, %5, %8 : vector<256x128xi32>
    %10 = arith.andi %7, %9 : vector<256x128xi1>
    %c1_i32_8 = arith.constant 1 : i32
    %11 = vector.broadcast %c1_i32_8 : i32 to vector<256x128xi32>
    %12 = arith.cmpi sge, %3, %11 : vector<256x128xi32>
    %c1_i32_9 = arith.constant 1 : i32
    %13 = vector.broadcast %c1_i32_9 : i32 to vector<256x128xi32>
    %14 = arith.cmpi sge, %3, %13 : vector<256x128xi32>
    %c15_i32 = arith.constant 15 : i32
    %15 = vector.broadcast %c15_i32 : i32 to vector<256x128xi32>
    %16 = arith.cmpi slt, %5, %15 : vector<256x128xi32>
    %17 = arith.andi %14, %16 : vector<256x128xi1>
    %c1_i32_10 = arith.constant 1 : i32
    %18 = vector.broadcast %c1_i32_10 : i32 to vector<256x128xi32>
    %19 = arith.cmpi sge, %5, %18 : vector<256x128xi32>
    %c15_i32_11 = arith.constant 15 : i32
    %20 = vector.broadcast %c15_i32_11 : i32 to vector<256x128xi32>
    %21 = arith.cmpi slt, %5, %20 : vector<256x128xi32>
    %c15_i32_12 = arith.constant 15 : i32
    %22 = vector.broadcast %c15_i32_12 : i32 to vector<256x128xi32>
    %23 = arith.cmpi slt, %3, %22 : vector<256x128xi32>
    %c1_i32_13 = arith.constant 1 : i32
    %24 = vector.broadcast %c1_i32_13 : i32 to vector<256x128xi32>
    %25 = arith.cmpi sge, %5, %24 : vector<256x128xi32>
    %26 = arith.andi %23, %25 : vector<256x128xi1>
    %c15_i32_14 = arith.constant 15 : i32
    %27 = vector.broadcast %c15_i32_14 : i32 to vector<256x128xi32>
    %28 = arith.cmpi slt, %3, %27 : vector<256x128xi32>
    %c15_i32_15 = arith.constant 15 : i32
    %29 = vector.broadcast %c15_i32_15 : i32 to vector<256x128xi32>
    %30 = arith.cmpi slt, %3, %29 : vector<256x128xi32>
    %c15_i32_16 = arith.constant 15 : i32
    %31 = vector.broadcast %c15_i32_16 : i32 to vector<256x128xi32>
    %32 = arith.cmpi slt, %5, %31 : vector<256x128xi32>
    %33 = arith.andi %30, %32 : vector<256x128xi1>
    %cst = arith.constant 0.000000e+00 : f32
    %34 = vector.broadcast %cst : f32 to vector<256x128xf32>
    %c17_i32 = arith.constant 17 : i32
    %35 = tpu.dynamic_rotate %1 by %c17_i32 dim 0 : vector<256x128xf32>, i32 -> vector<256x128xf32>
    %cst_17 = arith.constant 0.000000e+00 : f32
    %36 = vector.broadcast %cst_17 : f32 to vector<256x128xf32>
    %37 = arith.select %10, %35, %36 : vector<256x128xi1>, vector<256x128xf32>
    %38 = arith.truncf %37 : vector<256x128xf32> to vector<256x128xbf16>
    %c0_18 = arith.constant 0 : index
    %c0_19 = arith.constant 0 : index
    %c0_20 = arith.constant 0 : index
    %39 = vector.load %arg3[%c0_18, %c0_19, %c0_20] : memref<9x128x128xbf16, #tpu.memory_space<vmem>>, vector<1x128x128xbf16>
    %40 = vector.shape_cast %39 : vector<1x128x128xbf16> to vector<128x128xbf16>
    %cst_21 = arith.constant dense<0.000000e+00> : vector<256x128xf32>
    %41 = tpu.matmul %38, %40, %cst_21 {dimension_numbers = #tpu.dot_dimension_numbers<[1], [0], [0], [1], [0, 0, 1, 1], [], []>} : vector<256x128xbf16>, vector<128x128xbf16>, vector<256x128xf32> -> vector<256x128xf32>
    %42 = arith.addf %34, %41 : vector<256x128xf32>
    %c16_i32 = arith.constant 16 : i32
    %43 = tpu.dynamic_rotate %1 by %c16_i32 dim 0 : vector<256x128xf32>, i32 -> vector<256x128xf32>
    %cst_22 = arith.constant 0.000000e+00 : f32
    %44 = vector.broadcast %cst_22 : f32 to vector<256x128xf32>
    %45 = arith.select %12, %43, %44 : vector<256x128xi1>, vector<256x128xf32>
    %46 = arith.truncf %45 : vector<256x128xf32> to vector<256x128xbf16>
    %c1_23 = arith.constant 1 : index
    %c0_24 = arith.constant 0 : index
    %c0_25 = arith.constant 0 : index
    %47 = vector.load %arg3[%c1_23, %c0_24, %c0_25] : memref<9x128x128xbf16, #tpu.memory_space<vmem>>, vector<1x128x128xbf16>
    %48 = vector.shape_cast %47 : vector<1x128x128xbf16> to vector<128x128xbf16>
    %cst_26 = arith.constant dense<0.000000e+00> : vector<256x128xf32>
    %49 = tpu.matmul %46, %48, %cst_26 {dimension_numbers = #tpu.dot_dimension_numbers<[1], [0], [0], [1], [0, 0, 1, 1], [], []>} : vector<256x128xbf16>, vector<128x128xbf16>, vector<256x128xf32> -> vector<256x128xf32>
    %50 = arith.addf %42, %49 : vector<256x128xf32>
    %c15_i32_27 = arith.constant 15 : i32
    %51 = tpu.dynamic_rotate %1 by %c15_i32_27 dim 0 : vector<256x128xf32>, i32 -> vector<256x128xf32>
    %cst_28 = arith.constant 0.000000e+00 : f32
    %52 = vector.broadcast %cst_28 : f32 to vector<256x128xf32>
    %53 = arith.select %17, %51, %52 : vector<256x128xi1>, vector<256x128xf32>
    %54 = arith.truncf %53 : vector<256x128xf32> to vector<256x128xbf16>
    %c2 = arith.constant 2 : index
    %c0_29 = arith.constant 0 : index
    %c0_30 = arith.constant 0 : index
    %55 = vector.load %arg3[%c2, %c0_29, %c0_30] : memref<9x128x128xbf16, #tpu.memory_space<vmem>>, vector<1x128x128xbf16>
    %56 = vector.shape_cast %55 : vector<1x128x128xbf16> to vector<128x128xbf16>
    %cst_31 = arith.constant dense<0.000000e+00> : vector<256x128xf32>
    %57 = tpu.matmul %54, %56, %cst_31 {dimension_numbers = #tpu.dot_dimension_numbers<[1], [0], [0], [1], [0, 0, 1, 1], [], []>} : vector<256x128xbf16>, vector<128x128xbf16>, vector<256x128xf32> -> vector<256x128xf32>
    %58 = arith.addf %50, %57 : vector<256x128xf32>
    %c1_i32_32 = arith.constant 1 : i32
    %59 = tpu.dynamic_rotate %1 by %c1_i32_32 dim 0 : vector<256x128xf32>, i32 -> vector<256x128xf32>
    %cst_33 = arith.constant 0.000000e+00 : f32
    %60 = vector.broadcast %cst_33 : f32 to vector<256x128xf32>
    %61 = arith.select %19, %59, %60 : vector<256x128xi1>, vector<256x128xf32>
    %62 = arith.truncf %61 : vector<256x128xf32> to vector<256x128xbf16>
    %c3 = arith.constant 3 : index
    %c0_34 = arith.constant 0 : index
    %c0_35 = arith.constant 0 : index
    %63 = vector.load %arg3[%c3, %c0_34, %c0_35] : memref<9x128x128xbf16, #tpu.memory_space<vmem>>, vector<1x128x128xbf16>
    %64 = vector.shape_cast %63 : vector<1x128x128xbf16> to vector<128x128xbf16>
    %cst_36 = arith.constant dense<0.000000e+00> : vector<256x128xf32>
    %65 = tpu.matmul %62, %64, %cst_36 {dimension_numbers = #tpu.dot_dimension_numbers<[1], [0], [0], [1], [0, 0, 1, 1], [], []>} : vector<256x128xbf16>, vector<128x128xbf16>, vector<256x128xf32> -> vector<256x128xf32>
    %66 = arith.addf %58, %65 : vector<256x128xf32>
    %67 = arith.truncf %1 : vector<256x128xf32> to vector<256x128xbf16>
    %c4 = arith.constant 4 : index
    %c0_37 = arith.constant 0 : index
    %c0_38 = arith.constant 0 : index
    %68 = vector.load %arg3[%c4, %c0_37, %c0_38] : memref<9x128x128xbf16, #tpu.memory_space<vmem>>, vector<1x128x128xbf16>
    %69 = vector.shape_cast %68 : vector<1x128x128xbf16> to vector<128x128xbf16>
    %cst_39 = arith.constant dense<0.000000e+00> : vector<256x128xf32>
    %70 = tpu.matmul %67, %69, %cst_39 {dimension_numbers = #tpu.dot_dimension_numbers<[1], [0], [0], [1], [0, 0, 1, 1], [], []>} : vector<256x128xbf16>, vector<128x128xbf16>, vector<256x128xf32> -> vector<256x128xf32>
    %71 = arith.addf %66, %70 : vector<256x128xf32>
    %c255_i32 = arith.constant 255 : i32
    %72 = tpu.dynamic_rotate %1 by %c255_i32 dim 0 : vector<256x128xf32>, i32 -> vector<256x128xf32>
    %cst_40 = arith.constant 0.000000e+00 : f32
    %73 = vector.broadcast %cst_40 : f32 to vector<256x128xf32>
    %74 = arith.select %21, %72, %73 : vector<256x128xi1>, vector<256x128xf32>
    %75 = arith.truncf %74 : vector<256x128xf32> to vector<256x128xbf16>
    %c5 = arith.constant 5 : index
    %c0_41 = arith.constant 0 : index
    %c0_42 = arith.constant 0 : index
    %76 = vector.load %arg3[%c5, %c0_41, %c0_42] : memref<9x128x128xbf16, #tpu.memory_space<vmem>>, vector<1x128x128xbf16>
    %77 = vector.shape_cast %76 : vector<1x128x128xbf16> to vector<128x128xbf16>
    %cst_43 = arith.constant dense<0.000000e+00> : vector<256x128xf32>
    %78 = tpu.matmul %75, %77, %cst_43 {dimension_numbers = #tpu.dot_dimension_numbers<[1], [0], [0], [1], [0, 0, 1, 1], [], []>} : vector<256x128xbf16>, vector<128x128xbf16>, vector<256x128xf32> -> vector<256x128xf32>
    %79 = arith.addf %71, %78 : vector<256x128xf32>
    %c241_i32 = arith.constant 241 : i32
    %80 = tpu.dynamic_rotate %1 by %c241_i32 dim 0 : vector<256x128xf32>, i32 -> vector<256x128xf32>
    %cst_44 = arith.constant 0.000000e+00 : f32
    %81 = vector.broadcast %cst_44 : f32 to vector<256x128xf32>
    %82 = arith.select %26, %80, %81 : vector<256x128xi1>, vector<256x128xf32>
    %83 = arith.truncf %82 : vector<256x128xf32> to vector<256x128xbf16>
    %c6 = arith.constant 6 : index
    %c0_45 = arith.constant 0 : index
    %c0_46 = arith.constant 0 : index
    %84 = vector.load %arg3[%c6, %c0_45, %c0_46] : memref<9x128x128xbf16, #tpu.memory_space<vmem>>, vector<1x128x128xbf16>
    %85 = vector.shape_cast %84 : vector<1x128x128xbf16> to vector<128x128xbf16>
    %cst_47 = arith.constant dense<0.000000e+00> : vector<256x128xf32>
    %86 = tpu.matmul %83, %85, %cst_47 {dimension_numbers = #tpu.dot_dimension_numbers<[1], [0], [0], [1], [0, 0, 1, 1], [], []>} : vector<256x128xbf16>, vector<128x128xbf16>, vector<256x128xf32> -> vector<256x128xf32>
    %87 = arith.addf %79, %86 : vector<256x128xf32>
    %c240_i32 = arith.constant 240 : i32
    %88 = tpu.dynamic_rotate %1 by %c240_i32 dim 0 : vector<256x128xf32>, i32 -> vector<256x128xf32>
    %cst_48 = arith.constant 0.000000e+00 : f32
    %89 = vector.broadcast %cst_48 : f32 to vector<256x128xf32>
    %90 = arith.select %28, %88, %89 : vector<256x128xi1>, vector<256x128xf32>
    %91 = arith.truncf %90 : vector<256x128xf32> to vector<256x128xbf16>
    %c7 = arith.constant 7 : index
    %c0_49 = arith.constant 0 : index
    %c0_50 = arith.constant 0 : index
    %92 = vector.load %arg3[%c7, %c0_49, %c0_50] : memref<9x128x128xbf16, #tpu.memory_space<vmem>>, vector<1x128x128xbf16>
    %93 = vector.shape_cast %92 : vector<1x128x128xbf16> to vector<128x128xbf16>
    %cst_51 = arith.constant dense<0.000000e+00> : vector<256x128xf32>
    %94 = tpu.matmul %91, %93, %cst_51 {dimension_numbers = #tpu.dot_dimension_numbers<[1], [0], [0], [1], [0, 0, 1, 1], [], []>} : vector<256x128xbf16>, vector<128x128xbf16>, vector<256x128xf32> -> vector<256x128xf32>
    %95 = arith.addf %87, %94 : vector<256x128xf32>
    %c239_i32 = arith.constant 239 : i32
    %96 = tpu.dynamic_rotate %1 by %c239_i32 dim 0 : vector<256x128xf32>, i32 -> vector<256x128xf32>
    %cst_52 = arith.constant 0.000000e+00 : f32
    %97 = vector.broadcast %cst_52 : f32 to vector<256x128xf32>
    %98 = arith.select %33, %96, %97 : vector<256x128xi1>, vector<256x128xf32>
    %99 = arith.truncf %98 : vector<256x128xf32> to vector<256x128xbf16>
    %c8 = arith.constant 8 : index
    %c0_53 = arith.constant 0 : index
    %c0_54 = arith.constant 0 : index
    %100 = vector.load %arg3[%c8, %c0_53, %c0_54] : memref<9x128x128xbf16, #tpu.memory_space<vmem>>, vector<1x128x128xbf16>
    %101 = vector.shape_cast %100 : vector<1x128x128xbf16> to vector<128x128xbf16>
    %cst_55 = arith.constant dense<0.000000e+00> : vector<256x128xf32>
    %102 = tpu.matmul %99, %101, %cst_55 {dimension_numbers = #tpu.dot_dimension_numbers<[1], [0], [0], [1], [0, 0, 1, 1], [], []>} : vector<256x128xbf16>, vector<128x128xbf16>, vector<256x128xf32> -> vector<256x128xf32>
    %103 = arith.addf %95, %102 : vector<256x128xf32>
    %c0_56 = arith.constant 0 : index
    %c0_57 = arith.constant 0 : index
    %104 = vector.load %arg4[%c0_56, %c0_57] : memref<1x128xf32, #tpu.memory_space<vmem>>, vector<1x128xf32>
    %105 = vector.broadcast %104 : vector<1x128xf32> to vector<256x128xf32>
    %106 = arith.mulf %103, %105 : vector<256x128xf32>
    %c0_58 = arith.constant 0 : index
    %c0_59 = arith.constant 0 : index
    %107 = vector.load %arg5[%c0_58, %c0_59] : memref<1x128xf32, #tpu.memory_space<vmem>>, vector<1x128xf32>
    %108 = vector.broadcast %107 : vector<1x128xf32> to vector<256x128xf32>
    %109 = arith.addf %106, %108 : vector<256x128xf32>
    %cst_60 = arith.constant 0.000000e+00 : f32
    %110 = vector.broadcast %cst_60 : f32 to vector<256x128xf32>
    %111 = arith.maximumf %109, %110 : vector<256x128xf32>
    %cst_61 = arith.constant 0.000000e+00 : f32
    %112 = vector.broadcast %cst_61 : f32 to vector<256x128xf32>
    %c17_i32_62 = arith.constant 17 : i32
    %113 = tpu.dynamic_rotate %111 by %c17_i32_62 dim 0 : vector<256x128xf32>, i32 -> vector<256x128xf32>
    %cst_63 = arith.constant 0.000000e+00 : f32
    %114 = vector.broadcast %cst_63 : f32 to vector<256x128xf32>
    %115 = arith.select %10, %113, %114 : vector<256x128xi1>, vector<256x128xf32>
    %116 = arith.truncf %115 : vector<256x128xf32> to vector<256x128xbf16>
    %c0_64 = arith.constant 0 : index
    %c0_65 = arith.constant 0 : index
    %c0_66 = arith.constant 0 : index
    %117 = vector.load %arg6[%c0_64, %c0_65, %c0_66] : memref<9x128x128xbf16, #tpu.memory_space<vmem>>, vector<1x128x128xbf16>
    %118 = vector.shape_cast %117 : vector<1x128x128xbf16> to vector<128x128xbf16>
    %cst_67 = arith.constant dense<0.000000e+00> : vector<256x128xf32>
    %119 = tpu.matmul %116, %118, %cst_67 {dimension_numbers = #tpu.dot_dimension_numbers<[1], [0], [0], [1], [0, 0, 1, 1], [], []>} : vector<256x128xbf16>, vector<128x128xbf16>, vector<256x128xf32> -> vector<256x128xf32>
    %120 = arith.addf %112, %119 : vector<256x128xf32>
    %c16_i32_68 = arith.constant 16 : i32
    %121 = tpu.dynamic_rotate %111 by %c16_i32_68 dim 0 : vector<256x128xf32>, i32 -> vector<256x128xf32>
    %cst_69 = arith.constant 0.000000e+00 : f32
    %122 = vector.broadcast %cst_69 : f32 to vector<256x128xf32>
    %123 = arith.select %12, %121, %122 : vector<256x128xi1>, vector<256x128xf32>
    %124 = arith.truncf %123 : vector<256x128xf32> to vector<256x128xbf16>
    %c1_70 = arith.constant 1 : index
    %c0_71 = arith.constant 0 : index
    %c0_72 = arith.constant 0 : index
    %125 = vector.load %arg6[%c1_70, %c0_71, %c0_72] : memref<9x128x128xbf16, #tpu.memory_space<vmem>>, vector<1x128x128xbf16>
    %126 = vector.shape_cast %125 : vector<1x128x128xbf16> to vector<128x128xbf16>
    %cst_73 = arith.constant dense<0.000000e+00> : vector<256x128xf32>
    %127 = tpu.matmul %124, %126, %cst_73 {dimension_numbers = #tpu.dot_dimension_numbers<[1], [0], [0], [1], [0, 0, 1, 1], [], []>} : vector<256x128xbf16>, vector<128x128xbf16>, vector<256x128xf32> -> vector<256x128xf32>
    %128 = arith.addf %120, %127 : vector<256x128xf32>
    %c15_i32_74 = arith.constant 15 : i32
    %129 = tpu.dynamic_rotate %111 by %c15_i32_74 dim 0 : vector<256x128xf32>, i32 -> vector<256x128xf32>
    %cst_75 = arith.constant 0.000000e+00 : f32
    %130 = vector.broadcast %cst_75 : f32 to vector<256x128xf32>
    %131 = arith.select %17, %129, %130 : vector<256x128xi1>, vector<256x128xf32>
    %132 = arith.truncf %131 : vector<256x128xf32> to vector<256x128xbf16>
    %c2_76 = arith.constant 2 : index
    %c0_77 = arith.constant 0 : index
    %c0_78 = arith.constant 0 : index
    %133 = vector.load %arg6[%c2_76, %c0_77, %c0_78] : memref<9x128x128xbf16, #tpu.memory_space<vmem>>, vector<1x128x128xbf16>
    %134 = vector.shape_cast %133 : vector<1x128x128xbf16> to vector<128x128xbf16>
    %cst_79 = arith.constant dense<0.000000e+00> : vector<256x128xf32>
    %135 = tpu.matmul %132, %134, %cst_79 {dimension_numbers = #tpu.dot_dimension_numbers<[1], [0], [0], [1], [0, 0, 1, 1], [], []>} : vector<256x128xbf16>, vector<128x128xbf16>, vector<256x128xf32> -> vector<256x128xf32>
    %136 = arith.addf %128, %135 : vector<256x128xf32>
    %c1_i32_80 = arith.constant 1 : i32
    %137 = tpu.dynamic_rotate %111 by %c1_i32_80 dim 0 : vector<256x128xf32>, i32 -> vector<256x128xf32>
    %cst_81 = arith.constant 0.000000e+00 : f32
    %138 = vector.broadcast %cst_81 : f32 to vector<256x128xf32>
    %139 = arith.select %19, %137, %138 : vector<256x128xi1>, vector<256x128xf32>
    %140 = arith.truncf %139 : vector<256x128xf32> to vector<256x128xbf16>
    %c3_82 = arith.constant 3 : index
    %c0_83 = arith.constant 0 : index
    %c0_84 = arith.constant 0 : index
    %141 = vector.load %arg6[%c3_82, %c0_83, %c0_84] : memref<9x128x128xbf16, #tpu.memory_space<vmem>>, vector<1x128x128xbf16>
    %142 = vector.shape_cast %141 : vector<1x128x128xbf16> to vector<128x128xbf16>
    %cst_85 = arith.constant dense<0.000000e+00> : vector<256x128xf32>
    %143 = tpu.matmul %140, %142, %cst_85 {dimension_numbers = #tpu.dot_dimension_numbers<[1], [0], [0], [1], [0, 0, 1, 1], [], []>} : vector<256x128xbf16>, vector<128x128xbf16>, vector<256x128xf32> -> vector<256x128xf32>
    %144 = arith.addf %136, %143 : vector<256x128xf32>
    %145 = arith.truncf %111 : vector<256x128xf32> to vector<256x128xbf16>
    %c4_86 = arith.constant 4 : index
    %c0_87 = arith.constant 0 : index
    %c0_88 = arith.constant 0 : index
    %146 = vector.load %arg6[%c4_86, %c0_87, %c0_88] : memref<9x128x128xbf16, #tpu.memory_space<vmem>>, vector<1x128x128xbf16>
    %147 = vector.shape_cast %146 : vector<1x128x128xbf16> to vector<128x128xbf16>
    %cst_89 = arith.constant dense<0.000000e+00> : vector<256x128xf32>
    %148 = tpu.matmul %145, %147, %cst_89 {dimension_numbers = #tpu.dot_dimension_numbers<[1], [0], [0], [1], [0, 0, 1, 1], [], []>} : vector<256x128xbf16>, vector<128x128xbf16>, vector<256x128xf32> -> vector<256x128xf32>
    %149 = arith.addf %144, %148 : vector<256x128xf32>
    %c255_i32_90 = arith.constant 255 : i32
    %150 = tpu.dynamic_rotate %111 by %c255_i32_90 dim 0 : vector<256x128xf32>, i32 -> vector<256x128xf32>
    %cst_91 = arith.constant 0.000000e+00 : f32
    %151 = vector.broadcast %cst_91 : f32 to vector<256x128xf32>
    %152 = arith.select %21, %150, %151 : vector<256x128xi1>, vector<256x128xf32>
    %153 = arith.truncf %152 : vector<256x128xf32> to vector<256x128xbf16>
    %c5_92 = arith.constant 5 : index
    %c0_93 = arith.constant 0 : index
    %c0_94 = arith.constant 0 : index
    %154 = vector.load %arg6[%c5_92, %c0_93, %c0_94] : memref<9x128x128xbf16, #tpu.memory_space<vmem>>, vector<1x128x128xbf16>
    %155 = vector.shape_cast %154 : vector<1x128x128xbf16> to vector<128x128xbf16>
    %cst_95 = arith.constant dense<0.000000e+00> : vector<256x128xf32>
    %156 = tpu.matmul %153, %155, %cst_95 {dimension_numbers = #tpu.dot_dimension_numbers<[1], [0], [0], [1], [0, 0, 1, 1], [], []>} : vector<256x128xbf16>, vector<128x128xbf16>, vector<256x128xf32> -> vector<256x128xf32>
    %157 = arith.addf %149, %156 : vector<256x128xf32>
    %c241_i32_96 = arith.constant 241 : i32
    %158 = tpu.dynamic_rotate %111 by %c241_i32_96 dim 0 : vector<256x128xf32>, i32 -> vector<256x128xf32>
    %cst_97 = arith.constant 0.000000e+00 : f32
    %159 = vector.broadcast %cst_97 : f32 to vector<256x128xf32>
    %160 = arith.select %26, %158, %159 : vector<256x128xi1>, vector<256x128xf32>
    %161 = arith.truncf %160 : vector<256x128xf32> to vector<256x128xbf16>
    %c6_98 = arith.constant 6 : index
    %c0_99 = arith.constant 0 : index
    %c0_100 = arith.constant 0 : index
    %162 = vector.load %arg6[%c6_98, %c0_99, %c0_100] : memref<9x128x128xbf16, #tpu.memory_space<vmem>>, vector<1x128x128xbf16>
    %163 = vector.shape_cast %162 : vector<1x128x128xbf16> to vector<128x128xbf16>
    %cst_101 = arith.constant dense<0.000000e+00> : vector<256x128xf32>
    %164 = tpu.matmul %161, %163, %cst_101 {dimension_numbers = #tpu.dot_dimension_numbers<[1], [0], [0], [1], [0, 0, 1, 1], [], []>} : vector<256x128xbf16>, vector<128x128xbf16>, vector<256x128xf32> -> vector<256x128xf32>
    %165 = arith.addf %157, %164 : vector<256x128xf32>
    %c240_i32_102 = arith.constant 240 : i32
    %166 = tpu.dynamic_rotate %111 by %c240_i32_102 dim 0 : vector<256x128xf32>, i32 -> vector<256x128xf32>
    %cst_103 = arith.constant 0.000000e+00 : f32
    %167 = vector.broadcast %cst_103 : f32 to vector<256x128xf32>
    %168 = arith.select %28, %166, %167 : vector<256x128xi1>, vector<256x128xf32>
    %169 = arith.truncf %168 : vector<256x128xf32> to vector<256x128xbf16>
    %c7_104 = arith.constant 7 : index
    %c0_105 = arith.constant 0 : index
    %c0_106 = arith.constant 0 : index
    %170 = vector.load %arg6[%c7_104, %c0_105, %c0_106] : memref<9x128x128xbf16, #tpu.memory_space<vmem>>, vector<1x128x128xbf16>
    %171 = vector.shape_cast %170 : vector<1x128x128xbf16> to vector<128x128xbf16>
    %cst_107 = arith.constant dense<0.000000e+00> : vector<256x128xf32>
    %172 = tpu.matmul %169, %171, %cst_107 {dimension_numbers = #tpu.dot_dimension_numbers<[1], [0], [0], [1], [0, 0, 1, 1], [], []>} : vector<256x128xbf16>, vector<128x128xbf16>, vector<256x128xf32> -> vector<256x128xf32>
    %173 = arith.addf %165, %172 : vector<256x128xf32>
    %c239_i32_108 = arith.constant 239 : i32
    %174 = tpu.dynamic_rotate %111 by %c239_i32_108 dim 0 : vector<256x128xf32>, i32 -> vector<256x128xf32>
    %cst_109 = arith.constant 0.000000e+00 : f32
    %175 = vector.broadcast %cst_109 : f32 to vector<256x128xf32>
    %176 = arith.select %33, %174, %175 : vector<256x128xi1>, vector<256x128xf32>
    %177 = arith.truncf %176 : vector<256x128xf32> to vector<256x128xbf16>
    %c8_110 = arith.constant 8 : index
    %c0_111 = arith.constant 0 : index
    %c0_112 = arith.constant 0 : index
    %178 = vector.load %arg6[%c8_110, %c0_111, %c0_112] : memref<9x128x128xbf16, #tpu.memory_space<vmem>>, vector<1x128x128xbf16>
    %179 = vector.shape_cast %178 : vector<1x128x128xbf16> to vector<128x128xbf16>
    %cst_113 = arith.constant dense<0.000000e+00> : vector<256x128xf32>
    %180 = tpu.matmul %177, %179, %cst_113 {dimension_numbers = #tpu.dot_dimension_numbers<[1], [0], [0], [1], [0, 0, 1, 1], [], []>} : vector<256x128xbf16>, vector<128x128xbf16>, vector<256x128xf32> -> vector<256x128xf32>
    %181 = arith.addf %173, %180 : vector<256x128xf32>
    %c0_114 = arith.constant 0 : index
    %c0_115 = arith.constant 0 : index
    %182 = vector.load %arg7[%c0_114, %c0_115] : memref<1x128xf32, #tpu.memory_space<vmem>>, vector<1x128xf32>
    %183 = vector.broadcast %182 : vector<1x128xf32> to vector<256x128xf32>
    %184 = arith.mulf %181, %183 : vector<256x128xf32>
    %c0_116 = arith.constant 0 : index
    %c0_117 = arith.constant 0 : index
    %185 = vector.load %arg8[%c0_116, %c0_117] : memref<1x128xf32, #tpu.memory_space<vmem>>, vector<1x128xf32>
    %186 = vector.broadcast %185 : vector<1x128xf32> to vector<256x128xf32>
    %187 = arith.addf %184, %186 : vector<256x128xf32>
    %188 = arith.addf %187, %1 : vector<256x128xf32>
    %cst_118 = arith.constant 0.000000e+00 : f32
    %189 = vector.broadcast %cst_118 : f32 to vector<256x128xf32>
    %190 = arith.maximumf %188, %189 : vector<256x128xf32>
    %c0_119 = arith.constant 0 : index
    %c0_120 = arith.constant 0 : index
    %c0_121 = arith.constant 0 : index
    %191 = vector.load %arg9[%c0_119, %c0_120, %c0_121] : memref<1x256x128xf32, #tpu.memory_space<vmem>>, vector<1x256x128xf32>
    %192 = vector.shape_cast %191 : vector<1x256x128xf32> to vector<256x128xf32>
    %193 = vector.shape_cast %190 : vector<256x128xf32> to vector<1x256x128xf32>
    tpu.vector_store %arg9[%c0_119, %c0_120, %c0_121], %193 {strides = array<i32>} : memref<1x256x128xf32, #tpu.memory_space<vmem>>, vector<1x256x128xf32>,
    return
  }
  func.func @transform_0(%arg0: i32) -> (i32, i32, i32) {
    %c0_i32 = arith.constant 0 : i32
    %c0_i32_0 = arith.constant 0 : i32
    %c0_i32_1 = arith.constant 0 : i32
    return %arg0, %c0_i32, %c0_i32_0 : i32, i32, i32
  }
  func.func @transform_1(%arg0: i32) -> (i32, i32, i32) {
    %c0_i32 = arith.constant 0 : i32
    %c0_i32_0 = arith.constant 0 : i32
    %c0_i32_1 = arith.constant 0 : i32
    %c0_i32_2 = arith.constant 0 : i32
    return %c0_i32, %c0_i32_0, %c0_i32_1 : i32, i32, i32
  }
  func.func @transform_2(%arg0: i32) -> (i32, i32, i32) {
    %c0_i32 = arith.constant 0 : i32
    %c0_i32_0 = arith.constant 0 : i32
    %c0_i32_1 = arith.constant 0 : i32
    %c0_i32_2 = arith.constant 0 : i32
    return %c0_i32, %c0_i32_0, %c0_i32_1 : i32, i32, i32
  }
  func.func @transform_3(%arg0: i32) -> (i32, i32) {
    %c0_i32 = arith.constant 0 : i32
    %c0_i32_0 = arith.constant 0 : i32
    %c0_i32_1 = arith.constant 0 : i32
    return %c0_i32, %c0_i32_0 : i32, i32
  }
  func.func @transform_4(%arg0: i32) -> (i32, i32) {
    %c0_i32 = arith.constant 0 : i32
    %c0_i32_0 = arith.constant 0 : i32
    %c0_i32_1 = arith.constant 0 : i32
    return %c0_i32, %c0_i32_0 : i32, i32
  }
  func.func @transform_5(%arg0: i32) -> (i32, i32, i32) {
    %c0_i32 = arith.constant 0 : i32
    %c0_i32_0 = arith.constant 0 : i32
    %c0_i32_1 = arith.constant 0 : i32
    %c0_i32_2 = arith.constant 0 : i32
    return %c0_i32, %c0_i32_0, %c0_i32_1 : i32, i32, i32
  }
  func.func @transform_6(%arg0: i32) -> (i32, i32) {
    %c0_i32 = arith.constant 0 : i32
    %c0_i32_0 = arith.constant 0 : i32
    %c0_i32_1 = arith.constant 0 : i32
    return %c0_i32, %c0_i32_0 : i32, i32
  }
  func.func @transform_7(%arg0: i32) -> (i32, i32) {
    %c0_i32 = arith.constant 0 : i32
    %c0_i32_0 = arith.constant 0 : i32
    %c0_i32_1 = arith.constant 0 : i32
    return %c0_i32, %c0_i32_0 : i32, i32
  }
  func.func @transform_8(%arg0: i32) -> (i32, i32, i32) {
    %c0_i32 = arith.constant 0 : i32
    %c0_i32_0 = arith.constant 0 : i32
    %c0_i32_1 = arith.constant 0 : i32
    return %arg0, %c0_i32, %c0_i32_0 : i32, i32, i32
  }
}

</mosaic_0001>

<bundles_post_ra>
// kernel: tpu_custom_call.1
= control target key start
LH: loop header
LB: loop body
LE: loop exit
PB: predicated region body
PF: predicated region fallthrough
CT: control target
= control target key end

     0   :  { %s12063_s0 = inlined_call_operand.hbm [shape: f32[2,256,128], index: 0, kind: input, shape index: {}]   ;;  %s12064_s1 = inlined_call_operand.hbm [shape: s32[2,256,128], index: 1, kind: input, shape index: {}]   ;;  %s12065_s2 = inlined_call_operand.hbm [shape: bf16[9,128,128], index: 2, kind: input, shape index: {}]   ;;  %s12066_s3 = inlined_call_operand.vmem [shape: f32[1,128], index: 3, kind: input, shape index: {}]   ;;  %s12067_s4 = inlined_call_operand.vmem [shape: f32[1,128], index: 4, kind: input, shape index: {}]   ;;  %s12068_s5 = inlined_call_operand.hbm [shape: bf16[9,128,128], index: 5, kind: input, shape index: {}]   ;;  %s12069_s6 = inlined_call_operand.vmem [shape: f32[1,128], index: 6, kind: input, shape index: {}]   ;;  %s12070_s7 = inlined_call_operand.vmem [shape: f32[1,128], index: 7, kind: input, shape index: {}]   ;;  %s12071_s8 = inlined_call_operand.hbm [shape: f32[2,256,128], index: 8, kind: output, shape index: {}]  }
   0x1   :  { %12743 = sst [smem:[#allocation239_spill]] %s12064_s1 }
   0x2   :  { %12744 = sst [smem:[#allocation240_spill]] %s12065_s2 }
   0x3   :  { %13 = vsyncpa [#allocation3], 0 }
   0x4   :  { %15 = vsyncpa [#allocation3 + $0x1], 0 }
   0x5   :  { %16 = vsyncpa [#allocation6], 0 }
   0x6   :  { %17 = vsyncpa [#allocation9], 0 }
   0x7   :  { %18 = vsyncpa [#allocation4], 0 }
   0x8   :  { %20 = vsyncpa [#allocation4 + $0x1], 0  ;;  %s7355_s27 = smov 0   ;;  %s7357_s28 = smov 0  }
   0x9   :  { %s7359_s29 = smov 0   ;;  %s7361_s30 = smov 0  }
   0xa LB: > { %s7376_s9 = sadd.s32 4294967295, %s7299_s30   ;;  %s5397_s10 = sadd.s32 4294967294, %s7299_s30   ;;  %s7299_s30 = sphi %s7361_s30, %s14519_s30   ;;  %s7295_s29 = sphi %s7359_s29, %s14518_s29   ;;  %s7291_s28 = sphi %s7357_s28, %s14517_s28   ;;  %s7287_s27 = sphi %s7355_s27, %s14516_s27  }
   0xb   : > { %p46_p0 = scmp.ne.s32.totalorder %s7291_s28, %s7287_s27  ;;  %p47_p1 = scmp.eq.s32.totalorder %s7376_s9, 0 }
   0xc   : > { %p217_p2 = scmp.eq.s32.totalorder %s7376_s9, 1  ;;  %p223_p3 = scmp.eq.s32.totalorder %s5397_s10, 1 }
   0xd   : > { %p7385_p4 = por %p47_p1, %p46_p0  ;;  %p5398_p5 = scmp.ge.s32.totalorder %s7299_s30, 1 }
   0xe   : > { %p7390_p6 = por %p223_p3, %p46_p0  ;;  %p230_p7 = scmp.lt.s32.totalorder %s7299_s30, 3 }
   0xf   : > { %s12747_s1 = sld [smem:[#allocation239_spill]]  ;;  %s7301_s17 = smov [#allocation5]  }
  0x10   : > { %p7398_p8 = pnand %p5398_p5, %p230_p7  ;;  %s243_s18 = sshll.u32 %s7301_s17, 4  ;;  %s244_s18 = int_to_ptr.vmem [resolvable:$true] %s243_s18 }
  0x11   : > { %s12750_s2 = sld [smem:[#allocation240_spill]]  ;;  %s12072_s23 = smov 128  }
  0x12   : > { %p6939_p9 = pneg %p7398_p8  ;;  %s12073_s24 = smov 8  }
  0x13   : > { %s7304_s25 = smov [#allocation7]   ;;  %s7305_s10 = smov 64  }
  0x14   : > { %p7406_p10 = pnand %p6939_p9, %p47_p1  ;;  %s257_s26 = sshll.u32 %s7304_s25, 4  ;;  %s258_s26 = int_to_ptr.vmem [resolvable:$true] %s257_s26 }
  0x15   : > { %s241_s15 = sshll.u32 %s12747_s1, 4  ;;  %s7306_s13 = smov 4   ;;  %s242_s15 = int_to_ptr.hbm [resolvable:$true] %s241_s15 }
  0x16   : > { %6942 = dma.hbm_to_vmem [thread:$0]  (!%p7406_p10), %s242_s15, 8192, %s244_s18, [#allocation6], %s12072_s23, %s12072_s23, %s12073_s24  }
  0x17   : > { %s255_s22 = sshll.u32 %s12750_s2, 4  ;;  %s275_s20 = sshll.u32 %s12068_s5, 4  ;;  %s256_s22 = int_to_ptr.hbm [resolvable:$true] %s255_s22  ;;  %s276_s20 = int_to_ptr.hbm [resolvable:$true] %s275_s20 }
  0x18   : > { %6945 = dma.hbm_to_vmem [thread:$0]  (!%p7406_p10), %s256_s22, 9216, %s258_s26, [#allocation6], %s7305_s10, %s7305_s10, %s7306_s13  }
  0x19   : > { %s7307_s15 = smov [#allocation8]   ;;  %s7427_s21 = sadd.s32 1, %s7299_s30  }
  0x1a   : > { %s277_s18 = sshll.u32 %s7307_s15, 4  ;;  %s30_s25 = ssub.s32 %s7299_s30, %s7427_s21  ;;  %s278_s18 = int_to_ptr.vmem [resolvable:$true] %s277_s18 }
  0x1b   : > { %6948 = dma.hbm_to_vmem [thread:$0]  (!%p7406_p10), %s276_s20, 9216, %s278_s18, [#allocation9], %s7305_s10, %s7305_s10, %s7306_s13  }
  0x1c   : > { %s33_s23 = sadd.s32 1, %s7295_s29  ;;  %p31_p12 = scmp.eq.s32.totalorder %s30_s25, 0 }
  0x1d   : > { %p40_p13 = scmp.ne.s32.totalorder %s7295_s29, %s7291_s28  ;;  %p41_p0 = scmp.eq.s32.totalorder %s7299_s30, 0 }
  0x1e   : > { %s7436_s22 = scalar_select %p31_p12, %s7295_s29, %s33_s23  }
  0x1f   : > { %p7440_p3 = por %p217_p2, %p40_p13  ;;  %p6960_p5 = scmp.lt.s32.totalorder %s7299_s30, 2 }
  0x20   : > { %s297_s14 = sand.u32 1, %s7295_s29   ;;  %s6761_s17 = sshll.u32 %s7299_s30, 8 }
  0x21   : > { %p42_p7 = por %p41_p0, %p40_p13  ;;  %s5403_s19 = sshll.u32 %s297_s14, 8 }
  0x22   : > { %s306_s20 = scalar_lea.hbm %s12063_s0, %s6761_s17  ;;  %s301_s18 = scalar_lea.vmem [#allocation2], %s5403_s19 }
  0x23   : > { %s307_s15 = sshll.u32 %s306_s20, 4  ;;  %s309_s25 = sshll.u32 %s301_s18, 4  ;;  %s308_s15 = int_to_ptr.hbm [resolvable:$true] %s307_s15  ;;  %s310_s25 = int_to_ptr.vmem [resolvable:$true] %s309_s25 }
  0x24   : > { %p7450_p9 = pnand %p6960_p5, %p42_p7  ;;  %s298_s24 = scalar_lea.sflag [#allocation3], %s297_s14 }
  0x25   : > { %s7195_s1 = sshra.s32 %s308_s15, 4  ;;  %s7202_s19 = scalar_lea.hbm %s12063_s0, 512  ;;  %s7196_s1 = int_to_ptr.hbm [resolvable:$true] %s7195_s1 }
  0x26   : > { %s7197_s2 = scalar_lea.hbm %s7196_s1, 256  ;;  %p7199_p10 = pneg %p7450_p9 }
  0x27   : > { %p7198_p2 = scmp.ne.s32.totalorder %s7196_s1, %s7197_s2  ;;  %p7203_p0 = scmp.lt.s32.totalorder %s7196_s1, %s12063_s0 }
  0x28   : > { %p7204_p5 = scmp.lt.s32.totalorder %s7202_s19, %s7197_s2 }
  0x29   : > { %p7200_p12 = pnand %p7199_p10, %p7198_p2 }
  0x2a   : > { %p7205_p7 = por %p7204_p5, %p7203_p0 }
  0x2b   : > { %p7201_p13 = pneg %p7200_p12 }
  0x2d   : > { %p7206_p11 = pnand %p7205_p7, %p7201_p13 }
  0x2f   : > { %7209 = shalt.err (!%p7206_p11)
}
  0x30   : > { %s12753_s14 = smov 8   ;;  %s12754_s18 = smov 128  }
  0x31   : > { %6952 = dma.hbm_to_vmem [thread:$0]  (!%p7450_p9), %s308_s15, 4096, %s310_s25, %s298_s24, %s12754_s18, %s12754_s18, %s12753_s14  }
  0x32   : > { %321 = sbr.rel (%p7398_p8) target bundleno = 1774 (0x6ee), region = 52 }
  0x37   : > { %s7470_s17 = sand.u32 1, %s7291_s28  }
  0x38   : > { %s5407_s1 = sshll.u32 %s7470_s17, 8  ;;  %s324_s2 = scalar_lea.sflag [#allocation3], %s7470_s17 }
  0x39   : > { %s7476_s10 = scalar_lea.vmem [#allocation2], %s5407_s1 }
  0x3a   : > { %7270 = dma.done.wait (%p7385_p4), %s324_s2, 4096  }
  0x3b   : > { %7272 = vsyncadd (%p7385_p4), %s324_s2, 4294963200 }
  0x3c   : > { %7274 = dma.done.wait (%p47_p1), [#allocation6], 17408  }
  0x3d   : > { %7276 = vsyncadd (%p47_p1), [#allocation6], 4294949888 }
  0x3e   : > { %7278 = dma.done.wait (%p47_p1), [#allocation9], 9216  }
  0x3f   : > { %7280 = vsyncadd (%p47_p1), [#allocation9], 4294958080  ;;  %v6777_v0 = vld [vmem:[#allocation7 + $0x78] sm:$0xff]  ;;  %v6776_v2 = vld [vmem:[#allocation7 + $0x70] sm:$0xff]  ;;  %v761_v10 = vlaneseq  ;;  %v12755_v12 = vmov 0  ;;  %v12758_v20 = vmov 0 }
  0x40   : > { %v6769_v1 = vld [vmem:[#allocation7 + $0x38] sm:$0xff]  ;;  %6907 = vmatpush.bf16.msra.mxu2 %v6777_v0  ;;  %v6768_v3 = vld [vmem:[#allocation7 + $0x30] sm:$0xff]  ;;  %973 = vmatpush.bf16.msra.mxu0 %v6777_v0  ;;  %v6775_v4 = vld [vmem:[#allocation7 + $0x68] sm:$0xff]  ;;  %v12762_v23 = vmov 0  ;;  %v12768_v39 = vmov 0  ;;  %v12771_v40 = vmov 0 }
  0x41   : > { %6915 = vmatpush.bf16.msra.mxu3 %v6769_v1  ;;  %1110 = vmatpush.bf16.msra.mxu1 %v6769_v1  ;;  %v6767_v5 = vld [vmem:[#allocation7 + $0x28] sm:$0xff]  ;;  %v7490_v6 = vld [vmem:[#allocation5] sm:$0xff]  ;;  %v6773_v14 = vld [vmem:[#allocation7 + $0x58] sm:$0xff]  ;;  %v7510_v19 = vshrl.u32 %v761_v10, 7  ;;  %v12774_v43 = vmov 0  ;;  %v12777_v46 = vmov 0 }
  0x42   : > { %v6774_v7 = vld [vmem:[#allocation7 + $0x60] sm:$0xff]  ;;  %v7492_v9 = vld [vmem:[#allocation5 + $0x8] sm:$0xff]  ;;  %vm12085_vm0 = vcmp.lt.s32.totalorder %v7490_v6, 15  ;;  %v6765_v15 = vld [vmem:[#allocation7 + $0x18] sm:$0xff]  ;;  %vm12084_vm14 = vcmp.ge.s32.totalorder %v7490_v6, 1  ;;  %v12780_v50 = vmov 0 }
  0x43   : > { %v6766_v8 = vld [vmem:[#allocation7 + $0x20] sm:$0xff]  ;;  %vm12074_vm1 = vcmp.lt.s32.totalorder %v7492_v9, 15  ;;  %v7506_v13 = vld [vmem:[#allocation5 + $0x108] sm:$0xff]  ;;  %v6772_v16 = vld [vmem:[#allocation7 + $0x50] sm:$0xff]  ;;  %vm12086_vm8 = vcmp.lt.s32.totalorder %v7510_v19, 1  ;;  %vm12083_vm7 = vcmp.ge.s32.totalorder %v7492_v9, 1 }
  0x44   : > { %6908 = vmatpush.bf16.msra.mxu2 %v6776_v2  ;;  %974 = vmatpush.bf16.msra.mxu0 %v6776_v2  ;;  %v7496_v11 = vld [vmem:[#allocation5 + $0x100] sm:$0xff]  ;;  %vm7502_vm2 = vmpackc.low %vm12074_vm1, %vm12085_vm0  ;;  %v6764_v17 = vld [vmem:[#allocation7 + $0x10] sm:$0xff]  ;;  %vm12079_vm4 = vcmp.ge.s32.totalorder %v7506_v13, 1  ;;  %v12785_v54 = vmov 0  ;;  %s11775_s11 = scalar_lea.vmem [#allocation10], %s5407_s1  ;;  %s6906_s1 = sshll.u32 %s7376_s9, 8 }
  0x45   : > { %6916 = vmatpush.bf16.msra.mxu3 %v6768_v3  ;;  %1111 = vmatpush.bf16.msra.mxu1 %v6768_v3  ;;  %v12756_v12 = vsel %vm7502_vm2, 4294967295, %v12755_v12  ;;  %vm12082_vm3 = vcmp.ge.s32.totalorder %v7496_v11, 1  ;;  %v390_v18 = vld [vmem:[%s7476_s10 + $0x70] sm:$0xff]  ;;  %v7522_v21 = vld [vmem:[%s7476_s10 + $0x78] sm:$0xff]  ;;  %v7524_v22 = vld [vmem:[#allocation5 + $0x80] sm:$0xff]  ;;  %s5291_s15 = scalar_lea.hbm %s12071_s8, %s6906_s1  ;;  %s5292_s25 = sshll.u32 %s11775_s11, 4  ;;  %s5293_s25 = int_to_ptr.vmem [resolvable:$true] %s5292_s25 }
  0x46   : > { %12757 = vst [vmem:[#allocation15_spill] sm:$0xff] %v12756_v12  ;;  %vm7517_vm5 = vmand %vm12085_vm0, %vm12082_vm3  ;;  %v7534_v24 = vld [vmem:[#allocation5 + $0x88] sm:$0xff]  ;;  %v7539_v26 = vld [vmem:[#allocation5 + $0x180] sm:$0xff]  ;;  %vm12078_vm9 = vcmp.ge.s32.totalorder %v7524_v22, 1  ;;  %v743_v33 = vrot.slane %v390_v18, 7  ;;  %v744_v35 = vrot.slane %v7522_v21, 7  ;;  %v7625_v52 = vpack.c.bf16 %v7522_v21, %v390_v18 }
  0x47   : > { %v12759_v20 = vsel %vm7517_vm5, 4294967295, %v12758_v20  ;;  %12761 = vst [vmem:[#allocation17_spill] sm:$0xff] %v7524_v22  ;;  %vm7530_vm6 = vmand %vm12074_vm1, %vm12079_vm4  ;;  %v7537_v25 = vld [vmem:[%s7476_s10 + $0x68] sm:$0xff]  ;;  %v7544_v28 = vld [vmem:[%s7476_s10 + $0xf0] sm:$0xff]  ;;  %vm12077_vm10 = vcmp.ge.s32.totalorder %v7534_v24, 1  ;;  %vm12076_vm11 = vcmp.ge.s32.totalorder %v7539_v26, 1 }
  0x48   : > { %6909 = vmatpush.bf16.msra.mxu2 %v6775_v4  ;;  %975 = vmatpush.bf16.msra.mxu0 %v6775_v4  ;;  %12760 = vst [vmem:[#allocation16_spill] sm:$0xff] %v12759_v20  ;;  %v12763_v23 = vsel %vm7530_vm6, 4294967295, %v12762_v23  ;;  %v7541_v27 = vld [vmem:[#allocation5 + $0x188] sm:$0xff]  ;;  %v7552_v29 = vld [vmem:[%s7476_s10 + $0xf8] sm:$0xff]  ;;  %v12094_v34 = vrot.slane %v7537_v25, 7  ;;  %v759_v36 = vrot.slane %v7544_v28, 7  ;;  %vm7570_vm13 = vmpackc.low %vm12077_vm10, %vm12078_vm9  ;;  %v780_v44 = vsel %vm12086_vm8, %v743_v33, %v744_v35 }
  0x49   : > { %6917 = vmatpush.bf16.msra.mxu3 %v6767_v5  ;;  %1112 = vmatpush.bf16.msra.mxu1 %v6767_v5  ;;  %12764 = vst [vmem:[#allocation18_spill] sm:$0xff] %v12763_v23  ;;  %v7555_v30 = vld [vmem:[%s7476_s10 + $0xe8] sm:$0xff]  ;;  %vm12075_vm12 = vcmp.ge.s32.totalorder %v7541_v27, 1  ;;  %v760_v38 = vrot.slane %v7552_v29, 7  ;;  %v12769_v39 = vsel %vm7570_vm13, 4294967295, %v12768_v39  ;;  %vm7579_vm15 = vmand %vm12078_vm9, %vm12076_vm11  ;;  %v6770_v41 = vld [vmem:[#allocation7 + $0x40] sm:$0xff]  ;;  %v7643_v55 = vpack.c.bf16 %v7552_v29, %v7544_v28 }
  0x4a   : > { %12765 = vst [vmem:[#allocation19_spill] sm:$0xff] %v7534_v24  ;;  %v6771_v31 = vld [vmem:[#allocation7 + $0x48] sm:$0xff]  ;;  %v12095_v37 = vrot.slane %v7555_v30, 7  ;;  %v12772_v40 = vsel %vm7579_vm15, 4294967295, %v12771_v40  ;;  %v6762_v42 = vld [vmem:[#allocation7] sm:$0xff]  ;;  %vm7588_vm1 = vmand %vm12077_vm10, %vm12075_vm12  ;;  %v781_v45 = vsel %vm12086_vm8, %v12094_v34, %v743_v33  ;;  %v12794_v33 = vmov 0 }
  0x4b   : > { %12766 = vst [vmem:[#allocation20_spill] sm:$0xff] %v7539_v26  ;;  %v6763_v32 = vld [vmem:[#allocation7 + $0x8] sm:$0xff]  ;;  %v12775_v43 = vsel %vm7588_vm1, 4294967295, %v12774_v43  ;;  %vm7604_vm12 = vmand %vm12084_vm14, %vm12082_vm3  ;;  %v764_v47 = vsel %vm12086_vm8, %v759_v36, %v760_v38  ;;  %v6785_v49 = vld [vmem:[#allocation7 + $0xb8] sm:$0xff]  ;;  %v7631_v53 = vpack.c.bf16 %v780_v44, %v781_v45  ;;  %v12809_v45 = vmov 0  ;;  %s5294_s23 = sshll.u32 %s5291_s15, 4  ;;  %s5295_s23 = int_to_ptr.hbm [resolvable:$true] %s5294_s23 }
  0x4c   : > { %6910 = vmatpush.bf16.msra.mxu2 %v6774_v7  ;;  %976 = vmatpush.bf16.msra.mxu0 %v6774_v7  ;;  %12767 = vst [vmem:[#allocation21_spill] sm:$0xff] %v7541_v27  ;;  %v12778_v46 = vsel %vm7604_vm12, 4294967295, %v12777_v46  ;;  %v765_v48 = vsel %vm12086_vm8, %v12095_v37, %v759_v36  ;;  %vm7620_vm11 = vmand %vm12083_vm7, %vm12079_vm4  ;;  %v6793_v51 = vld [vmem:[#allocation7 + $0xf8] sm:$0xff]  ;;  %v6784_v58 = vld [vmem:[#allocation7 + $0xb0] sm:$0xff]  ;;  %v12797_v36 = vmov 0  ;;  %vm12805_vm8 = vcmp.lt.s32.totalorder %v7510_v19, 1 }
  0x4d   : > { %6918 = vmatpush.bf16.msra.mxu3 %v6766_v8  ;;  %1113 = vmatpush.bf16.msra.mxu1 %v6766_v8  ;;  %12770 = vst [vmem:[#allocation22_spill] sm:$0xff] %v12769_v39  ;;  %v12781_v50 = vsel %vm7620_vm11, 4294967295, %v12780_v50  ;;  %vm12080_vm10 = vmpackc.low %vm7588_vm1, %vm7579_vm15  ;;  %v7645_v56 = vpack.c.bf16 %v764_v47, %v765_v48  ;;  %v6801_v57 = vld [vmem:[#allocation7 + $0x138] sm:$0xff]  ;;  %v6792_v59 = vld [vmem:[#allocation7 + $0xf0] sm:$0xff]  ;;  %v12870_v20 = vmov 0  ;;  %s5280_s9 = scalar_lea.sflag [#allocation4], %s7470_s17 }
  0x4e   : > { %12773 = vst [vmem:[#allocation23_spill] sm:$0xff] %v12772_v40  ;;  %vm7637_vm9 = vmpackc.low %vm12083_vm7, %vm12084_vm14  ;;  %v392_v60 = vld [vmem:[%s7476_s10 + $0x80] sm:$0xff]  ;;  %v7662_v61 = vld [vmem:[%s7476_s10 + $0x88] sm:$0xff]  ;;  %s7239_s19 = sshra.s32 %s5295_s23, 4  ;;  %s7245_s18 = scalar_lea.hbm %s12071_s8, 512  ;;  %s7240_s19 = int_to_ptr.hbm [resolvable:$true] %s7239_s19 }
  0x4f   : > { %12776 = vst [vmem:[#allocation24_spill] sm:$0xff] %v12775_v43  ;;  %v12786_v54 = vsel %vm7637_vm9, 4294967295, %v12785_v54  ;;  %vm12081_vm4 = vmpackc.low %vm7620_vm11, %vm7604_vm12  ;;  %v7673_v62 = vld [vmem:[#allocation5 + $0x90] sm:$0xff]  ;;  %v7675_v63 = vld [vmem:[#allocation5 + $0x98] sm:$0xff]  ;;  %v7763_v48 = vpack.c.bf16 %v7662_v61, %v392_v60  ;;  %v12848_v43 = vmov 0  ;;  %s7241_s13 = scalar_lea.hbm %s7240_s19, 256  ;;  %p7246_p11 = scmp.lt.s32.totalorder %s7240_s19, %s12071_s8 }
  0x50   : > { %6911 = vmatpush.bf16.msra.mxu2 %v6773_v14  ;;  %977 = vmatpush.bf16.msra.mxu0 %v6773_v14  ;;  %12779 = vst [vmem:[#allocation25_spill] sm:$0xff] %v12778_v46  ;;  %v7677_v0 = vld [vmem:[#allocation5 + $0x190] sm:$0xff]  ;;  %v7679_v1 = vld [vmem:[#allocation5 + $0x198] sm:$0xff]  ;;  %v7682_v2 = vld [vmem:[%s7476_s10] sm:$0xff]  ;;  %v745_v14 = vrot.slane %v392_v60, 7  ;;  %vm12801_vm0 = vcmp.ge.s32.totalorder %v7675_v63, 1  ;;  %p7242_p1 = scmp.ne.s32.totalorder %s7240_s19, %s7241_s13  ;;  %p7247_p9 = scmp.lt.s32.totalorder %s7245_s18, %s7241_s13 }
  0x51   : > { %6919 = vmatpush.bf16.msra.mxu3 %v6765_v15  ;;  %1114 = vmatpush.bf16.msra.mxu1 %v6765_v15  ;;  %12782 = vst [vmem:[#allocation26_spill] sm:$0xff] %v12781_v50  ;;  %v6800_v3 = vld [vmem:[#allocation7 + $0x130] sm:$0xff]  ;;  %v7685_v4 = vld [vmem:[%s7476_s10 + $0x8] sm:$0xff]  ;;  %vm12091_vm3 = vcmp.ge.s32.totalorder %v7677_v0, 1  ;;  %v12099_v15 = vrot.slane %v7662_v61, 7  ;;  %v729_v18 = vrot.slane %v7682_v2, 7 }
  0x52   : > { %12783 = vst [vmem:[#allocation27_spill] sm:$0xff] %v7625_v52  ;;  %v6783_v5 = vld [vmem:[#allocation7 + $0xa8] sm:$0xff]  ;;  %v7689_v8 = vld [vmem:[#allocation5 + $0x10] sm:$0xff]  ;;  %vm12800_vm1 = vcmp.ge.s32.totalorder %v7679_v1, 1  ;;  %v7973_v12 = vld [vmem:[#allocation5 + $0x138] sm:$0xff]  ;;  %p7243_p4 = pnand %p7242_p1, %p7440_p3  ;;  %p7248_p2 = por %p7247_p9, %p7246_p11 }
  0x53   : > { %12784 = vst [vmem:[#allocation28_spill] sm:$0xff] %v7631_v53  ;;  %v6791_v7 = vld [vmem:[#allocation7 + $0xe8] sm:$0xff]  ;;  %v7691_v10 = vld [vmem:[#allocation5 + $0x110] sm:$0xff]  ;;  %vm12808_vm15 = vcmp.ge.s32.totalorder %v7689_v8, 1  ;;  %v8249_v27 = vld [vmem:[#allocation5 + $0x158] sm:$0xff] }
  0x54   : > { %6912 = vmatpush.bf16.msra.mxu2 %v6772_v16  ;;  %978 = vmatpush.bf16.msra.mxu0 %v6772_v16  ;;  %12787 = vst [vmem:[#allocation29_spill] sm:$0xff] %v12786_v54  ;;  %v7695_v16 = vld [vmem:[#allocation5 + $0x18] sm:$0xff]  ;;  %v7809_v60 = vld [vmem:[#allocation5 + $0xa8] sm:$0xff]  ;;  %p7244_p8 = pneg %p7243_p4 }
  0x55   : > { %6920 = vmatpush.bf16.msra.mxu3 %v6764_v17  ;;  %1115 = vmatpush.bf16.msra.mxu1 %v6764_v17  ;;  %12788 = vst [vmem:[#allocation30_spill] sm:$0xff] %v7643_v55  ;;  %v7697_v17 = vld [vmem:[#allocation5 + $0x118] sm:$0xff]  ;;  %v7833_v37 = vld [vmem:[#allocation5 + $0x28] sm:$0xff] }
  0x56   : > { %12789 = vst [vmem:[#allocation31_spill] sm:$0xff] %v7645_v56  ;;  %v7961_v46 = vld [vmem:[%s7476_s10 + $0x28] sm:$0xff]  ;;  %v7971_v54 = vld [vmem:[#allocation5 + $0x38] sm:$0xff]  ;;  %p7249_p10 = pnand %p7248_p2, %p7244_p8 }
  0x57   : > { %12790 = vst [vmem:[#allocation32_spill] sm:$0xff] %v7673_v62 }
  0x58   : > { %6913 = vmatpush.bf16.msra.mxu2 %v6771_v31  ;;  %979 = vmatpush.bf16.msra.mxu0 %v6771_v31  ;;  %12791 = vst [vmem:[#allocation33_spill] sm:$0xff] %v7675_v63  ;;  %v12096_v31 = vrot.slane %v7685_v4, 7 }
  0x59   : > { %6921 = vmatpush.bf16.msra.mxu3 %v6763_v32  ;;  %1116 = vmatpush.bf16.msra.mxu1 %v6763_v32  ;;  %12792 = vst [vmem:[#allocation34_spill] sm:$0xff] %v7677_v0  ;;  %v6799_v32 = vld [vmem:[#allocation7 + $0x128] sm:$0xff] }
  0x5a   : > { %12793 = vst [vmem:[#allocation35_spill] sm:$0xff] %v7679_v1 }
  0x5b   : > { %12819 = vst [vmem:[#allocation41_spill] sm:$0xff] %v7763_v48 }
  0x5c   : > { %6914 = vmatpush.bf16.msra.mxu2 %v6770_v41  ;;  %980 = vmatpush.bf16.msra.mxu0 %v6770_v41  ;;  %v12802_v41 = vmov 0  ;;  %12828 = vst [vmem:[#allocation47_spill] sm:$0xff] %v7809_v60 }
  0x5d   : > { %6922 = vmatpush.bf16.msra.mxu3 %v6762_v42  ;;  %1117 = vmatpush.bf16.msra.mxu1 %v6762_v42  ;;  %v778_v42 = vsel %vm12805_vm8, %v745_v14, %v12099_v15  ;;  %v12831_v15 = vmov 0  ;;  %12953 = vst [vmem:[#allocation91_spill] sm:$0xff] %v8249_v27 }
  0x5f   : > { %5470 = vmatmul.msk.bf16.vlgmr.msra.gmra.mxu2 %vm7570_vm13, %v7625_v52  ;;  %5446 = vmatmul.msk.bf16.vlgmr.msra.gmra.mxu0 %vm7637_vm9, %v7643_v55  ;;  %vm7726_vm13 = vmand %vm12801_vm0, %vm12800_vm1  ;;  %v6794_v52 = vld [vmem:[#allocation7 + $0x100] sm:$0xff] }
  0x60   : > { %1377 = vmatpush.bf16.msrb.mxu2 %v6785_v49  ;;  %5550 = vmatmul.msk.bf16.vlgmr.msra.gmra.mxu3 %vm12080_vm10, %v7631_v53  ;;  %vm12092_vm10 = vcmp.ge.s32.totalorder %v7673_v62, 1  ;;  %v12803_v41 = vsel %vm7726_vm13, 4294967295, %v12802_v41  ;;  %v12822_v49 = vmov 0  ;;  %v8237_v62 = vld [vmem:[%s7476_s10 + $0x48] sm:$0xff]  ;;  %v8374_v53 = vld [vmem:[%s7476_s10 + $0x50] sm:$0xff] }
  0x61   : > { %1611 = vmatpush.bf16.msrb.mxu3 %v6793_v51  ;;  %5526 = vmatmul.msk.bf16.vlgmr.msra.gmra.mxu1 %vm12081_vm4, %v7645_v56  ;;  %vm12088_vm4 = vcmp.ge.s32.totalorder %v7675_v63, 1  ;;  %vm7716_vm7 = vmand %vm12092_vm10, %vm12091_vm3  ;;  %12804 = vst [vmem:[#allocation38_spill] sm:$0xff] %v12803_v41  ;;  %v7781_v51 = vpack.c.bf16 %v7685_v4, %v7682_v2  ;;  %v8231_v63 = vld [vmem:[#allocation5 + $0x1d8] sm:$0xff] }
  0x62   : > { %1813 = vmatpush.bf16.msrb.mxu0 %v6801_v57  ;;  %vm7706_vm14 = vmpackc.low %vm12088_vm4, %vm12092_vm10  ;;  %v12798_v36 = vsel %vm7716_vm7, 4294967295, %v12797_v36  ;;  %vm12807_vm10 = vcmp.ge.s32.totalorder %v7691_v10, 1  ;;  %12949 = vst [vmem:[#allocation87_spill] sm:$0xff] %v8231_v63 }
  0x63   : > { %v12795_v33 = vsel %vm7706_vm14, 4294967295, %v12794_v33  ;;  %12799 = vst [vmem:[#allocation37_spill] sm:$0xff] %v12798_v36  ;;  %vm12806_vm3 = vmmov %vm12805_vm8  ;;  %vm12815_vm8 = vcmp.ge.s32.totalorder %v7695_v16, 1 }
  0x64   : > { %1378 = vmatpush.bf16.msrb.mxu2 %v6784_v58  ;;  %12796 = vst [vmem:[#allocation36_spill] sm:$0xff] %v12795_v33  ;;  %v779_v44 = vsel %vm12806_vm3, %v744_v35, %v745_v14  ;;  %vm7742_vm4 = vmand %vm12808_vm15, %vm12807_vm10  ;;  %v12816_v35 = vmov 0  ;;  %v7798_v58 = vld [vmem:[#allocation5 + $0xa0] sm:$0xff]  ;;  %v7813_v14 = vld [vmem:[%s7476_s10 + $0x98] sm:$0xff]  ;;  %v12845_v33 = vrot.slane %v7662_v61, 7 }
  0x65   : > { %1612 = vmatpush.bf16.msrb.mxu3 %v6792_v59  ;;  %v12810_v45 = vsel %vm7742_vm4, 4294967295, %v12809_v45  ;;  %vm12812_vm0 = vmmov %vm12806_vm3  ;;  %vm12814_vm3 = vcmp.ge.s32.totalorder %v7697_v17, 1  ;;  %12825 = vst [vmem:[#allocation44_spill] sm:$0xff] %v7781_v51  ;;  %v6782_v59 = vld [vmem:[#allocation7 + $0xa0] sm:$0xff]  ;;  %v12843_v36 = vrot.slane %v7813_v14, 7  ;;  %v12884_v56 = vrot.slane %v7813_v14, 7 }
  0x66   : > { %1814 = vmatpush.bf16.msrb.mxu0 %v6800_v3  ;;  %12811 = vst [vmem:[#allocation39_spill] sm:$0xff] %v12810_v45  ;;  %v794_v47 = vsel %vm12812_vm0, %v729_v18, %v12096_v31  ;;  %vm12813_vm1 = vmmov %vm12812_vm0  ;;  %v6790_v3 = vld [vmem:[#allocation7 + $0xe0] sm:$0xff]  ;;  %v7835_v31 = vld [vmem:[#allocation5 + $0x128] sm:$0xff] }
  0x67   : > { %v795_v21 = vsel %vm12813_vm1, %v760_v38, %v729_v18  ;;  %vm7758_vm12 = vmand %vm12815_vm8, %vm12814_vm3  ;;  %v7769_v38 = vpack.c.bf16 %v778_v42, %v779_v44  ;;  %12827 = vst [vmem:[#allocation46_spill] sm:$0xff] %v7798_v58  ;;  %v7815_v18 = vld [vmem:[#allocation5 + $0x1a0] sm:$0xff]  ;;  %v7820_v42 = vld [vmem:[%s7476_s10 + $0x10] sm:$0xff] }
  0x68   : > { %1379 = vmatpush.bf16.msrb.mxu2 %v6783_v5  ;;  %v12817_v35 = vsel %vm7758_vm12, 4294967295, %v12816_v35  ;;  %vm12097_vm10 = vmpackc.low %vm7726_vm13, %vm7716_vm7  ;;  %v7783_v57 = vpack.c.bf16 %v794_v47, %v795_v21  ;;  %v6798_v5 = vld [vmem:[#allocation7 + $0x120] sm:$0xff]  ;;  %12829 = vst [vmem:[#allocation48_spill] sm:$0xff] %v7815_v18  ;;  %v7823_v44 = vld [vmem:[%s7476_s10 + $0x18] sm:$0xff]  ;;  %vm12834_vm13 = vcmp.ge.s32.totalorder %v7815_v18, 1 }
  0x69   : > { %1613 = vmatpush.bf16.msrb.mxu3 %v6791_v7  ;;  %12818 = vst [vmem:[#allocation40_spill] sm:$0xff] %v12817_v35  ;;  %vm12821_vm0 = vmmov %vm12815_vm8  ;;  %v394_v7 = vld [vmem:[%s7476_s10 + $0x90] sm:$0xff]  ;;  %vm12111_vm8 = vcmp.ge.s32.totalorder %v7798_v58, 1  ;;  %v7827_v47 = vld [vmem:[#allocation5 + $0x20] sm:$0xff]  ;;  %v12851_v39 = vrot.slane %v7823_v44, 7 }
  0x6a   : > { %1815 = vmatpush.bf16.msrb.mxu0 %v6799_v32  ;;  %12820 = vst [vmem:[#allocation42_spill] sm:$0xff] %v7769_v38  ;;  %vm7775_vm1 = vmpackc.low %vm12821_vm0, %vm12808_vm15  ;;  %v7817_v32 = vld [vmem:[#allocation5 + $0x1a8] sm:$0xff]  ;;  %vm12104_vm15 = vcmp.ge.s32.totalorder %v7809_v60, 1  ;;  %v7829_v21 = vld [vmem:[#allocation5 + $0x120] sm:$0xff]  ;;  %v747_v34 = vrot.slane %v394_v7, 7  ;;  %vm12844_vm0 = vcmp.lt.s32.totalorder %v7510_v19, 1 }
  0x6b   : > { %v12823_v49 = vsel %vm7775_vm1, 4294967295, %v12822_v49  ;;  %12826 = vst [vmem:[#allocation45_spill] sm:$0xff] %v7783_v57  ;;  %vm12098_vm3 = vmpackc.low %vm7758_vm12, %vm7742_vm4  ;;  %vm12131_vm7 = vcmp.ge.s32.totalorder %v7829_v21, 1  ;;  %vm12115_vm4 = vcmp.ge.s32.totalorder %v7835_v31, 1  ;;  %vm12839_vm12 = vcmp.ge.s32.totalorder %v7809_v60, 1  ;;  %v7953_v35 = vld [vmem:[#allocation5 + $0x1b0] sm:$0xff] }
  0x6c   : > { %12824 = vst [vmem:[#allocation43_spill] sm:$0xff] %v12823_v49  ;;  %1380 = vmatpush.bf16.msrb.mxu2 %v6782_v59  ;;  %v12835_v59 = vmov 0  ;;  %v776_v41 = vsel %vm12844_vm0, %v747_v34, %v12843_v36  ;;  %v12853_v36 = vrot.slane %v7685_v4, 7  ;;  %v7955_v49 = vld [vmem:[#allocation5 + $0x1b8] sm:$0xff]  ;;  %v8109_v60 = vld [vmem:[#allocation5 + $0x48] sm:$0xff] }
  0x6d   : > { %12830 = vst [vmem:[#allocation49_spill] sm:$0xff] %v7817_v32  ;;  %1614 = vmatpush.bf16.msrb.mxu3 %v6790_v3  ;;  %v731_v3 = vrot.slane %v7820_v42, 7  ;;  %v8111_v58 = vld [vmem:[#allocation5 + $0x148] sm:$0xff] }
  0x6e   : > { %1816 = vmatpush.bf16.msrb.mxu0 %v6798_v5  ;;  %v12840_v5 = vmov 0  ;;  %12868 = vst [vmem:[#allocation60_spill] sm:$0xff] %v7953_v35 }
  0x6f   : > { %5473 = vmatmul.msk.bf16.gmra.mxu2 %vm7706_vm14, %v7763_v48  ;;  %5449 = vmatmul.msk.bf16.gmra.mxu0 %vm7775_vm1, %v7781_v51  ;;  %12869 = vst [vmem:[#allocation61_spill] sm:$0xff] %v7955_v49  ;;  %v12958_v48 = vmov 0 }
  0x70   : > { %5553 = vmatmul.msk.bf16.gmra.mxu3 %vm12097_vm10, %v7769_v38  ;;  %vm7854_vm10 = vmand %vm12111_vm8, %vm12834_vm13  ;;  %12910 = vst [vmem:[#allocation75_spill] sm:$0xff] %v8109_v60  ;;  %v8247_v38 = vld [vmem:[#allocation5 + $0x58] sm:$0xff] }
  0x71   : > { %5529 = vmatmul.msk.bf16.gmra.mxu1 %vm12098_vm3, %v7783_v57  ;;  %vm7844_vm3 = vmpackc.low %vm12104_vm15, %vm12111_vm8  ;;  %v12836_v59 = vsel %vm7854_vm10, 4294967295, %v12835_v59  ;;  %vm12838_vm15 = vcmp.ge.s32.totalorder %v7817_v32, 1  ;;  %vm12847_vm8 = vcmp.ge.s32.totalorder %v7827_v47, 1  ;;  %v8099_v32 = vld [vmem:[%s7476_s10 + $0x38] sm:$0xff]  ;;  %12952 = vst [vmem:[#allocation90_spill] sm:$0xff] %v8247_v38 }
  0x72   : > { %v12832_v15 = vsel %vm7844_vm3, 4294967295, %v12831_v15  ;;  %12837 = vst [vmem:[#allocation51_spill] sm:$0xff] %v12836_v59  ;;  %vm7864_vm1 = vmand %vm12839_vm12, %vm12838_vm15  ;;  %v6797_v59 = vld [vmem:[#allocation7 + $0x118] sm:$0xff] }
  0x73   : > { %12833 = vst [vmem:[#allocation50_spill] sm:$0xff] %v12832_v15  ;;  %v12841_v5 = vsel %vm7864_vm1, 4294967295, %v12840_v5  ;;  %vm12846_vm13 = vmmov %vm12844_vm0  ;;  %v7951_v15 = vld [vmem:[%s7476_s10 + $0xa8] sm:$0xff]  ;;  %1817 = vmatpush.bf16.msrb.mxu0 %v6797_v59 }
  0x74   : > { %12842 = vst [vmem:[#allocation52_spill] sm:$0xff] %v12841_v5  ;;  %v777_v40 = vsel %vm12846_vm13, %v12845_v33, %v747_v34  ;;  %vm7880_vm14 = vmand %vm12847_vm8, %vm12131_vm7  ;;  %v12856_v34 = vmov 0  ;;  %v7901_v33 = vpack.c.bf16 %v7813_v14, %v394_v7  ;;  %v7919_v7 = vpack.c.bf16 %v7823_v44, %v7820_v42  ;;  %v396_v5 = vld [vmem:[%s7476_s10 + $0xa0] sm:$0xff] }
  0x75   : > { %v12849_v43 = vsel %vm7880_vm14, 4294967295, %v12848_v43  ;;  %vm12852_vm12 = vmmov %vm12844_vm0  ;;  %v749_v50 = vrot.slane %v396_v5, 7  ;;  %v12882_v23 = vrot.slane %v7951_v15, 7 }
  0x76   : > { %12850 = vst [vmem:[#allocation53_spill] sm:$0xff] %v12849_v43  ;;  %v792_v45 = vsel %vm12852_vm12, %v731_v3, %v12851_v39  ;;  %vm12854_vm15 = vmmov %vm12844_vm0  ;;  %vm12855_vm0 = vcmp.ge.s32.totalorder %v7833_v37, 1  ;;  %v7907_v39 = vpack.c.bf16 %v776_v41, %v777_v40  ;;  %vm12861_vm12 = vcmp.ge.s32.totalorder %v7827_v47, 1  ;;  %v7936_v40 = vld [vmem:[#allocation5 + $0xb0] sm:$0xff]  ;;  %v6781_v41 = vld [vmem:[#allocation7 + $0x98] sm:$0xff] }
  0x77   : > { %v793_v61 = vsel %vm12854_vm15, %v12853_v36, %v731_v3  ;;  %vm7896_vm13 = vmand %vm12855_vm0, %vm12115_vm4  ;;  %12859 = vst [vmem:[#allocation55_spill] sm:$0xff] %v7901_v33  ;;  %v12863_v3 = vmov 0  ;;  %1381 = vmatpush.bf16.msrb.mxu2 %v6781_v41  ;;  %v7965_v43 = vld [vmem:[#allocation5 + $0x30] sm:$0xff]  ;;  %v12874_v41 = vmov 0 }
  0x78   : > { %v12857_v34 = vsel %vm7896_vm13, 4294967295, %v12856_v34  ;;  %vm12125_vm8 = vmpackc.low %vm7864_vm1, %vm7854_vm10  ;;  %12860 = vst [vmem:[#allocation56_spill] sm:$0xff] %v7907_v39  ;;  %v7921_v36 = vpack.c.bf16 %v792_v45, %v793_v61  ;;  %v7947_v45 = vld [vmem:[#allocation5 + $0xb8] sm:$0xff]  ;;  %vm12873_vm1 = vcmp.ge.s32.totalorder %v7953_v35, 1 }
  0x79   : > { %12858 = vst [vmem:[#allocation54_spill] sm:$0xff] %v12857_v34  ;;  %vm12862_vm15 = vmmov %vm12855_vm0  ;;  %v6789_v61 = vld [vmem:[#allocation7 + $0xd8] sm:$0xff]  ;;  %v7967_v34 = vld [vmem:[#allocation5 + $0x130] sm:$0xff] }
  0x7a   : > { %vm7913_vm0 = vmpackc.low %vm12862_vm15, %vm12861_vm12  ;;  %12866 = vst [vmem:[#allocation58_spill] sm:$0xff] %v7936_v40  ;;  %1615 = vmatpush.bf16.msrb.mxu3 %v6789_v61  ;;  %vm12149_vm12 = vcmp.ge.s32.totalorder %v7936_v40, 1  ;;  %vm12138_vm15 = vcmp.ge.s32.totalorder %v7947_v45, 1  ;;  %vm12173_vm10 = vcmp.ge.s32.totalorder %v7967_v34, 1  ;;  %v12879_v61 = vmov 0 }
  0x7b   : > { %v12864_v3 = vsel %vm7913_vm0, 4294967295, %v12863_v3  ;;  %vm12130_vm4 = vmpackc.low %vm7896_vm13, %vm7880_vm14  ;;  %12867 = vst [vmem:[#allocation59_spill] sm:$0xff] %v7947_v45  ;;  %vm12154_vm14 = vcmp.ge.s32.totalorder %v7973_v12, 1  ;;  %vm12878_vm13 = vcmp.ge.s32.totalorder %v7947_v45, 1  ;;  %v12890_v45 = vrot.slane %v7961_v46, 7 }
  0x7c   : > { %12865 = vst [vmem:[#allocation57_spill] sm:$0xff] %v12864_v3  ;;  %v7958_v3 = vld [vmem:[%s7476_s10 + $0x20] sm:$0xff]  ;;  %vm7982_vm7 = vmpackc.low %vm12138_vm15, %vm12149_vm12  ;;  %vm12877_vm15 = vcmp.ge.s32.totalorder %v7955_v49, 1  ;;  %v12887_v49 = vmov 0 }
  0x7d   : > { %v733_v59 = vrot.slane %v7958_v3, 7  ;;  %v12871_v20 = vsel %vm7982_vm7, 4294967295, %v12870_v20 }
  0x7e   : > { %12872 = vst [vmem:[#allocation62_spill] sm:$0xff] %v12871_v20  ;;  %v8089_v20 = vld [vmem:[%s7476_s10 + $0xb8] sm:$0xff] }
  0x7f   : > { %5476 = vmatmul.msk.bf16.gmra.mxu2 %vm7844_vm3, %v7901_v33  ;;  %5452 = vmatmul.msk.bf16.gmra.mxu0 %vm7913_vm0, %v7919_v7  ;;  %vm8002_vm0 = vmand %vm12878_vm13, %vm12877_vm15  ;;  %vm12894_vm15 = vcmp.ge.s32.totalorder %v7971_v54, 1  ;;  %v12911_v33 = vmov 0  ;;  %v12968_v26 = vrot.slane %v8089_v20, 7 }
  0x80   : > { %5556 = vmatmul.msk.bf16.gmra.mxu3 %vm12125_vm8, %v7907_v39  ;;  %v12880_v61 = vsel %vm8002_vm0, 4294967295, %v12879_v61  ;;  %vm12883_vm8 = vcmp.lt.s32.totalorder %v7510_v19, 1  ;;  %v12925_v39 = vrot.slane %v7951_v15, 7 }
  0x81   : > { %5532 = vmatmul.msk.bf16.gmra.mxu1 %vm12130_vm4, %v7921_v36  ;;  %vm7992_vm4 = vmand %vm12149_vm12, %vm12873_vm1  ;;  %12881 = vst [vmem:[#allocation64_spill] sm:$0xff] %v12880_v61  ;;  %v774_v55 = vsel %vm12883_vm8, %v749_v50, %v12882_v23  ;;  %vm12886_vm12 = vcmp.ge.s32.totalorder %v7965_v43, 1  ;;  %v12892_v23 = vrot.slane %v7823_v44, 7  ;;  %v398_v61 = vld [vmem:[%s7476_s10 + $0xb0] sm:$0xff] }
  0x82   : > { %v12875_v41 = vsel %vm7992_vm4, 4294967295, %v12874_v41  ;;  %vm12885_vm1 = vmmov %vm12883_vm8  ;;  %v751_v18 = vrot.slane %v398_v61, 7 }
  0x83   : > { %12876 = vst [vmem:[#allocation63_spill] sm:$0xff] %v12875_v41  ;;  %v775_v35 = vsel %vm12885_vm1, %v12884_v56, %v749_v50  ;;  %vm8018_vm3 = vmand %vm12886_vm12, %vm12173_vm10  ;;  %v12895_v50 = vmov 0  ;;  %v8039_v56 = vpack.c.bf16 %v7951_v15, %v396_v5  ;;  %v8057_v5 = vpack.c.bf16 %v7961_v46, %v7958_v3  ;;  %v6796_v41 = vld [vmem:[#allocation7 + $0x110] sm:$0xff] }
  0x84   : > { %v12888_v49 = vsel %vm8018_vm3, 4294967295, %v12887_v49  ;;  %vm12891_vm13 = vmmov %vm12885_vm1  ;;  %1818 = vmatpush.bf16.msrb.mxu0 %v6796_v41 }
  0x85   : > { %12889 = vst [vmem:[#allocation65_spill] sm:$0xff] %v12888_v49  ;;  %v790_v40 = vsel %vm12891_vm13, %v733_v59, %v12890_v45  ;;  %vm12893_vm8 = vmmov %vm12885_vm1  ;;  %v8045_v45 = vpack.c.bf16 %v774_v55, %v775_v35  ;;  %vm12900_vm13 = vcmp.ge.s32.totalorder %v7965_v43, 1  ;;  %v8074_v55 = vld [vmem:[#allocation5 + $0xc0] sm:$0xff]  ;;  %v6780_v35 = vld [vmem:[#allocation7 + $0x90] sm:$0xff] }
  0x86   : > { %v791_v14 = vsel %vm12893_vm8, %v12892_v23, %v733_v59  ;;  %vm8034_vm1 = vmand %vm12894_vm15, %vm12154_vm14  ;;  %12898 = vst [vmem:[#allocation67_spill] sm:$0xff] %v8039_v56  ;;  %v12902_v59 = vmov 0  ;;  %1382 = vmatpush.bf16.msrb.mxu2 %v6780_v35  ;;  %v8103_v49 = vld [vmem:[#allocation5 + $0x40] sm:$0xff]  ;;  %v12915_v35 = vmov 0 }
  0x87   : > { %v12896_v50 = vsel %vm8034_vm1, 4294967295, %v12895_v50  ;;  %vm12167_vm12 = vmpackc.low %vm8002_vm0, %vm7992_vm4  ;;  %12899 = vst [vmem:[#allocation68_spill] sm:$0xff] %v8045_v45  ;;  %v8059_v23 = vpack.c.bf16 %v790_v40, %v791_v14  ;;  %v8085_v40 = vld [vmem:[#allocation5 + $0xc8] sm:$0xff]  ;;  %v6788_v14 = vld [vmem:[#allocation7 + $0xd0] sm:$0xff] }
  0x88   : > { %12897 = vst [vmem:[#allocation66_spill] sm:$0xff] %v12896_v50  ;;  %vm12901_vm8 = vmmov %vm12894_vm15  ;;  %1616 = vmatpush.bf16.msrb.mxu3 %v6788_v14  ;;  %v8105_v50 = vld [vmem:[#allocation5 + $0x140] sm:$0xff]  ;;  %v12920_v14 = vmov 0 }
  0x89   : > { %vm8051_vm15 = vmpackc.low %vm12901_vm8, %vm12900_vm13  ;;  %12905 = vst [vmem:[#allocation70_spill] sm:$0xff] %v8074_v55  ;;  %vm12190_vm13 = vcmp.ge.s32.totalorder %v8074_v55, 1  ;;  %vm12180_vm8 = vcmp.ge.s32.totalorder %v8085_v40, 1  ;;  %vm12196_vm4 = vcmp.ge.s32.totalorder %v8105_v50, 1 }
  0x8a   : > { %v12903_v59 = vsel %vm8051_vm15, 4294967295, %v12902_v59  ;;  %vm12172_vm14 = vmpackc.low %vm8034_vm1, %vm8018_vm3  ;;  %12906 = vst [vmem:[#allocation71_spill] sm:$0xff] %v8085_v40  ;;  %vm12217_vm3 = vcmp.ge.s32.totalorder %v8111_v58, 1  ;;  %vm12919_vm1 = vcmp.ge.s32.totalorder %v8085_v40, 1  ;;  %v12931_v40 = vrot.slane %v8099_v32, 7 }
  0x8b   : > { %12904 = vst [vmem:[#allocation69_spill] sm:$0xff] %v12903_v59  ;;  %v8096_v59 = vld [vmem:[%s7476_s10 + $0x30] sm:$0xff]  ;;  %vm8120_vm10 = vmpackc.low %vm12180_vm8, %vm12190_vm13 }
  0x8c   : > { %12909 = vst [vmem:[#allocation74_spill] sm:$0xff] %v8103_v49  ;;  %v735_v41 = vrot.slane %v8096_v59, 7  ;;  %v12912_v33 = vsel %vm8120_vm10, 4294967295, %v12911_v33 }
  0x8d   : > { %12913 = vst [vmem:[#allocation76_spill] sm:$0xff] %v12912_v33  ;;  %v8227_v33 = vld [vmem:[%s7476_s10 + $0xc8] sm:$0xff] }
  0x8f   : > { %5479 = vmatmul.msk.bf16.gmra.mxu2 %vm7982_vm7, %v8039_v56  ;;  %5455 = vmatmul.msk.bf16.gmra.mxu0 %vm8051_vm15, %v8057_v5  ;;  %v8091_v56 = vld [vmem:[#allocation5 + $0x1c0] sm:$0xff] }
  0x90   : > { %5559 = vmatmul.msk.bf16.gmra.mxu3 %vm12167_vm12, %v8045_v45  ;;  %12907 = vst [vmem:[#allocation72_spill] sm:$0xff] %v8091_v56  ;;  %v8093_v45 = vld [vmem:[#allocation5 + $0x1c8] sm:$0xff]  ;;  %vm12914_vm0 = vcmp.ge.s32.totalorder %v8091_v56, 1  ;;  %v12923_v56 = vrot.slane %v8089_v20, 7  ;;  %vm12924_vm12 = vcmp.lt.s32.totalorder %v7510_v19, 1 }
  0x91   : > { %5535 = vmatmul.msk.bf16.gmra.mxu1 %vm12172_vm14, %v8059_v23  ;;  %12908 = vst [vmem:[#allocation73_spill] sm:$0xff] %v8093_v45  ;;  %vm8130_vm14 = vmand %vm12190_vm13, %vm12914_vm0  ;;  %vm12918_vm8 = vcmp.ge.s32.totalorder %v8093_v45, 1  ;;  %vm12927_vm13 = vcmp.ge.s32.totalorder %v8103_v49, 1  ;;  %v12928_v45 = vmov 0 }
  0x92   : > { %v12916_v35 = vsel %vm8130_vm14, 4294967295, %v12915_v35  ;;  %vm8140_vm15 = vmand %vm12919_vm1, %vm12918_vm8  ;;  %v772_v55 = vsel %vm12924_vm12, %v751_v18, %v12923_v56  ;;  %v12933_v56 = vrot.slane %v7961_v46, 7  ;;  %vm12935_vm8 = vcmp.ge.s32.totalorder %v8109_v60, 1 }
  0x93   : > { %12917 = vst [vmem:[#allocation77_spill] sm:$0xff] %v12916_v35  ;;  %v12921_v14 = vsel %vm8140_vm15, 4294967295, %v12920_v14  ;;  %vm12926_vm0 = vmmov %vm12924_vm12  ;;  %v6787_v35 = vld [vmem:[#allocation7 + $0xc8] sm:$0xff] }
  0x94   : > { %12922 = vst [vmem:[#allocation78_spill] sm:$0xff] %v12921_v14  ;;  %v773_v1 = vsel %vm12926_vm0, %v12925_v39, %v751_v18  ;;  %vm8156_vm7 = vmand %vm12927_vm13, %vm12196_vm4  ;;  %v12936_v18 = vmov 0  ;;  %v8177_v39 = vpack.c.bf16 %v8089_v20, %v398_v61  ;;  %v8195_v61 = vpack.c.bf16 %v8099_v32, %v8096_v59  ;;  %v6795_v14 = vld [vmem:[#allocation7 + $0x108] sm:$0xff]  ;;  %1617 = vmatpush.bf16.msrb.mxu3 %v6787_v35 }
  0x95   : > { %v12929_v45 = vsel %vm8156_vm7, 4294967295, %v12928_v45  ;;  %vm12932_vm1 = vmmov %vm12926_vm0  ;;  %1819 = vmatpush.bf16.msrb.mxu0 %v6795_v14  ;;  %v12963_v14 = vmov 0  ;;  %v12976_v20 = vrot.slane %v8099_v32, 7 }
  0x96   : > { %12930 = vst [vmem:[#allocation79_spill] sm:$0xff] %v12929_v45  ;;  %v788_v0 = vsel %vm12932_vm1, %v735_v41, %v12931_v40  ;;  %vm12934_vm12 = vmmov %vm12926_vm0  ;;  %v8183_v40 = vpack.c.bf16 %v772_v55, %v773_v1  ;;  %vm12941_vm1 = vcmp.ge.s32.totalorder %v8103_v49, 1  ;;  %v8213_v1 = vld [vmem:[#allocation5 + $0xd0] sm:$0xff]  ;;  %v6779_v55 = vld [vmem:[#allocation7 + $0x88] sm:$0xff] }
  0x97   : > { %v789_v15 = vsel %vm12934_vm12, %v12933_v56, %v735_v41  ;;  %vm8172_vm0 = vmand %vm12935_vm8, %vm12217_vm3  ;;  %12939 = vst [vmem:[#allocation81_spill] sm:$0xff] %v8177_v39  ;;  %v12943_v41 = vmov 0  ;;  %1383 = vmatpush.bf16.msrb.mxu2 %v6779_v55  ;;  %v8241_v45 = vld [vmem:[#allocation5 + $0x50] sm:$0xff] }
  0x98   : > { %v12937_v18 = vsel %vm8172_vm0, 4294967295, %v12936_v18  ;;  %vm12209_vm13 = vmpackc.low %vm8140_vm15, %vm8130_vm14  ;;  %12940 = vst [vmem:[#allocation82_spill] sm:$0xff] %v8183_v40  ;;  %v8197_v56 = vpack.c.bf16 %v788_v0, %v789_v15  ;;  %v400_v0 = vld [vmem:[%s7476_s10 + $0xc0] sm:$0xff]  ;;  %v8224_v15 = vld [vmem:[#allocation5 + $0xd8] sm:$0xff] }
  0x99   : > { %12938 = vst [vmem:[#allocation80_spill] sm:$0xff] %v12937_v18  ;;  %vm12942_vm12 = vmmov %vm12935_vm8  ;;  %v8243_v18 = vld [vmem:[#allocation5 + $0x150] sm:$0xff]  ;;  %v753_v55 = vrot.slane %v400_v0, 7  ;;  %1820 = vmatpush.bf16.msrb.mxu0 %v6794_v52  ;;  %v12998_v52 = vmov 0 }
  0x9a   : > { %vm8189_vm4 = vmpackc.low %vm12942_vm12, %vm12941_vm1  ;;  %12946 = vst [vmem:[#allocation84_spill] sm:$0xff] %v8213_v1  ;;  %vm12231_vm1 = vcmp.ge.s32.totalorder %v8213_v1, 1  ;;  %vm12222_vm12 = vcmp.ge.s32.totalorder %v8224_v15, 1  ;;  %vm12257_vm14 = vcmp.ge.s32.totalorder %v8243_v18, 1 }
  0x9b   : > { %v12944_v41 = vsel %vm8189_vm4, 4294967295, %v12943_v41  ;;  %vm12216_vm8 = vmpackc.low %vm8172_vm0, %vm8156_vm7  ;;  %12947 = vst [vmem:[#allocation85_spill] sm:$0xff] %v8224_v15  ;;  %vm12236_vm7 = vcmp.ge.s32.totalorder %v8249_v27, 1  ;;  %vm12962_vm0 = vcmp.ge.s32.totalorder %v8224_v15, 1  ;;  %v12974_v15 = vrot.slane %v8237_v62, 7  ;;  %v8390_v27 = vld [vmem:[#allocation5 + $0x168] sm:$0xff] }
  0x9c   : > { %12945 = vst [vmem:[#allocation83_spill] sm:$0xff] %v12944_v41  ;;  %v8234_v41 = vld [vmem:[%s7476_s10 + $0x40] sm:$0xff]  ;;  %vm8258_vm3 = vmpackc.low %vm12222_vm12, %vm12231_vm1  ;;  %vm12961_vm12 = vcmp.ge.s32.totalorder %v8231_v63, 1  ;;  %v12971_v63 = vmov 0 }
  0x9d   : > { %12950 = vst [vmem:[#allocation88_spill] sm:$0xff] %v8241_v45  ;;  %v737_v35 = vrot.slane %v8234_v41, 7 }
  0x9e   : > { %12951 = vst [vmem:[#allocation89_spill] sm:$0xff] %v8243_v18  ;;  %v13002_v18 = vmov 0 }
  0x9f   : > { %5482 = vmatmul.msk.bf16.gmra.mxu2 %vm8120_vm10, %v8177_v39  ;;  %5458 = vmatmul.msk.bf16.gmra.mxu0 %vm8189_vm4, %v8195_v61  ;;  %v8229_v39 = vld [vmem:[#allocation5 + $0x1d0] sm:$0xff]  ;;  %vm12262_vm10 = vcmp.ge.s32.totalorder %v8247_v38, 1  ;;  %vm8278_vm4 = vmand %vm12962_vm0, %vm12961_vm12  ;;  %v8383_v38 = vld [vmem:[#allocation5 + $0x160] sm:$0xff]  ;;  %12997 = vst [vmem:[#allocation110_spill] sm:$0xff] %v8390_v27 }
  0xa0   : > { %5562 = vmatmul.msk.bf16.gmra.mxu3 %vm12209_vm13, %v8183_v40  ;;  %12948 = vst [vmem:[#allocation86_spill] sm:$0xff] %v8229_v39  ;;  %v6809_v40 = vld [vmem:[#allocation7 + $0x178] sm:$0xff]  ;;  %vm12957_vm15 = vcmp.ge.s32.totalorder %v8229_v39, 1  ;;  %v12964_v14 = vsel %vm8278_vm4, 4294967295, %v12963_v14  ;;  %v12966_v39 = vrot.slane %v8227_v33, 7  ;;  %vm12967_vm13 = vcmp.lt.s32.totalorder %v7510_v19, 1 }
  0xa1   : > { %5538 = vmatmul.msk.bf16.gmra.mxu1 %vm12216_vm8, %v8197_v56  ;;  %vm8268_vm8 = vmand %vm12231_vm1, %vm12957_vm15  ;;  %12965 = vst [vmem:[#allocation94_spill] sm:$0xff] %v12964_v14  ;;  %vm12970_vm1 = vcmp.ge.s32.totalorder %v8241_v45, 1  ;;  %v8367_v14 = vld [vmem:[#allocation5 + $0xe8] sm:$0xff] }
  0xa2   : > { %2047 = vmatpush.bf16.msrb.mxu1 %v6809_v40  ;;  %v12954_v40 = vmov 0  ;;  %v12959_v48 = vsel %vm8268_vm8, 4294967295, %v12958_v48  ;;  %v770_v1 = vsel %vm12967_vm13, %v753_v55, %v12966_v39  ;;  %vm12969_vm15 = vmmov %vm12967_vm13  ;;  %12991 = vst [vmem:[#allocation104_spill] sm:$0xff] %v8367_v14 }
  0xa3   : > { %v12955_v40 = vsel %vm8258_vm3, 4294967295, %v12954_v40  ;;  %12960 = vst [vmem:[#allocation93_spill] sm:$0xff] %v12959_v48  ;;  %v771_v24 = vsel %vm12969_vm15, %v12968_v26, %v753_v55  ;;  %vm8294_vm0 = vmand %vm12970_vm1, %vm12257_vm14  ;;  %v12978_v26 = vmov 0  ;;  %v8315_v55 = vpack.c.bf16 %v8227_v33, %v400_v0  ;;  %v8365_v48 = vld [vmem:[#allocation5 + $0xe0] sm:$0xff] }
  0xa4   : > { %12956 = vst [vmem:[#allocation92_spill] sm:$0xff] %v12955_v40  ;;  %v12972_v63 = vsel %vm8294_vm0, 4294967295, %v12971_v63  ;;  %vm12975_vm12 = vmmov %vm12967_vm13  ;;  %v6786_v40 = vld [vmem:[#allocation7 + $0xc0] sm:$0xff] }
  0xa5   : > { %12973 = vst [vmem:[#allocation95_spill] sm:$0xff] %v12972_v63  ;;  %v786_v39 = vsel %vm12975_vm12, %v737_v35, %v12974_v15  ;;  %vm12977_vm13 = vmmov %vm12975_vm12  ;;  %v8321_v15 = vpack.c.bf16 %v770_v1, %v771_v24  ;;  %vm12983_vm12 = vcmp.ge.s32.totalorder %v8241_v45, 1  ;;  %v6808_v24 = vld [vmem:[#allocation7 + $0x170] sm:$0xff]  ;;  %v8354_v1 = vld [vmem:[%s7476_s10 + $0xd8] sm:$0xff]  ;;  %1618 = vmatpush.bf16.msrb.mxu3 %v6786_v40  ;;  %v739_v40 = vrot.slane %v8374_v53, 7 }
  0xa6   : > { %v787_v22 = vsel %vm12977_vm13, %v12976_v20, %v737_v35  ;;  %vm8310_vm15 = vmand %vm12262_vm10, %vm12236_vm7  ;;  %12981 = vst [vmem:[#allocation97_spill] sm:$0xff] %v8315_v55  ;;  %v12984_v35 = vmov 0  ;;  %v8333_v20 = vpack.c.bf16 %v8237_v62, %v8234_v41  ;;  %2048 = vmatpush.bf16.msrb.mxu1 %v6808_v24  ;;  %v8381_v63 = vld [vmem:[#allocation5 + $0x60] sm:$0xff]  ;;  %v8388_v45 = vld [vmem:[#allocation5 + $0x68] sm:$0xff] }
  0xa7   : > { %v12979_v26 = vsel %vm8310_vm15, 4294967295, %v12978_v26  ;;  %vm12250_vm1 = vmpackc.low %vm8278_vm4, %vm8268_vm8  ;;  %12982 = vst [vmem:[#allocation98_spill] sm:$0xff] %v8321_v15  ;;  %v8335_v0 = vpack.c.bf16 %v786_v39, %v787_v22  ;;  %v8351_v22 = vld [vmem:[%s7476_s10 + $0xd0] sm:$0xff]  ;;  %v6778_v39 = vld [vmem:[#allocation7 + $0x80] sm:$0xff]  ;;  %vm12283_vm8 = vcmp.ge.s32.totalorder %v8383_v38, 1 }
  0xa8   : > { %12980 = vst [vmem:[#allocation96_spill] sm:$0xff] %v12979_v26  ;;  %vm8327_vm13 = vmpackc.low %vm12262_vm10, %vm12983_vm12  ;;  %1384 = vmatpush.bf16.msrb.mxu2 %v6778_v39  ;;  %v8377_v26 = vld [vmem:[%s7476_s10 + $0x58] sm:$0xff]  ;;  %vm12275_vm12 = vcmp.ge.s32.totalorder %v8365_v48, 1  ;;  %v755_v24 = vrot.slane %v8351_v22, 7  ;;  %v12280_v39 = vrot.slane %v8354_v1, 7 }
  0xa9   : > { %v12985_v35 = vsel %vm8327_vm13, 4294967295, %v12984_v35  ;;  %12987 = vst [vmem:[#allocation100_spill] sm:$0xff] %v8333_v20  ;;  %vm12253_vm7 = vmpackc.low %vm8310_vm15, %vm8294_vm0  ;;  %vm12284_vm0 = vcmp.ge.s32.totalorder %v8390_v27, 1  ;;  %vm13006_vm15 = vcmp.ge.s32.totalorder %v8367_v14, 1  ;;  %v13057_v27 = vmov 0 }
  0xaa   : > { %12986 = vst [vmem:[#allocation99_spill] sm:$0xff] %v12985_v35  ;;  %v8371_v35 = vld [vmem:[#allocation5 + $0x1e8] sm:$0xff] }
  0xab   : > { %12988 = vst [vmem:[#allocation101_spill] sm:$0xff] %v8335_v0 }
  0xac   : > { %12989 = vst [vmem:[#allocation102_spill] sm:$0xff] %v8351_v22 }
  0xad   : > { %12990 = vst [vmem:[#allocation103_spill] sm:$0xff] %v8365_v48  ;;  %v13011_v48 = vrot.slane %v8227_v33, 7 }
  0xae   : > { %12993 = vst [vmem:[#allocation106_spill] sm:$0xff] %v8371_v35 }
  0xaf   : > { %5485 = vmatmul.msk.bf16.gmra.mxu2 %vm8258_vm3, %v8315_v55  ;;  %5461 = vmatmul.msk.bf16.gmra.mxu0 %vm8327_vm13, %v8333_v20  ;;  %v8369_v55 = vld [vmem:[#allocation5 + $0x1e0] sm:$0xff]  ;;  %12994 = vst [vmem:[#allocation107_spill] sm:$0xff] %v8381_v63 }
  0xb0   : > { %5565 = vmatmul.msk.bf16.gmra.mxu3 %vm12250_vm1, %v8321_v15  ;;  %12992 = vst [vmem:[#allocation105_spill] sm:$0xff] %v8369_v55  ;;  %v6807_v15 = vld [vmem:[#allocation7 + $0x168] sm:$0xff]  ;;  %vm12267_vm1 = vcmp.ge.s32.totalorder %v8367_v14, 1  ;;  %v6806_v20 = vld [vmem:[#allocation7 + $0x160] sm:$0xff]  ;;  %vm13001_vm14 = vcmp.ge.s32.totalorder %v8369_v55, 1  ;;  %v13017_v14 = vrot.slane %v8377_v26, 7 }
  0xb1   : > { %5541 = vmatmul.msk.bf16.gmra.mxu1 %vm12253_vm7, %v8335_v0  ;;  %12995 = vst [vmem:[#allocation108_spill] sm:$0xff] %v8383_v38  ;;  %vm8399_vm10 = vmpackc.low %vm12267_vm1, %vm12275_vm12  ;;  %vm13005_vm1 = vcmp.ge.s32.totalorder %v8371_v35, 1  ;;  %vm13010_vm7 = vcmp.lt.s32.totalorder %v7510_v19, 1  ;;  %v13014_v35 = vmov 0  ;;  %v8457_v38 = vpack.c.bf16 %v8354_v1, %v8351_v22 }
  0xb2   : > { %12996 = vst [vmem:[#allocation109_spill] sm:$0xff] %v8388_v45  ;;  %2049 = vmatpush.bf16.msrb.mxu1 %v6807_v15  ;;  %v12999_v52 = vsel %vm8399_vm10, 4294967295, %v12998_v52  ;;  %vm8409_vm4 = vmand %vm12275_vm12, %vm13001_vm14  ;;  %v13007_v15 = vmov 0  ;;  %v768_v55 = vsel %vm13010_vm7, %v755_v24, %v12280_v39  ;;  %vm13013_vm12 = vcmp.ge.s32.totalorder %v8381_v63, 1 }
  0xb3   : > { %13000 = vst [vmem:[#allocation111_spill] sm:$0xff] %v12999_v52  ;;  %v13003_v18 = vsel %vm8409_vm4, 4294967295, %v13002_v18  ;;  %vm8419_vm13 = vmand %vm13006_vm15, %vm13005_vm1  ;;  %v13019_v39 = vrot.slane %v8237_v62, 7  ;;  %vm13020_vm1 = vcmp.ge.s32.totalorder %v8388_v45, 1  ;;  %v8524_v52 = vld [vmem:[%s7476_s10 + $0xe0] sm:$0xff]  ;;  %v13048_v22 = vmov 0 }
  0xb4   : > { %13004 = vst [vmem:[#allocation112_spill] sm:$0xff] %v13003_v18  ;;  %v13008_v15 = vsel %vm8419_vm13, 4294967295, %v13007_v15  ;;  %vm13012_vm14 = vmmov %vm13010_vm7  ;;  %v13041_v18 = vmov 0  ;;  %v6802_v45 = vld [vmem:[#allocation7 + $0x140] sm:$0xff] }
  0xb5   : > { %13009 = vst [vmem:[#allocation113_spill] sm:$0xff] %v13008_v15  ;;  %v769_v0 = vsel %vm13012_vm14, %v13011_v48, %v755_v24  ;;  %vm8435_vm3 = vmand %vm13013_vm12, %vm12283_vm8  ;;  %v785_v33 = vsel %vm13010_vm7, %v13019_v39, %v739_v40  ;;  %v6805_v48 = vld [vmem:[#allocation7 + $0x158] sm:$0xff]  ;;  %v13021_v24 = vmov 0  ;;  %v8475_v39 = vpack.c.bf16 %v8377_v26, %v8374_v53 }
  0xb6   : > { %v13015_v35 = vsel %vm8435_vm3, 4294967295, %v13014_v35  ;;  %vm13018_vm15 = vmmov %vm13010_vm7  ;;  %2050 = vmatpush.bf16.msrb.mxu1 %v6806_v20  ;;  %13024 = vst [vmem:[#allocation116_spill] sm:$0xff] %v8457_v38  ;;  %v13028_v20 = vmov 0  ;;  %v6825_v15 = vld [vmem:[#allocation7 + $0x1f8] sm:$0xff] }
  0xb7   : > { %13016 = vst [vmem:[#allocation114_spill] sm:$0xff] %v13015_v35  ;;  %v784_v60 = vsel %vm13018_vm15, %v739_v40, %v13017_v14  ;;  %vm8451_vm12 = vmand %vm13020_vm1, %vm12284_vm0  ;;  %v8463_v14 = vpack.c.bf16 %v768_v55, %v769_v0  ;;  %vm13026_vm15 = vcmp.ge.s32.totalorder %v8381_v63, 1  ;;  %vm12286_vm0 = vcmp.lt.s32.totalorder %v7496_v11, 15  ;;  %v6804_v55 = vld [vmem:[#allocation7 + $0x150] sm:$0xff]  ;;  %v8528_v35 = vld [vmem:[#allocation5 + $0x1f8] sm:$0xff]  ;;  %2515 = vmatpush.bf16.msra.mxu3 %v6825_v15 }
  0xb8   : > { %v13022_v24 = vsel %vm8451_vm12, 4294967295, %v13021_v24  ;;  %vm12285_vm14 = vmpackc.low %vm8419_vm13, %vm8409_vm4  ;;  %13031 = vst [vmem:[#allocation119_spill] sm:$0xff] %v8475_v39  ;;  %v8477_v40 = vpack.c.bf16 %v784_v60, %v785_v33  ;;  %v8493_v60 = vld [vmem:[#allocation5 + $0xf0] sm:$0xff]  ;;  %v13035_v0 = vmov 0  ;;  %v6817_v33 = vld [vmem:[#allocation7 + $0x1b8] sm:$0xff] }
  0xb9   : > { %13023 = vst [vmem:[#allocation115_spill] sm:$0xff] %v13022_v24  ;;  %vm13027_vm7 = vmmov %vm13020_vm1  ;;  %2281 = vmatpush.bf16.msra.mxu2 %v6817_v33  ;;  %v8531_v24 = vld [vmem:[%s7476_s10 + $0x60] sm:$0xff]  ;;  %v8541_v33 = vld [vmem:[#allocation5 + $0x78] sm:$0xff] }
  0xba   : > { %13025 = vst [vmem:[#allocation117_spill] sm:$0xff] %v8463_v14  ;;  %vm8469_vm8 = vmpackc.low %vm13027_vm7, %vm13026_vm15  ;;  %2051 = vmatpush.bf16.msrb.mxu1 %v6805_v48  ;;  %vm12299_vm15 = vcmp.lt.s32.totalorder %v7506_v13, 15  ;;  %vm13034_vm7 = vcmp.lt.s32.totalorder %v7490_v6, 15  ;;  %v8513_v48 = vld [vmem:[#allocation5 + $0xf8] sm:$0xff]  ;;  %v741_v15 = vrot.slane %v8531_v24, 7 }
  0xbb   : > { %v13029_v20 = vsel %vm8469_vm8, 4294967295, %v13028_v20  ;;  %13032 = vst [vmem:[#allocation120_spill] sm:$0xff] %v8477_v40  ;;  %vm8500_vm1 = vmand %vm13034_vm7, %vm12286_vm0  ;;  %vm13040_vm7 = vcmp.lt.s32.totalorder %v7492_v9, 15  ;;  %v6833_v63 = vld [vmem:[#allocation7 + $0x238] sm:$0xff] }
  0xbc   : > { %13030 = vst [vmem:[#allocation118_spill] sm:$0xff] %v13029_v20  ;;  %v13036_v0 = vsel %vm8500_vm1, 4294967295, %v13035_v0  ;;  %vm8519_vm0 = vmand %vm13040_vm7, %vm12299_vm15  ;;  %v8526_v20 = vld [vmem:[#allocation5 + $0x1f0] sm:$0xff]  ;;  %vm12310_vm7 = vcmp.ge.s32.totalorder %v8513_v48, 1  ;;  %vm13056_vm15 = vcmp.ge.s32.totalorder %v8513_v48, 1  ;;  %2749 = vmatpush.bf16.msra.mxu0 %v6833_v63  ;;  %v13075_v63 = vmov 0 }
  0xbd   : > { %13033 = vst [vmem:[#allocation121_spill] sm:$0xff] %v8493_v60  ;;  %v13042_v18 = vsel %vm8519_vm0, 4294967295, %v13041_v18 }
  0xbe   : > { %13037 = vst [vmem:[#allocation122_spill] sm:$0xff] %v13036_v0  ;;  %2052 = vmatpush.bf16.msrb.mxu1 %v6804_v55  ;;  %v6803_v0 = vld [vmem:[#allocation7 + $0x148] sm:$0xff]  ;;  %v8543_v55 = vld [vmem:[#allocation5 + $0x178] sm:$0xff] }
  0xbf   : > { %5488 = vmatmul.msk.bf16.gmra.mxu2 %vm8399_vm10, %v8457_v38  ;;  %5464 = vmatmul.msk.bf16.gmra.mxu0 %vm8469_vm8, %v8475_v39  ;;  %13039 = vst [vmem:[#allocation123_spill] sm:$0xff] %v8513_v48  ;;  %v8535_v38 = vld [vmem:[#allocation5 + $0x70] sm:$0xff]  ;;  %vm13055_vm8 = vcmp.ge.s32.totalorder %v8528_v35, 1  ;;  %vm13061_vm10 = vcmp.lt.s32.totalorder %v7510_v19, 1  ;;  %v13062_v39 = vrot.slane %v8354_v1, 7  ;;  %v13069_v48 = vrot.slane %v7537_v25, 7 }
  0xc0   : > { %5568 = vmatmul.msk.bf16.gmra.mxu3 %vm12285_vm14, %v8463_v14  ;;  %vm13038_vm14 = vmpackc.low %vm8451_vm12, %vm8435_vm3  ;;  %13043 = vst [vmem:[#allocation124_spill] sm:$0xff] %v13042_v18  ;;  %v8537_v18 = vld [vmem:[#allocation5 + $0x170] sm:$0xff]  ;;  %v757_v14 = vrot.slane %v8524_v52, 7  ;;  %vm13051_vm3 = vcmp.ge.s32.totalorder %v8526_v20, 1  ;;  %vm13065_vm12 = vcmp.ge.s32.totalorder %v8535_v38, 1 }
  0xc1   : > { %5544 = vmatmul.msk.bf16.gmra.mxu1 %vm13038_vm14, %v8477_v40  ;;  %13044 = vst [vmem:[#allocation125_spill] sm:$0xff] %v8526_v20  ;;  %vm12322_vm14 = vcmp.ge.s32.totalorder %v8493_v60, 1  ;;  %vm8571_vm11 = vmand %vm13056_vm15, %vm13055_vm8  ;;  %v13060_v20 = vrot.slane %v7555_v30, 7  ;;  %vm13073_vm15 = vcmp.ge.s32.totalorder %v8543_v55, 1 }
  0xc2   : > { %13045 = vst [vmem:[#allocation126_spill] sm:$0xff] %v8528_v35  ;;  %2053 = vmatpush.bf16.msrb.mxu1 %v6803_v0  ;;  %vm8551_vm13 = vmpackc.low %vm12310_vm7, %vm12322_vm14  ;;  %v13052_v0 = vmov 0  ;;  %v13058_v27 = vsel %vm8571_vm11, 4294967295, %v13057_v27  ;;  %v13066_v35 = vmov 0 }
  0xc3   : > { %13046 = vst [vmem:[#allocation127_spill] sm:$0xff] %v8537_v18  ;;  %v13049_v22 = vsel %vm8551_vm13, 4294967295, %v13048_v22  ;;  %vm8561_vm4 = vmand %vm12322_vm14, %vm13051_vm3  ;;  %v766_v60 = vsel %vm13061_vm10, %v757_v14, %v13060_v20  ;;  %vm13064_vm14 = vcmp.ge.s32.totalorder %v8537_v18, 1  ;;  %v13071_v20 = vrot.slane %v8377_v26, 7 }
  0xc4   : > { %13047 = vst [vmem:[#allocation128_spill] sm:$0xff] %v8543_v55  ;;  %v13053_v0 = vsel %vm8561_vm4, 4294967295, %v13052_v0  ;;  %vm13063_vm3 = vmmov %vm13061_vm10 }
  0xc5   : > { %13050 = vst [vmem:[#allocation129_spill] sm:$0xff] %v13049_v22  ;;  %v767_v40 = vsel %vm13063_vm3, %v13062_v39, %v757_v14  ;;  %vm8587_vm7 = vmand %vm13065_vm12, %vm13064_vm14  ;;  %v8609_v14 = vpack.c.bf16 %v7555_v30, %v8524_v52  ;;  %vm13080_vm14 = vcmp.ge.s32.totalorder %v8535_v38, 1 }
  0xc6   : > { %13054 = vst [vmem:[#allocation130_spill] sm:$0xff] %v13053_v0  ;;  %v13067_v35 = vsel %vm8587_vm7, 4294967295, %v13066_v35  ;;  %vm13070_vm8 = vmmov %vm13063_vm3  ;;  %2054 = vmatpush.bf16.msrb.mxu1 %v6802_v45  ;;  %v8615_v39 = vpack.c.bf16 %v766_v60, %v767_v40  ;;  %v13082_v45 = vmov 0  ;;  %v1199_v40 = vrot.slane %v7682_v2, 1 }
  0xc7   : > { %13059 = vst [vmem:[#allocation131_spill] sm:$0xff] %v13058_v27  ;;  %v782_v49 = vsel %vm13070_vm8, %v741_v15, %v13069_v48  ;;  %vm13072_vm10 = vmmov %vm13063_vm3  ;;  %vm13074_vm3 = vcmp.ge.s32.totalorder %v8541_v33, 1  ;;  %v8627_v48 = vpack.c.bf16 %v7537_v25, %v8531_v24  ;;  %v12332_v25 = vrot.slane %v7544_v28, 1 }
  0xc8   : > { %13068 = vst [vmem:[#allocation132_spill] sm:$0xff] %v13067_v35  ;;  %v783_v1 = vsel %vm13072_vm10, %v13071_v20, %v741_v15  ;;  %vm8603_vm9 = vmand %vm13074_vm3, %vm13073_vm15  ;;  %v1200_v60 = vrot.slane %v7685_v4, 1  ;;  %v1201_v15 = vrot.slane %v7820_v42, 1  ;;  %v13089_v20 = vmov 0 }
  0xc9   : > { %v13076_v63 = vsel %vm8603_vm9, 4294967295, %v13075_v63  ;;  %13078 = vst [vmem:[#allocation134_spill] sm:$0xff] %v8609_v14  ;;  %vm12328_vm12 = vmpackc.low %vm8571_vm11, %vm8561_vm4  ;;  %v8629_v30 = vpack.c.bf16 %v782_v49, %v783_v1  ;;  %v1230_v49 = vrot.slane %v7552_v29, 1  ;;  %vm13093_vm4 = vcmp.ge.s32.totalorder %v7492_v9, 1 }
  0xca   : > { %13077 = vst [vmem:[#allocation133_spill] sm:$0xff] %v13076_v63  ;;  %vm13081_vm8 = vmmov %vm13074_vm3  ;;  %vm12334_vm3 = vcmp.lt.s32.totalorder %v7510_v19, 7  ;;  %v13094_v29 = vmov 0  ;;  %v13100_v1 = vmov 0  ;;  %v1203_v27 = vrot.slane %v7958_v3, 1 }
  0xcb   : > { %13079 = vst [vmem:[#allocation135_spill] sm:$0xff] %v8615_v39  ;;  %vm8621_vm10 = vmpackc.low %vm13081_vm8, %vm13080_vm14  ;;  %vm13087_vm14 = vcmp.lt.s32.totalorder %v7496_v11, 15  ;;  %vm13088_vm8 = vcmp.ge.s32.totalorder %v7490_v6, 1  ;;  %v1232_v2 = vsel %vm12334_vm3, %v12332_v25, %v1230_v49  ;;  %v1263_v6 = vsel %vm12334_vm3, %v1230_v49, %v1199_v40 }
  0xcc   : > { %v13083_v45 = vsel %vm8621_vm10, 4294967295, %v13082_v45  ;;  %13085 = vst [vmem:[#allocation137_spill] sm:$0xff] %v8627_v48  ;;  %vm12329_vm15 = vmpackc.low %vm8603_vm9, %vm8587_vm7  ;;  %v1261_v4 = vsel %vm12334_vm3, %v1200_v60, %v1201_v15  ;;  %v1262_v42 = vsel %vm12334_vm3, %v1199_v40, %v1200_v60  ;;  %v8689_v9 = vpack.c.bf16 %v1263_v6, %v1232_v2 }
  0xcd   : > { %13084 = vst [vmem:[#allocation136_spill] sm:$0xff] %v13083_v45  ;;  %v8699_v49 = vpack.c.bf16 %v1261_v4, %v1262_v42  ;;  %vm13104_vm3 = vcmp.lt.s32.totalorder %v7496_v11, 15  ;;  %v13106_v40 = vmov 0  ;;  %v1202_v42 = vrot.slane %v7823_v44, 1 }
  0xce   : > { %13086 = vst [vmem:[#allocation138_spill] sm:$0xff] %v8629_v30  ;;  %vm13117_vm9 = vcmp.lt.s32.totalorder %v7510_v19, 7  ;;  %v1205_v35 = vrot.slane %v8096_v59, 1 }
  0xcf   : > { %5491 = vmatmul.msk.bf16.gmra.mxu2 %vm8551_vm13, %v8609_v14  ;;  %5467 = vmatmul.msk.bf16.gmra.mxu0 %vm8621_vm10, %v8627_v48  ;;  %13097 = vst [vmem:[#allocation141_spill] sm:$0xff] %v8689_v9  ;;  %vm13105_vm13 = vcmp.lt.s32.totalorder %v7506_v13, 15  ;;  %v1259_v44 = vsel %vm13117_vm9, %v1202_v42, %v1203_v27  ;;  %vm13118_vm10 = vmmov %vm13117_vm9  ;;  %vm13124_vm9 = vcmp.lt.s32.totalorder %v7691_v10, 15 }
  0xd0   : > { %5571 = vmatmul.msk.bf16.gmra.mxu3 %vm12328_vm12, %v8615_v39  ;;  %vm8663_vm12 = vmand %vm13088_vm8, %vm13087_vm14  ;;  %vm13099_vm14 = vcmp.ge.s32.totalorder %v7506_v13, 1  ;;  %13103 = vst [vmem:[#allocation143_spill] sm:$0xff] %v8699_v49  ;;  %v1260_v3 = vsel %vm13118_vm10, %v1201_v15, %v1202_v42  ;;  %vm13125_vm10 = vcmp.lt.s32.totalorder %v7697_v17, 15 }
  0xd1   : > { %5547 = vmatmul.msk.bf16.gmra.mxu1 %vm12329_vm15, %v8629_v30  ;;  %v13090_v20 = vsel %vm8663_vm12, 4294967295, %v13089_v20  ;;  %vm13092_vm15 = vcmp.lt.s32.totalorder %v7506_v13, 15  ;;  %vm8705_vm7 = vmpackc.low %vm13105_vm13, %vm13104_vm3  ;;  %v6824_v13 = vld [vmem:[#allocation7 + $0x1f0] sm:$0xff]  ;;  %vm12345_vm13 = vcmp.lt.s32.totalorder %v7691_v10, 15  ;;  %vm12344_vm3 = vcmp.lt.s32.totalorder %v7697_v17, 15 }
  0xd2   : > { %13091 = vst [vmem:[#allocation139_spill] sm:$0xff] %v13090_v20  ;;  %vm8671_vm11 = vmand %vm13093_vm4, %vm13092_vm15  ;;  %vm13098_vm15 = vcmp.ge.s32.totalorder %v7496_v11, 1  ;;  %v13107_v40 = vsel %vm8705_vm7, 4294967295, %v13106_v40  ;;  %v6816_v11 = vld [vmem:[#allocation7 + $0x1b0] sm:$0xff]  ;;  %2516 = vmatpush.bf16.msra.mxu3 %v6824_v13  ;;  %v13114_v13 = vmov 0 }
  0xd3   : > { %v13095_v29 = vsel %vm8671_vm11, 4294967295, %v13094_v29  ;;  %vm12340_vm4 = vmpackc.low %vm8671_vm11, %vm8663_vm12  ;;  %13108 = vst [vmem:[#allocation144_spill] sm:$0xff] %v13107_v40  ;;  %2282 = vmatpush.bf16.msra.mxu2 %v6816_v11  ;;  %v6832_v40 = vld [vmem:[#allocation7 + $0x230] sm:$0xff]  ;;  %v13110_v11 = vmov 0 }
  0xd4   : > { %13096 = vst [vmem:[#allocation140_spill] sm:$0xff] %v13095_v29  ;;  %vm8695_vm8 = vmpackc.low %vm13099_vm14, %vm13098_vm15  ;;  %vm13109_vm15 = vcmp.ge.s32.totalorder %v7689_v8, 1  ;;  %2750 = vmatpush.bf16.msra.mxu0 %v6832_v40  ;;  %v8766_v40 = vpack.c.bf16 %v1259_v44, %v1260_v3  ;;  %v1210_v29 = vrot.slane %v8377_v26, 1  ;;  %v13204_v26 = vld [vmem:[#allocation90_spill] sm:$0xff] }
  0xd5   : > { %v13101_v1 = vsel %vm8695_vm8, 4294967295, %v13100_v1  ;;  %vm8736_vm14 = vmand %vm13109_vm15, %vm12345_vm13 }
  0xd6   : > { %13102 = vst [vmem:[#allocation142_spill] sm:$0xff] %v13101_v1  ;;  %v13111_v11 = vsel %vm8736_vm14, 4294967295, %v13110_v11  ;;  %v13195_v1 = vld [vmem:[#allocation100_spill] sm:$0xff] }
  0xd7   : > { %13112 = vst [vmem:[#allocation145_spill] sm:$0xff] %v13111_v11 }
  0xdc   : > { %v982_v25 = vpop.f32.mrf.mxu0 }
  0xde   : > { %v1119_v0 = vpop.f32.mrf.mxu1 }
  0xdf   : > { %v8709_v60 = vadd.f32 %v1119_v0, %v982_v25  ;;  %5606 = vmatmul.msk.bf16.vlgmr.msrb.gmra.mxu2 %vm12340_vm4, %v8689_v9  ;;  %1821 = vmatmul.bf16.vlgmr.msrb.gmra.mxu0 %v7781_v51  ;;  %vm13113_vm4 = vcmp.ge.s32.totalorder %v7695_v16, 1  ;;  %v13121_v16 = vmov 0 }
  0xe0   : > { %5686 = vmatmul.msk.bf16.vlgmr.msrb.gmra.mxu3 %vm8695_vm8, %v7783_v57  ;;  %vm8772_vm8 = vmpackc.low %vm13125_vm10, %vm13124_vm9  ;;  %vm13129_vm9 = vcmp.ge.s32.totalorder %v7827_v47, 1  ;;  %v13198_v57 = vld [vmem:[#allocation91_spill] sm:$0xff] }
  0xe1   : > { %5798 = vmatmul.msk.bf16.vlgmr.msrb.gmra.mxu1 %vm8705_vm7, %v8699_v49  ;;  %vm8744_vm7 = vmand %vm13113_vm4, %vm12344_vm3  ;;  %vm13119_vm4 = vcmp.ge.s32.totalorder %v7691_v10, 1  ;;  %vm13120_vm3 = vcmp.ge.s32.totalorder %v7697_v17, 1 }
  0xe2   : > { %v1022_v0 = vpop.f32.mrf.mxu2  ;;  %v13115_v13 = vsel %vm8744_vm7, 4294967295, %v13114_v13  ;;  %vm12350_vm15 = vmpackc.low %vm8744_vm7, %vm8736_vm14 }
  0xe3   : > { %v1159_v25 = vpop.f32.mrf.mxu3  ;;  %13116 = vst [vmem:[#allocation146_spill] sm:$0xff] %v13115_v13  ;;  %vm8762_vm13 = vmpackc.low %vm13120_vm3, %vm13119_vm4  ;;  %vm12355_vm3 = vcmp.lt.s32.totalorder %v7829_v21, 15  ;;  %vm12354_vm4 = vcmp.lt.s32.totalorder %v7835_v31, 15 }
  0xe4   : > { %v8724_v2 = vadd.f32 %v1159_v25, %v1022_v0  ;;  %v984_v6 = vpop.f32.mrf.mxu0  ;;  %v13122_v16 = vsel %vm8762_vm13, 4294967295, %v13121_v16  ;;  %vm8803_vm10 = vmand %vm13129_vm9, %vm12355_vm3 }
  0xe5   : > { %13123 = vst [vmem:[#allocation147_spill] sm:$0xff] %v13122_v16  ;;  %v1207_v16 = vrot.slane %v8234_v41, 1 }
  0xe6   : > { %v1121_v4 = vpop.f32.mrf.mxu1 }
  0xe7   : > { %v8730_v22 = vadd.f32 %v1121_v4, %v984_v6  ;;  %v13126_v4 = vmov 0 }
  0xe8   : > { %v13127_v4 = vsel %vm8772_vm8, 4294967295, %v13126_v4 }
  0xe9   : > { %13128 = vst [vmem:[#allocation148_spill] sm:$0xff] %v13127_v4  ;;  %v13130_v4 = vmov 0 }
  0xea   : > { %v1024_v8 = vpop.f32.mrf.mxu2  ;;  %v13131_v4 = vsel %vm8803_vm10, 4294967295, %v13130_v4 }
  0xeb   : > { %v1161_v0 = vpop.f32.mrf.mxu3  ;;  %13132 = vst [vmem:[#allocation149_spill] sm:$0xff] %v13131_v4 }
  0xec   : > { %v8752_v25 = vadd.f32 %v1161_v0, %v1024_v8  ;;  %v987_v15 = vpop.f32.mrf.mxu0 }
  0xee   : > { %v1124_v6 = vpop.f32.mrf.mxu1 }
  0xef   : > { %v8776_v42 = vadd.f32 %v1124_v6, %v987_v15  ;;  %5609 = vmatmul.msk.bf16.gmra.mxu2 %vm12350_vm15, %v8699_v49  ;;  %1826 = vmatmul.bf16.gmra.mxu0 %v7919_v7  ;;  %v1204_v6 = vrot.slane %v7961_v46, 1  ;;  %vm13133_vm15 = vcmp.ge.s32.totalorder %v7833_v37, 1  ;;  %v13141_v37 = vmov 0 }
  0xf0   : > { %5689 = vmatmul.msk.bf16.gmra.mxu3 %vm8762_vm13, %v7921_v36  ;;  %vm13137_vm13 = vcmp.lt.s32.totalorder %v7510_v19, 7 }
  0xf1   : > { %5801 = vmatmul.msk.bf16.gmra.mxu1 %vm8772_vm8, %v8766_v40  ;;  %vm8811_vm8 = vmand %vm13133_vm15, %vm12354_vm4  ;;  %v1257_v46 = vsel %vm13137_vm13, %v1204_v6, %v1205_v35  ;;  %vm13139_vm15 = vcmp.ge.s32.totalorder %v7829_v21, 1  ;;  %vm13140_vm4 = vcmp.ge.s32.totalorder %v7835_v31, 1 }
  0xf2   : > { %v1027_v44 = vpop.f32.mrf.mxu2  ;;  %vm13138_vm14 = vmmov %vm13137_vm13  ;;  %vm13144_vm13 = vcmp.lt.s32.totalorder %v7829_v21, 15 }
  0xf3   : > { %v1164_v3 = vpop.f32.mrf.mxu3  ;;  %v1258_v59 = vsel %vm13138_vm14, %v1203_v27, %v1204_v6  ;;  %vm12364_vm9 = vmpackc.low %vm8811_vm8, %vm8803_vm10  ;;  %vm13145_vm14 = vcmp.lt.s32.totalorder %v7835_v31, 15 }
  0xf4   : > { %v8791_v8 = vadd.f32 %v1164_v3, %v1027_v44  ;;  %v989_v0 = vpop.f32.mrf.mxu0  ;;  %v13134_v44 = vmov 0  ;;  %vm8829_vm3 = vmpackc.low %vm13140_vm4, %vm13139_vm15  ;;  %vm12369_vm4 = vcmp.lt.s32.totalorder %v7967_v34, 15  ;;  %vm12368_vm15 = vcmp.lt.s32.totalorder %v7973_v12, 15 }
  0xf5   : > { %v13135_v44 = vsel %vm8811_vm8, 4294967295, %v13134_v44  ;;  %v13142_v37 = vsel %vm8829_vm3, 4294967295, %v13141_v37  ;;  %vm8839_vm7 = vmpackc.low %vm13145_vm14, %vm13144_vm13  ;;  %vm13149_vm13 = vcmp.ge.s32.totalorder %v7965_v43, 1 }
  0xf6   : > { %v1126_v15 = vpop.f32.mrf.mxu1  ;;  %13136 = vst [vmem:[#allocation150_spill] sm:$0xff] %v13135_v44  ;;  %vm8870_vm14 = vmand %vm13149_vm13, %vm12369_vm4 }
  0xf7   : > { %v8797_v63 = vadd.f32 %v1126_v15, %v989_v0  ;;  %13143 = vst [vmem:[#allocation151_spill] sm:$0xff] %v13142_v37  ;;  %v8833_v15 = vpack.c.bf16 %v1257_v46, %v1258_v59  ;;  %v6815_v46 = vld [vmem:[#allocation7 + $0x1a8] sm:$0xff]  ;;  %v1206_v37 = vrot.slane %v8099_v32, 1 }
  0xf8   : > { %v6823_v59 = vld [vmem:[#allocation7 + $0x1e8] sm:$0xff]  ;;  %2283 = vmatpush.bf16.msra.mxu2 %v6815_v46  ;;  %v13150_v46 = vmov 0 }
  0xf9   : > { %2517 = vmatpush.bf16.msra.mxu3 %v6823_v59  ;;  %v13151_v46 = vsel %vm8870_vm14, 4294967295, %v13150_v46  ;;  %v13154_v59 = vmov 0 }
  0xfa   : > { %v1029_v3 = vpop.f32.mrf.mxu2  ;;  %13152 = vst [vmem:[#allocation153_spill] sm:$0xff] %v13151_v46 }
  0xfb   : > { %v1166_v47 = vpop.f32.mrf.mxu3 }
  0xfc   : > { %v8819_v0 = vadd.f32 %v1166_v47, %v1029_v3  ;;  %v992_v27 = vpop.f32.mrf.mxu0  ;;  %v13146_v3 = vmov 0 }
  0xfd   : > { %v13147_v3 = vsel %vm8839_vm7, 4294967295, %v13146_v3 }
  0xfe   : > { %v1129_v6 = vpop.f32.mrf.mxu1  ;;  %13148 = vst [vmem:[#allocation152_spill] sm:$0xff] %v13147_v3  ;;  %v6831_v3 = vld [vmem:[#allocation7 + $0x228] sm:$0xff] }
  0xff   : > { %v8843_v47 = vadd.f32 %v1129_v6, %v992_v27  ;;  %5612 = vmatmul.msk.bf16.gmra.mxu2 %vm12364_vm9, %v8766_v40  ;;  %1831 = vmatmul.bf16.gmra.mxu0 %v8057_v5  ;;  %vm13153_vm9 = vcmp.ge.s32.totalorder %v7971_v54, 1  ;;  %v13161_v54 = vmov 0 }
 0x100   : > { %5692 = vmatmul.msk.bf16.gmra.mxu3 %vm8829_vm3, %v8059_v23  ;;  %2751 = vmatpush.bf16.msra.mxu0 %v6831_v3  ;;  %vm13157_vm3 = vcmp.lt.s32.totalorder %v7510_v19, 7 }
 0x101   : > { %5804 = vmatmul.msk.bf16.gmra.mxu1 %vm8839_vm7, %v8833_v15  ;;  %vm8878_vm7 = vmand %vm13153_vm9, %vm12368_vm15  ;;  %v1255_v32 = vsel %vm13157_vm3, %v1206_v37, %v1207_v16  ;;  %vm13159_vm9 = vcmp.ge.s32.totalorder %v7967_v34, 1  ;;  %vm13160_vm15 = vcmp.ge.s32.totalorder %v7973_v12, 1 }
 0x102   : > { %v1032_v27 = vpop.f32.mrf.mxu2  ;;  %v13155_v59 = vsel %vm8878_vm7, 4294967295, %v13154_v59  ;;  %vm13158_vm10 = vmmov %vm13157_vm3  ;;  %vm13164_vm3 = vcmp.lt.s32.totalorder %v7967_v34, 15 }
 0x103   : > { %v1169_v6 = vpop.f32.mrf.mxu3  ;;  %13156 = vst [vmem:[#allocation154_spill] sm:$0xff] %v13155_v59  ;;  %v1256_v41 = vsel %vm13158_vm10, %v1205_v35, %v1206_v37  ;;  %vm12375_vm13 = vmpackc.low %vm8878_vm7, %vm8870_vm14  ;;  %vm13165_vm10 = vcmp.lt.s32.totalorder %v7973_v12, 15  ;;  %v13172_v59 = vmov 0 }
 0x104   : > { %v8858_v45 = vadd.f32 %v1169_v6, %v1032_v27  ;;  %v994_v4 = vpop.f32.mrf.mxu0  ;;  %vm8896_vm4 = vmpackc.low %vm13160_vm15, %vm13159_vm9  ;;  %v8900_v3 = vpack.c.bf16 %v1255_v32, %v1256_v41  ;;  %v13166_v27 = vmov 0  ;;  %vm12380_vm15 = vcmp.lt.s32.totalorder %v8105_v50, 15 }
 0x105   : > { %v13162_v54 = vsel %vm8896_vm4, 4294967295, %v13161_v54  ;;  %vm8906_vm8 = vmpackc.low %vm13165_vm10, %vm13164_vm3  ;;  %vm12379_vm9 = vcmp.lt.s32.totalorder %v8111_v58, 15 }
 0x106   : > { %v1131_v44 = vpop.f32.mrf.mxu1  ;;  %13163 = vst [vmem:[#allocation155_spill] sm:$0xff] %v13162_v54  ;;  %v13167_v27 = vsel %vm8906_vm8, 4294967295, %v13166_v27 }
 0x107   : > { %v8864_v11 = vadd.f32 %v1131_v44, %v994_v4  ;;  %13168 = vst [vmem:[#allocation156_spill] sm:$0xff] %v13167_v27  ;;  %v13170_v27 = vld [vmem:[#allocation74_spill] sm:$0xff] }
 0x108   : > { %vm13171_vm3 = vcmp.ge.s32.totalorder %v13170_v27, 1 }
 0x109   : > { %vm8937_vm10 = vmand %vm13171_vm3, %vm12380_vm15 }
 0x10a   : > { %v1034_v43 = vpop.f32.mrf.mxu2  ;;  %v13173_v59 = vsel %vm8937_vm10, 4294967295, %v13172_v59 }
 0x10b   : > { %v1171_v4 = vpop.f32.mrf.mxu3  ;;  %13174 = vst [vmem:[#allocation74_spill] sm:$0xff] %v13173_v59  ;;  %v13197_v59 = vld [vmem:[#allocation89_spill] sm:$0xff] }
 0x10c   : > { %v8886_v44 = vadd.f32 %v1171_v4, %v1034_v43  ;;  %v997_v35 = vpop.f32.mrf.mxu0  ;;  %v1208_v4 = vrot.slane %v8237_v62, 1 }
 0x10e   : > { %v1134_v37 = vpop.f32.mrf.mxu1 }
 0x10f   : > { %v8910_v6 = vadd.f32 %v1134_v37, %v997_v35  ;;  %5615 = vmatmul.msk.bf16.gmra.mxu2 %vm12375_vm13, %v8833_v15  ;;  %1836 = vmatmul.bf16.gmra.mxu0 %v8195_v61  ;;  %v1209_v35 = vrot.slane %v8374_v53, 1  ;;  %v13177_v53 = vmov 0 }
 0x110   : > { %5695 = vmatmul.msk.bf16.gmra.mxu3 %vm8896_vm4, %v8197_v56  ;;  %vm13180_vm4 = vcmp.lt.s32.totalorder %v7510_v19, 7 }
 0x111   : > { %5807 = vmatmul.msk.bf16.gmra.mxu1 %vm8906_vm8, %v8900_v3  ;;  %v1253_v62 = vsel %vm13180_vm4, %v1208_v4, %v1209_v35  ;;  %vm13181_vm14 = vmmov %vm13180_vm4  ;;  %vm13189_vm4 = vcmp.lt.s32.totalorder %v8105_v50, 15 }
 0x112   : > { %v1037_v32 = vpop.f32.mrf.mxu2 }
 0x113   : > { %v1174_v41 = vpop.f32.mrf.mxu3 }
 0x114   : > { %v8925_v43 = vadd.f32 %v1174_v41, %v1037_v32  ;;  %v999_v37 = vpop.f32.mrf.mxu0  ;;  %v13175_v32 = vld [vmem:[#allocation75_spill] sm:$0xff] }
 0x115   : > { %vm13176_vm13 = vcmp.ge.s32.totalorder %v13175_v32, 1  ;;  %v13185_v32 = vmov 0 }
 0x116   : > { %13169 = vst [vmem:[#allocation157_spill] sm:$0xff] %v8925_v43  ;;  %v1136_v46 = vpop.f32.mrf.mxu1  ;;  %vm8945_vm8 = vmand %vm13176_vm13, %vm12379_vm9  ;;  %vm13183_vm13 = vcmp.ge.s32.totalorder %v8105_v50, 1  ;;  %vm13184_vm9 = vcmp.ge.s32.totalorder %v8111_v58, 1 }
 0x117   : > { %v8931_v54 = vadd.f32 %v1136_v46, %v999_v37  ;;  %v13178_v53 = vsel %vm8945_vm8, 4294967295, %v13177_v53  ;;  %v1254_v46 = vsel %vm13181_vm14, %v1207_v16, %v1208_v4  ;;  %vm12393_vm3 = vmpackc.low %vm8945_vm8, %vm8937_vm10  ;;  %vm13190_vm14 = vcmp.lt.s32.totalorder %v8111_v58, 15 }
 0x118   : > { %13179 = vst [vmem:[#allocation75_spill] sm:$0xff] %v13178_v53  ;;  %vm8963_vm15 = vmpackc.low %vm13184_vm9, %vm13183_vm13  ;;  %v8967_v13 = vpack.c.bf16 %v1253_v62, %v1254_v46  ;;  %v13194_v62 = vld [vmem:[#allocation101_spill] sm:$0xff]  ;;  %v6814_v46 = vld [vmem:[#allocation7 + $0x1a0] sm:$0xff]  ;;  %vm12398_vm9 = vcmp.lt.s32.totalorder %v13197_v59, 15  ;;  %vm12397_vm13 = vcmp.lt.s32.totalorder %v13198_v57, 15 }
 0x119   : > { %v13186_v32 = vsel %vm8963_vm15, 4294967295, %v13185_v32  ;;  %vm8973_vm7 = vmpackc.low %vm13190_vm14, %vm13189_vm4  ;;  %2284 = vmatpush.bf16.msra.mxu2 %v6814_v46  ;;  %v13199_v46 = vld [vmem:[#allocation88_spill] sm:$0xff] }
 0x11a   : > { %v1039_v41 = vpop.f32.mrf.mxu2  ;;  %13187 = vst [vmem:[#allocation159_spill] sm:$0xff] %v13186_v32  ;;  %v1211_v32 = vrot.slane %v8531_v24, 1  ;;  %vm13200_vm4 = vcmp.ge.s32.totalorder %v13199_v46, 1  ;;  %v13206_v24 = vmov 0 }
 0x11b   : > { %v1176_v27 = vpop.f32.mrf.mxu3  ;;  %13188 = vst [vmem:[#allocation160_spill] sm:$0xff] %v8967_v13  ;;  %vm9004_vm14 = vmand %vm13200_vm4, %vm12398_vm9  ;;  %vm13212_vm4 = vcmp.ge.s32.totalorder %v13197_v59, 1 }
 0x11c   : > { %v8953_v37 = vadd.f32 %v1176_v27, %v1039_v41  ;;  %v1002_v16 = vpop.f32.mrf.mxu0  ;;  %v13191_v41 = vmov 0 }
 0x11d   : > { %v13192_v41 = vsel %vm8973_vm7, 4294967295, %v13191_v41 }
 0x11e   : > { %13182 = vst [vmem:[#allocation158_spill] sm:$0xff] %v8953_v37  ;;  %v1139_v4 = vpop.f32.mrf.mxu1 }
 0x11f   : > { %13193 = vst [vmem:[#allocation161_spill] sm:$0xff] %v13192_v41  ;;  %v8977_v27 = vadd.f32 %v1139_v4, %v1002_v16  ;;  %5618 = vmatmul.msk.bf16.gmra.mxu2 %vm12393_vm3, %v8900_v3  ;;  %1841 = vmatmul.bf16.gmra.mxu0 %v13195_v1  ;;  %v6822_v16 = vld [vmem:[#allocation7 + $0x1e0] sm:$0xff]  ;;  %vm13205_vm3 = vcmp.ge.s32.totalorder %v13204_v26, 1  ;;  %v13227_v1 = vld [vmem:[#allocation110_spill] sm:$0xff] }
 0x120   : > { %5698 = vmatmul.msk.bf16.gmra.mxu3 %vm8963_vm15, %v13194_v62  ;;  %v6830_v41 = vld [vmem:[#allocation7 + $0x220] sm:$0xff]  ;;  %vm13209_vm15 = vcmp.lt.s32.totalorder %v7510_v19, 7 }
 0x121   : > { %5810 = vmatmul.msk.bf16.gmra.mxu1 %vm8973_vm7, %v8967_v13  ;;  %2518 = vmatpush.bf16.msra.mxu3 %v6822_v16  ;;  %vm9012_vm7 = vmand %vm13205_vm3, %vm12397_vm13  ;;  %vm13213_vm13 = vcmp.ge.s32.totalorder %v13198_v57, 1 }
 0x122   : > { %v1042_v4 = vpop.f32.mrf.mxu2  ;;  %v13207_v24 = vsel %vm9012_vm7, 4294967295, %v13206_v24  ;;  %2752 = vmatpush.bf16.msra.mxu0 %v6830_v41  ;;  %vm13210_vm10 = vmmov %vm13209_vm15  ;;  %v13214_v41 = vmov 0 }
 0x123   : > { %v1179_v20 = vpop.f32.mrf.mxu3  ;;  %13208 = vst [vmem:[#allocation90_spill] sm:$0xff] %v13207_v24  ;;  %vm12405_vm3 = vmpackc.low %vm9012_vm7, %vm9004_vm14  ;;  %v7010_v24 = vld [vmem:[%s7476_s10 + $0x70] sm:$0xff] }
 0x124   : > { %v8992_v53 = vadd.f32 %v1179_v20, %v1042_v4  ;;  %v1004_v49 = vpop.f32.mrf.mxu0  ;;  %v13201_v20 = vmov 0  ;;  %vm9030_vm9 = vmpackc.low %vm13213_vm13, %vm13212_vm4  ;;  %vm12409_vm4 = vcmp.lt.s32.totalorder %v13227_v1, 15 }
 0x125   : > { %v13202_v20 = vsel %vm9004_vm14, 4294967295, %v13201_v20  ;;  %v13215_v41 = vsel %vm9030_vm9, 4294967295, %v13214_v41 }
 0x126   : > { %13196 = vst [vmem:[#allocation162_spill] sm:$0xff] %v8992_v53  ;;  %v1141_v51 = vpop.f32.mrf.mxu1  ;;  %v13226_v53 = vld [vmem:[#allocation108_spill] sm:$0xff] }
 0x127   : > { %v8998_v37 = vadd.f32 %v1141_v51, %v1004_v49  ;;  %13203 = vst [vmem:[#allocation88_spill] sm:$0xff] %v13202_v20  ;;  %v1251_v51 = vsel %vm13209_vm15, %v1210_v29, %v1211_v32  ;;  %v1252_v49 = vsel %vm13210_vm10, %v1209_v35, %v1210_v29  ;;  %vm13218_vm15 = vcmp.lt.s32.totalorder %v13197_v59, 15 }
 0x128   : > { %13216 = vst [vmem:[#allocation164_spill] sm:$0xff] %v13215_v41  ;;  %v9034_v26 = vpack.c.bf16 %v1251_v51, %v1252_v49  ;;  %vm13219_vm10 = vcmp.lt.s32.totalorder %v13198_v57, 15  ;;  %v13223_v51 = vld [vmem:[#allocation120_spill] sm:$0xff]  ;;  %v13224_v49 = vld [vmem:[#allocation119_spill] sm:$0xff]  ;;  %vm12410_vm13 = vcmp.lt.s32.totalorder %v13226_v53, 15  ;;  %v1213_v20 = vrot.slane %v7010_v24, 1 }
 0x129   : > { %vm9040_vm8 = vmpackc.low %vm13219_vm10, %vm13218_vm15  ;;  %v7011_v41 = vld [vmem:[%s7476_s10 + $0x68] sm:$0xff]  ;;  %v13235_v24 = vmov 0  ;;  %v9268_v57 = vld [vmem:[#allocation5 + $0x198] sm:$0xff] }
 0x12a   : > { %v1044_v16 = vpop.f32.mrf.mxu2  ;;  %13217 = vst [vmem:[#allocation165_spill] sm:$0xff] %v9034_v26 }
 0x12b   : > { %v1181_v4 = vpop.f32.mrf.mxu3  ;;  %13309 = vst [vmem:[#allocation187_spill] sm:$0xff] %v9268_v57 }
 0x12c   : > { %v9020_v46 = vadd.f32 %v1181_v4, %v1044_v16  ;;  %v1007_v29 = vpop.f32.mrf.mxu0  ;;  %v13220_v16 = vmov 0 }
 0x12d   : > { %v13221_v16 = vsel %vm9040_vm8, 4294967295, %v13220_v16 }
 0x12e   : > { %13211 = vst [vmem:[#allocation163_spill] sm:$0xff] %v9020_v46  ;;  %v1144_v35 = vpop.f32.mrf.mxu1 }
 0x12f   : > { %13222 = vst [vmem:[#allocation166_spill] sm:$0xff] %v13221_v16  ;;  %v9044_v4 = vadd.f32 %v1144_v35, %v1007_v29  ;;  %5621 = vmatmul.msk.bf16.gmra.mxu2 %vm12405_vm3, %v8967_v13  ;;  %1846 = vmatmul.bf16.gmra.mxu0 %v13224_v49  ;;  %v13228_v16 = vld [vmem:[#allocation107_spill] sm:$0xff]  ;;  %v13230_v49 = vmov 0 }
 0x130   : > { %5701 = vmatmul.msk.bf16.gmra.mxu3 %vm9030_vm9, %v13223_v51  ;;  %v1212_v51 = vrot.slane %v7011_v41, 1  ;;  %vm13229_vm15 = vcmp.ge.s32.totalorder %v13228_v16, 1  ;;  %vm13238_vm9 = vcmp.lt.s32.totalorder %v7510_v19, 7 }
 0x131   : > { %5813 = vmatmul.msk.bf16.gmra.mxu1 %vm9040_vm8, %v9034_v26  ;;  %vm9071_vm10 = vmand %vm13229_vm15, %vm12410_vm13 }
 0x132   : > { %v1047_v46 = vpop.f32.mrf.mxu2  ;;  %v13231_v49 = vsel %vm9071_vm10, 4294967295, %v13230_v49  ;;  %vm13239_vm14 = vmmov %vm13238_vm9 }
 0x133   : > { %v1184_v29 = vpop.f32.mrf.mxu3  ;;  %13232 = vst [vmem:[#allocation107_spill] sm:$0xff] %v13231_v49  ;;  %v7012_v49 = vld [vmem:[%s7476_s10 + $0x78] sm:$0xff] }
 0x134   : > { %v9059_v35 = vadd.f32 %v1184_v29, %v1047_v46  ;;  %v1009_v43 = vpop.f32.mrf.mxu0  ;;  %v13233_v46 = vld [vmem:[#allocation109_spill] sm:$0xff] }
 0x135   : > { %vm13234_vm3 = vcmp.ge.s32.totalorder %v13233_v46, 1  ;;  %v13243_v46 = vmov 0 }
 0x136   : > { %13225 = vst [vmem:[#allocation167_spill] sm:$0xff] %v9059_v35  ;;  %v1146_v13 = vpop.f32.mrf.mxu1  ;;  %vm9079_vm8 = vmand %vm13234_vm3, %vm12409_vm4  ;;  %vm13241_vm3 = vcmp.ge.s32.totalorder %v13226_v53, 1  ;;  %vm13242_vm4 = vcmp.ge.s32.totalorder %v13227_v1, 1 }
 0x137   : > { %v9065_v62 = vadd.f32 %v1146_v13, %v1009_v43  ;;  %v13236_v24 = vsel %vm9079_vm8, 4294967295, %v13235_v24  ;;  %v1249_v13 = vsel %vm13238_vm9, %v1212_v51, %v1213_v20  ;;  %v1250_v43 = vsel %vm13239_vm14, %v1211_v32, %v1212_v51  ;;  %vm12419_vm15 = vmpackc.low %vm9079_vm8, %vm9071_vm10 }
 0x138   : > { %13237 = vst [vmem:[#allocation109_spill] sm:$0xff] %v13236_v24  ;;  %vm9097_vm13 = vmpackc.low %vm13242_vm4, %vm13241_vm3  ;;  %v9101_v35 = vpack.c.bf16 %v1249_v13, %v1250_v43  ;;  %vm13247_vm9 = vcmp.lt.s32.totalorder %v13226_v53, 15  ;;  %vm13248_vm14 = vcmp.lt.s32.totalorder %v13227_v1, 15  ;;  %v6813_v13 = vld [vmem:[#allocation7 + $0x198] sm:$0xff]  ;;  %vm12430_vm4 = vcmp.lt.s32.totalorder %v8537_v18, 15 }
 0x139   : > { %v13244_v46 = vsel %vm9097_vm13, 4294967295, %v13243_v46  ;;  %vm9107_vm7 = vmpackc.low %vm13248_vm14, %vm13247_vm9  ;;  %v6821_v43 = vld [vmem:[#allocation7 + $0x1d8] sm:$0xff]  ;;  %2285 = vmatpush.bf16.msra.mxu2 %v6813_v13  ;;  %vm12423_vm3 = vcmp.lt.s32.totalorder %v8543_v55, 15  ;;  %vm13253_vm9 = vcmp.ge.s32.totalorder %v8535_v38, 1  ;;  %v13254_v13 = vmov 0 }
 0x13a   : > { %v1049_v41 = vpop.f32.mrf.mxu2  ;;  %13245 = vst [vmem:[#allocation169_spill] sm:$0xff] %v13244_v46  ;;  %2519 = vmatpush.bf16.msra.mxu3 %v6821_v43  ;;  %v7013_v46 = vld [vmem:[%s7476_s10 + $0x80] sm:$0xff]  ;;  %vm9138_vm14 = vmand %vm13253_vm9, %vm12430_vm4 }
 0x13b   : > { %v1186_v16 = vpop.f32.mrf.mxu3  ;;  %13246 = vst [vmem:[#allocation170_spill] sm:$0xff] %v9101_v35  ;;  %v13255_v13 = vsel %vm9138_vm14, 4294967295, %v13254_v13 }
 0x13c   : > { %v9087_v29 = vadd.f32 %v1186_v16, %v1049_v41  ;;  %v1012_v32 = vpop.f32.mrf.mxu0  ;;  %v13249_v41 = vmov 0  ;;  %13256 = vst [vmem:[#allocation173_spill] sm:$0xff] %v13255_v13  ;;  %v7015_v13 = vld [vmem:[%s7476_s10 + $0x88] sm:$0xff] }
 0x13d   : > { %v13250_v41 = vsel %vm9107_vm7, 4294967295, %v13249_v41 }
 0x13e   : > { %13240 = vst [vmem:[#allocation168_spill] sm:$0xff] %v9087_v29  ;;  %v1149_v51 = vpop.f32.mrf.mxu1  ;;  %v1214_v29 = vrot.slane %v7012_v49, 1  ;;  %v13258_v49 = vmov 0 }
 0x13f   : > { %13251 = vst [vmem:[#allocation171_spill] sm:$0xff] %v13250_v41  ;;  %v9111_v16 = vadd.f32 %v1149_v51, %v1012_v32  ;;  %5624 = vmatmul.msk.bf16.gmra.mxu2 %vm12419_vm15, %v9034_v26  ;;  %1851 = vmatmul.bf16.gmra.mxu0 %v8627_v48  ;;  %vm13257_vm15 = vcmp.ge.s32.totalorder %v8541_v33, 1  ;;  %v13266_v33 = vmov 0  ;;  %v9195_v41 = vld [vmem:[#allocation5 + $0x180] sm:$0xff] }
 0x140   : > { %5704 = vmatmul.msk.bf16.gmra.mxu3 %vm9097_vm13, %v8629_v30  ;;  %v1215_v30 = vrot.slane %v7013_v46, 1  ;;  %vm13261_vm13 = vcmp.lt.s32.totalorder %v7510_v19, 7  ;;  %v6829_v46 = vld [vmem:[#allocation7 + $0x218] sm:$0xff]  ;;  %13278 = vst [vmem:[#allocation180_spill] sm:$0xff] %v9195_v41 }
 0x141   : > { %5816 = vmatmul.msk.bf16.gmra.mxu1 %vm9107_vm7, %v9101_v35  ;;  %vm9146_vm7 = vmand %vm13257_vm15, %vm12423_vm3  ;;  %2753 = vmatpush.bf16.msra.mxu0 %v6829_v46  ;;  %vm13264_vm15 = vcmp.ge.s32.totalorder %v8537_v18, 1  ;;  %vm13265_vm3 = vcmp.ge.s32.totalorder %v8543_v55, 1  ;;  %v13271_v46 = vmov 0  ;;  %v13297_v18 = vmov 0 }
 0x142   : > { %v1052_v32 = vpop.f32.mrf.mxu2  ;;  %v13259_v49 = vsel %vm9146_vm7, 4294967295, %v13258_v49  ;;  %vm13262_vm10 = vmmov %vm13261_vm13 }
 0x143   : > { %v1189_v51 = vpop.f32.mrf.mxu3  ;;  %13260 = vst [vmem:[#allocation174_spill] sm:$0xff] %v13259_v49  ;;  %v1216_v49 = vrot.slane %v7015_v13, 1  ;;  %v13285_v13 = vld [vmem:[#allocation19_spill] sm:$0xff] }
 0x144   : > { %v9126_v24 = vadd.f32 %v1189_v51, %v1052_v32  ;;  %v1014_v26 = vpop.f32.mrf.mxu0 }
 0x146   : > { %13252 = vst [vmem:[#allocation172_spill] sm:$0xff] %v9126_v24  ;;  %v1151_v1 = vpop.f32.mrf.mxu1 }
 0x147   : > { %v9132_v48 = vadd.f32 %v1151_v1, %v1014_v26  ;;  %v1247_v1 = vsel %vm13261_vm13, %v1214_v29, %v1215_v30  ;;  %v1248_v26 = vsel %vm13262_vm10, %v1213_v20, %v1214_v29  ;;  %vm9164_vm13 = vmpackc.low %vm13265_vm3, %vm13264_vm15  ;;  %vm13270_vm10 = vcmp.lt.s32.totalorder %v8543_v55, 15  ;;  %v13295_v55 = vld [vmem:[#allocation21_spill] sm:$0xff] }
 0x148   : > { %v13267_v33 = vsel %vm9164_vm13, 4294967295, %v13266_v33  ;;  %v9168_v20 = vpack.c.bf16 %v1247_v1, %v1248_v26  ;;  %vm9174_vm9 = vmpackc.low %vm13270_vm10, %vm12430_vm4  ;;  %v13275_v1 = vld [vmem:[#allocation28_spill] sm:$0xff]  ;;  %v13276_v26 = vld [vmem:[#allocation27_spill] sm:$0xff]  ;;  %vm12438_vm15 = vcmp.lt.s32.totalorder %v9195_v41, 15 }
 0x149   : > { %13268 = vst [vmem:[#allocation176_spill] sm:$0xff] %v13267_v33  ;;  %v13272_v46 = vsel %vm9174_vm9, 4294967295, %v13271_v46  ;;  %vm13274_vm3 = vmpackc.low %vm9146_vm7, %vm9138_vm14  ;;  %vm13290_vm14 = vcmp.lt.s32.totalorder %v7510_v19, 7 }
 0x14a   : > { %v1054_v38 = vpop.f32.mrf.mxu2  ;;  %13269 = vst [vmem:[#allocation177_spill] sm:$0xff] %v9168_v20  ;;  %vm13291_vm7 = vmmov %vm13290_vm14 }
 0x14b   : > { %v1191_v43 = vpop.f32.mrf.mxu3  ;;  %13273 = vst [vmem:[#allocation178_spill] sm:$0xff] %v13272_v46 }
 0x14c   : > { %v9154_v32 = vadd.f32 %v1191_v43, %v1054_v38  ;;  %v1017_v29 = vpop.f32.mrf.mxu0 }
 0x14e   : > { %13263 = vst [vmem:[#allocation175_spill] sm:$0xff] %v9154_v32  ;;  %v1154_v51 = vpop.f32.mrf.mxu1  ;;  %v7016_v32 = vld [vmem:[%s7476_s10 + $0x90] sm:$0xff] }
 0x14f   : > { %v9178_v38 = vadd.f32 %v1154_v51, %v1017_v29  ;;  %5627 = vmatmul.msk.bf16.gmra.mxu2 %vm13274_vm3, %v9101_v35  ;;  %1856 = vmatmul.bf16.gmra.mxu0 %v13276_v26  ;;  %v1217_v24 = vrot.slane %v7016_v32, 1  ;;  %v9200_v35 = vld [vmem:[#allocation5 + $0x188] sm:$0xff]  ;;  %v13287_v32 = vmov 0 }
 0x150   : > { %5707 = vmatmul.msk.bf16.gmra.mxu3 %vm9164_vm13, %v13275_v1  ;;  %13279 = vst [vmem:[#allocation181_spill] sm:$0xff] %v9200_v35  ;;  %vm12437_vm10 = vcmp.lt.s32.totalorder %v9200_v35, 15 }
 0x151   : > { %5819 = vmatmul.msk.bf16.gmra.mxu1 %vm9174_vm9, %v9168_v20  ;;  %vm13286_vm9 = vcmp.ge.s32.totalorder %v13285_v13, 1  ;;  %v13293_v13 = vld [vmem:[#allocation20_spill] sm:$0xff] }
 0x152   : > { %v1057_v43 = vpop.f32.mrf.mxu2  ;;  %vm9217_vm13 = vmand %vm13286_vm9, %vm12437_vm10  ;;  %vm13294_vm9 = vcmp.ge.s32.totalorder %v13293_v13, 1  ;;  %vm13296_vm10 = vcmp.ge.s32.totalorder %v13295_v55, 1 }
 0x153   : > { %v1194_v29 = vpop.f32.mrf.mxu3  ;;  %v13288_v32 = vsel %vm9217_vm13, 4294967295, %v13287_v32 }
 0x154   : > { %v9193_v51 = vadd.f32 %v1194_v29, %v1057_v43  ;;  %v1019_v33 = vpop.f32.mrf.mxu0  ;;  %v13280_v43 = vld [vmem:[#allocation17_spill] sm:$0xff]  ;;  %v13282_v29 = vmov 0  ;;  %13289 = vst [vmem:[#allocation19_spill] sm:$0xff] %v13288_v32 }
 0x155   : > { %vm13281_vm3 = vcmp.ge.s32.totalorder %v13280_v43, 1 }
 0x156   : > { %13277 = vst [vmem:[#allocation179_spill] sm:$0xff] %v9193_v51  ;;  %v1156_v1 = vpop.f32.mrf.mxu1  ;;  %vm9209_vm4 = vmand %vm13281_vm3, %vm12438_vm15 }
 0x157   : > { %v9203_v46 = vadd.f32 %v1156_v1, %v1019_v33  ;;  %v13283_v29 = vsel %vm9209_vm4, 4294967295, %v13282_v29  ;;  %v1245_v33 = vsel %vm13290_vm14, %v1216_v49, %v1217_v24  ;;  %v1246_v1 = vsel %vm13291_vm7, %v1215_v30, %v1216_v49  ;;  %vm12451_vm3 = vmpackc.low %vm9217_vm13, %vm9209_vm4 }
 0x158   : > { %13284 = vst [vmem:[#allocation17_spill] sm:$0xff] %v13283_v29  ;;  %vm9235_vm15 = vmpackc.low %vm13296_vm10, %vm13294_vm9  ;;  %v9239_v53 = vpack.c.bf16 %v1245_v33, %v1246_v1  ;;  %vm13301_vm7 = vcmp.lt.s32.totalorder %v9195_v41, 15  ;;  %vm13302_vm14 = vcmp.lt.s32.totalorder %v9200_v35, 15  ;;  %v13306_v33 = vld [vmem:[#allocation42_spill] sm:$0xff]  ;;  %v6812_v1 = vld [vmem:[#allocation7 + $0x190] sm:$0xff]  ;;  %vm12456_vm9 = vcmp.lt.s32.totalorder %v9268_v57, 15 }
 0x159   : > { %v13298_v18 = vsel %vm9235_vm15, 4294967295, %v13297_v18  ;;  %vm9245_vm8 = vmpackc.low %vm13302_vm14, %vm13301_vm7  ;;  %2286 = vmatpush.bf16.msra.mxu2 %v6812_v1  ;;  %v9263_v41 = vld [vmem:[#allocation5 + $0x190] sm:$0xff] }
 0x15a   : > { %v1059_v51 = vpop.f32.mrf.mxu2  ;;  %13299 = vst [vmem:[#allocation183_spill] sm:$0xff] %v13298_v18  ;;  %vm12457_vm10 = vcmp.lt.s32.totalorder %v9263_v41, 15  ;;  %v7019_v18 = vld [vmem:[%s7476_s10 + $0x98] sm:$0xff] }
 0x15b   : > { %v1196_v43 = vpop.f32.mrf.mxu3  ;;  %13300 = vst [vmem:[#allocation184_spill] sm:$0xff] %v9239_v53 }
 0x15c   : > { %v9225_v26 = vadd.f32 %v1196_v43, %v1059_v51  ;;  %v1822_v30 = vpop.f32.mrf.mxu0  ;;  %v13303_v51 = vmov 0  ;;  %v13307_v43 = vld [vmem:[#allocation41_spill] sm:$0xff]  ;;  %13308 = vst [vmem:[#allocation186_spill] sm:$0xff] %v9263_v41 }
 0x15d   : > { %v13304_v51 = vsel %vm9245_vm8, 4294967295, %v13303_v51 }
 0x15e   : > { %13292 = vst [vmem:[#allocation182_spill] sm:$0xff] %v9225_v26  ;;  %v2056_v49 = vpop.f32.mrf.mxu1  ;;  %v6820_v26 = vld [vmem:[#allocation7 + $0x1d0] sm:$0xff] }
 0x15f   : > { %13305 = vst [vmem:[#allocation185_spill] sm:$0xff] %v13304_v51  ;;  %5630 = vmatmul.msk.bf16.gmra.mxu2 %vm12451_vm3, %v9168_v20  ;;  %1861 = vmatmul.bf16.gmra.mxu0 %v13307_v43  ;;  %v7020_v20 = vld [vmem:[%s7476_s10 + $0xa0] sm:$0xff] }
 0x160   : > { %5710 = vmatmul.msk.bf16.gmra.mxu3 %vm9235_vm15, %v13306_v33  ;;  %v1218_v33 = vrot.slane %v7019_v18, 1  ;;  %v1219_v55 = vrot.slane %v7020_v20, 1  ;;  %v13315_v18 = vld [vmem:[#allocation33_spill] sm:$0xff]  ;;  %v13317_v20 = vmov 0  ;;  %vm13321_vm15 = vcmp.lt.s32.totalorder %v7510_v19, 7 }
 0x161   : > { %5822 = vmatmul.msk.bf16.gmra.mxu1 %vm9245_vm8, %v9239_v53  ;;  %2520 = vmatpush.bf16.msra.mxu3 %v6820_v26  ;;  %vm13316_vm3 = vcmp.ge.s32.totalorder %v13315_v18, 1  ;;  %vm13322_vm4 = vmmov %vm13321_vm15  ;;  %v13323_v18 = vld [vmem:[#allocation34_spill] sm:$0xff] }
 0x162   : > { %v1386_v35 = vpop.f32.mrf.mxu2  ;;  %vm9283_vm8 = vmand %vm13316_vm3, %vm12456_vm9 }
 0x163   : > { %v1620_v32 = vpop.f32.mrf.mxu3  ;;  %v1466_v29 = vadd.f32 %v1386_v35, %v8709_v60  ;;  %v13310_v60 = vld [vmem:[#allocation32_spill] sm:$0xff]  ;;  %v13312_v35 = vmov 0  ;;  %v13318_v20 = vsel %vm9283_vm8, 4294967295, %v13317_v20 }
 0x164   : > { %v1824_v13 = vpop.f32.mrf.mxu0  ;;  %vm13311_vm7 = vcmp.ge.s32.totalorder %v13310_v60, 1  ;;  %13319 = vst [vmem:[#allocation33_spill] sm:$0xff] %v13318_v20 }
 0x165   : > { %v1700_v43 = vadd.f32 %v1620_v32, %v1466_v29  ;;  %vm9275_vm14 = vmand %vm13311_vm7, %vm12457_vm10  ;;  %v1243_v29 = vsel %vm13321_vm15, %v1218_v33, %v1219_v55  ;;  %v1244_v32 = vsel %vm13322_vm4, %v1217_v24, %v1218_v33  ;;  %vm13324_vm7 = vcmp.ge.s32.totalorder %v13323_v18, 1 }
 0x166   : > { %v2058_v1 = vpop.f32.mrf.mxu1  ;;  %v13313_v35 = vsel %vm9275_vm14, 4294967295, %v13312_v35  ;;  %v9306_v24 = vpack.c.bf16 %v1243_v29, %v1244_v32  ;;  %vm13331_vm4 = vcmp.lt.s32.totalorder %v9263_v41, 15  ;;  %vm13332_vm15 = vcmp.lt.s32.totalorder %v9268_v57, 15  ;;  %v13337_v29 = vld [vmem:[#allocation56_spill] sm:$0xff]  ;;  %v13338_v32 = vld [vmem:[#allocation55_spill] sm:$0xff] }
 0x167   : > { %v1902_v51 = vadd.f32 %v1822_v30, %v1700_v43  ;;  %13314 = vst [vmem:[#allocation32_spill] sm:$0xff] %v13313_v35  ;;  %v6828_v30 = vld [vmem:[#allocation7 + $0x210] sm:$0xff]  ;;  %vm9312_vm3 = vmpackc.low %vm13332_vm15, %vm13331_vm4  ;;  %v9332_v35 = vld [vmem:[#allocation5 + $0x1a0] sm:$0xff] }
 0x168   : > { %2754 = vmatpush.bf16.msra.mxu0 %v6828_v30  ;;  %v13333_v30 = vmov 0  ;;  %13340 = vst [vmem:[#allocation191_spill] sm:$0xff] %v9332_v35  ;;  %v7023_v41 = vld [vmem:[%s7476_s10 + $0xa8] sm:$0xff] }
 0x169   : > { %v9287_v26 = vadd.f32 %v2056_v49, %v1902_v51  ;;  %v13325_v49 = vld [vmem:[#allocation35_spill] sm:$0xff]  ;;  %v13327_v51 = vmov 0  ;;  %v13334_v30 = vsel %vm9312_vm3, 4294967295, %v13333_v30 }
 0x16a   : > { %v1388_v43 = vpop.f32.mrf.mxu2  ;;  %vm13326_vm9 = vcmp.ge.s32.totalorder %v13325_v49, 1  ;;  %13330 = vst [vmem:[#allocation35_spill] sm:$0xff] %v9306_v24 }
 0x16b   : > { %13320 = vst [vmem:[#allocation188_spill] sm:$0xff] %v9287_v26  ;;  %v1622_v60 = vpop.f32.mrf.mxu3  ;;  %v1467_v59 = vadd.f32 %v1388_v43, %v8730_v22  ;;  %vm9302_vm10 = vmpackc.low %vm13326_vm9, %vm13324_vm7  ;;  %vm12470_vm7 = vcmp.lt.s32.totalorder %v9332_v35, 15 }
 0x16c   : > { %v13328_v51 = vsel %vm9302_vm10, 4294967295, %v13327_v51  ;;  %v1827_v26 = vpop.f32.mrf.mxu0  ;;  %13335 = vst [vmem:[#allocation189_spill] sm:$0xff] %v13334_v30  ;;  %vm13336_vm9 = vmpackc.low %vm9283_vm8, %vm9275_vm14  ;;  %v13342_v30 = vld [vmem:[#allocation46_spill] sm:$0xff]  ;;  %vm13353_vm14 = vcmp.lt.s32.totalorder %v7510_v19, 7 }
 0x16d   : > { %13329 = vst [vmem:[#allocation34_spill] sm:$0xff] %v13328_v51  ;;  %v1701_v33 = vadd.f32 %v1622_v60, %v1467_v59  ;;  %v1220_v51 = vrot.slane %v7023_v41, 1  ;;  %vm13343_vm15 = vcmp.ge.s32.totalorder %v13342_v30, 1  ;;  %v13347_v41 = vld [vmem:[#allocation47_spill] sm:$0xff]  ;;  %vm13354_vm8 = vmmov %vm13353_vm14 }
 0x16e   : > { %v2061_v22 = vpop.f32.mrf.mxu1 }
 0x16f   : > { %5633 = vmatmul.msk.bf16.gmra.mxu2 %vm13336_vm9, %v9239_v53  ;;  %v1903_v59 = vadd.f32 %v1824_v13, %v1701_v33  ;;  %1866 = vmatmul.bf16.gmra.mxu0 %v13338_v32  ;;  %v9337_v53 = vld [vmem:[#allocation5 + $0x1a8] sm:$0xff]  ;;  %vm9344_vm9 = vmand %vm13343_vm15, %vm12470_vm7  ;;  %v1242_v30 = vsel %vm13354_vm8, %v1219_v55, %v1220_v51  ;;  %vm13362_vm8 = vcmp.lt.s32.totalorder %v9332_v35, 15 }
 0x170   : > { %5713 = vmatmul.msk.bf16.gmra.mxu3 %vm9302_vm10, %v13337_v29  ;;  %v7024_v29 = vld [vmem:[%s7476_s10 + $0xb0] sm:$0xff]  ;;  %13341 = vst [vmem:[#allocation192_spill] sm:$0xff] %v9337_v53  ;;  %vm12469_vm4 = vcmp.lt.s32.totalorder %v9337_v53, 15 }
 0x171   : > { %5825 = vmatmul.msk.bf16.gmra.mxu1 %vm9312_vm3, %v9306_v24  ;;  %v9329_v43 = vadd.f32 %v2058_v1, %v1903_v59  ;;  %v1221_v13 = vrot.slane %v7024_v29, 1  ;;  %vm13348_vm3 = vcmp.ge.s32.totalorder %v13347_v41, 1  ;;  %v13355_v41 = vld [vmem:[#allocation48_spill] sm:$0xff] }
 0x172   : > { %v1391_v60 = vpop.f32.mrf.mxu2  ;;  %vm9352_vm10 = vmand %vm13348_vm3, %vm12469_vm4  ;;  %vm13356_vm15 = vcmp.ge.s32.totalorder %v13355_v41, 1 }
 0x173   : > { %13339 = vst [vmem:[#allocation190_spill] sm:$0xff] %v9329_v43  ;;  %v1625_v57 = vpop.f32.mrf.mxu3  ;;  %v1468_v20 = vadd.f32 %v1391_v60, %v8776_v42  ;;  %v13344_v42 = vmov 0  ;;  %vm12479_vm3 = vmpackc.low %vm9352_vm10, %vm9344_vm9  ;;  %v13357_v43 = vld [vmem:[#allocation49_spill] sm:$0xff] }
 0x174   : > { %v1829_v32 = vpop.f32.mrf.mxu0  ;;  %v13345_v42 = vsel %vm9344_vm9, 4294967295, %v13344_v42  ;;  %vm13358_vm4 = vcmp.ge.s32.totalorder %v13357_v43, 1  ;;  %v9406_v43 = vld [vmem:[#allocation5 + $0x1b8] sm:$0xff] }
 0x175   : > { %v1702_v33 = vadd.f32 %v1625_v57, %v1468_v20  ;;  %13346 = vst [vmem:[#allocation46_spill] sm:$0xff] %v13345_v42  ;;  %v13349_v57 = vmov 0  ;;  %vm9371_vm7 = vmpackc.low %vm13358_vm4, %vm13356_vm15  ;;  %v6819_v42 = vld [vmem:[#allocation7 + $0x1c8] sm:$0xff]  ;;  %vm12483_vm15 = vcmp.lt.s32.totalorder %v9406_v43, 15 }
 0x176   : > { %v2063_v1 = vpop.f32.mrf.mxu1  ;;  %v13350_v57 = vsel %vm9352_vm10, 4294967295, %v13349_v57  ;;  %2521 = vmatpush.bf16.msra.mxu3 %v6819_v42  ;;  %13371 = vst [vmem:[#allocation197_spill] sm:$0xff] %v9406_v43  ;;  %v13374_v42 = vmov 0 }
 0x177   : > { %v1904_v59 = vadd.f32 %v1827_v26, %v1702_v33  ;;  %13351 = vst [vmem:[#allocation47_spill] sm:$0xff] %v13350_v57  ;;  %v1241_v26 = vsel %vm13353_vm14, %v1220_v51, %v1221_v13  ;;  %vm13363_vm14 = vcmp.lt.s32.totalorder %v9337_v53, 15 }
 0x178   : > { %vm9381_vm13 = vmpackc.low %vm13363_vm14, %vm13362_vm8 }
 0x179   : > { %v9356_v20 = vadd.f32 %v2061_v22, %v1904_v59  ;;  %v13359_v22 = vmov 0  ;;  %v9375_v59 = vpack.c.bf16 %v1241_v26, %v1242_v30  ;;  %v13367_v26 = vld [vmem:[#allocation68_spill] sm:$0xff] }
 0x17a   : > { %v1393_v29 = vpop.f32.mrf.mxu2  ;;  %v13360_v22 = vsel %vm9371_vm7, 4294967295, %v13359_v22 }
 0x17b   : > { %13352 = vst [vmem:[#allocation193_spill] sm:$0xff] %v9356_v20  ;;  %v1627_v60 = vpop.f32.mrf.mxu3  ;;  %v1469_v33 = vadd.f32 %v1393_v29, %v8797_v63  ;;  %v13364_v63 = vmov 0  ;;  %v6811_v29 = vld [vmem:[#allocation7 + $0x188] sm:$0xff] }
 0x17c   : > { %13361 = vst [vmem:[#allocation48_spill] sm:$0xff] %v13360_v22  ;;  %v1832_v51 = vpop.f32.mrf.mxu0  ;;  %v13365_v63 = vsel %vm9381_vm13, 4294967295, %v13364_v63  ;;  %2287 = vmatpush.bf16.msra.mxu2 %v6811_v29  ;;  %v9401_v22 = vld [vmem:[#allocation5 + $0x1b0] sm:$0xff]  ;;  %v6827_v29 = vld [vmem:[#allocation7 + $0x208] sm:$0xff] }
 0x17d   : > { %v1703_v55 = vadd.f32 %v1627_v60, %v1469_v33  ;;  %13366 = vst [vmem:[#allocation194_spill] sm:$0xff] %v13365_v63  ;;  %v13368_v60 = vld [vmem:[#allocation67_spill] sm:$0xff]  ;;  %vm12484_vm4 = vcmp.lt.s32.totalorder %v9401_v22, 15  ;;  %2755 = vmatpush.bf16.msra.mxu0 %v6827_v29  ;;  %v13395_v29 = vmov 0 }
 0x17e   : > { %v2066_v20 = vpop.f32.mrf.mxu1  ;;  %13370 = vst [vmem:[#allocation196_spill] sm:$0xff] %v9401_v22 }
 0x17f   : > { %5636 = vmatmul.msk.bf16.gmra.mxu2 %vm12479_vm3, %v9306_v24  ;;  %v1905_v30 = vadd.f32 %v1829_v32, %v1703_v55  ;;  %1871 = vmatmul.bf16.gmra.mxu0 %v13368_v60  ;;  %v7027_v32 = vld [vmem:[%s7476_s10 + $0xb8] sm:$0xff]  ;;  %v7028_v60 = vld [vmem:[%s7476_s10 + $0xc0] sm:$0xff] }
 0x180   : > { %5716 = vmatmul.msk.bf16.gmra.mxu3 %vm9371_vm7, %v13367_v26  ;;  %v1222_v55 = vrot.slane %v7027_v32, 1  ;;  %v1223_v26 = vrot.slane %v7028_v60, 1  ;;  %vm13383_vm7 = vcmp.lt.s32.totalorder %v7510_v19, 7 }
 0x181   : > { %5828 = vmatmul.msk.bf16.gmra.mxu1 %vm9381_vm13, %v9375_v59  ;;  %v9398_v33 = vadd.f32 %v2063_v1, %v1905_v30  ;;  %vm13384_vm9 = vmmov %vm13383_vm7 }
 0x182   : > { %v1396_v57 = vpop.f32.mrf.mxu2 }
 0x183   : > { %13369 = vst [vmem:[#allocation195_spill] sm:$0xff] %v9398_v33  ;;  %v1630_v53 = vpop.f32.mrf.mxu3  ;;  %v1470_v35 = vadd.f32 %v1396_v57, %v8843_v47  ;;  %v13372_v47 = vld [vmem:[#allocation58_spill] sm:$0xff]  ;;  %v13377_v57 = vld [vmem:[#allocation59_spill] sm:$0xff] }
 0x184   : > { %v1834_v63 = vpop.f32.mrf.mxu0  ;;  %vm13373_vm8 = vcmp.ge.s32.totalorder %v13372_v47, 1  ;;  %vm13378_vm3 = vcmp.ge.s32.totalorder %v13377_v57, 1  ;;  %v13385_v57 = vld [vmem:[#allocation60_spill] sm:$0xff] }
 0x185   : > { %v1704_v24 = vadd.f32 %v1630_v53, %v1470_v35  ;;  %vm9413_vm14 = vmand %vm13373_vm8, %vm12484_vm4  ;;  %v13379_v53 = vmov 0  ;;  %vm13386_vm8 = vcmp.ge.s32.totalorder %v13385_v57, 1 }
 0x186   : > { %v2068_v1 = vpop.f32.mrf.mxu1  ;;  %v13375_v42 = vsel %vm9413_vm14, 4294967295, %v13374_v42  ;;  %vm9421_vm13 = vmand %vm13378_vm3, %vm12483_vm15 }
 0x187   : > { %v1906_v30 = vadd.f32 %v1832_v51, %v1704_v24  ;;  %13376 = vst [vmem:[#allocation58_spill] sm:$0xff] %v13375_v42  ;;  %v13380_v53 = vsel %vm9421_vm13, 4294967295, %v13379_v53  ;;  %v1239_v24 = vsel %vm13383_vm7, %v1222_v55, %v1223_v26  ;;  %v1240_v51 = vsel %vm13384_vm9, %v1221_v13, %v1222_v55  ;;  %v9470_v42 = vld [vmem:[#allocation5 + $0x1c0] sm:$0xff] }
 0x188   : > { %13381 = vst [vmem:[#allocation59_spill] sm:$0xff] %v13380_v53  ;;  %v9444_v13 = vpack.c.bf16 %v1239_v24, %v1240_v51  ;;  %vm13393_vm7 = vcmp.lt.s32.totalorder %v9401_v22, 15  ;;  %vm13394_vm9 = vcmp.lt.s32.totalorder %v9406_v43, 15  ;;  %v13399_v24 = vld [vmem:[#allocation82_spill] sm:$0xff]  ;;  %v7031_v43 = vld [vmem:[%s7476_s10 + $0xc8] sm:$0xff] }
 0x189   : > { %v9425_v35 = vadd.f32 %v2066_v20, %v1906_v30  ;;  %v13387_v20 = vld [vmem:[#allocation61_spill] sm:$0xff]  ;;  %v13389_v30 = vmov 0  ;;  %vm9450_vm3 = vmpackc.low %vm13394_vm9, %vm13393_vm7  ;;  %13402 = vst [vmem:[#allocation201_spill] sm:$0xff] %v9470_v42  ;;  %v9475_v22 = vld [vmem:[#allocation5 + $0x1c8] sm:$0xff] }
 0x18a   : > { %v1398_v60 = vpop.f32.mrf.mxu2  ;;  %vm13388_vm15 = vcmp.ge.s32.totalorder %v13387_v20, 1  ;;  %13392 = vst [vmem:[#allocation61_spill] sm:$0xff] %v9444_v13  ;;  %v13396_v29 = vsel %vm9450_vm3, 4294967295, %v13395_v29  ;;  %vm12495_vm7 = vcmp.lt.s32.totalorder %v9475_v22, 15 }
 0x18b   : > { %13382 = vst [vmem:[#allocation198_spill] sm:$0xff] %v9425_v35  ;;  %v1632_v32 = vpop.f32.mrf.mxu3  ;;  %v1471_v47 = vadd.f32 %v1398_v60, %v8864_v11  ;;  %vm9440_vm4 = vmpackc.low %vm13388_vm15, %vm13386_vm8  ;;  %v13400_v60 = vld [vmem:[#allocation81_spill] sm:$0xff]  ;;  %vm12496_vm8 = vcmp.lt.s32.totalorder %v9470_v42, 15 }
 0x18c   : > { %v13390_v30 = vsel %vm9440_vm4, 4294967295, %v13389_v30  ;;  %v1837_v35 = vpop.f32.mrf.mxu0  ;;  %13397 = vst [vmem:[#allocation199_spill] sm:$0xff] %v13396_v29  ;;  %vm13398_vm15 = vmpackc.low %vm9421_vm13, %vm9413_vm14  ;;  %v13405_v29 = vld [vmem:[#allocation70_spill] sm:$0xff]  ;;  %vm13416_vm14 = vcmp.lt.s32.totalorder %v7510_v19, 7 }
 0x18d   : > { %13391 = vst [vmem:[#allocation60_spill] sm:$0xff] %v13390_v30  ;;  %v1705_v55 = vadd.f32 %v1632_v32, %v1471_v47  ;;  %v1224_v30 = vrot.slane %v7031_v43, 1  ;;  %vm13406_vm9 = vcmp.ge.s32.totalorder %v13405_v29, 1  ;;  %v13410_v43 = vld [vmem:[#allocation71_spill] sm:$0xff]  ;;  %vm13417_vm13 = vmmov %vm13416_vm14 }
 0x18e   : > { %v2071_v11 = vpop.f32.mrf.mxu1 }
 0x18f   : > { %5639 = vmatmul.msk.bf16.gmra.mxu2 %vm13398_vm15, %v9375_v59  ;;  %v1907_v51 = vadd.f32 %v1834_v63, %v1705_v55  ;;  %1876 = vmatmul.bf16.gmra.mxu0 %v13400_v60  ;;  %vm9482_vm15 = vmand %vm13406_vm9, %vm12496_vm8  ;;  %v1238_v29 = vsel %vm13417_vm13, %v1223_v26, %v1224_v30  ;;  %vm13425_vm13 = vcmp.lt.s32.totalorder %v9470_v42, 15 }
 0x190   : > { %5719 = vmatmul.msk.bf16.gmra.mxu3 %vm9440_vm4, %v13399_v24  ;;  %v13403_v24 = vld [vmem:[#allocation102_spill] sm:$0xff] }
 0x191   : > { %5831 = vmatmul.msk.bf16.gmra.mxu1 %vm9450_vm3, %v9444_v13  ;;  %v9467_v32 = vadd.f32 %v2068_v1, %v1907_v51  ;;  %v1225_v63 = vrot.slane %v13403_v24, 1  ;;  %13404 = vst [vmem:[#allocation102_spill] sm:$0xff] %v9475_v22  ;;  %vm13411_vm3 = vcmp.ge.s32.totalorder %v13410_v43, 1  ;;  %v13418_v43 = vld [vmem:[#allocation72_spill] sm:$0xff] }
 0x192   : > { %v1401_v47 = vpop.f32.mrf.mxu2  ;;  %vm9490_vm4 = vmand %vm13411_vm3, %vm12495_vm7  ;;  %vm13419_vm9 = vcmp.ge.s32.totalorder %v13418_v43, 1 }
 0x193   : > { %13401 = vst [vmem:[#allocation200_spill] sm:$0xff] %v9467_v32  ;;  %v1635_v33 = vpop.f32.mrf.mxu3  ;;  %v1472_v53 = vadd.f32 %v1401_v47, %v8910_v6  ;;  %v13407_v6 = vmov 0  ;;  %vm12505_vm3 = vmpackc.low %vm9490_vm4, %vm9482_vm15  ;;  %v13420_v32 = vld [vmem:[#allocation73_spill] sm:$0xff] }
 0x194   : > { %v1839_v60 = vpop.f32.mrf.mxu0  ;;  %v13408_v6 = vsel %vm9482_vm15, 4294967295, %v13407_v6  ;;  %vm13421_vm7 = vcmp.ge.s32.totalorder %v13420_v32, 1 }
 0x195   : > { %v1706_v55 = vadd.f32 %v1635_v33, %v1472_v53  ;;  %13409 = vst [vmem:[#allocation70_spill] sm:$0xff] %v13408_v6  ;;  %v13412_v33 = vmov 0  ;;  %vm9509_vm8 = vmpackc.low %vm13421_vm7, %vm13419_vm9 }
 0x196   : > { %v2073_v1 = vpop.f32.mrf.mxu1  ;;  %v13413_v33 = vsel %vm9490_vm4, 4294967295, %v13412_v33 }
 0x197   : > { %v1908_v51 = vadd.f32 %v1837_v35, %v1706_v55  ;;  %13414 = vst [vmem:[#allocation71_spill] sm:$0xff] %v13413_v33  ;;  %v1237_v35 = vsel %vm13416_vm14, %v1224_v30, %v1225_v63  ;;  %vm13426_vm14 = vcmp.lt.s32.totalorder %v9475_v22, 15  ;;  %v6818_v33 = vld [vmem:[#allocation7 + $0x1c0] sm:$0xff] }
 0x198   : > { %vm9519_vm10 = vmpackc.low %vm13426_vm14, %vm13425_vm13  ;;  %2522 = vmatpush.bf16.msra.mxu3 %v6818_v33 }
 0x199   : > { %v9494_v53 = vadd.f32 %v2071_v11, %v1908_v51  ;;  %v13422_v11 = vmov 0  ;;  %v9513_v51 = vpack.c.bf16 %v1237_v35, %v1238_v29  ;;  %v13430_v35 = vld [vmem:[#allocation98_spill] sm:$0xff] }
 0x19a   : > { %v1403_v24 = vpop.f32.mrf.mxu2  ;;  %v13423_v11 = vsel %vm9509_vm8, 4294967295, %v13422_v11 }
 0x19b   : > { %13415 = vst [vmem:[#allocation202_spill] sm:$0xff] %v9494_v53  ;;  %v1637_v47 = vpop.f32.mrf.mxu3  ;;  %v1473_v55 = vadd.f32 %v1403_v24, %v8931_v54  ;;  %v13427_v54 = vmov 0  ;;  %v6810_v24 = vld [vmem:[#allocation7 + $0x180] sm:$0xff] }
 0x19c   : > { %13424 = vst [vmem:[#allocation72_spill] sm:$0xff] %v13423_v11  ;;  %v1842_v30 = vpop.f32.mrf.mxu0  ;;  %v13428_v54 = vsel %vm9519_vm10, 4294967295, %v13427_v54  ;;  %2288 = vmatpush.bf16.msra.mxu2 %v6810_v24  ;;  %v1227_v11 = vrot.slane %v8524_v52, 1  ;;  %v13439_v52 = vld [vmem:[#allocation85_spill] sm:$0xff]  ;;  %v6826_v24 = vld [vmem:[#allocation7 + $0x200] sm:$0xff] }
 0x19d   : > { %v1707_v26 = vadd.f32 %v1637_v47, %v1473_v55  ;;  %13429 = vst [vmem:[#allocation73_spill] sm:$0xff] %v13428_v54  ;;  %v13431_v47 = vld [vmem:[#allocation97_spill] sm:$0xff]  ;;  %2756 = vmatpush.bf16.msra.mxu0 %v6826_v24  ;;  %v13461_v24 = vld [vmem:[#allocation116_spill] sm:$0xff] }
 0x19e   : > { %v2076_v53 = vpop.f32.mrf.mxu1 }
 0x19f   : > { %5642 = vmatmul.msk.bf16.gmra.mxu2 %vm12505_vm3, %v9444_v13  ;;  %v1909_v29 = vadd.f32 %v1839_v60, %v1707_v26  ;;  %1881 = vmatmul.bf16.gmra.mxu0 %v13431_v47  ;;  %v9539_v13 = vld [vmem:[#allocation5 + $0x1d0] sm:$0xff]  ;;  %v7034_v60 = vld [vmem:[%s7476_s10 + $0xd8] sm:$0xff]  ;;  %vm13440_vm3 = vcmp.ge.s32.totalorder %v13439_v52, 1 }
 0x1a0   : > { %5722 = vmatmul.msk.bf16.gmra.mxu3 %vm9509_vm8, %v13430_v35  ;;  %vm12510_vm7 = vcmp.lt.s32.totalorder %v9539_v13, 15  ;;  %v1226_v26 = vrot.slane %v7034_v60, 1  ;;  %v9544_v35 = vld [vmem:[#allocation5 + $0x1d8] sm:$0xff]  ;;  %vm13445_vm8 = vcmp.lt.s32.totalorder %v7510_v19, 7 }
 0x1a1   : > { %5834 = vmatmul.msk.bf16.gmra.mxu1 %vm9519_vm10, %v9513_v51  ;;  %v9536_v55 = vadd.f32 %v2073_v1, %v1909_v29  ;;  %vm12509_vm9 = vcmp.lt.s32.totalorder %v9544_v35, 15  ;;  %vm13446_vm15 = vmmov %vm13445_vm8  ;;  %v13447_v52 = vld [vmem:[#allocation86_spill] sm:$0xff] }
 0x1a2   : > { %v1406_v6 = vpop.f32.mrf.mxu2  ;;  %vm9561_vm10 = vmand %vm13440_vm3, %vm12509_vm9  ;;  %v1235_v33 = vsel %vm13445_vm8, %v1226_v26, %v1227_v11  ;;  %vm13454_vm8 = vcmp.lt.s32.totalorder %v9539_v13, 15 }
 0x1a3   : > { %13432 = vst [vmem:[#allocation203_spill] sm:$0xff] %v9536_v55  ;;  %v1640_v22 = vpop.f32.mrf.mxu3  ;;  %v1474_v42 = vadd.f32 %v1406_v6, %v8977_v27  ;;  %v13434_v27 = vld [vmem:[#allocation84_spill] sm:$0xff]  ;;  %v13436_v6 = vmov 0 }
 0x1a4   : > { %v1844_v54 = vpop.f32.mrf.mxu0  ;;  %vm13435_vm13 = vcmp.ge.s32.totalorder %v13434_v27, 1 }
 0x1a5   : > { %v1708_v47 = vadd.f32 %v1640_v22, %v1474_v42  ;;  %vm9553_vm14 = vmand %vm13435_vm13, %vm12510_vm7  ;;  %v13441_v22 = vmov 0  ;;  %vm13448_vm13 = vcmp.ge.s32.totalorder %v13447_v52, 1 }
 0x1a6   : > { %v9547_v1 = vpop.f32.mrf.mxu1  ;;  %v13437_v6 = vsel %vm9553_vm14, 4294967295, %v13436_v6  ;;  %v13442_v22 = vsel %vm9561_vm10, 4294967295, %v13441_v22  ;;  %vm12516_vm3 = vmpackc.low %vm9561_vm10, %vm9553_vm14 }
 0x1a7   : > { %13433 = vst [vmem:[#allocation204_spill] sm:$0xff] %v9547_v1  ;;  %v1910_v29 = vadd.f32 %v1842_v30, %v1708_v47  ;;  %v1236_v30 = vsel %vm13446_vm15, %v1225_v63, %v1226_v26  ;;  %vm13455_vm15 = vcmp.lt.s32.totalorder %v9544_v35, 15 }
 0x1a8   : > { %13438 = vst [vmem:[#allocation84_spill] sm:$0xff] %v13437_v6  ;;  %v9584_v63 = vpack.c.bf16 %v1235_v33, %v1236_v30  ;;  %vm9590_vm4 = vmpackc.low %vm13455_vm15, %vm13454_vm8  ;;  %v13459_v33 = vld [vmem:[#allocation117_spill] sm:$0xff]  ;;  %v9610_v6 = vld [vmem:[#allocation5 + $0x1e0] sm:$0xff] }
 0x1a9   : > { %13443 = vst [vmem:[#allocation85_spill] sm:$0xff] %v13442_v22  ;;  %v9565_v42 = vadd.f32 %v2076_v53, %v1910_v29  ;;  %v13449_v53 = vld [vmem:[#allocation87_spill] sm:$0xff]  ;;  %v13451_v29 = vmov 0 }
 0x1aa   : > { %v1408_v47 = vpop.f32.mrf.mxu2  ;;  %vm13450_vm9 = vcmp.ge.s32.totalorder %v13449_v53, 1  ;;  %13462 = vst [vmem:[#allocation207_spill] sm:$0xff] %v9610_v6 }
 0x1ab   : > { %13444 = vst [vmem:[#allocation205_spill] sm:$0xff] %v9565_v42  ;;  %v1642_v60 = vpop.f32.mrf.mxu3  ;;  %v1475_v27 = vadd.f32 %v1408_v47, %v8998_v37  ;;  %vm9580_vm7 = vmpackc.low %vm13450_vm9, %vm13448_vm13  ;;  %v13456_v37 = vmov 0  ;;  %vm12520_vm9 = vcmp.lt.s32.totalorder %v9610_v6, 15 }
 0x1ac   : > { %v13452_v29 = vsel %vm9580_vm7, 4294967295, %v13451_v29  ;;  %v1847_v1 = vpop.f32.mrf.mxu0  ;;  %v13457_v37 = vsel %vm9590_vm4, 4294967295, %v13456_v37 }
 0x1ad   : > { %13453 = vst [vmem:[#allocation86_spill] sm:$0xff] %v13452_v29  ;;  %v1709_v26 = vadd.f32 %v1642_v60, %v1475_v27  ;;  %v9613_v29 = vld [vmem:[#allocation5 + $0x1e8] sm:$0xff] }
 0x1ae   : > { %v2081_v42 = vpop.f32.mrf.mxu1  ;;  %13458 = vst [vmem:[#allocation87_spill] sm:$0xff] %v13457_v37  ;;  %vm12519_vm13 = vcmp.lt.s32.totalorder %v9613_v29, 15 }
 0x1af   : > { %5645 = vmatmul.msk.bf16.gmra.mxu2 %vm12516_vm3, %v9513_v51  ;;  %v9603_v30 = vadd.f32 %v1844_v54, %v1709_v26  ;;  %1886 = vmatmul.bf16.gmra.mxu0 %v13461_v24  ;;  %13463 = vst [vmem:[#allocation208_spill] sm:$0xff] %v9613_v29  ;;  %v7038_v26 = vld [vmem:[%s7476_s10 + $0xe8] sm:$0xff]  ;;  %v13465_v24 = vld [vmem:[#allocation103_spill] sm:$0xff] }
 0x1b0   : > { %5725 = vmatmul.msk.bf16.gmra.mxu3 %vm9580_vm7, %v13459_v33  ;;  %vm13466_vm8 = vcmp.ge.s32.totalorder %v13465_v24, 1  ;;  %vm13477_vm7 = vcmp.lt.s32.totalorder %v7510_v19, 7 }
 0x1b1   : > { %13460 = vst [vmem:[#allocation206_spill] sm:$0xff] %v9603_v30  ;;  %5837 = vmatmul.msk.bf16.gmra.mxu1 %vm9590_vm4, %v9584_v63  ;;  %v1228_v30 = vrot.slane %v7038_v26, 1  ;;  %vm9623_vm15 = vmand %vm13466_vm8, %vm12520_vm9 }
 0x1b2   : > { %v1411_v47 = vpop.f32.mrf.mxu2  ;;  %vm13478_vm8 = vmmov %vm13477_vm7 }
 0x1b3   : > { %v1645_v60 = vpop.f32.mrf.mxu3  ;;  %v1476_v27 = vadd.f32 %v1411_v47, %v9044_v4  ;;  %v13467_v4 = vmov 0  ;;  %v13470_v47 = vld [vmem:[#allocation104_spill] sm:$0xff]  ;;  %v1234_v24 = vsel %vm13478_vm8, %v1227_v11, %v1228_v30  ;;  %vm13488_vm8 = vcmp.lt.s32.totalorder %v9613_v29, 15 }
 0x1b4   : > { %v1849_v55 = vpop.f32.mrf.mxu0  ;;  %v13468_v4 = vsel %vm9623_vm15, 4294967295, %v13467_v4  ;;  %vm13471_vm3 = vcmp.ge.s32.totalorder %v13470_v47, 1  ;;  %v13479_v47 = vld [vmem:[#allocation105_spill] sm:$0xff] }
 0x1b5   : > { %v1710_v22 = vadd.f32 %v1645_v60, %v1476_v27  ;;  %13469 = vst [vmem:[#allocation103_spill] sm:$0xff] %v13468_v4  ;;  %vm9631_vm4 = vmand %vm13471_vm3, %vm12519_vm13  ;;  %v13472_v60 = vmov 0  ;;  %vm13480_vm13 = vcmp.ge.s32.totalorder %v13479_v47, 1 }
 0x1b6   : > { %v9616_v54 = vpop.f32.mrf.mxu1  ;;  %v13473_v60 = vsel %vm9631_vm4, 4294967295, %v13472_v60  ;;  %vm12527_vm3 = vmpackc.low %vm9631_vm4, %vm9623_vm15 }
 0x1b7   : > { %13464 = vst [vmem:[#allocation209_spill] sm:$0xff] %v9616_v54  ;;  %v1912_v37 = vadd.f32 %v1847_v1, %v1710_v22  ;;  %v13476_v1 = vrot.slane %v7544_v28, 1  ;;  %v13483_v28 = vmov 0 }
 0x1b8   : > { %13474 = vst [vmem:[#allocation104_spill] sm:$0xff] %v13473_v60  ;;  %v9686_v60 = vld [vmem:[#allocation5 + $0x1f0] sm:$0xff] }
 0x1b9   : > { %v9635_v27 = vadd.f32 %v2081_v42, %v1912_v37  ;;  %v1233_v22 = vsel %vm13477_vm7, %v1228_v30, %v13476_v1  ;;  %v13481_v42 = vld [vmem:[#allocation106_spill] sm:$0xff]  ;;  %vm13487_vm7 = vcmp.lt.s32.totalorder %v9610_v6, 15  ;;  %13495 = vst [vmem:[#allocation213_spill] sm:$0xff] %v9686_v60 }
 0x1ba   : > { %v1413_v26 = vpop.f32.mrf.mxu2  ;;  %vm13482_vm9 = vcmp.ge.s32.totalorder %v13481_v42, 1  ;;  %v9656_v37 = vpack.c.bf16 %v1233_v22, %v1234_v24  ;;  %vm9662_vm10 = vmpackc.low %vm13488_vm8, %vm13487_vm7  ;;  %v7046_v22 = vld [vmem:[#allocation5 + $0x38] sm:$0xff] }
 0x1bb   : > { %13475 = vst [vmem:[#allocation210_spill] sm:$0xff] %v9635_v27  ;;  %v1647_v54 = vpop.f32.mrf.mxu3  ;;  %v1477_v33 = vadd.f32 %v1413_v26, %v9065_v62  ;;  %vm9652_vm14 = vmpackc.low %vm13482_vm9, %vm13480_vm13  ;;  %v13489_v62 = vmov 0  ;;  %vm12532_vm13 = vcmp.lt.s32.totalorder %v9686_v60, 15  ;;  %v13500_v27 = vmov 0 }
 0x1bc   : > { %v13484_v28 = vsel %vm9652_vm14, 4294967295, %v13483_v28  ;;  %13486 = vst [vmem:[#allocation106_spill] sm:$0xff] %v9656_v37  ;;  %v1852_v30 = vpop.f32.mrf.mxu0  ;;  %v13490_v62 = vsel %vm9662_vm10, 4294967295, %v13489_v62 }
 0x1bd   : > { %13485 = vst [vmem:[#allocation105_spill] sm:$0xff] %v13484_v28  ;;  %v1711_v11 = vadd.f32 %v1647_v54, %v1477_v33  ;;  %v13493_v54 = vld [vmem:[#allocation122_spill] sm:$0xff] }
 0x1be   : > { %v2086_v1 = vpop.f32.mrf.mxu1  ;;  %13491 = vst [vmem:[#allocation211_spill] sm:$0xff] %v13490_v62 }
 0x1bf   : > { %5648 = vmatmul.msk.bf16.gmra.mxu2 %vm12527_vm3, %v9584_v63  ;;  %v9675_v33 = vadd.f32 %v1849_v55, %v1711_v11  ;;  %1891 = vmatmul.bf16.gmra.mxu0 %v8609_v14  ;;  %v9689_v55 = vld [vmem:[#allocation5 + $0x1f8] sm:$0xff]  ;;  %v13505_v14 = vmov 0 }
 0x1c0   : > { %5728 = vmatmul.msk.bf16.gmra.mxu3 %vm9652_vm14, %v8615_v39  ;;  %13496 = vst [vmem:[#allocation214_spill] sm:$0xff] %v9689_v55  ;;  %vm12533_vm7 = vcmp.lt.s32.totalorder %v9689_v55, 15  ;;  %vm13516_vm14 = vcmp.lt.s32.totalorder %v9686_v60, 15  ;;  %vm13517_vm4 = vcmp.lt.s32.totalorder %v9689_v55, 15  ;;  %v13534_v55 = vld [vmem:[#allocation30_spill] sm:$0xff]  ;;  %v7044_v60 = vld [vmem:[#allocation5 + $0x28] sm:$0xff] }
 0x1c1   : > { %13492 = vst [vmem:[#allocation212_spill] sm:$0xff] %v9675_v33  ;;  %5840 = vmatmul.msk.bf16.gmra.mxu1 %vm9662_vm10, %v9656_v37  ;;  %v13498_v33 = vld [vmem:[#allocation121_spill] sm:$0xff]  ;;  %vm9729_vm12 = vmpackc.low %vm13517_vm4, %vm13516_vm14  ;;  %vm13544_vm14 = vcmp.lt.s32.totalorder %v7697_v17, 15 }
 0x1c2   : > { %v1416_v24 = vpop.f32.mrf.mxu2  ;;  %vm13499_vm8 = vcmp.ge.s32.totalorder %v13498_v33, 1 }
 0x1c3   : > { %v1650_v26 = vpop.f32.mrf.mxu3  ;;  %v1478_v4 = vadd.f32 %v1416_v24, %v9111_v16  ;;  %vm9698_vm3 = vmand %vm13499_vm8, %vm12532_vm13  ;;  %v13503_v24 = vld [vmem:[#allocation123_spill] sm:$0xff]  ;;  %vm13521_vm8 = vcmp.ge.s32.totalorder %v7691_v10, 1 }
 0x1c4   : > { %v1854_v62 = vpop.f32.mrf.mxu0  ;;  %v13501_v27 = vsel %vm9698_vm3, 4294967295, %v13500_v27  ;;  %vm13504_vm9 = vcmp.ge.s32.totalorder %v13503_v24, 1  ;;  %v13511_v24 = vld [vmem:[#allocation126_spill] sm:$0xff] }
 0x1c5   : > { %v1712_v11 = vadd.f32 %v1650_v26, %v1478_v4  ;;  %13502 = vst [vmem:[#allocation121_spill] sm:$0xff] %v13501_v27  ;;  %vm9706_vm10 = vmand %vm13504_vm9, %vm12533_vm7  ;;  %v7041_v26 = vld [vmem:[#allocation5 + $0x10] sm:$0xff]  ;;  %vm13512_vm7 = vcmp.ge.s32.totalorder %v13511_v24, 1  ;;  %v13536_v27 = vmov 0 }
 0x1c6   : > { %v9692_v28 = vpop.f32.mrf.mxu1  ;;  %v13506_v14 = vsel %vm9706_vm10, 4294967295, %v13505_v14  ;;  %vm13522_vm13 = vcmp.lt.s32.totalorder %v7041_v26, 15  ;;  %vm13531_vm4 = vmpackc.low %vm9706_vm10, %vm9698_vm3 }
 0x1c7   : > { %13497 = vst [vmem:[#allocation215_spill] sm:$0xff] %v9692_v28  ;;  %v1914_v16 = vadd.f32 %v1852_v30, %v1712_v11  ;;  %v7042_v30 = vld [vmem:[#allocation5 + $0x18] sm:$0xff]  ;;  %v13509_v11 = vld [vmem:[#allocation125_spill] sm:$0xff]  ;;  %vm9736_vm11 = vmand %vm13522_vm13, %vm13521_vm8 }
 0x1c8   : > { %13507 = vst [vmem:[#allocation123_spill] sm:$0xff] %v13506_v14  ;;  %vm13510_vm9 = vcmp.ge.s32.totalorder %v13509_v11, 1 }
 0x1c9   : > { %v9710_v4 = vadd.f32 %v2086_v1, %v1914_v16  ;;  %vm9721_vm15 = vmpackc.low %vm13512_vm7, %vm13510_vm9  ;;  %v13513_v1 = vmov 0  ;;  %v13518_v16 = vmov 0  ;;  %vm13526_vm7 = vcmp.ge.s32.totalorder %v7697_v17, 1  ;;  %v7043_v17 = vld [vmem:[#allocation5 + $0x20] sm:$0xff] }
 0x1ca   : > { %v1418_v28 = vpop.f32.mrf.mxu2  ;;  %v13514_v1 = vsel %vm9721_vm15, 4294967295, %v13513_v1  ;;  %v13519_v16 = vsel %vm9729_vm12, 4294967295, %v13518_v16  ;;  %vm13527_vm9 = vcmp.lt.s32.totalorder %v7042_v30, 15 }
 0x1cb   : > { %13508 = vst [vmem:[#allocation216_spill] sm:$0xff] %v9710_v4  ;;  %v1652_v39 = vpop.f32.mrf.mxu3  ;;  %v1479_v33 = vadd.f32 %v1418_v28, %v9132_v48  ;;  %v13523_v48 = vmov 0  ;;  %vm9743_vm1 = vmand %vm13527_vm9, %vm13526_vm7  ;;  %v13528_v28 = vmov 0 }
 0x1cc   : > { %13515 = vst [vmem:[#allocation125_spill] sm:$0xff] %v13514_v1  ;;  %v1857_v29 = vpop.f32.mrf.mxu0  ;;  %v13524_v48 = vsel %vm9736_vm11, 4294967295, %v13523_v48  ;;  %v13529_v28 = vsel %vm9743_vm1, 4294967295, %v13528_v28  ;;  %vm13535_vm8 = vmmov %vm13527_vm9  ;;  %vm13539_vm9 = vcmp.lt.s32.totalorder %v7691_v10, 15 }
 0x1cd   : > { %13520 = vst [vmem:[#allocation217_spill] sm:$0xff] %v13519_v16  ;;  %v1713_v4 = vadd.f32 %v1652_v39, %v1479_v33  ;;  %v13532_v39 = vld [vmem:[#allocation31_spill] sm:$0xff]  ;;  %vm9768_vm7 = vmpackc.low %vm13535_vm8, %vm13522_vm13  ;;  %v13546_v16 = vmov 0 }
 0x1ce   : > { %v2091_v6 = vpop.f32.mrf.mxu1  ;;  %13525 = vst [vmem:[#allocation218_spill] sm:$0xff] %v13524_v48  ;;  %v13537_v27 = vsel %vm9768_vm7, 4294967295, %v13536_v27  ;;  %vm13545_vm3 = vmmov %vm13535_vm8  ;;  %vm637_vm8 = vcmp.lt.s32.totalorder %v7043_v17, 15 }
 0x1cf   : > { %13530 = vst [vmem:[#allocation219_spill] sm:$0xff] %v13529_v28  ;;  %5651 = vmatmul.msk.bf16.gmra.mxu2 %vm13531_vm4, %v9656_v37  ;;  %v9756_v33 = vadd.f32 %v1854_v62, %v1713_v4  ;;  %1896 = vmatmul.bf16.gmra.mxu0 %v13534_v55  ;;  %vm13540_vm4 = vmmov %vm13522_vm13  ;;  %v13541_v62 = vmov 0 }
 0x1d0   : > { %5731 = vmatmul.msk.bf16.gmra.mxu3 %vm9721_vm15, %v13532_v39  ;;  %13538 = vst [vmem:[#allocation221_spill] sm:$0xff] %v13537_v27  ;;  %vm9775_vm15 = vmand %vm13540_vm4, %vm13539_vm9  ;;  %vm13553_vm4 = vcmp.ge.s32.totalorder %v7835_v31, 1  ;;  %v13678_v27 = vld [vmem:[#allocation127_spill] sm:$0xff] }
 0x1d1   : > { %13533 = vst [vmem:[#allocation220_spill] sm:$0xff] %v9756_v33  ;;  %5843 = vmatmul.msk.bf16.gmra.mxu1 %vm9729_vm12, %v8689_v9  ;;  %v13542_v62 = vsel %vm9775_vm15, 4294967295, %v13541_v62  ;;  %vm9782_vm10 = vmand %vm13545_vm3, %vm13544_vm14  ;;  %vm12554_vm3 = vcmp.lt.s32.totalorder %v7044_v60, 15  ;;  %vm13549_vm14 = vcmp.ge.s32.totalorder %v7829_v21, 1 }
 0x1d2   : > { %13543 = vst [vmem:[#allocation222_spill] sm:$0xff] %v13542_v62  ;;  %v1421_v4 = vpop.f32.mrf.mxu2  ;;  %v13547_v16 = vsel %vm9782_vm10, 4294967295, %v13546_v16  ;;  %vm9799_vm9 = vmand %vm637_vm8, %vm13549_vm14  ;;  %vm13571_vm14 = vcmp.lt.s32.totalorder %v7835_v31, 15  ;;  %v7045_v31 = vld [vmem:[#allocation5 + $0x30] sm:$0xff] }
 0x1d3   : > { %v1655_v1 = vpop.f32.mrf.mxu3  ;;  %13548 = vst [vmem:[#allocation223_spill] sm:$0xff] %v13547_v16  ;;  %v1480_v14 = vadd.f32 %v1421_v4, %v9178_v38  ;;  %vm9806_vm13 = vmand %vm12554_vm3, %vm13553_vm4  ;;  %vm13561_vm4 = vnez %v13493_v54 }
 0x1d4   : > { %v1859_v26 = vpop.f32.mrf.mxu0  ;;  %vm13559_vm12 = vmpackc.low %vm7530_vm6, %vm7517_vm5 }
 0x1d5   : > { %v1714_v10 = vadd.f32 %v1655_v1, %v1480_v14  ;;  %v13550_v14 = vmov 0  ;;  %vm13562_vm3 = vmpackc.low %vm8519_vm0, %vm13561_vm4 }
 0x1d6   : > { %v9791_v33 = vpop.f32.mrf.mxu1  ;;  %v13551_v14 = vsel %vm9799_vm9, 4294967295, %v13550_v14  ;;  %vm13584_vm0 = vmpackc.low %vm9743_vm1, %vm9736_vm11 }
 0x1d7   : > { %v1916_v9 = vadd.f32 %v1857_v29, %v1714_v10  ;;  %13552 = vst [vmem:[#allocation224_spill] sm:$0xff] %v13551_v14  ;;  %vm13605_vm1 = vnez %v13551_v14  ;;  %v13650_v14 = vld [vmem:[#allocation108_spill] sm:$0xff] }
 0x1d9   : > { %v9793_v55 = vadd.f32 %v2091_v6, %v1916_v9  ;;  %v13554_v9 = vmov 0  ;;  %v13708_v6 = vld [vmem:[#allocation20_spill] sm:$0xff] }
 0x1da   : > { %v1423_v30 = vpop.f32.mrf.mxu2  ;;  %v13555_v9 = vsel %vm9806_vm13, 4294967295, %v13554_v9 }
 0x1db   : > { %v1657_v39 = vpop.f32.mrf.mxu3  ;;  %v1481_v38 = vadd.f32 %v1423_v30, %v9203_v46  ;;  %13556 = vst [vmem:[#allocation225_spill] sm:$0xff] %v13555_v9 }
 0x1dc   : > { %v1862_v37 = vpop.f32.mrf.mxu0 }
 0x1dd   : > { %v1715_v4 = vadd.f32 %v1657_v39, %v1481_v38 }
 0x1de   : > { %v2096_v24 = vpop.f32.mrf.mxu1 }
 0x1df   : > { %5878 = vmatmul.msk.bf16.vlgmr.msra.gmra.mxu2 %vm13559_vm12, %v7921_v36  ;;  %v9819_v1 = vadd.f32 %v1859_v26, %v1715_v4  ;;  %6038 = vmatmul.msk.bf16.vlgmr.msra.gmra.mxu0 %vm13562_vm3, %v8766_v40  ;;  %vm13563_vm12 = vcmp.lt.s32.totalorder %v7044_v60, 15  ;;  %v13564_v36 = vmov 0  ;;  %v13573_v40 = vmov 0 }
 0x1e0   : > { %5958 = vmatmul.msk.bf16.vlgmr.msra.gmra.mxu3 %vm7502_vm2, %v7919_v7  ;;  %vm9833_vm5 = vmpackc.low %vm13563_vm12, %vm637_vm8  ;;  %vm13567_vm2 = vcmp.lt.s32.totalorder %v7829_v21, 15  ;;  %v13568_v7 = vmov 0 }
 0x1e1   : > { %v13565_v36 = vsel %vm9833_vm5, 4294967295, %v13564_v36  ;;  %vm9840_vm6 = vmand %vm637_vm8, %vm13567_vm2  ;;  %vm639_vm2 = vcmp.lt.s32.totalorder %v7045_v31, 15  ;;  %vm640_vm8 = vcmp.lt.s32.totalorder %v7046_v22, 15 }
 0x1e2   : > { %13566 = vst [vmem:[#allocation226_spill] sm:$0xff] %v13565_v36  ;;  %v13569_v7 = vsel %vm9840_vm6, 4294967295, %v13568_v7  ;;  %v1426_v39 = vpop.f32.mrf.mxu2  ;;  %vm13572_vm9 = vmmov %vm13563_vm12  ;;  %vm13580_vm12 = vcmp.ge.s32.totalorder %v7973_v12, 1 }
 0x1e3   : > { %13570 = vst [vmem:[#allocation227_spill] sm:$0xff] %v13569_v7  ;;  %v1660_v10 = vpop.f32.mrf.mxu3  ;;  %vm9847_vm4 = vmand %vm13572_vm9, %vm13571_vm14  ;;  %v1482_v26 = vadd.f32 %v1426_v39, %v8724_v2  ;;  %vm13576_vm9 = vcmp.ge.s32.totalorder %v7967_v34, 1 }
 0x1e4   : > { %v13574_v40 = vsel %vm9847_vm4, 4294967295, %v13573_v40  ;;  %v1864_v17 = vpop.f32.mrf.mxu0  ;;  %vm9864_vm14 = vmand %vm639_vm2, %vm13576_vm9  ;;  %vm13593_vm9 = vcmp.lt.s32.totalorder %v7973_v12, 15  ;;  %v7047_v12 = vld [vmem:[#allocation5 + $0x40] sm:$0xff] }
 0x1e5   : > { %13575 = vst [vmem:[#allocation228_spill] sm:$0xff] %v13574_v40  ;;  %v1716_v21 = vadd.f32 %v1660_v10, %v1482_v26  ;;  %v13577_v10 = vmov 0  ;;  %vm9871_vm3 = vmand %vm640_vm8, %vm13580_vm12  ;;  %v13619_v40 = vld [vmem:[#allocation89_spill] sm:$0xff] }
 0x1e6   : > { %v9856_v30 = vpop.f32.mrf.mxu1  ;;  %v13578_v10 = vsel %vm9864_vm14, 4294967295, %v13577_v10  ;;  %vm13585_vm12 = vmpackc.low %vm9782_vm10, %vm9775_vm15 }
 0x1e7   : > { %v1918_v38 = vadd.f32 %v1862_v37, %v1716_v21  ;;  %13579 = vst [vmem:[#allocation229_spill] sm:$0xff] %v13578_v10  ;;  %v13581_v37 = vmov 0  ;;  %vm9912_vm15 = vmand %vm640_vm8, %vm13593_vm9  ;;  %v13649_v10 = vld [vmem:[#allocation158_spill] sm:$0xff] }
 0x1e8   : > { %v13582_v37 = vsel %vm9871_vm3, 4294967295, %v13581_v37 }
 0x1e9   : > { %v9858_v4 = vadd.f32 %v2096_v24, %v1918_v38  ;;  %13583 = vst [vmem:[#allocation230_spill] sm:$0xff] %v13582_v37 }
 0x1ea   : > { %v1428_v60 = vpop.f32.mrf.mxu2 }
 0x1eb   : > { %v1662_v54 = vpop.f32.mrf.mxu3  ;;  %v1483_v2 = vadd.f32 %v1428_v60, %v8752_v25 }
 0x1ec   : > { %v1867_v29 = vpop.f32.mrf.mxu0 }
 0x1ed   : > { %v1717_v39 = vadd.f32 %v1662_v54, %v1483_v2  ;;  %v7048_v2 = vld [vmem:[#allocation5 + $0x48] sm:$0xff] }
 0x1ee   : > { %v2101_v46 = vpop.f32.mrf.mxu1 }
 0x1ef   : > { %5881 = vmatmul.msk.bf16.gmra.mxu2 %vm13584_vm0, %v8059_v23  ;;  %v9884_v25 = vadd.f32 %v1864_v17, %v1717_v39  ;;  %6041 = vmatmul.msk.bf16.gmra.mxu0 %vm13585_vm12, %v8833_v15  ;;  %vm9898_vm0 = vmpackc.low %vm640_vm8, %vm639_vm2  ;;  %v13586_v23 = vmov 0  ;;  %v13594_v15 = vmov 0  ;;  %vm13597_vm8 = vcmp.ge.s32.totalorder %v8105_v50, 1 }
 0x1f0   : > { %5961 = vmatmul.msk.bf16.gmra.mxu3 %vm9768_vm7, %v8057_v5  ;;  %v13587_v23 = vsel %vm9898_vm0, 4294967295, %v13586_v23  ;;  %vm13589_vm7 = vcmp.lt.s32.totalorder %v7967_v34, 15  ;;  %v13590_v5 = vmov 0  ;;  %v13595_v15 = vsel %vm9912_vm15, 4294967295, %v13594_v15 }
 0x1f1   : > { %13588 = vst [vmem:[#allocation231_spill] sm:$0xff] %v13587_v23  ;;  %vm9905_vm11 = vmand %vm639_vm2, %vm13589_vm7  ;;  %vm641_vm7 = vcmp.lt.s32.totalorder %v7047_v12, 15  ;;  %vm642_vm2 = vcmp.lt.s32.totalorder %v7048_v2, 15  ;;  %vm13601_vm12 = vcmp.ge.s32.totalorder %v8111_v58, 1  ;;  %v7052_v23 = vld [vmem:[#allocation5 + $0x68] sm:$0xff] }
 0x1f2   : > { %v13591_v5 = vsel %vm9905_vm11, 4294967295, %v13590_v5  ;;  %v1431_v54 = vpop.f32.mrf.mxu2  ;;  %13596 = vst [vmem:[#allocation233_spill] sm:$0xff] %v13595_v15  ;;  %vm9929_vm9 = vmand %vm641_vm7, %vm13597_vm8 }
 0x1f3   : > { %13592 = vst [vmem:[#allocation232_spill] sm:$0xff] %v13591_v5  ;;  %v1665_v24 = vpop.f32.mrf.mxu3  ;;  %v1484_v26 = vadd.f32 %v1431_v54, %v8791_v8  ;;  %vm9936_vm10 = vmand %vm642_vm2, %vm13601_vm12  ;;  %vm13615_vm12 = vcmp.lt.s32.totalorder %v8111_v58, 15  ;;  %v7049_v58 = vld [vmem:[#allocation5 + $0x50] sm:$0xff] }
 0x1f4   : > { %v1869_v21 = vpop.f32.mrf.mxu0  ;;  %vm13606_vm11 = vmpackc.low %vm9806_vm13, %vm13605_vm1 }
 0x1f5   : > { %v1718_v34 = vadd.f32 %v1665_v24, %v1484_v26  ;;  %v13598_v24 = vmov 0  ;;  %vm13607_vm8 = vmpackc.low %vm9847_vm4, %vm9840_vm6 }
 0x1f6   : > { %v9921_v17 = vpop.f32.mrf.mxu1  ;;  %v13599_v24 = vsel %vm9929_vm9, 4294967295, %v13598_v24  ;;  %vm9977_vm6 = vmand %vm642_vm2, %vm13615_vm12 }
 0x1f7   : > { %v1920_v38 = vadd.f32 %v1867_v29, %v1718_v34  ;;  %13600 = vst [vmem:[#allocation234_spill] sm:$0xff] %v13599_v24  ;;  %vm13630_vm13 = vmpackc.low %vm9871_vm3, %vm9864_vm14  ;;  %v7054_v24 = vld [vmem:[#allocation5 + $0x78] sm:$0xff] }
 0x1f9   : > { %v9923_v31 = vadd.f32 %v2101_v46, %v1920_v38  ;;  %v13602_v46 = vmov 0 }
 0x1fa   : > { %v1433_v22 = vpop.f32.mrf.mxu2  ;;  %v13603_v46 = vsel %vm9936_vm10, 4294967295, %v13602_v46 }
 0x1fb   : > { %v1667_v60 = vpop.f32.mrf.mxu3  ;;  %v1485_v8 = vadd.f32 %v1433_v22, %v8819_v0  ;;  %13604 = vst [vmem:[#allocation235_spill] sm:$0xff] %v13603_v46  ;;  %v13677_v46 = vld [vmem:[#allocation163_spill] sm:$0xff] }
 0x1fc   : > { %v1872_v54 = vpop.f32.mrf.mxu0 }
 0x1fd   : > { %v1719_v39 = vadd.f32 %v1667_v60, %v1485_v8  ;;  %v7050_v8 = vld [vmem:[#allocation5 + $0x58] sm:$0xff] }
 0x1fe   : > { %v2106_v62 = vpop.f32.mrf.mxu1 }
 0x1ff   : > { %5884 = vmatmul.msk.bf16.gmra.mxu2 %vm13606_vm11, %v8197_v56  ;;  %v9949_v0 = vadd.f32 %v1869_v21, %v1719_v39  ;;  %6044 = vmatmul.msk.bf16.gmra.mxu0 %vm13607_vm8, %v8900_v3  ;;  %vm9963_vm11 = vmpackc.low %vm642_vm2, %vm641_vm7  ;;  %v13608_v56 = vmov 0  ;;  %v13616_v3 = vmov 0  ;;  %vm13620_vm2 = vcmp.ge.s32.totalorder %v13619_v40, 1 }
 0x200   : > { %5964 = vmatmul.msk.bf16.gmra.mxu3 %vm9833_vm5, %v8195_v61  ;;  %v13609_v56 = vsel %vm9963_vm11, 4294967295, %v13608_v56  ;;  %vm13611_vm5 = vcmp.lt.s32.totalorder %v8105_v50, 15  ;;  %v13612_v61 = vmov 0  ;;  %v13617_v3 = vsel %vm9977_vm6, 4294967295, %v13616_v3 }
 0x201   : > { %13610 = vst [vmem:[#allocation236_spill] sm:$0xff] %v13609_v56  ;;  %vm9970_vm1 = vmand %vm641_vm7, %vm13611_vm5  ;;  %vm643_vm5 = vcmp.lt.s32.totalorder %v7049_v58, 15  ;;  %vm12577_vm7 = vcmp.lt.s32.totalorder %v7050_v8, 15 }
 0x202   : > { %v13613_v61 = vsel %vm9970_vm1, 4294967295, %v13612_v61  ;;  %v1436_v29 = vpop.f32.mrf.mxu2  ;;  %13618 = vst [vmem:[#allocation238_spill] sm:$0xff] %v13617_v3  ;;  %vm9994_vm12 = vmand %vm643_vm5, %vm13620_vm2  ;;  %vm13633_vm2 = vnez %v13591_v5 }
 0x203   : > { %13614 = vst [vmem:[#allocation237_spill] sm:$0xff] %v13613_v61  ;;  %v1670_v26 = vpop.f32.mrf.mxu3  ;;  %v1486_v34 = vadd.f32 %v1436_v29, %v8858_v45 }
 0x204   : > { %v1874_v21 = vpop.f32.mrf.mxu0 }
 0x205   : > { %v1720_v50 = vadd.f32 %v1670_v26, %v1486_v34  ;;  %v13621_v26 = vmov 0  ;;  %v13629_v34 = vld [vmem:[#allocation101_spill] sm:$0xff] }
 0x206   : > { %v9986_v38 = vpop.f32.mrf.mxu1  ;;  %v13622_v26 = vsel %vm9994_vm12, 4294967295, %v13621_v26 }
 0x207   : > { %v1922_v12 = vadd.f32 %v1872_v54, %v1720_v50  ;;  %13623 = vst [vmem:[#allocation89_spill] sm:$0xff] %v13622_v26  ;;  %v13626_v54 = vmov 0 }
 0x209   : > { %v9988_v22 = vadd.f32 %v2106_v62, %v1922_v12  ;;  %v13624_v62 = vld [vmem:[#allocation91_spill] sm:$0xff]  ;;  %v13632_v12 = vld [vmem:[#allocation160_spill] sm:$0xff] }
 0x20a   : > { %v1438_v60 = vpop.f32.mrf.mxu2  ;;  %vm13625_vm8 = vcmp.ge.s32.totalorder %v13624_v62, 1 }
 0x20b   : > { %v1672_v2 = vpop.f32.mrf.mxu3  ;;  %v1487_v45 = vadd.f32 %v1438_v60, %v8886_v44  ;;  %vm10001_vm4 = vmand %vm12577_vm7, %vm13625_vm8  ;;  %v13631_v44 = vld [vmem:[#allocation100_spill] sm:$0xff]  ;;  %v13636_v60 = vmov 0  ;;  %vm13643_vm8 = vcmp.lt.s32.totalorder %v13624_v62, 15  ;;  %v7051_v62 = vld [vmem:[#allocation5 + $0x60] sm:$0xff] }
 0x20c   : > { %v1877_v29 = vpop.f32.mrf.mxu0  ;;  %v13627_v54 = vsel %vm10001_vm4, 4294967295, %v13626_v54  ;;  %vm13634_vm7 = vmpackc.low %vm9912_vm15, %vm13633_vm2 }
 0x20d   : > { %v1721_v39 = vadd.f32 %v1672_v2, %v1487_v45  ;;  %13628 = vst [vmem:[#allocation91_spill] sm:$0xff] %v13627_v54  ;;  %vm13661_vm15 = vmpackc.low %vm9936_vm10, %vm9929_vm9  ;;  %vm13689_vm10 = vnez %v13622_v26  ;;  %v7056_v26 = vld [vmem:[#allocation5 + $0x88] sm:$0xff] }
 0x20e   : > { %v2111_v7 = vpop.f32.mrf.mxu1  ;;  %v13706_v54 = vld [vmem:[#allocation168_spill] sm:$0xff] }
 0x20f   : > { %5887 = vmatmul.msk.bf16.gmra.mxu2 %vm13630_vm13, %v13629_v34  ;;  %v10014_v50 = vadd.f32 %v1874_v21, %v1721_v39  ;;  %6047 = vmatmul.msk.bf16.gmra.mxu0 %vm13634_vm7, %v13632_v12  ;;  %vm13635_vm13 = vcmp.lt.s32.totalorder %v7050_v8, 15  ;;  %v13640_v21 = vmov 0  ;;  %v13645_v39 = vmov 0  ;;  %v13648_v34 = vld [vmem:[#allocation157_spill] sm:$0xff] }
 0x210   : > { %5967 = vmatmul.msk.bf16.gmra.mxu3 %vm9898_vm0, %v13631_v44  ;;  %vm10028_vm14 = vmpackc.low %vm13635_vm13, %vm643_vm5  ;;  %vm13639_vm0 = vcmp.lt.s32.totalorder %v13619_v40, 15 }
 0x211   : > { %v13637_v60 = vsel %vm10028_vm14, 4294967295, %v13636_v60  ;;  %vm10035_vm3 = vmand %vm643_vm5, %vm13639_vm0  ;;  %vm645_vm0 = vcmp.lt.s32.totalorder %v7051_v62, 15  ;;  %vm646_vm5 = vcmp.lt.s32.totalorder %v7052_v23, 15 }
 0x212   : > { %13638 = vst [vmem:[#allocation101_spill] sm:$0xff] %v13637_v60  ;;  %v13641_v21 = vsel %vm10035_vm3, 4294967295, %v13640_v21  ;;  %v1441_v2 = vpop.f32.mrf.mxu2  ;;  %vm13644_vm12 = vmmov %vm13635_vm13  ;;  %v7055_v60 = vld [vmem:[#allocation5 + $0x80] sm:$0xff] }
 0x213   : > { %13642 = vst [vmem:[#allocation100_spill] sm:$0xff] %v13641_v21  ;;  %v1675_v45 = vpop.f32.mrf.mxu3  ;;  %vm10042_vm2 = vmand %vm13644_vm12, %vm13643_vm8  ;;  %v1488_v44 = vadd.f32 %v1441_v2, %v13648_v34  ;;  %vm13651_vm12 = vcmp.ge.s32.totalorder %v13650_v14, 1 }
 0x214   : > { %v13646_v39 = vsel %vm10042_vm2, 4294967295, %v13645_v39  ;;  %v1879_v58 = vpop.f32.mrf.mxu0  ;;  %vm10059_vm8 = vmand %vm645_vm0, %vm13651_vm12 }
 0x215   : > { %13647 = vst [vmem:[#allocation160_spill] sm:$0xff] %v13646_v39  ;;  %v1722_v40 = vadd.f32 %v1675_v45, %v1488_v44  ;;  %v13652_v45 = vmov 0  ;;  %v13663_v44 = vld [vmem:[#allocation165_spill] sm:$0xff] }
 0x216   : > { %v10051_v12 = vpop.f32.mrf.mxu1  ;;  %v13653_v45 = vsel %vm10059_vm8, 4294967295, %v13652_v45 }
 0x217   : > { %v1924_v5 = vadd.f32 %v1877_v29, %v1722_v40  ;;  %13654 = vst [vmem:[#allocation157_spill] sm:$0xff] %v13653_v45  ;;  %v13660_v29 = vld [vmem:[#allocation120_spill] sm:$0xff]  ;;  %v13665_v40 = vmov 0  ;;  %v7058_v45 = vld [vmem:[#allocation5 + $0x98] sm:$0xff] }
 0x219   : > { %v10053_v15 = vadd.f32 %v2111_v7, %v1924_v5  ;;  %v13655_v7 = vld [vmem:[#allocation110_spill] sm:$0xff]  ;;  %v13657_v5 = vmov 0 }
 0x21a   : > { %v1443_v8 = vpop.f32.mrf.mxu2  ;;  %vm13656_vm13 = vcmp.ge.s32.totalorder %v13655_v7, 1  ;;  %vm13672_vm12 = vcmp.lt.s32.totalorder %v13655_v7, 15  ;;  %v7053_v7 = vld [vmem:[#allocation5 + $0x70] sm:$0xff] }
 0x21b   : > { %v1677_v16 = vpop.f32.mrf.mxu3  ;;  %v1489_v2 = vadd.f32 %v1443_v8, %v13649_v10  ;;  %vm10066_vm7 = vmand %vm646_vm5, %vm13656_vm13 }
 0x21c   : > { %v1882_v37 = vpop.f32.mrf.mxu0  ;;  %v13658_v5 = vsel %vm10066_vm7, 4294967295, %v13657_v5  ;;  %vm13664_vm13 = vmpackc.low %vm9977_vm6, %vm9970_vm1 }
 0x21d   : > { %v1723_v34 = vadd.f32 %v1677_v16, %v1489_v2  ;;  %13659 = vst [vmem:[#allocation158_spill] sm:$0xff] %v13658_v5  ;;  %v13662_v16 = vld [vmem:[#allocation119_spill] sm:$0xff]  ;;  %vm10107_vm1 = vmand %vm646_vm5, %vm13672_vm12 }
 0x21e   : > { %v2116_v36 = vpop.f32.mrf.mxu1  ;;  %v13740_v5 = vld [vmem:[#allocation175_spill] sm:$0xff] }
 0x21f   : > { %5890 = vmatmul.msk.bf16.gmra.mxu2 %vm13661_vm15, %v13660_v29  ;;  %v10079_v10 = vadd.f32 %v1879_v58, %v1723_v34  ;;  %6050 = vmatmul.msk.bf16.gmra.mxu0 %vm13664_vm13, %v13663_v44  ;;  %vm10093_vm15 = vmpackc.low %vm646_vm5, %vm645_vm0  ;;  %v13669_v58 = vmov 0  ;;  %v13673_v34 = vmov 0  ;;  %v13676_v29 = vld [vmem:[#allocation162_spill] sm:$0xff]  ;;  %vm13679_vm5 = vcmp.ge.s32.totalorder %v13678_v27, 1 }
 0x220   : > { %5970 = vmatmul.msk.bf16.gmra.mxu3 %vm9963_vm11, %v13662_v16  ;;  %v13666_v40 = vsel %vm10093_vm15, 4294967295, %v13665_v40  ;;  %vm13668_vm11 = vcmp.lt.s32.totalorder %v13650_v14, 15  ;;  %v13674_v34 = vsel %vm10107_vm1, 4294967295, %v13673_v34 }
 0x221   : > { %13667 = vst [vmem:[#allocation108_spill] sm:$0xff] %v13666_v40  ;;  %vm10100_vm9 = vmand %vm645_vm0, %vm13668_vm11  ;;  %vm647_vm11 = vcmp.lt.s32.totalorder %v7053_v7, 15  ;;  %vm648_vm0 = vcmp.lt.s32.totalorder %v7054_v24, 15  ;;  %v7057_v40 = vld [vmem:[#allocation5 + $0x90] sm:$0xff] }
 0x222   : > { %v13670_v58 = vsel %vm10100_vm9, 4294967295, %v13669_v58  ;;  %v1446_v8 = vpop.f32.mrf.mxu2  ;;  %13675 = vst [vmem:[#allocation120_spill] sm:$0xff] %v13674_v34  ;;  %vm10124_vm12 = vmand %vm647_vm11, %vm13679_vm5 }
 0x223   : > { %13671 = vst [vmem:[#allocation110_spill] sm:$0xff] %v13670_v58  ;;  %v1680_v2 = vpop.f32.mrf.mxu3  ;;  %v1490_v16 = vadd.f32 %v1446_v8, %v13676_v29  ;;  %vm13690_vm9 = vmpackc.low %vm10001_vm4, %vm13689_vm10 }
 0x224   : > { %v1884_v62 = vpop.f32.mrf.mxu0  ;;  %vm13693_vm5 = vmpackc.low %vm10042_vm2, %vm10035_vm3 }
 0x225   : > { %v1724_v14 = vadd.f32 %v1680_v2, %v1490_v16  ;;  %v13680_v2 = vmov 0  ;;  %v13688_v16 = vld [vmem:[#allocation138_spill] sm:$0xff]  ;;  %vm13719_vm4 = vmpackc.low %vm10066_vm7, %vm10059_vm8 }
 0x226   : > { %v10116_v61 = vpop.f32.mrf.mxu1  ;;  %v13681_v2 = vsel %vm10124_vm12, 4294967295, %v13680_v2 }
 0x227   : > { %v1926_v44 = vadd.f32 %v1882_v37, %v1724_v14  ;;  %13682 = vst [vmem:[#allocation119_spill] sm:$0xff] %v13681_v2  ;;  %v13683_v37 = vld [vmem:[#allocation128_spill] sm:$0xff]  ;;  %v13692_v14 = vld [vmem:[#allocation170_spill] sm:$0xff] }
 0x228   : > { %vm13684_vm13 = vcmp.ge.s32.totalorder %v13683_v37, 1 }
 0x229   : > { %v10118_v3 = vadd.f32 %v2116_v36, %v1926_v44  ;;  %vm10131_vm6 = vmand %vm648_vm0, %vm13684_vm13  ;;  %v13685_v36 = vmov 0  ;;  %v13694_v44 = vmov 0  ;;  %vm13701_vm13 = vcmp.lt.s32.totalorder %v13683_v37, 15 }
 0x22a   : > { %v1448_v23 = vpop.f32.mrf.mxu2  ;;  %v13686_v36 = vsel %vm10131_vm6, 4294967295, %v13685_v36 }
 0x22b   : > { %v1682_v56 = vpop.f32.mrf.mxu3  ;;  %v1491_v8 = vadd.f32 %v1448_v23, %v13677_v46  ;;  %13687 = vst [vmem:[#allocation165_spill] sm:$0xff] %v13686_v36  ;;  %v13691_v46 = vld [vmem:[#allocation137_spill] sm:$0xff]  ;;  %v13698_v23 = vmov 0 }
 0x22c   : > { %v1887_v9 = vpop.f32.mrf.mxu0 }
 0x22d   : > { %v1725_v29 = vadd.f32 %v1682_v56, %v1491_v8 }
 0x22f   : > { %5893 = vmatmul.msk.bf16.gmra.mxu2 %vm13690_vm9, %v13688_v16  ;;  %v10144_v56 = vadd.f32 %v1884_v62, %v1725_v29  ;;  %6053 = vmatmul.msk.bf16.gmra.mxu0 %vm13693_vm5, %v13692_v14  ;;  %vm10158_vm9 = vmpackc.low %vm648_vm0, %vm647_vm11  ;;  %v2121_v62 = vpop.f32.mrf.mxu1  ;;  %v13702_v16 = vmov 0 }
 0x230   : > { %5973 = vmatmul.msk.bf16.gmra.mxu3 %vm10028_vm14, %v13691_v46  ;;  %v13695_v44 = vsel %vm10158_vm9, 4294967295, %v13694_v44  ;;  %vm13697_vm14 = vcmp.lt.s32.totalorder %v13678_v27, 15  ;;  %vm10172_vm5 = vmand %vm648_vm0, %vm13701_vm13  ;;  %v13705_v46 = vld [vmem:[#allocation167_spill] sm:$0xff]  ;;  %vm13709_vm0 = vcmp.ge.s32.totalorder %v13708_v6, 1 }
 0x231   : > { %13696 = vst [vmem:[#allocation162_spill] sm:$0xff] %v13695_v44  ;;  %vm10165_vm10 = vmand %vm647_vm11, %vm13697_vm14  ;;  %v13703_v16 = vsel %vm10172_vm5, 4294967295, %v13702_v16  ;;  %vm649_vm14 = vcmp.lt.s32.totalorder %v7055_v60, 15  ;;  %vm12617_vm11 = vcmp.lt.s32.totalorder %v7056_v26, 15 }
 0x232   : > { %v13699_v23 = vsel %vm10165_vm10, 4294967295, %v13698_v23  ;;  %v1451_v8 = vpop.f32.mrf.mxu2  ;;  %13704 = vst [vmem:[#allocation127_spill] sm:$0xff] %v13703_v16  ;;  %vm10189_vm13 = vmand %vm649_vm14, %vm13709_vm0  ;;  %vm13722_vm0 = vnez %v13670_v58  ;;  %v13770_v16 = vld [vmem:[#allocation182_spill] sm:$0xff] }
 0x233   : > { %13700 = vst [vmem:[#allocation163_spill] sm:$0xff] %v13699_v23  ;;  %v1685_v29 = vpop.f32.mrf.mxu3  ;;  %v1492_v14 = vadd.f32 %v1451_v8, %v13705_v46 }
 0x234   : > { %v1889_v7 = vpop.f32.mrf.mxu0 }
 0x235   : > { %v1726_v27 = vadd.f32 %v1685_v29, %v1492_v14  ;;  %v13710_v29 = vmov 0  ;;  %v13725_v14 = vmov 0 }
 0x236   : > { %v13711_v29 = vsel %vm10189_vm13, 4294967295, %v13710_v29 }
 0x237   : > { %v1928_v21 = vadd.f32 %v1887_v9, %v1726_v27  ;;  %v10184_v28 = vpop.f32.mrf.mxu1  ;;  %13712 = vst [vmem:[#allocation138_spill] sm:$0xff] %v13711_v29  ;;  %v13713_v9 = vld [vmem:[#allocation21_spill] sm:$0xff]  ;;  %v13728_v27 = vld [vmem:[#allocation180_spill] sm:$0xff] }
 0x238   : > { %13707 = vst [vmem:[#allocation128_spill] sm:$0xff] %v10184_v28  ;;  %vm13714_vm3 = vcmp.ge.s32.totalorder %v13713_v9, 1  ;;  %v13736_v9 = vmov 0 }
 0x239   : > { %v10181_v39 = vadd.f32 %v2121_v62, %v1928_v21  ;;  %vm10196_vm2 = vmand %vm12617_vm11, %vm13714_vm3  ;;  %v13715_v21 = vmov 0  ;;  %v13718_v62 = vld [vmem:[#allocation28_spill] sm:$0xff] }
 0x23a   : > { %v1453_v37 = vpop.f32.mrf.mxu2  ;;  %v13716_v21 = vsel %vm10196_vm2, 4294967295, %v13715_v21  ;;  %vm13723_vm11 = vmpackc.low %vm10107_vm1, %vm13722_vm0 }
 0x23b   : > { %v1687_v24 = vpop.f32.mrf.mxu3  ;;  %v1493_v48 = vadd.f32 %v1453_v37, %v13706_v54  ;;  %13717 = vst [vmem:[#allocation137_spill] sm:$0xff] %v13716_v21  ;;  %v13721_v54 = vld [vmem:[#allocation177_spill] sm:$0xff]  ;;  %vm13750_vm1 = vmpackc.low %vm10131_vm6, %vm10124_vm12  ;;  %vm13781_vm6 = vnez %v13711_v29 }
 0x23c   : > { %v1892_v46 = vpop.f32.mrf.mxu0 }
 0x23d   : > { %v1727_v8 = vadd.f32 %v1687_v24, %v1493_v48  ;;  %v13720_v48 = vld [vmem:[#allocation27_spill] sm:$0xff] }
 0x23f   : > { %5896 = vmatmul.msk.bf16.gmra.mxu2 %vm13719_vm4, %v13718_v62  ;;  %v10209_v6 = vadd.f32 %v1889_v7, %v1727_v8  ;;  %6056 = vmatmul.msk.bf16.gmra.mxu0 %vm13723_vm11, %v13721_v54  ;;  %vm13724_vm4 = vcmp.lt.s32.totalorder %v7056_v26, 15  ;;  %v13730_v7 = vmov 0  ;;  %v13733_v8 = vld [vmem:[#allocation181_spill] sm:$0xff]  ;;  %v13739_v62 = vld [vmem:[#allocation172_spill] sm:$0xff] }
 0x240   : > { %5976 = vmatmul.msk.bf16.gmra.mxu3 %vm10093_vm15, %v13720_v48  ;;  %vm10223_vm8 = vmpackc.low %vm13724_vm4, %vm649_vm14  ;;  %vm13729_vm15 = vcmp.lt.s32.totalorder %v13728_v27, 15  ;;  %vm13734_vm3 = vcmp.lt.s32.totalorder %v13733_v8, 15  ;;  %v2126_v27 = vpop.f32.mrf.mxu1 }
 0x241   : > { %v13726_v14 = vsel %vm10223_vm8, 4294967295, %v13725_v14  ;;  %vm10230_vm7 = vmand %vm649_vm14, %vm13729_vm15  ;;  %vm651_vm15 = vcmp.lt.s32.totalorder %v7057_v40, 15  ;;  %vm652_vm14 = vcmp.lt.s32.totalorder %v7058_v45, 15  ;;  %v7060_v45 = vld [vmem:[#allocation5 + $0xa8] sm:$0xff] }
 0x242   : > { %13727 = vst [vmem:[#allocation170_spill] sm:$0xff] %v13726_v14  ;;  %v13731_v7 = vsel %vm10230_vm7, 4294967295, %v13730_v7  ;;  %v1456_v37 = vpop.f32.mrf.mxu2  ;;  %vm13735_vm13 = vmmov %vm13724_vm4  ;;  %vm13745_vm4 = vcmp.ge.s32.totalorder %v13325_v49, 1  ;;  %v13753_v49 = vld [vmem:[#allocation184_spill] sm:$0xff]  ;;  %v7062_v14 = vld [vmem:[#allocation5 + $0xb8] sm:$0xff] }
 0x243   : > { %13732 = vst [vmem:[#allocation167_spill] sm:$0xff] %v13731_v7  ;;  %v1690_v24 = vpop.f32.mrf.mxu3  ;;  %vm10237_vm0 = vmand %vm13735_vm13, %vm13734_vm3  ;;  %v1494_v48 = vadd.f32 %v1456_v37, %v13739_v62  ;;  %vm13741_vm13 = vcmp.ge.s32.totalorder %v13323_v18, 1  ;;  %v13751_v18 = vld [vmem:[#allocation41_spill] sm:$0xff] }
 0x244   : > { %v13737_v9 = vsel %vm10237_vm0, 4294967295, %v13736_v9  ;;  %v1894_v54 = vpop.f32.mrf.mxu0  ;;  %vm10252_vm3 = vmand %vm651_vm15, %vm13741_vm13 }
 0x245   : > { %13738 = vst [vmem:[#allocation168_spill] sm:$0xff] %v13737_v9  ;;  %v1728_v60 = vadd.f32 %v1690_v24, %v1494_v48  ;;  %v13742_v24 = vmov 0  ;;  %vm10259_vm11 = vmand %vm652_vm14, %vm13745_vm4  ;;  %v13755_v48 = vmov 0 }
 0x246   : > { %v13743_v24 = vsel %vm10252_vm3, 4294967295, %v13742_v24  ;;  %vm13754_vm4 = vmpackc.low %vm10172_vm5, %vm10165_vm10 }
 0x247   : > { %v1930_v58 = vadd.f32 %v1892_v46, %v1728_v60  ;;  %13744 = vst [vmem:[#allocation20_spill] sm:$0xff] %v13743_v24  ;;  %v13749_v46 = vld [vmem:[#allocation42_spill] sm:$0xff] }
 0x248   : > { %v13758_v60 = vld [vmem:[#allocation186_spill] sm:$0xff] }
 0x249   : > { %v10246_v34 = vadd.f32 %v2126_v27, %v1930_v58  ;;  %v13746_v58 = vmov 0 }
 0x24a   : > { %v1458_v26 = vpop.f32.mrf.mxu2  ;;  %v13747_v58 = vsel %vm10259_vm11, 4294967295, %v13746_v58 }
 0x24b   : > { %v1692_v8 = vpop.f32.mrf.mxu3  ;;  %v1495_v28 = vadd.f32 %v1458_v26, %v13740_v5  ;;  %13748 = vst [vmem:[#allocation21_spill] sm:$0xff] %v13747_v58  ;;  %v6849_v5 = vld [vmem:[#allocation8 + $0x78] sm:$0xff] }
 0x24c   : > { %v1897_v62 = vpop.f32.mrf.mxu0  ;;  %3215 = vmatpush.bf16.msra.mxu1 %v6849_v5 }
 0x24d   : > { %v1729_v37 = vadd.f32 %v1692_v8, %v1495_v28  ;;  %v13763_v8 = vld [vmem:[#allocation187_spill] sm:$0xff] }
 0x24e   : > { %vm13764_vm13 = vcmp.lt.s32.totalorder %v13763_v8, 15 }
 0x24f   : > { %5899 = vmatmul.msk.bf16.gmra.mxu2 %vm13750_vm1, %v13749_v46  ;;  %v10272_v28 = vadd.f32 %v1894_v54, %v1729_v37  ;;  %6059 = vmatmul.msk.bf16.gmra.mxu0 %vm13754_vm4, %v13753_v49  ;;  %vm10286_vm1 = vmpackc.low %vm652_vm14, %vm651_vm15  ;;  %v13760_v54 = vmov 0  ;;  %v13765_v37 = vmov 0  ;;  %v13768_v46 = vld [vmem:[#allocation179_spill] sm:$0xff] }
 0x250   : > { %5979 = vmatmul.msk.bf16.gmra.mxu3 %vm10158_vm9, %v13751_v18  ;;  %v13756_v48 = vsel %vm10286_vm1, 4294967295, %v13755_v48  ;;  %vm13759_vm9 = vcmp.lt.s32.totalorder %v13758_v60, 15  ;;  %vm10300_vm4 = vmand %vm652_vm14, %vm13764_vm13  ;;  %v7059_v60 = vld [vmem:[#allocation5 + $0xa0] sm:$0xff]  ;;  %vm13771_vm14 = vcmp.ge.s32.totalorder %v13355_v41, 1 }
 0x251   : > { %13752 = vst [vmem:[#allocation28_spill] sm:$0xff] %v10272_v28  ;;  %vm10293_vm12 = vmand %vm651_vm15, %vm13759_vm9  ;;  %v13766_v37 = vsel %vm10300_vm4, 4294967295, %v13765_v37  ;;  %vm653_vm9 = vcmp.lt.s32.totalorder %v7059_v60, 15  ;;  %vm654_vm15 = vcmp.lt.s32.totalorder %v7060_v45, 15  ;;  %v13783_v41 = vld [vmem:[#allocation55_spill] sm:$0xff]  ;;  %v7061_v45 = vld [vmem:[#allocation5 + $0xb0] sm:$0xff] }
 0x252   : > { %13757 = vst [vmem:[#allocation27_spill] sm:$0xff] %v13756_v48  ;;  %v13761_v54 = vsel %vm10293_vm12, 4294967295, %v13760_v54  ;;  %v1461_v27 = vpop.f32.mrf.mxu2  ;;  %vm10315_vm13 = vmand %vm653_vm9, %vm13771_vm14 }
 0x253   : > { %13762 = vst [vmem:[#allocation177_spill] sm:$0xff] %v13761_v54  ;;  %v1695_v26 = vpop.f32.mrf.mxu3  ;;  %v1496_v18 = vadd.f32 %v1461_v27, %v13768_v46  ;;  %v13772_v27 = vmov 0  ;;  %v13780_v46 = vld [vmem:[#allocation56_spill] sm:$0xff]  ;;  %vm13782_vm12 = vmpackc.low %vm10196_vm2, %vm13781_vm6 }
 0x254   : > { %13767 = vst [vmem:[#allocation180_spill] sm:$0xff] %v13766_v37  ;;  %v1899_v5 = vpop.f32.mrf.mxu0  ;;  %v13773_v27 = vsel %vm10315_vm13, 4294967295, %v13772_v27  ;;  %vm13786_vm14 = vmpackc.low %vm10237_vm0, %vm10230_vm7 }
 0x255   : > { %v1730_v40 = vadd.f32 %v1695_v26, %v1496_v18  ;;  %13774 = vst [vmem:[#allocation172_spill] sm:$0xff] %v13773_v27  ;;  %v13775_v26 = vld [vmem:[#allocation49_spill] sm:$0xff]  ;;  %v13792_v18 = vmov 0  ;;  %vm13811_vm2 = vmpackc.low %vm10259_vm11, %vm10252_vm3  ;;  %vm13815_vm3 = vcmp.lt.s32.totalorder %v7062_v14, 15 }
 0x256   : > { %vm13776_vm10 = vcmp.ge.s32.totalorder %v13775_v26, 1  ;;  %v13797_v26 = vmov 0 }
 0x257   : > { %v10309_v49 = vadd.f32 %v1897_v62, %v1730_v40  ;;  %vm10322_vm5 = vmand %vm654_vm15, %vm13776_vm10  ;;  %v13777_v62 = vmov 0 }
 0x258   : > { %v13778_v62 = vsel %vm10322_vm5, 4294967295, %v13777_v62 }
 0x259   : > { %13769 = vst [vmem:[#allocation181_spill] sm:$0xff] %v10309_v49 }
 0x25a   : > { %v1463_v23 = vpop.f32.mrf.mxu2  ;;  %13779 = vst [vmem:[#allocation175_spill] sm:$0xff] %v13778_v62 }
 0x25b   : > { %v1697_v8 = vpop.f32.mrf.mxu3  ;;  %v1497_v44 = vadd.f32 %v1463_v23, %v13770_v16  ;;  %v13785_v23 = vld [vmem:[#allocation35_spill] sm:$0xff]  ;;  %v13787_v16 = vmov 0 }
 0x25c   : > { %v2758_v36 = vpop.f32.mrf.mxu0 }
 0x25d   : > { %v1731_v2 = vadd.f32 %v1697_v8, %v1497_v44  ;;  %v13795_v8 = vld [vmem:[#allocation192_spill] sm:$0xff] }
 0x25e   : > { %vm13796_vm10 = vcmp.lt.s32.totalorder %v13795_v8, 15 }
 0x25f   : > { %5902 = vmatmul.msk.bf16.gmra.mxu2 %vm13782_vm12, %v13780_v46  ;;  %v10335_v44 = vadd.f32 %v1899_v5, %v1731_v2  ;;  %6062 = vmatmul.msk.bf16.gmra.mxu0 %vm13786_vm14, %v13785_v23  ;;  %vm10349_vm12 = vmpackc.low %vm654_vm15, %vm653_vm9  ;;  %v13790_v2 = vld [vmem:[#allocation191_spill] sm:$0xff]  ;;  %v13800_v46 = vld [vmem:[#allocation188_spill] sm:$0xff]  ;;  %vm13806_vm14 = vcmp.ge.s32.totalorder %v13387_v20, 1  ;;  %v13816_v20 = vmov 0 }
 0x260   : > { %5982 = vmatmul.msk.bf16.gmra.mxu3 %vm10223_vm8, %v13783_v41  ;;  %v13788_v16 = vsel %vm10349_vm12, 4294967295, %v13787_v16  ;;  %vm13791_vm8 = vcmp.lt.s32.totalorder %v13790_v2, 15  ;;  %vm10363_vm7 = vmand %vm654_vm15, %vm13796_vm10  ;;  %v10375_v2 = vld [vmem:[%s12066_s3] ss:$0 sm:$0xff]  ;;  %vm13802_vm15 = vcmp.ge.s32.totalorder %v13385_v57, 1 }
 0x261   : > { %13784 = vst [vmem:[#allocation42_spill] sm:$0xff] %v10335_v44  ;;  %vm10356_vm6 = vmand %vm653_vm9, %vm13791_vm8  ;;  %v13798_v26 = vsel %vm10363_vm7, 4294967295, %v13797_v26  ;;  %vm655_vm8 = vcmp.lt.s32.totalorder %v7061_v45, 15  ;;  %vm12650_vm9 = vcmp.lt.s32.totalorder %v7062_v14, 15  ;;  %v13812_v57 = vld [vmem:[#allocation67_spill] sm:$0xff] }
 0x262   : > { %13789 = vst [vmem:[#allocation41_spill] sm:$0xff] %v13788_v16  ;;  %v13793_v18 = vsel %vm10356_vm6, 4294967295, %v13792_v18  ;;  %v2290_v40 = vpop.f32.mrf.mxu2  ;;  %vm10387_vm10 = vmand %vm655_vm8, %vm13802_vm15  ;;  %vm13813_vm15 = vnez %v13761_v54 }
 0x263   : > { %13794 = vst [vmem:[#allocation184_spill] sm:$0xff] %v13793_v18  ;;  %v2524_v5 = vpop.f32.mrf.mxu3  ;;  %v2370_v41 = vadd.f32 %v2290_v40, %v13800_v46  ;;  %v10381_v40 = vld [vmem:[%s12067_s4] ss:$0 sm:$0xff]  ;;  %vm10395_vm0 = vmand %vm12650_vm9, %vm13806_vm14  ;;  %v13859_v18 = vld [vmem:[#allocation102_spill] sm:$0xff] }
 0x264   : > { %13799 = vst [vmem:[#allocation186_spill] sm:$0xff] %v13798_v26  ;;  %v2760_v23 = vpop.f32.mrf.mxu0  ;;  %vm13814_vm9 = vmpackc.low %vm10300_vm4, %vm13813_vm15  ;;  %v13866_v26 = vld [vmem:[#allocation198_spill] sm:$0xff] }
 0x265   : > { %v2604_v60 = vadd.f32 %v2524_v5, %v2370_v41  ;;  %v13801_v5 = vld [vmem:[#allocation190_spill] sm:$0xff] }
 0x267   : > { %v2838_v8 = vadd.f32 %v2758_v36, %v2604_v60  ;;  %v13803_v36 = vmov 0 }
 0x268   : > { %v13804_v36 = vsel %vm10387_vm10, 4294967295, %v13803_v36 }
 0x269   : > { %v2874_v7 = vmul.f32 %v10375_v2, %v2838_v8  ;;  %13805 = vst [vmem:[#allocation187_spill] sm:$0xff] %v13804_v36  ;;  %v13807_v8 = vmov 0  ;;  %v7069_v36 = vld [vmem:[#allocation5 + $0xf0] sm:$0xff] }
 0x26a   : > { %v2292_v46 = vpop.f32.mrf.mxu2  ;;  %v13808_v8 = vsel %vm10395_vm0, 4294967295, %v13807_v8 }
 0x26b   : > { %v2526_v9 = vpop.f32.mrf.mxu3  ;;  %v2371_v41 = vadd.f32 %v2292_v46, %v13801_v5  ;;  %v2910_v60 = vadd.f32 %v10381_v40, %v2874_v7  ;;  %13809 = vst [vmem:[#allocation179_spill] sm:$0xff] %v13808_v8  ;;  %v13810_v46 = vld [vmem:[#allocation68_spill] sm:$0xff]  ;;  %v6848_v7 = vld [vmem:[#allocation8 + $0x70] sm:$0xff] }
 0x26c   : > { %v2763_v21 = vpop.f32.mrf.mxu0  ;;  %3216 = vmatpush.bf16.msra.mxu1 %v6848_v7  ;;  %v13830_v7 = vld [vmem:[#allocation193_spill] sm:$0xff]  ;;  %v13970_v8 = vld [vmem:[#allocation212_spill] sm:$0xff] }
 0x26d   : > { %v2605_v29 = vadd.f32 %v2526_v9, %v2371_v41  ;;  %v13819_v9 = vld [vmem:[#allocation196_spill] sm:$0xff]  ;;  %v10432_v5 = vmax.f32 %v2910_v60, 0.0 }
 0x26f   : > { %v2839_v44 = vadd.f32 %v2760_v23, %v2605_v29  ;;  %5905 = vmatmul.msk.bf16.gmra.mxu2 %vm13811_vm2, %v13810_v46  ;;  %6065 = vmatmul.msk.bf16.gmra.mxu0 %vm13814_vm9, %v9375_v59  ;;  %vm10420_vm2 = vmpackc.low %vm13815_vm3, %vm655_vm8  ;;  %v13821_v23 = vmov 0  ;;  %13824 = vst [vmem:[#allocation56_spill] sm:$0xff] %v10432_v5  ;;  %v13825_v46 = vld [vmem:[#allocation197_spill] sm:$0xff]  ;;  %v12659_v37 = vrot.slane %v10432_v5, 7  ;;  %v12662_v14 = vrot.slane %v10432_v5, 1 }
 0x270   : > { %5985 = vmatmul.msk.bf16.gmra.mxu3 %vm10286_vm1, %v13812_v57  ;;  %v13817_v20 = vsel %vm10420_vm2, 4294967295, %v13816_v20  ;;  %vm13820_vm1 = vcmp.lt.s32.totalorder %v13819_v9, 15  ;;  %vm13826_vm9 = vcmp.lt.s32.totalorder %v13825_v46, 15  ;;  %v13827_v57 = vmov 0 }
 0x271   : > { %13818 = vst [vmem:[#allocation182_spill] sm:$0xff] %v13817_v20  ;;  %v2875_v29 = vmul.f32 %v10375_v2, %v2839_v44  ;;  %vm10428_vm14 = vmand %vm655_vm8, %vm13820_vm1  ;;  %vm13832_vm8 = vcmp.lt.s32.totalorder %v7510_v19, 1 }
 0x272   : > { %v13822_v23 = vsel %vm10428_vm14, 4294967295, %v13821_v23  ;;  %v2295_v41 = vpop.f32.mrf.mxu2  ;;  %vm10437_vm15 = vmand %vm13815_vm3, %vm13826_vm9  ;;  %vm13834_vm9 = vcmp.lt.s32.totalorder %v7510_v19, 7 }
 0x273   : > { %13823 = vst [vmem:[#allocation49_spill] sm:$0xff] %v13822_v23  ;;  %v2529_v59 = vpop.f32.mrf.mxu3  ;;  %v13828_v57 = vsel %vm10437_vm15, 4294967295, %v13827_v57  ;;  %v2911_v44 = vadd.f32 %v10381_v40, %v2875_v29  ;;  %v2372_v9 = vadd.f32 %v2295_v41, %v13830_v7  ;;  %vm13845_vm14 = vmpackc.low %vm10322_vm5, %vm10315_vm13 }
 0x274   : > { %13829 = vst [vmem:[#allocation55_spill] sm:$0xff] %v13828_v57  ;;  %v2765_v54 = vpop.f32.mrf.mxu0  ;;  %vm13879_vm5 = vmpackc.low %vm10395_vm0, %vm10387_vm10  ;;  %vm13891_vm0 = vcmp.lt.s32.totalorder %v7510_v19, 7 }
 0x275   : > { %v2943_v45 = vmax.f32 %v2911_v44, 0.0  ;;  %v2606_v60 = vadd.f32 %v2529_v59, %v2372_v9  ;;  %v7063_v44 = vld [vmem:[#allocation5 + $0xc0] sm:$0xff]  ;;  %v7064_v9 = vld [vmem:[#allocation5 + $0xc8] sm:$0xff] }
 0x276   : > { %vm657_vm3 = vcmp.lt.s32.totalorder %v7063_v44, 15  ;;  %vm12670_vm1 = vcmp.lt.s32.totalorder %v7064_v9, 15 }
 0x277   : > { %v2975_v46 = vrot.slane %v2943_v45, 7  ;;  %v3442_v48 = vrot.slane %v2943_v45, 1  ;;  %v2840_v24 = vadd.f32 %v2763_v21, %v2606_v60  ;;  %v10450_v58 = vpack.c.bf16 %v2943_v45, %v10432_v5  ;;  %v13835_v60 = vld [vmem:[#allocation195_spill] sm:$0xff]  ;;  %vm10500_vm13 = vmpackc.low %vm12670_vm1, %vm657_vm3 }
 0x279   : > { %13831 = vst [vmem:[#allocation35_spill] sm:$0xff] %v10450_v58  ;;  %v10456_v29 = vsel %vm13832_vm8, %v12659_v37, %v2975_v46  ;;  %v2876_v41 = vmul.f32 %v10375_v2, %v2840_v24  ;;  %v3503_v59 = vsel %vm13834_vm9, %v12662_v14, %v3442_v48  ;;  %vm13836_vm8 = vcmp.ge.s32.totalorder %v13418_v43, 1  ;;  %v13846_v43 = vld [vmem:[#allocation81_spill] sm:$0xff] }
 0x27a   : > { %13833 = vst [vmem:[#allocation191_spill] sm:$0xff] %v10456_v29  ;;  %v2297_v7 = vpop.f32.mrf.mxu2  ;;  %vm10468_vm4 = vmand %vm657_vm3, %vm13836_vm8  ;;  %v13837_v24 = vmov 0  ;;  %vm13840_vm9 = vcmp.ge.s32.totalorder %v13420_v32, 1  ;;  %v13841_v14 = vmov 0  ;;  %v13847_v32 = vld [vmem:[#allocation61_spill] sm:$0xff]  ;;  %vm13857_vm8 = vcmp.lt.s32.totalorder %v7510_v19, 7 }
 0x27b   : > { %v2531_v21 = vpop.f32.mrf.mxu3  ;;  %v2912_v45 = vadd.f32 %v10381_v40, %v2876_v41  ;;  %v2373_v58 = vadd.f32 %v2297_v7, %v13835_v60  ;;  %v13838_v24 = vsel %vm10468_vm4, 4294967295, %v13837_v24  ;;  %vm10475_vm11 = vmand %vm12670_vm1, %vm13840_vm9  ;;  %vm13860_vm1 = vcmp.lt.s32.totalorder %v13859_v18, 15 }
 0x27c   : > { %v2768_v29 = vpop.f32.mrf.mxu0  ;;  %13839 = vst [vmem:[#allocation192_spill] sm:$0xff] %v13838_v24  ;;  %v13842_v14 = vsel %vm10475_vm11, 4294967295, %v13841_v14  ;;  %vm13848_vm9 = vmpackc.low %vm10363_vm7, %vm10356_vm6  ;;  %vm13861_vm6 = vcmp.lt.s32.totalorder %v7064_v9, 15 }
 0x27d   : > { %v2944_v49 = vmax.f32 %v2912_v45, 0.0  ;;  %v2607_v37 = vadd.f32 %v2531_v21, %v2373_v58  ;;  %13843 = vst [vmem:[#allocation188_spill] sm:$0xff] %v13842_v14  ;;  %v13844_v45 = vld [vmem:[#allocation82_spill] sm:$0xff]  ;;  %v13849_v58 = vmov 0  ;;  %v13854_v21 = vmov 0  ;;  %vm10519_vm7 = vmand %vm13861_vm6, %vm13860_vm1 }
 0x27e   : > { %v13850_v58 = vsel %vm10500_vm13, 4294967295, %v13849_v58  ;;  %vm13868_vm1 = vmmov %vm13857_vm8  ;;  %v13931_v14 = vld [vmem:[#allocation206_spill] sm:$0xff] }
 0x27f   : > { %v2976_v41 = vrot.slane %v2944_v49, 7  ;;  %v3443_v5 = vrot.slane %v2944_v49, 1  ;;  %v2841_v7 = vadd.f32 %v2765_v54, %v2607_v37  ;;  %5908 = vmatmul.msk.bf16.gmra.mxu2 %vm13845_vm14, %v13844_v45  ;;  %6068 = vmatmul.msk.bf16.gmra.mxu0 %vm13848_vm9, %v13847_v32  ;;  %13851 = vst [vmem:[#allocation190_spill] sm:$0xff] %v13850_v58  ;;  %v13852_v37 = vld [vmem:[#allocation201_spill] sm:$0xff]  ;;  %vm13858_vm9 = vcmp.lt.s32.totalorder %v7510_v19, 1 }
 0x280   : > { %5988 = vmatmul.msk.bf16.gmra.mxu3 %vm10349_vm12, %v13846_v43  ;;  %vm13853_vm14 = vcmp.lt.s32.totalorder %v13852_v37, 15  ;;  %vm13867_vm6 = vmmov %vm13858_vm9 }
 0x281   : > { %v2877_v54 = vmul.f32 %v10375_v2, %v2841_v7  ;;  %vm10508_vm12 = vmand %vm657_vm3, %vm13853_vm14  ;;  %v3502_v60 = vsel %vm13857_vm8, %v3442_v48, %v3443_v5  ;;  %v3035_v45 = vsel %vm13858_vm9, %v2975_v46, %v2976_v41  ;;  %v13862_v7 = vmov 0 }
 0x282   : > { %v13855_v21 = vsel %vm10508_vm12, 4294967295, %v13854_v21  ;;  %v2300_v43 = vpop.f32.mrf.mxu2  ;;  %v13863_v7 = vsel %vm10519_vm7, 4294967295, %v13862_v7  ;;  %v10523_v44 = vpack.c.bf16 %v3502_v60, %v3503_v59  ;;  %v7065_v60 = vld [vmem:[#allocation5 + $0xd0] sm:$0xff]  ;;  %vm13870_vm9 = vcmp.ge.s32.totalorder %v13447_v52, 1 }
 0x283   : > { %13856 = vst [vmem:[#allocation68_spill] sm:$0xff] %v13855_v21  ;;  %v2534_v32 = vpop.f32.mrf.mxu3  ;;  %v2913_v37 = vadd.f32 %v10381_v40, %v2877_v54  ;;  %v2374_v16 = vadd.f32 %v2300_v43, %v13866_v26  ;;  %vm659_vm8 = vcmp.lt.s32.totalorder %v7065_v60, 15  ;;  %v13880_v52 = vld [vmem:[#allocation97_spill] sm:$0xff] }
 0x284   : > { %13864 = vst [vmem:[#allocation67_spill] sm:$0xff] %v13863_v7  ;;  %v2770_v27 = vpop.f32.mrf.mxu0 }
 0x285   : > { %13865 = vst [vmem:[#allocation196_spill] sm:$0xff] %v10523_v44  ;;  %v2945_v48 = vmax.f32 %v2913_v37, 0.0  ;;  %v2608_v46 = vadd.f32 %v2534_v32, %v2374_v16  ;;  %v7066_v16 = vld [vmem:[#allocation5 + $0xd8] sm:$0xff] }
 0x286   : > { %vm12679_vm14 = vcmp.lt.s32.totalorder %v7066_v16, 15  ;;  %vm13883_vm10 = vcmp.lt.s32.totalorder %v7066_v16, 15 }
 0x287   : > { %v2977_v18 = vrot.slane %v2945_v48, 7  ;;  %v3444_v9 = vrot.slane %v2945_v48, 1  ;;  %v2842_v62 = vadd.f32 %v2768_v29, %v2608_v46  ;;  %v10531_v28 = vpack.c.bf16 %v2945_v48, %v2944_v49  ;;  %v13869_v49 = vld [vmem:[#allocation200_spill] sm:$0xff] }
 0x289   : > { %v2878_v59 = vmul.f32 %v10375_v2, %v2842_v62  ;;  %v3034_v54 = vsel %vm13867_vm6, %v2976_v41, %v2977_v18  ;;  %v3501_v26 = vsel %vm13868_vm1, %v3443_v5, %v3444_v9  ;;  %vm10545_vm6 = vmand %vm659_vm8, %vm13870_vm9  ;;  %v13871_v5 = vmov 0 }
 0x28a   : > { %v2302_v43 = vpop.f32.mrf.mxu2  ;;  %v10538_v37 = vpack.c.bf16 %v3034_v54, %v3035_v45  ;;  %v13872_v5 = vsel %vm10545_vm6, 4294967295, %v13871_v5  ;;  %vm13874_vm1 = vcmp.ge.s32.totalorder %v13449_v53, 1  ;;  %v13875_v41 = vmov 0  ;;  %v6847_v53 = vld [vmem:[#allocation8 + $0x68] sm:$0xff] }
 0x28b   : > { %v2536_v44 = vpop.f32.mrf.mxu3  ;;  %v2914_v29 = vadd.f32 %v10381_v40, %v2878_v59  ;;  %v2375_v32 = vadd.f32 %v2302_v43, %v13869_v49  ;;  %13873 = vst [vmem:[#allocation197_spill] sm:$0xff] %v13872_v5  ;;  %vm10552_vm3 = vmand %vm12679_vm14, %vm13874_vm1  ;;  %v13878_v43 = vld [vmem:[#allocation98_spill] sm:$0xff]  ;;  %vm13881_vm1 = vnez %v13822_v23  ;;  %3217 = vmatpush.bf16.msra.mxu1 %v6847_v53 }
 0x28c   : > { %v2773_v46 = vpop.f32.mrf.mxu0  ;;  %v13876_v41 = vsel %vm10552_vm3, 4294967295, %v13875_v41  ;;  %vm13882_vm14 = vmpackc.low %vm10437_vm15, %vm13881_vm1  ;;  %vm13894_vm1 = vcmp.lt.s32.totalorder %v7066_v16, 15 }
 0x28d   : > { %v2946_v48 = vmax.f32 %v2914_v29, 0.0  ;;  %v2609_v62 = vadd.f32 %v2536_v44, %v2375_v32  ;;  %13877 = vst [vmem:[#allocation193_spill] sm:$0xff] %v13876_v41  ;;  %v13888_v29 = vmov 0 }
 0x28f   : > { %v2978_v45 = vrot.slane %v2946_v48, 7  ;;  %v3445_v59 = vrot.slane %v2946_v48, 1  ;;  %v2843_v54 = vadd.f32 %v2770_v27, %v2609_v62  ;;  %5911 = vmatmul.msk.bf16.gmra.mxu2 %vm13879_vm5, %v13878_v43  ;;  %6071 = vmatmul.msk.bf16.gmra.mxu0 %vm13882_vm14, %v9513_v51  ;;  %vm10577_vm5 = vmpackc.low %vm13883_vm10, %vm659_vm8  ;;  %v13884_v27 = vmov 0  ;;  %v13898_v43 = vld [vmem:[#allocation202_spill] sm:$0xff] }
 0x290   : > { %5991 = vmatmul.msk.bf16.gmra.mxu3 %vm10420_vm2, %v13880_v52  ;;  %v13885_v27 = vsel %vm10577_vm5, 4294967295, %v13884_v27  ;;  %vm13887_vm2 = vcmp.lt.s32.totalorder %v9539_v13, 15  ;;  %vm13892_vm14 = vcmp.lt.s32.totalorder %v7510_v19, 1  ;;  %vm13893_vm10 = vcmp.lt.s32.totalorder %v9544_v35, 15 }
 0x291   : > { %13886 = vst [vmem:[#allocation195_spill] sm:$0xff] %v13885_v27  ;;  %v2879_v44 = vmul.f32 %v10375_v2, %v2843_v54  ;;  %vm10585_vm9 = vmand %vm659_vm8, %vm13887_vm2  ;;  %v3500_v49 = vsel %vm13891_vm0, %v3444_v9, %v3445_v59  ;;  %v3033_v51 = vsel %vm13892_vm14, %v2977_v18, %v2978_v45  ;;  %v13895_v54 = vmov 0 }
 0x292   : > { %v13889_v29 = vsel %vm10585_vm9, 4294967295, %v13888_v29  ;;  %v2305_v32 = vpop.f32.mrf.mxu2  ;;  %vm10596_vm15 = vmand %vm13894_vm1, %vm13893_vm10  ;;  %v10600_v13 = vpack.c.bf16 %v3500_v49, %v3501_v26  ;;  %vm13902_vm10 = vcmp.ge.s32.totalorder %v13479_v47, 1  ;;  %v13912_v47 = vld [vmem:[#allocation116_spill] sm:$0xff] }
 0x293   : > { %13890 = vst [vmem:[#allocation82_spill] sm:$0xff] %v13889_v29  ;;  %v2539_v62 = vpop.f32.mrf.mxu3  ;;  %v13896_v54 = vsel %vm10596_vm15, 4294967295, %v13895_v54  ;;  %v2915_v60 = vadd.f32 %v10381_v40, %v2879_v44  ;;  %v2376_v52 = vadd.f32 %v2305_v32, %v13898_v43  ;;  %vm13899_vm2 = vmmov %vm13892_vm14  ;;  %v7067_v32 = vld [vmem:[#allocation5 + $0xe0] sm:$0xff] }
 0x294   : > { %13897 = vst [vmem:[#allocation81_spill] sm:$0xff] %v13896_v54  ;;  %v2775_v53 = vpop.f32.mrf.mxu0  ;;  %vm13900_vm8 = vmmov %vm13891_vm0  ;;  %vm661_vm1 = vcmp.lt.s32.totalorder %v7067_v32, 15 }
 0x295   : > { %v2947_v18 = vmax.f32 %v2915_v60, 0.0  ;;  %v2610_v9 = vadd.f32 %v2539_v62, %v2376_v52  ;;  %v7068_v62 = vld [vmem:[#allocation5 + $0xe8] sm:$0xff]  ;;  %vm13911_vm9 = vmpackc.low %vm10475_vm11, %vm10468_vm4 }
 0x296   : > { %vm12691_vm14 = vcmp.lt.s32.totalorder %v7068_v62, 15  ;;  %vm13945_vm11 = vmpackc.low %vm10552_vm3, %vm10545_vm6  ;;  %vm13959_vm3 = vcmp.lt.s32.totalorder %v7510_v19, 7 }
 0x297   : > { %v2979_v35 = vrot.slane %v2947_v18, 7  ;;  %v3446_v16 = vrot.slane %v2947_v18, 1  ;;  %v2844_v23 = vadd.f32 %v2773_v46, %v2610_v9  ;;  %v10608_v57 = vpack.c.bf16 %v2947_v18, %v2946_v48  ;;  %v13901_v48 = vld [vmem:[#allocation203_spill] sm:$0xff]  ;;  %vm10654_vm4 = vmpackc.low %vm12691_vm14, %vm661_vm1 }
 0x299   : > { %v2880_v26 = vmul.f32 %v10375_v2, %v2844_v23  ;;  %v3032_v44 = vsel %vm13899_vm2, %v2978_v45, %v2979_v35  ;;  %v3499_v49 = vsel %vm13900_vm8, %v3445_v59, %v3446_v16  ;;  %vm10622_vm2 = vmand %vm661_vm1, %vm13902_vm10  ;;  %v13903_v45 = vmov 0 }
 0x29a   : > { %v2307_v43 = vpop.f32.mrf.mxu2  ;;  %v10615_v60 = vpack.c.bf16 %v3032_v44, %v3033_v51  ;;  %v13904_v45 = vsel %vm10622_vm2, 4294967295, %v13903_v45  ;;  %vm13906_vm8 = vcmp.ge.s32.totalorder %v13481_v42, 1  ;;  %v13907_v59 = vmov 0 }
 0x29b   : > { %v2541_v20 = vpop.f32.mrf.mxu3  ;;  %v2916_v46 = vadd.f32 %v10381_v40, %v2880_v26  ;;  %v2377_v52 = vadd.f32 %v2307_v43, %v13901_v48  ;;  %13905 = vst [vmem:[#allocation61_spill] sm:$0xff] %v13904_v45  ;;  %vm10629_vm0 = vmand %vm12691_vm14, %vm13906_vm8  ;;  %v13910_v43 = vld [vmem:[#allocation117_spill] sm:$0xff]  ;;  %v13914_v42 = vmov 0  ;;  %vm13922_vm10 = vcmp.lt.s32.totalorder %v7510_v19, 7 }
 0x29c   : > { %v2778_v9 = vpop.f32.mrf.mxu0  ;;  %v13908_v59 = vsel %vm10629_vm0, 4294967295, %v13907_v59  ;;  %vm13913_vm8 = vmpackc.low %vm10519_vm7, %vm10508_vm12  ;;  %v13915_v42 = vsel %vm10654_vm4, 4294967295, %v13914_v42  ;;  %vm13926_vm12 = vcmp.lt.s32.totalorder %v7068_v62, 15 }
 0x29d   : > { %v2948_v18 = vmax.f32 %v2916_v46, 0.0  ;;  %v2611_v23 = vadd.f32 %v2541_v20, %v2377_v52  ;;  %13909 = vst [vmem:[#allocation201_spill] sm:$0xff] %v13908_v59  ;;  %v13919_v46 = vmov 0 }
 0x29e   : > { %13916 = vst [vmem:[#allocation102_spill] sm:$0xff] %v13915_v42  ;;  %v13982_v42 = vld [vmem:[#allocation215_spill] sm:$0xff] }
 0x29f   : > { %v2980_v51 = vrot.slane %v2948_v18, 7  ;;  %v3447_v26 = vrot.slane %v2948_v18, 1  ;;  %v2845_v44 = vadd.f32 %v2775_v53, %v2611_v23  ;;  %5914 = vmatmul.msk.bf16.gmra.mxu2 %vm13911_vm9, %v13910_v43  ;;  %6074 = vmatmul.msk.bf16.gmra.mxu0 %vm13913_vm8, %v9584_v63  ;;  %v13917_v53 = vld [vmem:[#allocation207_spill] sm:$0xff]  ;;  %vm13923_vm8 = vcmp.lt.s32.totalorder %v7510_v19, 1  ;;  %v13924_v43 = vld [vmem:[#allocation208_spill] sm:$0xff] }
 0x2a0   : > { %5994 = vmatmul.msk.bf16.gmra.mxu3 %vm10500_vm13, %v13912_v47  ;;  %vm13918_vm9 = vcmp.lt.s32.totalorder %v13917_v53, 15  ;;  %vm13925_vm14 = vcmp.lt.s32.totalorder %v13924_v43, 15  ;;  %v13930_v53 = vld [vmem:[#allocation205_spill] sm:$0xff] }
 0x2a1   : > { %v2881_v20 = vmul.f32 %v10375_v2, %v2845_v44  ;;  %vm10662_vm13 = vmand %vm661_vm1, %vm13918_vm9  ;;  %v3498_v48 = vsel %vm13922_vm10, %v3446_v16, %v3447_v26  ;;  %v3031_v63 = vsel %vm13923_vm8, %v2979_v35, %v2980_v51  ;;  %v13927_v44 = vmov 0 }
 0x2a2   : > { %v13920_v46 = vsel %vm10662_vm13, 4294967295, %v13919_v46  ;;  %v2310_v52 = vpop.f32.mrf.mxu2  ;;  %vm10673_vm7 = vmand %vm13926_vm12, %vm13925_vm14  ;;  %v10677_v32 = vpack.c.bf16 %v3498_v48, %v3499_v49  ;;  %v13932_v49 = vld [vmem:[#allocation204_spill] sm:$0xff] }
 0x2a3   : > { %13921 = vst [vmem:[#allocation198_spill] sm:$0xff] %v13920_v46  ;;  %v2544_v23 = vpop.f32.mrf.mxu3  ;;  %v13928_v44 = vsel %vm10673_vm7, 4294967295, %v13927_v44  ;;  %v2917_v47 = vadd.f32 %v10381_v40, %v2881_v20  ;;  %v2378_v21 = vadd.f32 %v2310_v52, %v13930_v53  ;;  %v2145_v48 = vadd.f32 %v13932_v49, %v13931_v14  ;;  %vm13933_vm12 = vmmov %vm13923_vm8 }
 0x2a4   : > { %13929 = vst [vmem:[#allocation200_spill] sm:$0xff] %v13928_v44  ;;  %v2780_v7 = vpop.f32.mrf.mxu0  ;;  %vm13934_vm14 = vmmov %vm13922_vm10  ;;  %vm663_vm10 = vcmp.lt.s32.totalorder %v7069_v36, 15  ;;  %vm13935_vm8 = vcmp.ge.s32.totalorder %v13509_v11, 1  ;;  %v13946_v11 = vld [vmem:[#allocation134_spill] sm:$0xff] }
 0x2a5   : > { %v2949_v35 = vmax.f32 %v2917_v47, 0.0  ;;  %v2612_v16 = vadd.f32 %v2544_v23, %v2378_v21 }
 0x2a7   : > { %v2981_v43 = vrot.slane %v2949_v35, 7  ;;  %v3448_v62 = vrot.slane %v2949_v35, 1  ;;  %v2846_v58 = vadd.f32 %v2778_v9, %v2612_v16  ;;  %v10685_v24 = vpack.c.bf16 %v2949_v35, %v2948_v18  ;;  %v7070_v9 = vld [vmem:[#allocation5 + $0xf8] sm:$0xff] }
 0x2a8   : > { %vm12701_vm9 = vcmp.lt.s32.totalorder %v7070_v9, 15  ;;  %vm13950_vm6 = vcmp.lt.s32.totalorder %v7070_v9, 15 }
 0x2a9   : > { %v2882_v20 = vmul.f32 %v10375_v2, %v2846_v58  ;;  %v3030_v52 = vsel %vm13933_vm12, %v2980_v51, %v2981_v43  ;;  %v3497_v53 = vsel %vm13934_vm14, %v3447_v26, %v3448_v62  ;;  %vm10700_vm12 = vmand %vm663_vm10, %vm13935_vm8  ;;  %v13936_v51 = vmov 0  ;;  %v13939_v26 = vld [vmem:[#allocation126_spill] sm:$0xff] }
 0x2aa   : > { %v2312_v21 = vpop.f32.mrf.mxu2  ;;  %v10694_v47 = vpack.c.bf16 %v3030_v52, %v3031_v63  ;;  %v13937_v51 = vsel %vm10700_vm12, 4294967295, %v13936_v51  ;;  %vm13940_vm14 = vcmp.ge.s32.totalorder %v13939_v26, 1  ;;  %v13941_v63 = vmov 0  ;;  %v13944_v52 = vld [vmem:[#allocation135_spill] sm:$0xff] }
 0x2ab   : > { %v2546_v23 = vpop.f32.mrf.mxu3  ;;  %v2918_v18 = vadd.f32 %v10381_v40, %v2882_v20  ;;  %v2379_v35 = vadd.f32 %v2312_v21, %v2145_v48  ;;  %13938 = vst [vmem:[#allocation98_spill] sm:$0xff] %v13937_v51  ;;  %vm10707_vm1 = vmand %vm12701_vm9, %vm13940_vm14  ;;  %v6846_v21 = vld [vmem:[#allocation8 + $0x60] sm:$0xff]  ;;  %vm13948_vm14 = vnez %v13889_v29  ;;  %v13961_v29 = vld [vmem:[#allocation214_spill] sm:$0xff] }
 0x2ac   : > { %v2783_v58 = vpop.f32.mrf.mxu0  ;;  %v13942_v63 = vsel %vm10707_vm1, 4294967295, %v13941_v63  ;;  %vm13949_vm9 = vmpackc.low %vm10596_vm15, %vm13948_vm14  ;;  %3218 = vmatpush.bf16.msra.mxu1 %v6846_v21  ;;  %vm13963_vm14 = vcmp.lt.s32.totalorder %v7070_v9, 15 }
 0x2ad   : > { %v2950_v14 = vmax.f32 %v2918_v18, 0.0  ;;  %v2613_v16 = vadd.f32 %v2546_v23, %v2379_v35  ;;  %13943 = vst [vmem:[#allocation97_spill] sm:$0xff] %v13942_v63  ;;  %v13947_v23 = vld [vmem:[#allocation106_spill] sm:$0xff]  ;;  %v13954_v35 = vld [vmem:[#allocation213_spill] sm:$0xff] }
 0x2af   : > { %v2982_v49 = vrot.slane %v2950_v14, 7  ;;  %v3449_v20 = vrot.slane %v2950_v14, 1  ;;  %v2847_v48 = vadd.f32 %v2780_v7, %v2613_v16  ;;  %5917 = vmatmul.msk.bf16.gmra.mxu2 %vm13945_vm11, %v13944_v52  ;;  %6077 = vmatmul.msk.bf16.gmra.mxu0 %vm13949_vm9, %v13947_v23  ;;  %vm10732_vm11 = vmpackc.low %vm13950_vm6, %vm663_vm10  ;;  %v13951_v7 = vmov 0 }
 0x2b0   : > { %5997 = vmatmul.msk.bf16.gmra.mxu3 %vm10577_vm5, %v13946_v11  ;;  %v13952_v7 = vsel %vm10732_vm11, 4294967295, %v13951_v7  ;;  %vm13955_vm5 = vcmp.lt.s32.totalorder %v13954_v35, 15  ;;  %v13956_v16 = vmov 0  ;;  %vm13960_vm9 = vcmp.lt.s32.totalorder %v7510_v19, 1  ;;  %v13968_v35 = vld [vmem:[#allocation210_spill] sm:$0xff] }
 0x2b1   : > { %13953 = vst [vmem:[#allocation202_spill] sm:$0xff] %v13952_v7  ;;  %v2883_v18 = vmul.f32 %v10375_v2, %v2847_v48  ;;  %vm10740_vm8 = vmand %vm663_vm10, %vm13955_vm5  ;;  %v3496_v26 = vsel %vm13959_vm3, %v3448_v62, %v3449_v20  ;;  %v3029_v52 = vsel %vm13960_vm9, %v2981_v43, %v2982_v49  ;;  %vm13962_vm6 = vcmp.lt.s32.totalorder %v13961_v29, 15  ;;  %v6836_v7 = vld [vmem:[#allocation8 + $0x10] sm:$0xff] }
 0x2b2   : > { %v13957_v16 = vsel %vm10740_vm8, 4294967295, %v13956_v16  ;;  %v2315_v11 = vpop.f32.mrf.mxu2  ;;  %vm10751_vm15 = vmand %vm13963_vm14, %vm13962_vm6  ;;  %v13964_v48 = vmov 0  ;;  %v10755_v36 = vpack.c.bf16 %v3496_v26, %v3497_v53  ;;  %v13971_v53 = vld [vmem:[#allocation209_spill] sm:$0xff]  ;;  %vm13973_vm10 = vcmp.lt.s32.totalorder %v7510_v19, 7  ;;  %v14048_v19 = vld [vmem:[#allocation140_spill] sm:$0xff] }
 0x2b3   : > { %13958 = vst [vmem:[#allocation203_spill] sm:$0xff] %v13957_v16  ;;  %v2549_v23 = vpop.f32.mrf.mxu3  ;;  %v13965_v48 = vsel %vm10751_vm15, 4294967295, %v13964_v48  ;;  %v2919_v21 = vadd.f32 %v10381_v40, %v2883_v18  ;;  %v2380_v54 = vadd.f32 %v2315_v11, %v13968_v35  ;;  %vm12724_vm3 = vmpackc.low %vm10751_vm15, %vm10740_vm8  ;;  %v2147_v26 = vadd.f32 %v13971_v53, %v13970_v8  ;;  %v6840_v16 = vld [vmem:[#allocation8 + $0x30] sm:$0xff] }
 0x2b4   : > { %13966 = vst [vmem:[#allocation117_spill] sm:$0xff] %v13965_v48  ;;  %v2785_v27 = vpop.f32.mrf.mxu0  ;;  %vm13972_vm5 = vmmov %vm13960_vm9  ;;  %v6856_v48 = vld [vmem:[#allocation8 + $0xb0] sm:$0xff] }
 0x2b5   : > { %13967 = vst [vmem:[#allocation116_spill] sm:$0xff] %v10755_v36  ;;  %v2951_v43 = vmax.f32 %v2919_v21, 0.0  ;;  %v2614_v62 = vadd.f32 %v2549_v23, %v2380_v54  ;;  %vm13975_vm14 = vmpackc.low %vm10629_vm0, %vm10622_vm2 }
 0x2b6   : > { %vm13978_vm9 = vmpackc.low %vm10673_vm7, %vm10662_vm13 }
 0x2b7   : > { %v2983_v29 = vrot.slane %v2951_v43, 7  ;;  %v3450_v9 = vrot.slane %v2951_v43, 1  ;;  %v2848_v5 = vadd.f32 %v2783_v58, %v2614_v62  ;;  %v10763_v41 = vpack.c.bf16 %v2951_v43, %v2950_v14  ;;  %vm13979_vm6 = vmmov %vm13973_vm10 }
 0x2b9   : > { %13969 = vst [vmem:[#allocation207_spill] sm:$0xff] %v10763_v41  ;;  %v2884_v18 = vmul.f32 %v10375_v2, %v2848_v5  ;;  %v3028_v11 = vsel %vm13972_vm5, %v2982_v49, %v2983_v29  ;;  %v3495_v35 = vsel %vm13973_vm10, %v3449_v20, %v3450_v9  ;;  %v13974_v5 = vld [vmem:[#allocation31_spill] sm:$0xff]  ;;  %v13976_v49 = vld [vmem:[#allocation30_spill] sm:$0xff]  ;;  %v13977_v20 = vld [vmem:[#allocation141_spill] sm:$0xff] }
 0x2ba   : > { %v2317_v36 = vpop.f32.mrf.mxu2  ;;  %v10772_v54 = vpack.c.bf16 %v3028_v11, %v3029_v52  ;;  %vm13983_vm10 = vmmov %vm13972_vm5 }
 0x2bb   : > { %v2551_v21 = vpop.f32.mrf.mxu3  ;;  %v2920_v23 = vadd.f32 %v10381_v40, %v2884_v18  ;;  %v2381_v58 = vadd.f32 %v2317_v36, %v2147_v26 }
 0x2bc   : > { %v2788_v62 = vpop.f32.mrf.mxu0 }
 0x2bd   : > { %v2952_v14 = vmax.f32 %v2920_v23, 0.0  ;;  %v2615_v43 = vadd.f32 %v2551_v21, %v2381_v58  ;;  %v13980_v23 = vld [vmem:[#allocation216_spill] sm:$0xff] }
 0x2bf   : > { %v2984_v41 = vrot.slane %v2952_v14, 7  ;;  %v3451_v8 = vrot.slane %v2952_v14, 1  ;;  %v2849_v53 = vadd.f32 %v2785_v27, %v2615_v43  ;;  %5920 = vmatmul.msk.bf16.gmra.mxu2 %vm13975_vm14, %v13974_v5  ;;  %6080 = vmatmul.msk.bf16.gmra.mxu0 %vm13978_vm9, %v13977_v20  ;;  %vm13984_vm14 = vmmov %vm13979_vm6 }
 0x2c0   : > { %6000 = vmatmul.msk.bf16.gmra.mxu3 %vm10654_vm4, %v13976_v49  ;;  %vm13986_vm9 = vmpackc.low %vm10707_vm1, %vm10700_vm12 }
 0x2c1   : > { %v2885_v27 = vmul.f32 %v10375_v2, %v2849_v53  ;;  %v3494_v52 = vsel %vm13979_vm6, %v3450_v9, %v3451_v8  ;;  %v3027_v36 = vsel %vm13972_vm5, %v2983_v29, %v2984_v41  ;;  %v13981_v9 = vld [vmem:[#allocation220_spill] sm:$0xff] }
 0x2c2   : > { %v2320_v26 = vpop.f32.mrf.mxu2  ;;  %v10795_v11 = vpack.c.bf16 %v3494_v52, %v3495_v35  ;;  %v2149_v45 = vadd.f32 %v13982_v42, %v13981_v9 }
 0x2c3   : > { %v2554_v18 = vpop.f32.mrf.mxu3  ;;  %v2921_v21 = vadd.f32 %v10381_v40, %v2885_v27  ;;  %v2382_v58 = vadd.f32 %v2320_v26, %v13980_v23 }
 0x2c4   : > { %v2790_v49 = vpop.f32.mrf.mxu0 }
 0x2c5   : > { %v2953_v43 = vmax.f32 %v2921_v21, 0.0  ;;  %v2616_v5 = vadd.f32 %v2554_v18, %v2382_v58 }
 0x2c7   : > { %v2985_v20 = vrot.slane %v2953_v43, 7  ;;  %v3452_v46 = vrot.slane %v2953_v43, 1  ;;  %v2850_v53 = vadd.f32 %v2788_v62, %v2616_v5  ;;  %v10799_v44 = vpack.c.bf16 %v2953_v43, %v2952_v14 }
 0x2c9   : > { %v2886_v29 = vmul.f32 %v10375_v2, %v2850_v53  ;;  %v3026_v35 = vsel %vm13983_vm10, %v2984_v41, %v2985_v20  ;;  %v3493_v27 = vsel %vm13984_vm14, %v3451_v8, %v3452_v46  ;;  %v13985_v53 = vld [vmem:[#allocation45_spill] sm:$0xff]  ;;  %v13987_v41 = vld [vmem:[#allocation44_spill] sm:$0xff]  ;;  %v6845_v8 = vld [vmem:[#allocation8 + $0x58] sm:$0xff] }
 0x2ca   : > { %v2322_v52 = vpop.f32.mrf.mxu2  ;;  %v10808_v18 = vpack.c.bf16 %v3026_v35, %v3027_v36  ;;  %v13988_v36 = vld [vmem:[#allocation143_spill] sm:$0xff]  ;;  %3219 = vmatpush.bf16.msra.mxu1 %v6845_v8  ;;  %vm13989_vm10 = vmmov %vm13972_vm5 }
 0x2cb   : > { %v2556_v26 = vpop.f32.mrf.mxu3  ;;  %v2922_v21 = vadd.f32 %v10381_v40, %v2886_v29  ;;  %v2383_v62 = vadd.f32 %v2322_v52, %v2149_v45  ;;  %vm13990_vm14 = vmmov %vm13979_vm6 }
 0x2cc   : > { %v2793_v58 = vpop.f32.mrf.mxu0 }
 0x2cd   : > { %v2954_v14 = vmax.f32 %v2922_v21, 0.0  ;;  %v2617_v23 = vadd.f32 %v2556_v26, %v2383_v62 }
 0x2cf   : > { %v2986_v43 = vrot.slane %v2954_v14, 7  ;;  %v3453_v42 = vrot.slane %v2954_v14, 1  ;;  %v2851_v5 = vadd.f32 %v2790_v49, %v2617_v23  ;;  %5923 = vmatmul.msk.bf16.gmra.mxu2 %vm13986_vm9, %v13985_v53  ;;  %6083 = vmatmul.msk.bf16.gmra.mxu0 %vm12724_vm3, %v13988_v36  ;;  %vm13991_vm9 = vmmov %vm13979_vm6 }
 0x2d0   : > { %6003 = vmatmul.msk.bf16.gmra.mxu3 %vm10732_vm11, %v13987_v41 }
 0x2d1   : > { %v2887_v45 = vmul.f32 %v10375_v2, %v2851_v5  ;;  %v3492_v49 = vsel %vm13979_vm6, %v3452_v46, %v3453_v42  ;;  %v3025_v9 = vsel %vm13972_vm5, %v2985_v20, %v2986_v43  ;;  %v2151_v46 = vadd.f32 %v9791_v33, %v9819_v1  ;;  %vm13992_vm6 = vmmov %vm13972_vm5 }
 0x2d2   : > { %v2325_v29 = vpop.f32.mrf.mxu2  ;;  %v10831_v52 = vpack.c.bf16 %v3492_v49, %v3493_v27 }
 0x2d3   : > { %v2559_v35 = vpop.f32.mrf.mxu3  ;;  %v2923_v26 = vadd.f32 %v10381_v40, %v2887_v45  ;;  %v2384_v21 = vadd.f32 %v2325_v29, %v9793_v55 }
 0x2d4   : > { %v2795_v53 = vpop.f32.mrf.mxu0 }
 0x2d5   : > { %v2955_v62 = vmax.f32 %v2923_v26, 0.0  ;;  %v2618_v23 = vadd.f32 %v2559_v35, %v2384_v21 }
 0x2d7   : > { %v2987_v41 = vrot.slane %v2955_v62, 7  ;;  %v3454_v5 = vrot.slane %v2955_v62, 1  ;;  %v2852_v8 = vadd.f32 %v2793_v58, %v2618_v23  ;;  %v10835_v36 = vpack.c.bf16 %v2955_v62, %v2954_v14 }
 0x2d9   : > { %v2888_v20 = vmul.f32 %v10375_v2, %v2852_v8  ;;  %v3024_v27 = vsel %vm13989_vm10, %v2986_v43, %v2987_v41  ;;  %v3491_v45 = vsel %vm13990_vm14, %v3453_v42, %v3454_v5  ;;  %vm13993_vm10 = vmmov %vm13991_vm9 }
 0x2da   : > { %v2327_v55 = vpop.f32.mrf.mxu2  ;;  %v10844_v29 = vpack.c.bf16 %v3024_v27, %v3025_v9  ;;  %vm13994_vm14 = vmmov %vm13991_vm9 }
 0x2db   : > { %v2561_v49 = vpop.f32.mrf.mxu3  ;;  %v2924_v35 = vadd.f32 %v10381_v40, %v2888_v20  ;;  %v2385_v58 = vadd.f32 %v2327_v55, %v2151_v46 }
 0x2dc   : > { %v2798_v21 = vpop.f32.mrf.mxu0 }
 0x2dd   : > { %v2956_v14 = vmax.f32 %v2924_v35, 0.0  ;;  %v2619_v26 = vadd.f32 %v2561_v49, %v2385_v58 }
 0x2df   : > { %v2988_v62 = vrot.slane %v2956_v14, 7  ;;  %v3455_v33 = vrot.slane %v2956_v14, 1  ;;  %v2853_v1 = vadd.f32 %v2795_v53, %v2619_v26 }
 0x2e1   : > { %v2889_v23 = vmul.f32 %v10375_v2, %v2853_v1  ;;  %v3490_v43 = vsel %vm13991_vm9, %v3454_v5, %v3455_v33  ;;  %v3023_v42 = vsel %vm13992_vm6, %v2987_v41, %v2988_v62  ;;  %v2153_v5 = vadd.f32 %v9856_v30, %v9884_v25  ;;  %vm13995_vm9 = vmmov %vm13972_vm5 }
 0x2e2   : > { %v2330_v8 = vpop.f32.mrf.mxu2  ;;  %v10852_v27 = vpack.c.bf16 %v3490_v43, %v3491_v45  ;;  %vm13996_vm6 = vmmov %vm13972_vm5 }
 0x2e3   : > { %v2564_v9 = vpop.f32.mrf.mxu3  ;;  %v2925_v46 = vadd.f32 %v10381_v40, %v2889_v23  ;;  %v2386_v20 = vadd.f32 %v2330_v8, %v9858_v4 }
 0x2e4   : > { %v2800_v35 = vpop.f32.mrf.mxu0 }
 0x2e5   : > { %v2957_v55 = vmax.f32 %v2925_v46, 0.0  ;;  %v2620_v49 = vadd.f32 %v2564_v9, %v2386_v20 }
 0x2e7   : > { %v2989_v53 = vrot.slane %v2957_v55, 7  ;;  %v3456_v58 = vrot.slane %v2957_v55, 1  ;;  %v2854_v26 = vadd.f32 %v2798_v21, %v2620_v49  ;;  %v10856_v1 = vpack.c.bf16 %v2957_v55, %v2956_v14  ;;  %v6844_v49 = vld [vmem:[#allocation8 + $0x50] sm:$0xff] }
 0x2e8   : > { %3220 = vmatpush.bf16.msra.mxu1 %v6844_v49 }
 0x2e9   : > { %v2890_v41 = vmul.f32 %v10375_v2, %v2854_v26  ;;  %v3022_v45 = vsel %vm13972_vm5, %v2988_v62, %v2989_v53  ;;  %v3489_v23 = vsel %vm13993_vm10, %v3455_v33, %v3456_v58  ;;  %vm13997_vm5 = vmmov %vm13993_vm10 }
 0x2ea   : > { %v2332_v4 = vpop.f32.mrf.mxu2  ;;  %v10865_v8 = vpack.c.bf16 %v3022_v45, %v3023_v42  ;;  %vm13998_vm10 = vmmov %vm13997_vm5 }
 0x2eb   : > { %v2566_v43 = vpop.f32.mrf.mxu3  ;;  %v2926_v9 = vadd.f32 %v10381_v40, %v2890_v41  ;;  %v2387_v21 = vadd.f32 %v2332_v4, %v2153_v5 }
 0x2ec   : > { %v2803_v20 = vpop.f32.mrf.mxu0 }
 0x2ed   : > { %v2958_v14 = vmax.f32 %v2926_v9, 0.0  ;;  %v2621_v46 = vadd.f32 %v2566_v43, %v2387_v21 }
 0x2ef   : > { %v2990_v55 = vrot.slane %v2958_v14, 7  ;;  %v3457_v30 = vrot.slane %v2958_v14, 1  ;;  %v2855_v25 = vadd.f32 %v2800_v35, %v2621_v46 }
 0x2f1   : > { %v2891_v26 = vmul.f32 %v10375_v2, %v2855_v25  ;;  %v3488_v62 = vsel %vm13994_vm14, %v3456_v58, %v3457_v30  ;;  %v3021_v33 = vsel %vm13995_vm9, %v2989_v53, %v2990_v55  ;;  %v2155_v58 = vadd.f32 %v9921_v17, %v9949_v0  ;;  %vm13999_vm14 = vmmov %vm13996_vm6 }
 0x2f2   : > { %v2335_v42 = vpop.f32.mrf.mxu2  ;;  %v10873_v41 = vpack.c.bf16 %v3488_v62, %v3489_v23  ;;  %vm14001_vm9 = vmmov %vm13996_vm6 }
 0x2f3   : > { %v2569_v45 = vpop.f32.mrf.mxu3  ;;  %v2927_v5 = vadd.f32 %v10381_v40, %v2891_v26  ;;  %v2388_v4 = vadd.f32 %v2335_v42, %v9923_v31 }
 0x2f4   : > { %v2805_v9 = vpop.f32.mrf.mxu0 }
 0x2f5   : > { %v2959_v43 = vmax.f32 %v2927_v5, 0.0  ;;  %v2622_v35 = vadd.f32 %v2569_v45, %v2388_v4 }
 0x2f7   : > { %v2991_v21 = vrot.slane %v2959_v43, 7  ;;  %v3458_v46 = vrot.slane %v2959_v43, 1  ;;  %v2856_v25 = vadd.f32 %v2803_v20, %v2622_v35  ;;  %v10877_v49 = vpack.c.bf16 %v2959_v43, %v2958_v14 }
 0x2f9   : > { %v2892_v53 = vmul.f32 %v10375_v2, %v2856_v25  ;;  %v3020_v23 = vsel %vm13996_vm6, %v2990_v55, %v2991_v21  ;;  %v3487_v26 = vsel %vm13997_vm5, %v3457_v30, %v3458_v46  ;;  %vm14002_vm6 = vmmov %vm13997_vm5 }
 0x2fa   : > { %v2337_v31 = vpop.f32.mrf.mxu2  ;;  %v10886_v42 = vpack.c.bf16 %v3020_v23, %v3021_v33 }
 0x2fb   : > { %v2571_v62 = vpop.f32.mrf.mxu3  ;;  %v2928_v45 = vadd.f32 %v10381_v40, %v2892_v53  ;;  %v2389_v20 = vadd.f32 %v2337_v31, %v2155_v58 }
 0x2fc   : > { %v2808_v4 = vpop.f32.mrf.mxu0 }
 0x2fd   : > { %v2960_v14 = vmax.f32 %v2928_v45, 0.0  ;;  %v2623_v5 = vadd.f32 %v2571_v62, %v2389_v20 }
 0x2ff   : > { %v2992_v43 = vrot.slane %v2960_v14, 7  ;;  %v3459_v17 = vrot.slane %v2960_v14, 1  ;;  %v2857_v0 = vadd.f32 %v2805_v9, %v2623_v5 }
 0x301   : > { %v2893_v35 = vmul.f32 %v10375_v2, %v2857_v0  ;;  %v3486_v55 = vsel %vm13998_vm10, %v3458_v46, %v3459_v17  ;;  %v3019_v30 = vsel %vm13999_vm14, %v2991_v21, %v2992_v43  ;;  %v2157_v46 = vadd.f32 %v9986_v38, %v10014_v50  ;;  %vm14003_vm10 = vmmov %vm14001_vm9 }
 0x302   : > { %v2340_v25 = vpop.f32.mrf.mxu2  ;;  %v10894_v23 = vpack.c.bf16 %v3486_v55, %v3487_v26  ;;  %vm14004_vm14 = vmmov %vm14001_vm9 }
 0x303   : > { %v2574_v33 = vpop.f32.mrf.mxu3  ;;  %v2929_v58 = vadd.f32 %v10381_v40, %v2893_v35  ;;  %v2390_v53 = vadd.f32 %v2340_v25, %v9988_v22 }
 0x304   : > { %14000 = vst [vmem:[#allocation208_spill] sm:$0xff] %v10894_v23  ;;  %v2810_v45 = vpop.f32.mrf.mxu0 }
 0x305   : > { %v2961_v31 = vmax.f32 %v2929_v58, 0.0  ;;  %v2624_v62 = vadd.f32 %v2574_v33, %v2390_v53 }
 0x307   : > { %v2993_v9 = vrot.slane %v2961_v31, 7  ;;  %v3460_v20 = vrot.slane %v2961_v31, 1  ;;  %v2858_v5 = vadd.f32 %v2808_v4, %v2624_v62  ;;  %v10898_v0 = vpack.c.bf16 %v2961_v31, %v2960_v14  ;;  %v6843_v62 = vld [vmem:[#allocation8 + $0x48] sm:$0xff] }
 0x308   : > { %3221 = vmatpush.bf16.msra.mxu1 %v6843_v62 }
 0x309   : > { %v2894_v21 = vmul.f32 %v10375_v2, %v2858_v5  ;;  %v3018_v26 = vsel %vm14001_vm9, %v2992_v43, %v2993_v9  ;;  %v3485_v35 = vsel %vm14002_vm6, %v3459_v17, %v3460_v20  ;;  %vm14005_vm9 = vmmov %vm13997_vm5 }
 0x30a   : > { %v2342_v22 = vpop.f32.mrf.mxu2  ;;  %v10907_v25 = vpack.c.bf16 %v3018_v26, %v3019_v30  ;;  %vm14006_vm6 = vmmov %vm13997_vm5 }
 0x30b   : > { %v2576_v55 = vpop.f32.mrf.mxu3  ;;  %v2930_v33 = vadd.f32 %v10381_v40, %v2894_v21  ;;  %v2391_v4 = vadd.f32 %v2342_v22, %v2157_v46 }
 0x30c   : > { %v2813_v53 = vpop.f32.mrf.mxu0 }
 0x30d   : > { %v2962_v14 = vmax.f32 %v2930_v33, 0.0  ;;  %v2625_v58 = vadd.f32 %v2576_v55, %v2391_v4 }
 0x30f   : > { %v2994_v31 = vrot.slane %v2962_v14, 7  ;;  %v3461_v38 = vrot.slane %v2962_v14, 1  ;;  %v2859_v50 = vadd.f32 %v2810_v45, %v2625_v58 }
 0x311   : > { %v2895_v5 = vmul.f32 %v10375_v2, %v2859_v50  ;;  %v3484_v43 = vsel %vm13997_vm5, %v3460_v20, %v3461_v38  ;;  %v3017_v17 = vsel %vm14003_vm10, %v2993_v9, %v2994_v31  ;;  %v2159_v20 = vadd.f32 %v10051_v12, %v10079_v10  ;;  %vm14007_vm5 = vmmov %vm14003_vm10 }
 0x312   : > { %v2345_v30 = vpop.f32.mrf.mxu2  ;;  %v10915_v21 = vpack.c.bf16 %v3484_v43, %v3485_v35  ;;  %vm14009_vm10 = vmmov %vm14007_vm5 }
 0x313   : > { %v2579_v26 = vpop.f32.mrf.mxu3  ;;  %v2931_v46 = vadd.f32 %v10381_v40, %v2895_v5  ;;  %v2392_v22 = vadd.f32 %v2345_v30, %v10053_v15 }
 0x314   : > { %v2815_v33 = vpop.f32.mrf.mxu0 }
 0x315   : > { %v2963_v55 = vmax.f32 %v2931_v46, 0.0  ;;  %v2626_v45 = vadd.f32 %v2579_v26, %v2392_v22 }
 0x317   : > { %v2995_v4 = vrot.slane %v2963_v55, 7  ;;  %v3462_v58 = vrot.slane %v2963_v55, 1  ;;  %v2860_v50 = vadd.f32 %v2813_v53, %v2626_v45  ;;  %v10919_v62 = vpack.c.bf16 %v2963_v55, %v2962_v14 }
 0x319   : > { %v2896_v9 = vmul.f32 %v10375_v2, %v2860_v50  ;;  %v3016_v35 = vsel %vm14004_vm14, %v2994_v31, %v2995_v4  ;;  %v3483_v5 = vsel %vm14005_vm9, %v3461_v38, %v3462_v58  ;;  %vm14010_vm14 = vmmov %vm14006_vm6 }
 0x31a   : > { %v2347_v15 = vpop.f32.mrf.mxu2  ;;  %v10928_v30 = vpack.c.bf16 %v3016_v35, %v3017_v17  ;;  %vm14011_vm9 = vmmov %vm14006_vm6 }
 0x31b   : > { %v2581_v43 = vpop.f32.mrf.mxu3  ;;  %v2932_v26 = vadd.f32 %v10381_v40, %v2896_v9  ;;  %v2393_v53 = vadd.f32 %v2347_v15, %v2159_v20 }
 0x31c   : > { %v2818_v22 = vpop.f32.mrf.mxu0 }
 0x31d   : > { %v2964_v14 = vmax.f32 %v2932_v26, 0.0  ;;  %v2627_v46 = vadd.f32 %v2581_v43, %v2393_v53 }
 0x31f   : > { %v2996_v55 = vrot.slane %v2964_v14, 7  ;;  %v3463_v12 = vrot.slane %v2964_v14, 1  ;;  %v2861_v10 = vadd.f32 %v2815_v33, %v2627_v46 }
 0x321   : > { %v2897_v45 = vmul.f32 %v10375_v2, %v2861_v10  ;;  %v3482_v31 = vsel %vm14006_vm6, %v3462_v58, %v3463_v12  ;;  %v3015_v38 = vsel %vm14007_vm5, %v2995_v4, %v2996_v55  ;;  %v2161_v58 = vadd.f32 %v10116_v61, %v10144_v56  ;;  %vm14012_vm6 = vmmov %vm14007_vm5 }
 0x322   : > { %v2350_v50 = vpop.f32.mrf.mxu2  ;;  %v10936_v35 = vpack.c.bf16 %v3482_v31, %v3483_v5 }
 0x323   : > { %v2584_v17 = vpop.f32.mrf.mxu3  ;;  %v2933_v20 = vadd.f32 %v10381_v40, %v2897_v45  ;;  %v2394_v9 = vadd.f32 %v2350_v50, %v10118_v3 }
 0x324   : > { %14008 = vst [vmem:[#allocation205_spill] sm:$0xff] %v10936_v35  ;;  %v2820_v26 = vpop.f32.mrf.mxu0 }
 0x325   : > { %v2965_v15 = vmax.f32 %v2933_v20, 0.0  ;;  %v2628_v43 = vadd.f32 %v2584_v17, %v2394_v9  ;;  %v6857_v20 = vld [vmem:[#allocation8 + $0xb8] sm:$0xff] }
 0x326   : > { %v6865_v9 = vld [vmem:[#allocation8 + $0xf8] sm:$0xff]  ;;  %3618 = vmatpush.bf16.msrb.mxu3 %v6857_v20  ;;  %v6855_v20 = vld [vmem:[#allocation8 + $0xa8] sm:$0xff] }
 0x327   : > { %v2997_v33 = vrot.slane %v2965_v15, 7  ;;  %v3464_v53 = vrot.slane %v2965_v15, 1  ;;  %v2862_v46 = vadd.f32 %v2818_v22, %v2628_v43  ;;  %v10940_v10 = vpack.c.bf16 %v2965_v15, %v2964_v14  ;;  %v6841_v14 = vld [vmem:[#allocation8 + $0x38] sm:$0xff]  ;;  %3852 = vmatpush.bf16.msrb.mxu0 %v6865_v9  ;;  %v6863_v9 = vld [vmem:[#allocation8 + $0xe8] sm:$0xff] }
 0x328   : > { %3352 = vmatpush.bf16.msrb.mxu2 %v6841_v14  ;;  %v6839_v14 = vld [vmem:[#allocation8 + $0x28] sm:$0xff] }
 0x329   : > { %v2898_v4 = vmul.f32 %v10375_v2, %v2862_v46  ;;  %v3014_v5 = vsel %vm14009_vm10, %v2996_v55, %v2997_v33  ;;  %v3481_v45 = vsel %vm14010_vm14, %v3463_v12, %v3464_v53  ;;  %v6842_v12 = vld [vmem:[#allocation8 + $0x40] sm:$0xff]  ;;  %vm14015_vm10 = vmmov %vm14011_vm9 }
 0x32a   : > { %v2352_v3 = vpop.f32.mrf.mxu2  ;;  %v10949_v50 = vpack.c.bf16 %v3014_v5, %v3015_v38  ;;  %v6864_v38 = vld [vmem:[#allocation8 + $0xf0] sm:$0xff]  ;;  %3222 = vmatpush.bf16.msra.mxu1 %v6842_v12  ;;  %3619 = vmatpush.bf16.msrb.mxu3 %v6856_v48  ;;  %v6838_v48 = vld [vmem:[#allocation8 + $0x20] sm:$0xff]  ;;  %vm14016_vm14 = vmmov %vm14011_vm9 }
 0x32b   : > { %v2586_v31 = vpop.f32.mrf.mxu3  ;;  %v2934_v17 = vadd.f32 %v10381_v40, %v2898_v4  ;;  %v2395_v22 = vadd.f32 %v2352_v3, %v2161_v58  ;;  %3853 = vmatpush.bf16.msrb.mxu0 %v6864_v38  ;;  %v6854_v38 = vld [vmem:[#allocation8 + $0xa0] sm:$0xff] }
 0x32c   : > { %v2823_v56 = vpop.f32.mrf.mxu0  ;;  %3353 = vmatpush.bf16.msrb.mxu2 %v6840_v16 }
 0x32d   : > { %v2966_v15 = vmax.f32 %v2934_v17, 0.0  ;;  %v2629_v61 = vadd.f32 %v2586_v31, %v2395_v22 }
 0x32e   : > { %3620 = vmatpush.bf16.msrb.mxu3 %v6855_v20 }
 0x32f   : > { %v2998_v55 = vrot.slane %v2966_v15, 7  ;;  %v3465_v43 = vrot.slane %v2966_v15, 1  ;;  %v2863_v46 = vadd.f32 %v2820_v26, %v2629_v61  ;;  %3854 = vmatpush.bf16.msrb.mxu0 %v6863_v9  ;;  %v6837_v9 = vld [vmem:[#allocation8 + $0x18] sm:$0xff] }
 0x330   : > { %3354 = vmatpush.bf16.msrb.mxu2 %v6839_v14 }
 0x331   : > { %v2899_v5 = vmul.f32 %v10375_v2, %v2863_v46  ;;  %v3480_v58 = vsel %vm14011_vm9, %v3464_v53, %v3465_v43  ;;  %v3013_v4 = vsel %vm14012_vm6, %v2997_v33, %v2998_v55  ;;  %vm14017_vm9 = vmmov %vm14007_vm5 }
 0x332   : > { %v2355_v3 = vpop.f32.mrf.mxu2  ;;  %v10957_v17 = vpack.c.bf16 %v3480_v58, %v3481_v45  ;;  %v6862_v45 = vld [vmem:[#allocation8 + $0xe0] sm:$0xff]  ;;  %3621 = vmatpush.bf16.msrb.mxu3 %v6854_v38  ;;  %v6852_v38 = vld [vmem:[#allocation8 + $0x90] sm:$0xff]  ;;  %vm14020_vm6 = vmmov %vm14007_vm5 }
 0x333   : > { %v2589_v31 = vpop.f32.mrf.mxu3  ;;  %v2935_v26 = vadd.f32 %v10381_v40, %v2899_v5  ;;  %v2396_v22 = vadd.f32 %v2355_v3, %v10181_v39  ;;  %v14014_v5 = vld [vmem:[#allocation128_spill] sm:$0xff]  ;;  %3855 = vmatpush.bf16.msrb.mxu0 %v6862_v45  ;;  %v6860_v45 = vld [vmem:[#allocation8 + $0xd0] sm:$0xff] }
 0x334   : > { %14013 = vst [vmem:[#allocation206_spill] sm:$0xff] %v10957_v17  ;;  %v2825_v46 = vpop.f32.mrf.mxu0  ;;  %v2163_v39 = vadd.f32 %v14014_v5, %v10209_v6  ;;  %3355 = vmatpush.bf16.msrb.mxu2 %v6838_v48  ;;  %v6853_v6 = vld [vmem:[#allocation8 + $0x98] sm:$0xff] }
 0x335   : > { %v2967_v16 = vmax.f32 %v2935_v26, 0.0  ;;  %v2630_v61 = vadd.f32 %v2589_v31, %v2396_v22 }
 0x336   : > { %3622 = vmatpush.bf16.msrb.mxu3 %v6853_v6 }
 0x337   : > { %v2999_v33 = vrot.slane %v2967_v16, 7  ;;  %v3466_v53 = vrot.slane %v2967_v16, 1  ;;  %v2864_v12 = vadd.f32 %v2823_v56, %v2630_v61  ;;  %v10961_v58 = vpack.c.bf16 %v2967_v16, %v2966_v15  ;;  %v6861_v16 = vld [vmem:[#allocation8 + $0xd8] sm:$0xff] }
 0x338   : > { %3356 = vmatpush.bf16.msrb.mxu2 %v6837_v9  ;;  %3856 = vmatpush.bf16.msrb.mxu0 %v6861_v16 }
 0x339   : > { %v2900_v3 = vmul.f32 %v10375_v2, %v2864_v12  ;;  %v3012_v31 = vsel %vm14007_vm5, %v2998_v55, %v2999_v33  ;;  %v3479_v26 = vsel %vm14015_vm10, %v3465_v43, %v3466_v53  ;;  %vm14021_vm5 = vmmov %vm14015_vm10 }
 0x33a   : > { %v2357_v22 = vpop.f32.mrf.mxu2  ;;  %v10970_v56 = vpack.c.bf16 %v3012_v31, %v3013_v4  ;;  %v2128_v4 = vpop.f32.mrf.mxu1  ;;  %3623 = vmatpush.bf16.msrb.mxu3 %v6852_v38  ;;  %v6858_v38 = vld [vmem:[#allocation8 + $0xc0] sm:$0xff]  ;;  %vm14023_vm10 = vmmov %vm14021_vm5 }
 0x33b   : > { %v2591_v14 = vpop.f32.mrf.mxu3  ;;  %v2936_v15 = vadd.f32 %v10381_v40, %v2900_v3  ;;  %v2397_v20 = vadd.f32 %v2357_v22, %v2163_v39 }
 0x33c   : > { %v2828_v5 = vpop.f32.mrf.mxu0  ;;  %3357 = vmatpush.bf16.msrb.mxu2 %v6836_v7  ;;  %3857 = vmatpush.bf16.msrb.mxu0 %v6860_v45 }
 0x33d   : > { %v2968_v61 = vmax.f32 %v2936_v15, 0.0  ;;  %v2631_v12 = vadd.f32 %v2591_v14, %v2397_v20  ;;  %v6835_v15 = vld [vmem:[#allocation8 + $0x8] sm:$0xff] }
 0x33e   : > { %v6859_v20 = vld [vmem:[#allocation8 + $0xc8] sm:$0xff] }
 0x33f   : > { %v3000_v55 = vrot.slane %v2968_v61, 7  ;;  %v3467_v48 = vrot.slane %v2968_v61, 1  ;;  %v2865_v43 = vadd.f32 %v2825_v46, %v2631_v12  ;;  %v10983_v46 = vld [vmem:[%s12067_s4] ss:$0 sm:$0xff] }
 0x340   : > { %3358 = vmatpush.bf16.msrb.mxu2 %v6835_v15  ;;  %3858 = vmatpush.bf16.msrb.mxu0 %v6859_v20  ;;  %v6834_v12 = vld [vmem:[#allocation8] sm:$0xff] }
 0x341   : > { %v2901_v31 = vmul.f32 %v10375_v2, %v2865_v43  ;;  %v3478_v40 = vsel %vm14016_vm14, %v3466_v53, %v3467_v48  ;;  %v3011_v39 = vsel %vm14017_vm9, %v2999_v33, %v3000_v55  ;;  %v6851_v53 = vld [vmem:[#allocation8 + $0x88] sm:$0xff]  ;;  %v6850_v43 = vld [vmem:[#allocation8 + $0x80] sm:$0xff]  ;;  %vm14024_vm14 = vmmov %vm14020_vm6 }
 0x342   : > { %v2360_v3 = vpop.f32.mrf.mxu2  ;;  %v10978_v14 = vpack.c.bf16 %v3478_v40, %v3479_v26  ;;  %3624 = vmatpush.bf16.msrb.mxu3 %v6851_v53  ;;  %v14019_v40 = vld [vmem:[#allocation28_spill] sm:$0xff]  ;;  %vm14026_vm9 = vmmov %vm14020_vm6 }
 0x343   : > { %v2594_v22 = vpop.f32.mrf.mxu3  ;;  %v2937_v2 = vadd.f32 %v10983_v46, %v2901_v31  ;;  %v2398_v7 = vadd.f32 %v2360_v3, %v10246_v34  ;;  %v2165_v31 = vadd.f32 %v2128_v4, %v14019_v40  ;;  %v7072_v34 = vld [vmem:[%s12066_s3] ss:$0 sm:$0xff] }
 0x344   : > { %14018 = vst [vmem:[#allocation204_spill] sm:$0xff] %v10978_v14  ;;  %3359 = vmatpush.bf16.msrb.mxu2 %v6834_v12  ;;  %3859 = vmatpush.bf16.msrb.mxu0 %v6858_v38 }
 0x345   : > { %v2969_v9 = vmax.f32 %v2937_v2, 0.0  ;;  %v2632_v33 = vadd.f32 %v2594_v22, %v2398_v7  ;;  %v2830_v2 = vpop.f32.mrf.mxu0  ;;  %v6873_v22 = vld [vmem:[#allocation8 + $0x138] sm:$0xff] }
 0x346   : > { %3625 = vmatpush.bf16.msrb.mxu3 %v6850_v43  ;;  %4054 = vmatpush.bf16.msrb.mxu1 %v6873_v22 }
 0x347   : > { %v3001_v6 = vrot.slane %v2969_v9, 7  ;;  %v3468_v26 = vrot.slane %v2969_v9, 1  ;;  %v2866_v16 = vadd.f32 %v2828_v5, %v2632_v33  ;;  %v10987_v45 = vpack.c.bf16 %v2969_v9, %v2968_v61  ;;  %v2131_v9 = vpop.f32.mrf.mxu1 }
 0x349   : > { %v2902_v3 = vmul.f32 %v7072_v34, %v2866_v16  ;;  %v3010_v7 = vsel %vm14020_vm6, %v3000_v55, %v3001_v6  ;;  %v3477_v5 = vsel %vm14021_vm5, %v3467_v48, %v3468_v26  ;;  %v14022_v55 = vld [vmem:[#allocation181_spill] sm:$0xff]  ;;  %vm14027_vm6 = vmmov %vm14021_vm5 }
 0x34a   : > { %v2362_v15 = vpop.f32.mrf.mxu2  ;;  %v10997_v61 = vpack.c.bf16 %v3010_v7, %v3011_v39  ;;  %v2166_v63 = vadd.f32 %v2131_v9, %v14022_v55  ;;  %vm14028_vm5 = vmmov %vm14026_vm9 }
 0x34b   : > { %v2596_v53 = vpop.f32.mrf.mxu3  ;;  %v2938_v4 = vadd.f32 %v10983_v46, %v2902_v3  ;;  %v2399_v20 = vadd.f32 %v2362_v15, %v2165_v31 }
 0x34d   : > { %v2970_v33 = vmax.f32 %v2938_v4, 0.0  ;;  %v2633_v16 = vadd.f32 %v2596_v53, %v2399_v20  ;;  %v2833_v7 = vpop.f32.mrf.mxu0 }
 0x34f   : > { %v3002_v12 = vrot.slane %v2970_v33, 7  ;;  %v3469_v40 = vrot.slane %v2970_v33, 1  ;;  %v2867_v51 = vadd.f32 %v2830_v2, %v2633_v16  ;;  %v2133_v2 = vpop.f32.mrf.mxu1 }
 0x351   : > { %v2903_v59 = vmul.f32 %v7072_v34, %v2867_v51  ;;  %v3476_v48 = vsel %vm14023_vm10, %v3468_v26, %v3469_v40  ;;  %v3009_v39 = vsel %vm14024_vm14, %v3001_v6, %v3002_v12  ;;  %v14025_v26 = vld [vmem:[#allocation42_spill] sm:$0xff]  ;;  %vm14029_vm10 = vmmov %vm14027_vm6 }
 0x352   : > { %v2365_v43 = vpop.f32.mrf.mxu2  ;;  %v11005_v3 = vpack.c.bf16 %v3476_v48, %v3477_v5  ;;  %v2167_v16 = vadd.f32 %v2133_v2, %v14025_v26  ;;  %vm14031_vm14 = vmmov %vm14028_vm5 }
 0x353   : > { %v2599_v38 = vpop.f32.mrf.mxu3  ;;  %v2939_v31 = vadd.f32 %v10983_v46, %v2903_v59  ;;  %v2400_v22 = vadd.f32 %v2365_v43, %v2166_v63 }
 0x355   : > { %v2971_v15 = vmax.f32 %v2939_v31, 0.0  ;;  %v2634_v53 = vadd.f32 %v2599_v38, %v2400_v22 }
 0x357   : > { %v3003_v4 = vrot.slane %v2971_v15, 7  ;;  %v3470_v20 = vrot.slane %v2971_v15, 1  ;;  %v2868_v51 = vadd.f32 %v2833_v7, %v2634_v53  ;;  %v11008_v9 = vpack.c.bf16 %v2971_v15, %v2970_v33  ;;  %v2835_v33 = vpop.f32.mrf.mxu0 }
 0x359   : > { %v2904_v55 = vmul.f32 %v7072_v34, %v2868_v51  ;;  %v3008_v6 = vsel %vm14026_vm9, %v3002_v12, %v3003_v4  ;;  %v3475_v5 = vsel %vm14027_vm6, %v3469_v40, %v3470_v20  ;;  %vm14034_vm9 = vmmov %vm14028_vm5 }
 0x35a   : > { %v2367_v59 = vpop.f32.mrf.mxu2  ;;  %v11015_v63 = vpack.c.bf16 %v3008_v6, %v3009_v39 }
 0x35b   : > { %v2940_v48 = vadd.f32 %v10983_v46, %v2904_v55  ;;  %v2401_v43 = vadd.f32 %v2367_v59, %v2167_v16  ;;  %v2601_v38 = vpop.f32.mrf.mxu3 }
 0x35d   : > { %v2972_v31 = vmax.f32 %v2940_v48, 0.0  ;;  %v2635_v22 = vadd.f32 %v2601_v38, %v2401_v43  ;;  %v14032_v48 = vld [vmem:[#allocation56_spill] sm:$0xff]  ;;  %v6872_v38 = vld [vmem:[#allocation8 + $0x130] sm:$0xff] }
 0x35e   : > { %v14033_v43 = vrot.slane %v14032_v48, 7  ;;  %4055 = vmatpush.bf16.msrb.mxu1 %v6872_v38  ;;  %v14080_v38 = vld [vmem:[#allocation149_spill] sm:$0xff] }
 0x35f   : > { %v3004_v7 = vrot.slane %v2972_v31, 7  ;;  %v3471_v15 = vrot.slane %v2972_v31, 1  ;;  %v2869_v53 = vadd.f32 %v2835_v33, %v2635_v22  ;;  %v14041_v33 = vld [vmem:[#allocation191_spill] sm:$0xff] }
 0x361   : > { %v3007_v2 = vsel %vm14028_vm5, %v3003_v4, %v3004_v7  ;;  %v2905_v12 = vmul.f32 %v7072_v34, %v2869_v53  ;;  %v3474_v40 = vsel %vm14029_vm10, %v3470_v20, %v3471_v15  ;;  %v14035_v20 = vrot.slane %v14032_v48, 1  ;;  %vm14036_vm5 = vmmov %vm14027_vm6  ;;  %v14045_v53 = vld [vmem:[#allocation25_spill] sm:$0xff] }
 0x362   : > { %v11022_v51 = vpack.c.bf16 %v3474_v40, %v3475_v5  ;;  %v14037_v5 = vld [vmem:[#allocation29_spill] sm:$0xff]  ;;  %v14055_v40 = vld [vmem:[#allocation35_spill] sm:$0xff] }
 0x363   : > { %v2941_v39 = vadd.f32 %v10983_v46, %v2905_v12  ;;  %vm14038_vm10 = vnez %v14037_v5  ;;  %v14050_v12 = vld [vmem:[#allocation139_spill] sm:$0xff]  ;;  %v14066_v48 = vld [vmem:[#allocation145_spill] sm:$0xff]  ;;  %v14078_v5 = vld [vmem:[#allocation150_spill] sm:$0xff] }
 0x365   : > { %v2973_v26 = vmax.f32 %v2941_v39, 0.0  ;;  %v14056_v39 = vld [vmem:[#allocation43_spill] sm:$0xff] }
 0x366   : > { %vm14057_vm15 = vnez %v14056_v39  ;;  %v14097_v39 = vld [vmem:[#allocation155_spill] sm:$0xff] }
 0x367   : > { %v3005_v16 = vrot.slane %v2973_v26, 7  ;;  %v11025_v55 = vpack.c.bf16 %v2973_v26, %v2972_v31  ;;  %v3472_v6 = vrot.slane %v2973_v26, 1  ;;  %v14058_v26 = vld [vmem:[#allocation40_spill] sm:$0xff] }
 0x368   : > { %vm14059_vm13 = vnez %v14058_v26  ;;  %v14099_v26 = vld [vmem:[#allocation83_spill] sm:$0xff] }
 0x369   : > { %14030 = vst [vmem:[#allocation126_spill] sm:$0xff] %v11025_v55  ;;  %v3006_v59 = vsel %vm14031_vm14, %v3004_v7, %v3005_v16  ;;  %v3037_v34 = vsel %vm14034_vm9, %v3005_v16, %v14033_v43  ;;  %v3473_v4 = vsel %vm14027_vm6, %v3471_v15, %v3472_v6  ;;  %v3504_v46 = vsel %vm14036_vm5, %v3472_v6, %v14035_v20  ;;  %v14043_v15 = vld [vmem:[#allocation26_spill] sm:$0xff]  ;;  %v14060_v16 = vld [vmem:[#allocation39_spill] sm:$0xff]  ;;  %v14063_v6 = vld [vmem:[#allocation196_spill] sm:$0xff] }
 0x36a   : > { %6118 = vmatmul.msk.bf16.vlgmr.msra.gmra.mxu1 %vm14038_vm10, %v11025_v55  ;;  %v11042_v31 = vpack.c.bf16 %v3006_v59, %v3007_v2  ;;  %v11044_v22 = vpack.c.bf16 %v3504_v46, %v3473_v4  ;;  %v11047_v7 = vpack.c.bf16 %v14041_v33, %v3037_v34  ;;  %vm14044_vm14 = vnez %v14043_v15  ;;  %v14053_v2 = vld [vmem:[#allocation142_spill] sm:$0xff]  ;;  %v14069_v43 = vld [vmem:[#allocation147_spill] sm:$0xff]  ;;  %v14071_v34 = vld [vmem:[#allocation57_spill] sm:$0xff] }
 0x36b   : > { %vm14046_vm9 = vnez %v14045_v53  ;;  %vm14049_vm5 = vnez %v14048_v19  ;;  %vm14051_vm10 = vnez %v14050_v12  ;;  %vm14054_vm8 = vnez %v14053_v2  ;;  %v14064_v59 = vld [vmem:[#allocation146_spill] sm:$0xff]  ;;  %v6871_v4 = vld [vmem:[#allocation8 + $0x128] sm:$0xff]  ;;  %v14075_v46 = vld [vmem:[#allocation53_spill] sm:$0xff] }
 0x36c   : > { %14039 = vst [vmem:[#allocation135_spill] sm:$0xff] %v11042_v31  ;;  %vm14047_vm6 = vmpackc.low %vm14044_vm14, %vm14046_vm9  ;;  %6358 = vmatmul.msk.bf16.vlgmr.msrb.gmra.mxu0 %vm14054_vm8, %v11047_v7  ;;  %vm14061_vm14 = vnez %v14060_v16  ;;  %vm14070_vm8 = vnez %v14069_v43  ;;  %4056 = vmatpush.bf16.msrb.mxu1 %v6871_v4  ;;  %v14073_v20 = vld [vmem:[#allocation54_spill] sm:$0xff]  ;;  %v14083_v33 = vld [vmem:[#allocation151_spill] sm:$0xff] }
 0x36d   : > { %14040 = vst [vmem:[#allocation134_spill] sm:$0xff] %v11044_v22  ;;  %6198 = vmatmul.msk.bf16.vlgmr.msrb.gmra.mxu2 %vm14047_vm6, %v11042_v31  ;;  %vm14052_vm3 = vmpackc.low %vm14049_vm5, %vm14051_vm10  ;;  %vm14065_vm6 = vnez %v14064_v59  ;;  %vm14076_vm10 = vnez %v14075_v46  ;;  %v14085_v15 = vld [vmem:[#allocation69_spill] sm:$0xff]  ;;  %v14087_v53 = vld [vmem:[#allocation66_spill] sm:$0xff] }
 0x36e   : > { %14042 = vst [vmem:[#allocation106_spill] sm:$0xff] %v11047_v7  ;;  %6278 = vmatmul.msk.bf16.vlgmr.msrb.gmra.mxu3 %vm14052_vm3, %v11044_v22  ;;  %vm14062_vm9 = vmpackc.low %vm14059_vm13, %vm14061_vm14  ;;  %vm14067_vm3 = vnez %v14066_v48  ;;  %vm14074_vm13 = vnez %v14073_v20  ;;  %v14089_v19 = vld [vmem:[#allocation65_spill] sm:$0xff]  ;;  %v14092_v12 = vld [vmem:[#allocation154_spill] sm:$0xff] }
 0x36f   : > { %vm14068_vm5 = vmpackc.low %vm14065_vm6, %vm14067_vm3  ;;  %vm14081_vm6 = vnez %v14080_v38  ;;  %v14094_v2 = vld [vmem:[#allocation153_spill] sm:$0xff]  ;;  %v6870_v16 = vld [vmem:[#allocation8 + $0x120] sm:$0xff] }
 0x370   : > { %vm14077_vm14 = vmpackc.low %vm14074_vm13, %vm14076_vm10  ;;  %vm14090_vm13 = vnez %v14089_v19  ;;  %4057 = vmatpush.bf16.msrb.mxu1 %v6870_v16  ;;  %v14101_v59 = vld [vmem:[#allocation80_spill] sm:$0xff]  ;;  %v14103_v48 = vld [vmem:[#allocation79_spill] sm:$0xff] }
 0x371   : > { %v14106_v43 = vld [vmem:[#allocation116_spill] sm:$0xff]  ;;  %v14109_v4 = vld [vmem:[#allocation74_spill] sm:$0xff]  ;;  %v14112_v20 = vld [vmem:[#allocation159_spill] sm:$0xff] }
 0x372   : > { %v14114_v46 = vld [vmem:[#allocation207_spill] sm:$0xff]  ;;  %v14117_v38 = vld [vmem:[#allocation96_spill] sm:$0xff]  ;;  %v14136_v16 = vld [vmem:[#allocation109_spill] sm:$0xff] }
 0x373   : > { %v14127_v19 = vld [vmem:[#allocation164_spill] sm:$0xff]  ;;  %v14175_v22 = vld [vmem:[#allocation37_spill] sm:$0xff]  ;;  %v14186_v55 = vld [vmem:[#allocation50_spill] sm:$0xff] }
 0x37a   : > { %6121 = vmatmul.msk.bf16.gmra.mxu1 %vm14057_vm15, %v14055_v40  ;;  %vm14072_vm15 = vnez %v14071_v34  ;;  %v14107_v34 = vld [vmem:[#allocation75_spill] sm:$0xff] }
 0x37c   : > { %6361 = vmatmul.msk.bf16.gmra.mxu0 %vm14070_vm8, %v10538_v37  ;;  %vm14086_vm8 = vnez %v14085_v15  ;;  %v14122_v15 = vld [vmem:[#allocation90_spill] sm:$0xff] }
 0x37d   : > { %6201 = vmatmul.msk.bf16.gmra.mxu2 %vm14062_vm9, %v11047_v7  ;;  %vm14079_vm9 = vnez %v14078_v5  ;;  %v14115_v5 = vld [vmem:[#allocation99_spill] sm:$0xff] }
 0x37e   : > { %6281 = vmatmul.msk.bf16.gmra.mxu3 %vm14068_vm5, %v14063_v6  ;;  %vm14082_vm3 = vmpackc.low %vm14079_vm9, %vm14081_vm6  ;;  %vm14084_vm5 = vnez %v14083_v33  ;;  %vm14095_vm9 = vnez %v14094_v2  ;;  %v14119_v33 = vld [vmem:[#allocation95_spill] sm:$0xff]  ;;  %v6869_v2 = vld [vmem:[#allocation8 + $0x118] sm:$0xff] }
 0x37f   : > { %4058 = vmatpush.bf16.msrb.mxu1 %v6869_v2  ;;  %v14159_v2 = vld [vmem:[#allocation24_spill] sm:$0xff] }
 0x38a   : > { %6124 = vmatmul.msk.bf16.gmra.mxu1 %vm14072_vm15, %v10531_v28  ;;  %vm14088_vm15 = vnez %v14087_v53  ;;  %v14124_v53 = vld [vmem:[#allocation88_spill] sm:$0xff] }
 0x38b   : > { %vm14091_vm10 = vmpackc.low %vm14088_vm15, %vm14090_vm13  ;;  %vm14104_vm15 = vnez %v14103_v48  ;;  %v14141_v48 = vld [vmem:[#allocation169_spill] sm:$0xff] }
 0x38c   : > { %6364 = vmatmul.msk.bf16.gmra.mxu0 %vm14084_vm5, %v10615_v60  ;;  %vm14100_vm5 = vnez %v14099_v26  ;;  %v14133_v26 = vld [vmem:[#allocation114_spill] sm:$0xff] }
 0x38d   : > { %6204 = vmatmul.msk.bf16.gmra.mxu2 %vm14077_vm14, %v10538_v37  ;;  %vm14093_vm14 = vnez %v14092_v12  ;;  %v14129_v12 = vld [vmem:[#allocation118_spill] sm:$0xff] }
 0x38e   : > { %6284 = vmatmul.msk.bf16.gmra.mxu3 %vm14082_vm3, %v10600_v13  ;;  %vm14096_vm6 = vmpackc.low %vm14093_vm14, %vm14095_vm9  ;;  %vm14098_vm3 = vnez %v14097_v39  ;;  %vm14110_vm14 = vnez %v14109_v4  ;;  %v14131_v39 = vld [vmem:[#allocation115_spill] sm:$0xff]  ;;  %v14145_v4 = vld [vmem:[#allocation133_spill] sm:$0xff] }
 0x39a   : > { %6127 = vmatmul.msk.bf16.gmra.mxu1 %vm14086_vm8, %v10608_v57  ;;  %vm14102_vm8 = vnez %v14101_v59  ;;  %v14138_v59 = vld [vmem:[#allocation107_spill] sm:$0xff] }
 0x39b   : > { %vm14105_vm13 = vmpackc.low %vm14102_vm8, %vm14104_vm15  ;;  %vm14120_vm8 = vnez %v14119_v33  ;;  %v14155_v33 = vld [vmem:[#allocation176_spill] sm:$0xff] }
 0x39c   : > { %6367 = vmatmul.msk.bf16.gmra.mxu0 %vm14098_vm3, %v10694_v47  ;;  %vm14116_vm3 = vnez %v14115_v5  ;;  %v14150_v5 = vld [vmem:[#allocation174_spill] sm:$0xff] }
 0x39d   : > { %6207 = vmatmul.msk.bf16.gmra.mxu2 %vm14091_vm10, %v10615_v60  ;;  %vm14108_vm10 = vnez %v14107_v34  ;;  %v14143_v34 = vld [vmem:[#allocation136_spill] sm:$0xff] }
 0x39e   : > { %6287 = vmatmul.msk.bf16.gmra.mxu3 %vm14096_vm6, %v10677_v32  ;;  %vm14111_vm9 = vmpackc.low %vm14108_vm10, %vm14110_vm14  ;;  %vm14113_vm6 = vnez %v14112_v20  ;;  %vm14125_vm10 = vnez %v14124_v53  ;;  %v14147_v20 = vld [vmem:[#allocation132_spill] sm:$0xff]  ;;  %v14157_v53 = vld [vmem:[#allocation22_spill] sm:$0xff] }
 0x3aa   : > { %6130 = vmatmul.msk.bf16.gmra.mxu1 %vm14100_vm5, %v10685_v24  ;;  %vm14118_vm5 = vnez %v14117_v38  ;;  %v14152_v38 = vld [vmem:[#allocation173_spill] sm:$0xff] }
 0x3ab   : > { %vm14121_vm15 = vmpackc.low %vm14118_vm5, %vm14120_vm8  ;;  %vm14134_vm5 = vnez %v14133_v26  ;;  %v14164_v26 = vld [vmem:[#allocation19_spill] sm:$0xff] }
 0x3ac   : > { %6370 = vmatmul.msk.bf16.gmra.mxu0 %vm14113_vm6, %v10772_v54  ;;  %vm14130_vm6 = vnez %v14129_v12  ;;  %v6868_v12 = vld [vmem:[#allocation8 + $0x110] sm:$0xff] }
 0x3ad   : > { %6210 = vmatmul.msk.bf16.gmra.mxu2 %vm14105_vm13, %v10694_v47  ;;  %vm14123_vm13 = vnez %v14122_v15  ;;  %4059 = vmatpush.bf16.msrb.mxu1 %v6868_v12  ;;  %v14173_v12 = vld [vmem:[#allocation38_spill] sm:$0xff] }
 0x3ae   : > { %6290 = vmatmul.msk.bf16.gmra.mxu3 %vm14111_vm9, %v14106_v43  ;;  %vm14126_vm14 = vmpackc.low %vm14123_vm13, %vm14125_vm10  ;;  %vm14128_vm9 = vnez %v14127_v19  ;;  %vm14139_vm13 = vnez %v14138_v59  ;;  %v14169_v59 = vld [vmem:[#allocation183_spill] sm:$0xff] }
 0x3ba   : > { %6133 = vmatmul.msk.bf16.gmra.mxu1 %vm14116_vm3, %v14114_v46  ;;  %vm14132_vm3 = vnez %v14131_v39  ;;  %v14161_v39 = vld [vmem:[#allocation23_spill] sm:$0xff] }
 0x3bb   : > { %vm14135_vm8 = vmpackc.low %vm14132_vm3, %vm14134_vm5  ;;  %vm14148_vm3 = vnez %v14147_v20 }
 0x3bc   : > { %6373 = vmatmul.msk.bf16.gmra.mxu0 %vm14128_vm9, %v10808_v18  ;;  %vm14144_vm9 = vnez %v14143_v34 }
 0x3bd   : > { %6213 = vmatmul.msk.bf16.gmra.mxu2 %vm14121_vm15, %v10772_v54  ;;  %vm14137_vm15 = vnez %v14136_v16  ;;  %v14166_v16 = vld [vmem:[#allocation17_spill] sm:$0xff] }
 0x3be   : > { %6293 = vmatmul.msk.bf16.gmra.mxu3 %vm14126_vm14, %v10795_v11  ;;  %vm14140_vm10 = vmpackc.low %vm14137_vm15, %vm14139_vm13  ;;  %vm14142_vm14 = vnez %v14141_v48  ;;  %vm14153_vm15 = vnez %v14152_v38 }
 0x3ca   : > { %6136 = vmatmul.msk.bf16.gmra.mxu1 %vm14130_vm6, %v10799_v44  ;;  %vm14146_vm6 = vnez %v14145_v4 }
 0x3cb   : > { %vm14149_vm5 = vmpackc.low %vm14146_vm6, %vm14148_vm3  ;;  %vm14162_vm6 = vnez %v14161_v39 }
 0x3cc   : > { %6376 = vmatmul.msk.bf16.gmra.mxu0 %vm14142_vm14, %v10844_v29  ;;  %vm14158_vm14 = vnez %v14157_v53 }
 0x3cd   : > { %6216 = vmatmul.msk.bf16.gmra.mxu2 %vm14135_vm8, %v10808_v18  ;;  %vm14151_vm8 = vnez %v14150_v5 }
 0x3ce   : > { %6296 = vmatmul.msk.bf16.gmra.mxu3 %vm14140_vm10, %v10831_v52  ;;  %vm14154_vm13 = vmpackc.low %vm14151_vm8, %vm14153_vm15  ;;  %vm14156_vm10 = vnez %v14155_v33  ;;  %vm14167_vm8 = vnez %v14166_v16  ;;  %v14171_v16 = vld [vmem:[#allocation36_spill] sm:$0xff] }
 0x3da   : > { %6139 = vmatmul.msk.bf16.gmra.mxu1 %vm14144_vm9, %v10835_v36  ;;  %vm14160_vm9 = vnez %v14159_v2 }
 0x3db   : > { %vm14163_vm3 = vmpackc.low %vm14160_vm9, %vm14162_vm6  ;;  %vm14176_vm9 = vnez %v14175_v22 }
 0x3dc   : > { %6379 = vmatmul.msk.bf16.gmra.mxu0 %vm14156_vm10, %v10865_v8  ;;  %vm14172_vm10 = vnez %v14171_v16 }
 0x3dd   : > { %6219 = vmatmul.msk.bf16.gmra.mxu2 %vm14149_vm5, %v10844_v29  ;;  %vm14165_vm5 = vnez %v14164_v26 }
 0x3de   : > { %6299 = vmatmul.msk.bf16.gmra.mxu3 %vm14154_vm13, %v10852_v27  ;;  %vm14168_vm15 = vmpackc.low %vm14165_vm5, %vm14167_vm8  ;;  %vm14170_vm13 = vnez %v14169_v59 }
 0x3e7   : > { %v3224_v15 = vpop.f32.mrf.mxu1 }
 0x3e9   : > { %v3861_v19 = vpop.f32.mrf.mxu0 }
 0x3ea   : > { %6142 = vmatmul.msk.bf16.gmra.mxu1 %vm14158_vm14, %v10856_v1  ;;  %vm14174_vm14 = vnez %v14173_v12 }
 0x3eb   : > { %vm14177_vm6 = vmpackc.low %vm14174_vm14, %vm14176_vm9 }
 0x3ec   : > { %6382 = vmatmul.msk.bf16.gmra.mxu0 %vm14170_vm13, %v10886_v42  ;;  %vm14187_vm13 = vnez %v14186_v55  ;;  %v14199_v55 = vld [vmem:[#allocation48_spill] sm:$0xff] }
 0x3ed   : > { %6222 = vmatmul.msk.bf16.gmra.mxu2 %vm14163_vm3, %v10865_v8 }
 0x3ee   : > { %6302 = vmatmul.msk.bf16.gmra.mxu3 %vm14168_vm15, %v10873_v41 }
 0x3ef   : > { %v3226_v48 = vpop.f32.mrf.mxu1 }
 0x3f0   : > { %v3361_v34 = vpop.f32.mrf.mxu2 }
 0x3f1   : > { %v3627_v4 = vpop.f32.mrf.mxu3  ;;  %v3362_v20 = vadd.f32 %v3361_v34, %v3224_v15  ;;  %v3863_v38 = vpop.f32.mrf.mxu0  ;;  %v14178_v15 = vld [vmem:[#allocation33_spill] sm:$0xff]  ;;  %v14184_v34 = vld [vmem:[#allocation34_spill] sm:$0xff] }
 0x3f2   : > { %vm14179_vm3 = vnez %v14178_v15  ;;  %vm14185_vm15 = vnez %v14184_v34  ;;  %v6867_v34 = vld [vmem:[#allocation8 + $0x108] sm:$0xff] }
 0x3f3   : > { %v3707_v5 = vadd.f32 %v3627_v4, %v3362_v20  ;;  %4060 = vmatpush.bf16.msrb.mxu1 %v6867_v34  ;;  %v14204_v34 = vld [vmem:[#allocation64_spill] sm:$0xff] }
 0x3f5   : > { %v11208_v33 = vadd.f32 %v3861_v19, %v3707_v5  ;;  %v14180_v19 = vld [vmem:[#allocation32_spill] sm:$0xff] }
 0x3f6   : > { %vm14181_vm5 = vnez %v14180_v19 }
 0x3f7   : > { %v3229_v53 = vpop.f32.mrf.mxu1  ;;  %vm14182_vm8 = vmpackc.low %vm14179_vm3, %vm14181_vm5 }
 0x3f8   : > { %v3363_v2 = vpop.f32.mrf.mxu2 }
 0x3f9   : > { %v3629_v39 = vpop.f32.mrf.mxu3  ;;  %v3364_v26 = vadd.f32 %v3363_v2, %v3226_v48  ;;  %v3866_v59 = vpop.f32.mrf.mxu0 }
 0x3fa   : > { %6145 = vmatmul.msk.bf16.gmra.mxu1 %vm14172_vm10, %v10877_v49 }
 0x3fb   : > { %v3708_v7 = vadd.f32 %v3629_v39, %v3364_v26 }
 0x3fc   : > { %6385 = vmatmul.msk.bf16.gmra.mxu0 %vm14185_vm15, %v10907_v25 }
 0x3fd   : > { %6225 = vmatmul.msk.bf16.gmra.mxu2 %vm14177_vm6, %v10886_v42  ;;  %v11225_v48 = vadd.f32 %v3863_v38, %v3708_v7 }
 0x3fe   : > { %6305 = vmatmul.msk.bf16.gmra.mxu3 %vm14182_vm8, %v10894_v23  ;;  %v14190_v23 = vld [vmem:[#allocation51_spill] sm:$0xff]  ;;  %vm14200_vm8 = vnez %v14199_v55 }
 0x3ff   : > { %14183 = vst [vmem:[#allocation213_spill] sm:$0xff] %v11225_v48  ;;  %v3231_v4 = vpop.f32.mrf.mxu1  ;;  %v14188_v48 = vld [vmem:[#allocation52_spill] sm:$0xff]  ;;  %vm14191_vm14 = vnez %v14190_v23 }
 0x400   : > { %v3366_v20 = vpop.f32.mrf.mxu2  ;;  %vm14189_vm10 = vnez %v14188_v48 }
 0x401   : > { %v3632_v5 = vpop.f32.mrf.mxu3  ;;  %v3367_v2 = vadd.f32 %v3366_v20, %v3229_v53  ;;  %v3868_v39 = vpop.f32.mrf.mxu0  ;;  %vm14192_vm9 = vmpackc.low %vm14189_vm10, %vm14191_vm14  ;;  %v14193_v53 = vld [vmem:[#allocation47_spill] sm:$0xff] }
 0x402   : > { %vm14194_vm6 = vnez %v14193_v53 }
 0x403   : > { %v3709_v22 = vadd.f32 %v3632_v5, %v3367_v2 }
 0x405   : > { %v11230_v26 = vadd.f32 %v3866_v59, %v3709_v22  ;;  %v14195_v59 = vld [vmem:[#allocation46_spill] sm:$0xff] }
 0x406   : > { %vm14196_vm3 = vnez %v14195_v59 }
 0x407   : > { %v3234_v16 = vpop.f32.mrf.mxu1  ;;  %vm14197_vm5 = vmpackc.low %vm14194_vm6, %vm14196_vm3 }
 0x408   : > { %v3368_v12 = vpop.f32.mrf.mxu2 }
 0x409   : > { %v3634_v15 = vpop.f32.mrf.mxu3  ;;  %v3369_v19 = vadd.f32 %v3368_v12, %v3231_v4  ;;  %v3871_v38 = vpop.f32.mrf.mxu0 }
 0x40a   : > { %6148 = vmatmul.msk.bf16.gmra.mxu1 %vm14187_vm13, %v10898_v0  ;;  %vm14205_vm13 = vnez %v14204_v34 }
 0x40b   : > { %v3710_v7 = vadd.f32 %v3634_v15, %v3369_v19 }
 0x40c   : > { %6388 = vmatmul.msk.bf16.gmra.mxu0 %vm14200_vm8, %v10928_v30 }
 0x40d   : > { %6228 = vmatmul.msk.bf16.gmra.mxu2 %vm14192_vm9, %v10907_v25  ;;  %v11247_v4 = vadd.f32 %v3868_v39, %v3710_v7  ;;  %v14202_v39 = vld [vmem:[#allocation62_spill] sm:$0xff] }
 0x40e   : > { %6308 = vmatmul.msk.bf16.gmra.mxu3 %vm14197_vm5, %v10915_v21  ;;  %vm14203_vm15 = vnez %v14202_v39 }
 0x40f   : > { %14198 = vst [vmem:[#allocation214_spill] sm:$0xff] %v11247_v4  ;;  %v3236_v20 = vpop.f32.mrf.mxu1  ;;  %v14206_v4 = vld [vmem:[#allocation63_spill] sm:$0xff] }
 0x410   : > { %v3371_v48 = vpop.f32.mrf.mxu2  ;;  %vm14207_vm10 = vnez %v14206_v4 }
 0x411   : > { %v3637_v5 = vpop.f32.mrf.mxu3  ;;  %v3372_v23 = vadd.f32 %v3371_v48, %v3234_v16  ;;  %v3873_v22 = vpop.f32.mrf.mxu0  ;;  %vm14208_vm14 = vmpackc.low %vm14205_vm13, %vm14207_vm10  ;;  %v14209_v16 = vld [vmem:[#allocation59_spill] sm:$0xff]  ;;  %v14215_v48 = vld [vmem:[#allocation60_spill] sm:$0xff] }
 0x412   : > { %vm14210_vm9 = vnez %v14209_v16  ;;  %vm14216_vm5 = vnez %v14215_v48  ;;  %v6866_v48 = vld [vmem:[#allocation8 + $0x100] sm:$0xff] }
 0x413   : > { %v3711_v2 = vadd.f32 %v3637_v5, %v3372_v23  ;;  %4061 = vmatpush.bf16.msrb.mxu1 %v6866_v48 }
 0x415   : > { %v11252_v12 = vadd.f32 %v3871_v38, %v3711_v2  ;;  %v14211_v38 = vld [vmem:[#allocation58_spill] sm:$0xff] }
 0x416   : > { %vm14212_vm6 = vnez %v14211_v38 }
 0x417   : > { %14201 = vst [vmem:[#allocation210_spill] sm:$0xff] %v11252_v12  ;;  %v3239_v15 = vpop.f32.mrf.mxu1  ;;  %vm14213_vm3 = vmpackc.low %vm14210_vm9, %vm14212_vm6  ;;  %v14222_v12 = vld [vmem:[#allocation77_spill] sm:$0xff] }
 0x418   : > { %v3373_v19 = vpop.f32.mrf.mxu2  ;;  %vm14223_vm13 = vnez %v14222_v12 }
 0x419   : > { %v3639_v53 = vpop.f32.mrf.mxu3  ;;  %v3374_v59 = vadd.f32 %v3373_v19, %v3236_v20  ;;  %v3876_v55 = vpop.f32.mrf.mxu0 }
 0x41a   : > { %6151 = vmatmul.msk.bf16.gmra.mxu1 %vm14203_vm15, %v10919_v62 }
 0x41b   : > { %v3712_v7 = vadd.f32 %v3639_v53, %v3374_v59 }
 0x41c   : > { %6391 = vmatmul.msk.bf16.gmra.mxu0 %vm14216_vm5, %v10949_v50 }
 0x41d   : > { %6231 = vmatmul.msk.bf16.gmra.mxu2 %vm14208_vm14, %v10928_v30  ;;  %v11269_v20 = vadd.f32 %v3873_v22, %v3712_v7 }
 0x41e   : > { %6311 = vmatmul.msk.bf16.gmra.mxu3 %vm14213_vm3, %v10936_v35  ;;  %v14218_v35 = vld [vmem:[#allocation76_spill] sm:$0xff] }
 0x41f   : > { %14214 = vst [vmem:[#allocation212_spill] sm:$0xff] %v11269_v20  ;;  %v3241_v5 = vpop.f32.mrf.mxu1  ;;  %vm14219_vm8 = vnez %v14218_v35  ;;  %v14220_v20 = vld [vmem:[#allocation78_spill] sm:$0xff] }
 0x420   : > { %v3376_v23 = vpop.f32.mrf.mxu2  ;;  %vm14221_vm15 = vnez %v14220_v20  ;;  %v6889_v35 = vld [vmem:[#allocation8 + $0x1b8] sm:$0xff] }
 0x421   : > { %v3642_v2 = vpop.f32.mrf.mxu3  ;;  %v3377_v19 = vadd.f32 %v3376_v23, %v3239_v15  ;;  %v3878_v53 = vpop.f32.mrf.mxu0  ;;  %vm14224_vm10 = vmpackc.low %vm14221_vm15, %vm14223_vm13  ;;  %v14225_v15 = vld [vmem:[#allocation71_spill] sm:$0xff]  ;;  %v6897_v23 = vld [vmem:[#allocation8 + $0x1f8] sm:$0xff]  ;;  %4522 = vmatpush.bf16.msra.mxu3 %v6889_v35 }
 0x422   : > { %vm14226_vm14 = vnez %v14225_v15  ;;  %4756 = vmatpush.bf16.msra.mxu0 %v6897_v23  ;;  %v6896_v15 = vld [vmem:[#allocation8 + $0x1f0] sm:$0xff]  ;;  %v6878_v23 = vld [vmem:[#allocation8 + $0x160] sm:$0xff] }
 0x423   : > { %v3713_v4 = vadd.f32 %v3642_v2, %v3377_v19  ;;  %v14231_v19 = vld [vmem:[#allocation72_spill] sm:$0xff] }
 0x424   : > { %vm14232_vm3 = vnez %v14231_v19  ;;  %v6895_v19 = vld [vmem:[#allocation8 + $0x1e8] sm:$0xff] }
 0x425   : > { %v11274_v59 = vadd.f32 %v3876_v55, %v3713_v4  ;;  %v14227_v55 = vld [vmem:[#allocation70_spill] sm:$0xff] }
 0x426   : > { %vm14228_vm9 = vnez %v14227_v55  ;;  %4757 = vmatpush.bf16.msra.mxu0 %v6896_v15  ;;  %v14242_v15 = vld [vmem:[#allocation84_spill] sm:$0xff] }
 0x427   : > { %14217 = vst [vmem:[#allocation209_spill] sm:$0xff] %v11274_v59  ;;  %v3244_v39 = vpop.f32.mrf.mxu1  ;;  %vm14229_vm6 = vmpackc.low %vm14226_vm14, %vm14228_vm9  ;;  %v6894_v59 = vld [vmem:[#allocation8 + $0x1e0] sm:$0xff]  ;;  %vm14243_vm14 = vnez %v14242_v15  ;;  %v6891_v15 = vld [vmem:[#allocation8 + $0x1c8] sm:$0xff] }
 0x428   : > { %v3378_v34 = vpop.f32.mrf.mxu2 }
 0x429   : > { %v3644_v16 = vpop.f32.mrf.mxu3  ;;  %v3379_v38 = vadd.f32 %v3378_v34, %v3241_v5  ;;  %v3881_v7 = vpop.f32.mrf.mxu0  ;;  %v6881_v5 = vld [vmem:[#allocation8 + $0x178] sm:$0xff] }
 0x42a   : > { %6154 = vmatmul.msk.bf16.gmra.mxu1 %vm14219_vm8, %v10940_v10  ;;  %4288 = vmatpush.bf16.msra.mxu2 %v6881_v5 }
 0x42b   : > { %v3714_v22 = vadd.f32 %v3644_v16, %v3379_v38  ;;  %v6880_v16 = vld [vmem:[#allocation8 + $0x170] sm:$0xff]  ;;  %4758 = vmatpush.bf16.msra.mxu0 %v6895_v19 }
 0x42c   : > { %6394 = vmatmul.msk.bf16.gmra.mxu0 %vm14232_vm3, %v10970_v56  ;;  %v6888_v38 = vld [vmem:[#allocation8 + $0x1b0] sm:$0xff] }
 0x42d   : > { %6234 = vmatmul.msk.bf16.gmra.mxu2 %vm14224_vm10, %v10949_v50  ;;  %v11291_v2 = vadd.f32 %v3878_v53, %v3714_v22  ;;  %4523 = vmatpush.bf16.msra.mxu3 %v6888_v38  ;;  %v6879_v53 = vld [vmem:[#allocation8 + $0x168] sm:$0xff]  ;;  %v14237_v38 = vld [vmem:[#allocation93_spill] sm:$0xff] }
 0x42e   : > { %6314 = vmatmul.msk.bf16.gmra.mxu3 %vm14229_vm6, %v10957_v17  ;;  %4289 = vmatpush.bf16.msra.mxu2 %v6880_v16  ;;  %v6887_v22 = vld [vmem:[#allocation8 + $0x1a8] sm:$0xff]  ;;  %vm14238_vm15 = vnez %v14237_v38 }
 0x42f   : > { %14230 = vst [vmem:[#allocation31_spill] sm:$0xff] %v11291_v2  ;;  %v3246_v12 = vpop.f32.mrf.mxu1  ;;  %4759 = vmatpush.bf16.msra.mxu0 %v6894_v59  ;;  %v14246_v59 = vld [vmem:[#allocation86_spill] sm:$0xff] }
 0x430   : > { %v3381_v20 = vpop.f32.mrf.mxu2  ;;  %vm14247_vm6 = vnez %v14246_v59 }
 0x431   : > { %v3647_v4 = vpop.f32.mrf.mxu3  ;;  %v3382_v34 = vadd.f32 %v3381_v20, %v3244_v39  ;;  %v3883_v17 = vpop.f32.mrf.mxu0  ;;  %4524 = vmatpush.bf16.msra.mxu3 %v6887_v22  ;;  %v6886_v20 = vld [vmem:[#allocation8 + $0x1a0] sm:$0xff]  ;;  %v6893_v22 = vld [vmem:[#allocation8 + $0x1d8] sm:$0xff] }
 0x432   : > { %4290 = vmatpush.bf16.msra.mxu2 %v6879_v53  ;;  %v6885_v53 = vld [vmem:[#allocation8 + $0x198] sm:$0xff] }
 0x433   : > { %v3715_v55 = vadd.f32 %v3647_v4, %v3382_v34  ;;  %v14233_v4 = vld [vmem:[#allocation92_spill] sm:$0xff]  ;;  %4760 = vmatpush.bf16.msra.mxu0 %v6893_v22  ;;  %v6874_v22 = vld [vmem:[#allocation8 + $0x140] sm:$0xff] }
 0x434   : > { %vm14234_vm5 = vnez %v14233_v4  ;;  %v6884_v4 = vld [vmem:[#allocation8 + $0x190] sm:$0xff] }
 0x435   : > { %v11296_v2 = vadd.f32 %v3881_v7, %v3715_v55  ;;  %4525 = vmatpush.bf16.msra.mxu3 %v6886_v20  ;;  %v14235_v7 = vld [vmem:[#allocation94_spill] sm:$0xff]  ;;  %v6876_v20 = vld [vmem:[#allocation8 + $0x150] sm:$0xff] }
 0x436   : > { %4291 = vmatpush.bf16.msra.mxu2 %v6878_v23  ;;  %vm14236_vm8 = vnez %v14235_v7  ;;  %v6877_v55 = vld [vmem:[#allocation8 + $0x158] sm:$0xff]  ;;  %v6892_v7 = vld [vmem:[#allocation8 + $0x1d0] sm:$0xff] }
 0x437   : > { %v3249_v48 = vpop.f32.mrf.mxu1  ;;  %vm14239_vm13 = vmpackc.low %vm14236_vm8, %vm14238_vm15  ;;  %4761 = vmatpush.bf16.msra.mxu0 %v6892_v7  ;;  %v14252_v7 = vld [vmem:[#allocation112_spill] sm:$0xff] }
 0x438   : > { %v3383_v5 = vpop.f32.mrf.mxu2  ;;  %vm14253_vm8 = vnez %v14252_v7 }
 0x439   : > { %v3649_v35 = vpop.f32.mrf.mxu3  ;;  %v3384_v39 = vadd.f32 %v3383_v5, %v3246_v12  ;;  %v3886_v16 = vpop.f32.mrf.mxu0  ;;  %v14240_v12 = vld [vmem:[#allocation85_spill] sm:$0xff]  ;;  %4526 = vmatpush.bf16.msra.mxu3 %v6885_v53 }
 0x43a   : > { %6157 = vmatmul.msk.bf16.gmra.mxu1 %vm14234_vm5, %v10961_v58  ;;  %vm14241_vm10 = vnez %v14240_v12  ;;  %4292 = vmatpush.bf16.msra.mxu2 %v6877_v55 }
 0x43b   : > { %v3716_v34 = vadd.f32 %v3649_v35, %v3384_v39  ;;  %vm14244_vm9 = vmpackc.low %vm14241_vm10, %vm14243_vm14  ;;  %4762 = vmatpush.bf16.msra.mxu0 %v6891_v15 }
 0x43c   : > { %6397 = vmatmul.msk.bf16.gmra.mxu0 %vm14247_vm6, %v10997_v61 }
 0x43d   : > { %6237 = vmatmul.msk.bf16.gmra.mxu2 %vm14239_vm13, %v10970_v56  ;;  %v11313_v19 = vadd.f32 %v3883_v17, %v3716_v34  ;;  %4527 = vmatpush.bf16.msra.mxu3 %v6884_v4  ;;  %v6875_v17 = vld [vmem:[#allocation8 + $0x148] sm:$0xff]  ;;  %v14250_v4 = vld [vmem:[#allocation113_spill] sm:$0xff] }
 0x43e   : > { %6317 = vmatmul.msk.bf16.gmra.mxu3 %vm14244_vm9, %v10978_v14  ;;  %4293 = vmatpush.bf16.msra.mxu2 %v6876_v20  ;;  %v6883_v34 = vld [vmem:[#allocation8 + $0x188] sm:$0xff]  ;;  %v6890_v14 = vld [vmem:[#allocation8 + $0x1c0] sm:$0xff]  ;;  %vm14251_vm5 = vnez %v14250_v4 }
 0x43f   : > { %14245 = vst [vmem:[#allocation30_spill] sm:$0xff] %v11313_v19  ;;  %v3251_v5 = vpop.f32.mrf.mxu1  ;;  %4763 = vmatpush.bf16.msra.mxu0 %v6890_v14  ;;  %vm14254_vm15 = vmpackc.low %vm14251_vm5, %vm14253_vm8 }
 0x440   : > { %v3386_v35 = vpop.f32.mrf.mxu2 }
 0x441   : > { %v3652_v39 = vpop.f32.mrf.mxu3  ;;  %v3387_v23 = vadd.f32 %v3386_v35, %v3249_v48  ;;  %v3888_v12 = vpop.f32.mrf.mxu0  ;;  %4528 = vmatpush.bf16.msra.mxu3 %v6883_v34  ;;  %v6882_v35 = vld [vmem:[#allocation8 + $0x180] sm:$0xff]  ;;  %v14260_v34 = vld [vmem:[#allocation105_spill] sm:$0xff] }
 0x442   : > { %4294 = vmatpush.bf16.msra.mxu2 %v6875_v17  ;;  %vm14261_vm9 = vnez %v14260_v34  ;;  %v14266_v34 = vld [vmem:[#allocation130_spill] sm:$0xff] }
 0x443   : > { %v3717_v38 = vadd.f32 %v3652_v39, %v3387_v23  ;;  %v14248_v39 = vld [vmem:[#allocation111_spill] sm:$0xff]  ;;  %vm14267_vm5 = vnez %v14266_v34 }
 0x444   : > { %vm14249_vm3 = vnez %v14248_v39 }
 0x445   : > { %v11318_v59 = vadd.f32 %v3886_v16, %v3717_v38  ;;  %4529 = vmatpush.bf16.msra.mxu3 %v6882_v35  ;;  %v6905_v16 = vld [vmem:[#allocation8 + $0x238] sm:$0xff]  ;;  %v14257_v38 = vld [vmem:[#allocation103_spill] sm:$0xff] }
 0x446   : > { %4295 = vmatpush.bf16.msra.mxu2 %v6874_v22  ;;  %vm14258_vm10 = vnez %v14257_v38  ;;  %4990 = vmatpush.bf16.msra.mxu1 %v6905_v16  ;;  %v14264_v16 = vld [vmem:[#allocation131_spill] sm:$0xff] }
 0x447   : > { %v3254_v19 = vpop.f32.mrf.mxu1 }
 0x448   : > { %v3388_v55 = vpop.f32.mrf.mxu2 }
 0x449   : > { %v3654_v53 = vpop.f32.mrf.mxu3  ;;  %v3389_v48 = vadd.f32 %v3388_v55, %v3251_v5  ;;  %v3891_v20 = vpop.f32.mrf.mxu0  ;;  %v14255_v5 = vld [vmem:[#allocation104_spill] sm:$0xff] }
 0x44a   : > { %6160 = vmatmul.msk.bf16.gmra.mxu1 %vm14249_vm3, %v10987_v45  ;;  %vm14256_vm13 = vnez %v14255_v5  ;;  %vm14265_vm3 = vnez %v14264_v16 }
 0x44b   : > { %v3718_v23 = vadd.f32 %v3654_v53, %v3389_v48  ;;  %vm14259_vm14 = vmpackc.low %vm14256_vm13, %vm14258_vm10 }
 0x44c   : > { %6400 = vmatmul.msk.bf16.gmra.mxu0 %vm14261_vm9, %v11015_v63  ;;  %vm14268_vm8 = vmpackc.low %vm14265_vm3, %vm14267_vm5 }
 0x44d   : > { %6240 = vmatmul.msk.bf16.gmra.mxu2 %vm14254_vm15, %v10997_v61  ;;  %v11335_v17 = vadd.f32 %v3888_v12, %v3718_v23  ;;  %v14262_v12 = vld [vmem:[#allocation129_spill] sm:$0xff] }
 0x44e   : > { %6320 = vmatmul.msk.bf16.gmra.mxu3 %vm14259_vm14, %v11005_v3  ;;  %vm14263_vm6 = vnez %v14262_v12 }
 0x44f   : > { %v3256_v14 = vpop.f32.mrf.mxu1 }
 0x450   : > { %v3391_v15 = vpop.f32.mrf.mxu2 }
 0x451   : > { %v3657_v55 = vpop.f32.mrf.mxu3  ;;  %v3392_v53 = vadd.f32 %v3391_v15, %v3254_v19  ;;  %v3893_v22 = vpop.f32.mrf.mxu0  ;;  %v14269_v19 = vld [vmem:[#allocation123_spill] sm:$0xff]  ;;  %v14275_v15 = vld [vmem:[#allocation125_spill] sm:$0xff] }
 0x452   : > { %vm14270_vm15 = vnez %v14269_v19  ;;  %vm14276_vm14 = vnez %v14275_v15  ;;  %v14277_v15 = vld [vmem:[#allocation144_spill] sm:$0xff] }
 0x453   : > { %v3719_v48 = vadd.f32 %v3657_v55, %v3392_v53  ;;  %vm14278_vm9 = vnez %v14277_v15 }
 0x455   : > { %v11340_v35 = vadd.f32 %v3891_v20, %v3719_v48  ;;  %v14271_v20 = vld [vmem:[#allocation121_spill] sm:$0xff] }
 0x456   : > { %vm14272_vm13 = vnez %v14271_v20 }
 0x457   : > { %v3259_v39 = vpop.f32.mrf.mxu1  ;;  %vm14273_vm10 = vmpackc.low %vm14270_vm15, %vm14272_vm13 }
 0x458   : > { %v3393_v4 = vpop.f32.mrf.mxu2 }
 0x459   : > { %v3659_v7 = vpop.f32.mrf.mxu3  ;;  %v3394_v5 = vadd.f32 %v3393_v4, %v3256_v14  ;;  %v3896_v38 = vpop.f32.mrf.mxu0 }
 0x45a   : > { %6163 = vmatmul.msk.bf16.gmra.mxu1 %vm14263_vm6, %v11008_v9 }
 0x45b   : > { %v3720_v23 = vadd.f32 %v3659_v7, %v3394_v5 }
 0x45c   : > { %6403 = vmatmul.msk.bf16.gmra.mxu0 %vm14276_vm14, %v11042_v31  ;;  %v14279_v31 = vld [vmem:[#allocation18_spill] sm:$0xff] }
 0x45d   : > { %6243 = vmatmul.msk.bf16.gmra.mxu2 %vm14268_vm8, %v11015_v63  ;;  %v11357_v14 = vadd.f32 %v3893_v22, %v3720_v23  ;;  %vm14280_vm6 = vnez %v14279_v31 }
 0x45e   : > { %6323 = vmatmul.msk.bf16.gmra.mxu3 %vm14273_vm10, %v11022_v51 }
 0x45f   : > { %14274 = vst [vmem:[#allocation141_spill] sm:$0xff] %v11357_v14  ;;  %v3261_v55 = vpop.f32.mrf.mxu1  ;;  %v6904_v14 = vld [vmem:[#allocation8 + $0x230] sm:$0xff] }
 0x460   : > { %v3396_v53 = vpop.f32.mrf.mxu2  ;;  %4991 = vmatpush.bf16.msra.mxu1 %v6904_v14  ;;  %v14288_v14 = vld [vmem:[#allocation219_spill] sm:$0xff] }
 0x461   : > { %v3662_v48 = vpop.f32.mrf.mxu3  ;;  %v3397_v4 = vadd.f32 %v3396_v53, %v3259_v39  ;;  %v3898_v5 = vpop.f32.mrf.mxu0  ;;  %v14281_v39 = vld [vmem:[#allocation16_spill] sm:$0xff]  ;;  %vm14289_vm13 = vnez %v14288_v14 }
 0x462   : > { %vm14282_vm3 = vnez %v14281_v39 }
 0x463   : > { %v3721_v7 = vadd.f32 %v3662_v48, %v3397_v4  ;;  %vm14283_vm5 = vmpackc.low %vm14280_vm6, %vm14282_vm3 }
 0x465   : > { %v11362_v12 = vadd.f32 %v3896_v38, %v3721_v7 }
 0x467   : > { %v3264_v16 = vpop.f32.mrf.mxu1 }
 0x468   : > { %v3398_v34 = vpop.f32.mrf.mxu2 }
 0x469   : > { %v3664_v19 = vpop.f32.mrf.mxu3  ;;  %v3399_v20 = vadd.f32 %v3398_v34, %v3261_v55  ;;  %v3901_v23 = vpop.f32.mrf.mxu0  ;;  %v14284_v55 = vld [vmem:[#allocation15_spill] sm:$0xff] }
 0x46a   : > { %4062 = vmatmul.bf16.vlgmr.msrb.gmra.mxu1 %v14055_v40  ;;  %vm14285_vm8 = vnez %v14284_v55  ;;  %v14293_v55 = vld [vmem:[#allocation221_spill] sm:$0xff] }
 0x46b   : > { %v3722_v22 = vadd.f32 %v3664_v19, %v3399_v20 }
 0x46c   : > { %6630 = vmatmul.msk.bf16.vlgmr.msra.gmra.mxu0 %vm14285_vm8, %v10531_v28 }
 0x46d   : > { %6470 = vmatmul.msk.bf16.vlgmr.msra.gmra.mxu2 %vm14278_vm9, %v14063_v6  ;;  %v11374_v38 = vadd.f32 %v3898_v5, %v3722_v22  ;;  %v14286_v22 = vld [vmem:[#allocation148_spill] sm:$0xff]  ;;  %vm14294_vm9 = vnez %v14293_v55  ;;  %v14297_v55 = vld [vmem:[#allocation225_spill] sm:$0xff] }
 0x46e   : > { %6550 = vmatmul.msk.bf16.vlgmr.msra.gmra.mxu3 %vm14283_vm5, %v10538_v37  ;;  %vm14287_vm15 = vnez %v14286_v22  ;;  %vm14298_vm3 = vnez %v14297_v55 }
 0x46f   : > { %v3266_v53 = vpop.f32.mrf.mxu1 }
 0x470   : > { %v3401_v48 = vpop.f32.mrf.mxu2 }
 0x471   : > { %v3667_v4 = vpop.f32.mrf.mxu3  ;;  %v3402_v7 = vadd.f32 %v3401_v48, %v3264_v16  ;;  %v3903_v19 = vpop.f32.mrf.mxu0  ;;  %v14290_v16 = vld [vmem:[#allocation218_spill] sm:$0xff] }
 0x472   : > { %vm14291_vm10 = vnez %v14290_v16  ;;  %v14295_v16 = vld [vmem:[#allocation152_spill] sm:$0xff] }
 0x473   : > { %v3723_v34 = vadd.f32 %v3667_v4, %v3402_v7  ;;  %vm14292_vm14 = vmpackc.low %vm14289_vm13, %vm14291_vm10  ;;  %vm14296_vm6 = vnez %v14295_v16 }
 0x475   : > { %v11379_v20 = vadd.f32 %v3901_v23, %v3723_v34 }
 0x477   : > { %v3269_v31 = vpop.f32.mrf.mxu1 }
 0x478   : > { %v3403_v15 = vpop.f32.mrf.mxu2 }
 0x479   : > { %v3669_v39 = vpop.f32.mrf.mxu3  ;;  %v3404_v6 = vadd.f32 %v3403_v15, %v3266_v53  ;;  %v3906_v5 = vpop.f32.mrf.mxu0 }
 0x47a   : > { %4067 = vmatmul.bf16.gmra.mxu1 %v10531_v28 }
 0x47b   : > { %v3724_v37 = vadd.f32 %v3669_v39, %v3404_v6 }
 0x47c   : > { %6633 = vmatmul.msk.bf16.gmra.mxu0 %vm14294_vm9, %v10608_v57 }
 0x47d   : > { %6473 = vmatmul.msk.bf16.gmra.mxu2 %vm14287_vm15, %v10600_v13  ;;  %v11391_v23 = vadd.f32 %v3903_v19, %v3724_v37  ;;  %v6903_v37 = vld [vmem:[#allocation8 + $0x228] sm:$0xff] }
 0x47e   : > { %6553 = vmatmul.msk.bf16.gmra.mxu3 %vm14292_vm14, %v10615_v60  ;;  %4992 = vmatpush.bf16.msra.mxu1 %v6903_v37  ;;  %v14306_v37 = vld [vmem:[#allocation230_spill] sm:$0xff] }
 0x47f   : > { %v3271_v28 = vpop.f32.mrf.mxu1  ;;  %vm14307_vm10 = vnez %v14306_v37 }
 0x480   : > { %v3406_v6 = vpop.f32.mrf.mxu2 }
 0x481   : > { %v3672_v53 = vpop.f32.mrf.mxu3  ;;  %v3407_v48 = vadd.f32 %v3406_v6, %v3269_v31  ;;  %v3908_v7 = vpop.f32.mrf.mxu0  ;;  %v14299_v31 = vld [vmem:[#allocation224_spill] sm:$0xff] }
 0x482   : > { %vm14300_vm5 = vnez %v14299_v31 }
 0x483   : > { %v3725_v4 = vadd.f32 %v3672_v53, %v3407_v48  ;;  %vm14301_vm8 = vmpackc.low %vm14298_vm3, %vm14300_vm5 }
 0x485   : > { %v11396_v34 = vadd.f32 %v3906_v5, %v3725_v4 }
 0x487   : > { %v3274_v15 = vpop.f32.mrf.mxu1 }
 0x488   : > { %v3408_v39 = vpop.f32.mrf.mxu2 }
 0x489   : > { %v3674_v22 = vpop.f32.mrf.mxu3  ;;  %v3409_v14 = vadd.f32 %v3408_v39, %v3271_v28  ;;  %v3911_v19 = vpop.f32.mrf.mxu0  ;;  %v14302_v28 = vld [vmem:[#allocation226_spill] sm:$0xff] }
 0x48a   : > { %4072 = vmatmul.bf16.gmra.mxu1 %v10608_v57  ;;  %vm14303_vm15 = vnez %v14302_v28  ;;  %v14311_v28 = vld [vmem:[#allocation231_spill] sm:$0xff] }
 0x48b   : > { %v3726_v60 = vadd.f32 %v3674_v22, %v3409_v14 }
 0x48c   : > { %6636 = vmatmul.msk.bf16.gmra.mxu0 %vm14303_vm15, %v10685_v24 }
 0x48d   : > { %6476 = vmatmul.msk.bf16.gmra.mxu2 %vm14296_vm6, %v10677_v32  ;;  %v11408_v5 = vadd.f32 %v3908_v7, %v3726_v60  ;;  %v14304_v60 = vld [vmem:[#allocation156_spill] sm:$0xff]  ;;  %vm14312_vm6 = vnez %v14311_v28  ;;  %v14315_v28 = vld [vmem:[#allocation235_spill] sm:$0xff] }
 0x48e   : > { %6556 = vmatmul.msk.bf16.gmra.mxu3 %vm14301_vm8, %v10694_v47  ;;  %vm14305_vm13 = vnez %v14304_v60  ;;  %vm14316_vm5 = vnez %v14315_v28 }
 0x48f   : > { %v3276_v57 = vpop.f32.mrf.mxu1 }
 0x490   : > { %v3411_v6 = vpop.f32.mrf.mxu2 }
 0x491   : > { %v3677_v53 = vpop.f32.mrf.mxu3  ;;  %v3412_v48 = vadd.f32 %v3411_v6, %v3274_v15  ;;  %v3913_v39 = vpop.f32.mrf.mxu0  ;;  %v14308_v15 = vld [vmem:[#allocation229_spill] sm:$0xff] }
 0x492   : > { %vm14309_vm14 = vnez %v14308_v15  ;;  %v14313_v15 = vld [vmem:[#allocation161_spill] sm:$0xff] }
 0x493   : > { %v3727_v4 = vadd.f32 %v3677_v53, %v3412_v48  ;;  %vm14310_vm9 = vmpackc.low %vm14307_vm10, %vm14309_vm14  ;;  %vm14314_vm3 = vnez %v14313_v15 }
 0x495   : > { %v11413_v22 = vadd.f32 %v3911_v19, %v3727_v4 }
 0x497   : > { %v3279_v14 = vpop.f32.mrf.mxu1 }
 0x498   : > { %v3413_v16 = vpop.f32.mrf.mxu2 }
 0x499   : > { %v3679_v55 = vpop.f32.mrf.mxu3  ;;  %v3414_v31 = vadd.f32 %v3413_v16, %v3276_v57  ;;  %v3916_v7 = vpop.f32.mrf.mxu0 }
 0x49a   : > { %4077 = vmatmul.bf16.gmra.mxu1 %v10685_v24 }
 0x49b   : > { %v3728_v47 = vadd.f32 %v3679_v55, %v3414_v31 }
 0x49c   : > { %6639 = vmatmul.msk.bf16.gmra.mxu0 %vm14312_vm6, %v14114_v46 }
 0x49d   : > { %6479 = vmatmul.msk.bf16.gmra.mxu2 %vm14305_vm13, %v14106_v43  ;;  %v11425_v19 = vadd.f32 %v3913_v39, %v3728_v47  ;;  %v6902_v47 = vld [vmem:[#allocation8 + $0x220] sm:$0xff] }
 0x49e   : > { %6559 = vmatmul.msk.bf16.gmra.mxu3 %vm14310_vm9, %v10772_v54  ;;  %4993 = vmatpush.bf16.msra.mxu1 %v6902_v47  ;;  %v14324_v47 = vld [vmem:[#allocation91_spill] sm:$0xff] }
 0x49f   : > { %v3281_v24 = vpop.f32.mrf.mxu1  ;;  %vm14325_vm14 = vnez %v14324_v47 }
 0x4a0   : > { %v3416_v57 = vpop.f32.mrf.mxu2 }
 0x4a1   : > { %v3682_v6 = vpop.f32.mrf.mxu3  ;;  %v3417_v53 = vadd.f32 %v3416_v57, %v3279_v14  ;;  %v3918_v4 = vpop.f32.mrf.mxu0  ;;  %v14317_v14 = vld [vmem:[#allocation234_spill] sm:$0xff] }
 0x4a2   : > { %vm14318_vm8 = vnez %v14317_v14 }
 0x4a3   : > { %v3729_v48 = vadd.f32 %v3682_v6, %v3417_v53  ;;  %vm14319_vm15 = vmpackc.low %vm14316_vm5, %vm14318_vm8 }
 0x4a5   : > { %v11430_v16 = vadd.f32 %v3916_v7, %v3729_v48 }
 0x4a7   : > { %v3284_v55 = vpop.f32.mrf.mxu1 }
 0x4a8   : > { %v3418_v31 = vpop.f32.mrf.mxu2 }
 0x4a9   : > { %v3684_v60 = vpop.f32.mrf.mxu3  ;;  %v3419_v37 = vadd.f32 %v3418_v31, %v3281_v24  ;;  %v3921_v39 = vpop.f32.mrf.mxu0  ;;  %v14320_v24 = vld [vmem:[#allocation236_spill] sm:$0xff] }
 0x4aa   : > { %4082 = vmatmul.bf16.gmra.mxu1 %v14114_v46  ;;  %vm14321_vm13 = vnez %v14320_v24  ;;  %v14329_v24 = vld [vmem:[#allocation101_spill] sm:$0xff] }
 0x4ab   : > { %v3730_v54 = vadd.f32 %v3684_v60, %v3419_v37 }
 0x4ac   : > { %6642 = vmatmul.msk.bf16.gmra.mxu0 %vm14321_vm13, %v10799_v44 }
 0x4ad   : > { %6482 = vmatmul.msk.bf16.gmra.mxu2 %vm14314_vm3, %v10795_v11  ;;  %v11442_v7 = vadd.f32 %v3918_v4, %v3730_v54  ;;  %v14322_v54 = vld [vmem:[#allocation166_spill] sm:$0xff]  ;;  %vm14330_vm3 = vnez %v14329_v24 }
 0x4ae   : > { %6562 = vmatmul.msk.bf16.gmra.mxu3 %vm14319_vm15, %v10808_v18  ;;  %vm14323_vm10 = vnez %v14322_v54  ;;  %v14333_v24 = vld [vmem:[#allocation158_spill] sm:$0xff] }
 0x4af   : > { %v3286_v46 = vpop.f32.mrf.mxu1  ;;  %vm14334_vm8 = vnez %v14333_v24 }
 0x4b0   : > { %v3421_v57 = vpop.f32.mrf.mxu2 }
 0x4b1   : > { %v3687_v6 = vpop.f32.mrf.mxu3  ;;  %v3422_v53 = vadd.f32 %v3421_v57, %v3284_v55  ;;  %v3923_v31 = vpop.f32.mrf.mxu0  ;;  %v14326_v55 = vld [vmem:[#allocation89_spill] sm:$0xff] }
 0x4b2   : > { %vm14327_vm9 = vnez %v14326_v55  ;;  %v14331_v55 = vld [vmem:[#allocation171_spill] sm:$0xff] }
 0x4b3   : > { %v3731_v48 = vadd.f32 %v3687_v6, %v3422_v53  ;;  %vm14328_vm6 = vmpackc.low %vm14325_vm14, %vm14327_vm9  ;;  %vm14332_vm5 = vnez %v14331_v55 }
 0x4b5   : > { %v11447_v60 = vadd.f32 %v3921_v39, %v3731_v48 }
 0x4b7   : > { %v3289_v37 = vpop.f32.mrf.mxu1 }
 0x4b8   : > { %v3423_v15 = vpop.f32.mrf.mxu2 }
 0x4b9   : > { %v3689_v28 = vpop.f32.mrf.mxu3  ;;  %v3424_v14 = vadd.f32 %v3423_v15, %v3286_v46  ;;  %v3926_v4 = vpop.f32.mrf.mxu0 }
 0x4ba   : > { %4087 = vmatmul.bf16.gmra.mxu1 %v10799_v44 }
 0x4bb   : > { %v3732_v18 = vadd.f32 %v3689_v28, %v3424_v14 }
 0x4bc   : > { %6645 = vmatmul.msk.bf16.gmra.mxu0 %vm14330_vm3, %v10835_v36 }
 0x4bd   : > { %6485 = vmatmul.msk.bf16.gmra.mxu2 %vm14323_vm10, %v10831_v52  ;;  %v11459_v39 = vadd.f32 %v3923_v31, %v3732_v18  ;;  %v6901_v18 = vld [vmem:[#allocation8 + $0x218] sm:$0xff] }
 0x4be   : > { %6565 = vmatmul.msk.bf16.gmra.mxu3 %vm14328_vm6, %v10844_v29  ;;  %4994 = vmatpush.bf16.msra.mxu1 %v6901_v18  ;;  %v14342_v18 = vld [vmem:[#allocation165_spill] sm:$0xff] }
 0x4bf   : > { %v3291_v44 = vpop.f32.mrf.mxu1  ;;  %vm14343_vm9 = vnez %v14342_v18 }
 0x4c0   : > { %v3426_v46 = vpop.f32.mrf.mxu2 }
 0x4c1   : > { %v3692_v57 = vpop.f32.mrf.mxu3  ;;  %v3427_v6 = vadd.f32 %v3426_v46, %v3289_v37  ;;  %v3928_v48 = vpop.f32.mrf.mxu0  ;;  %v14335_v37 = vld [vmem:[#allocation157_spill] sm:$0xff] }
 0x4c2   : > { %vm14336_vm15 = vnez %v14335_v37 }
 0x4c3   : > { %v3733_v53 = vadd.f32 %v3692_v57, %v3427_v6  ;;  %vm14337_vm13 = vmpackc.low %vm14334_vm8, %vm14336_vm15 }
 0x4c5   : > { %v11464_v15 = vadd.f32 %v3926_v4, %v3733_v53 }
 0x4c7   : > { %v3294_v28 = vpop.f32.mrf.mxu1 }
 0x4c8   : > { %v3428_v14 = vpop.f32.mrf.mxu2 }
 0x4c9   : > { %v3694_v54 = vpop.f32.mrf.mxu3  ;;  %v3429_v47 = vadd.f32 %v3428_v14, %v3291_v44  ;;  %v3931_v31 = vpop.f32.mrf.mxu0  ;;  %v14338_v44 = vld [vmem:[#allocation108_spill] sm:$0xff] }
 0x4ca   : > { %4092 = vmatmul.bf16.gmra.mxu1 %v10835_v36  ;;  %vm14339_vm10 = vnez %v14338_v44  ;;  %v14348_v44 = vld [vmem:[#allocation162_spill] sm:$0xff] }
 0x4cb   : > { %v3734_v29 = vadd.f32 %v3694_v54, %v3429_v47 }
 0x4cc   : > { %6648 = vmatmul.msk.bf16.gmra.mxu0 %vm14339_vm10, %v10856_v1 }
 0x4cd   : > { %6488 = vmatmul.msk.bf16.gmra.mxu2 %vm14332_vm5, %v10852_v27  ;;  %v11476_v4 = vadd.f32 %v3928_v48, %v3734_v29  ;;  %v14340_v29 = vld [vmem:[#allocation178_spill] sm:$0xff]  ;;  %vm14349_vm5 = vnez %v14348_v44  ;;  %v14350_v44 = vld [vmem:[#allocation208_spill] sm:$0xff] }
 0x4ce   : > { %6568 = vmatmul.msk.bf16.gmra.mxu3 %vm14337_vm13, %v10865_v8  ;;  %vm14341_vm14 = vnez %v14340_v29 }
 0x4cf   : > { %v3296_v36 = vpop.f32.mrf.mxu1 }
 0x4d0   : > { %v3431_v46 = vpop.f32.mrf.mxu2 }
 0x4d1   : > { %v3697_v57 = vpop.f32.mrf.mxu3  ;;  %v3432_v6 = vadd.f32 %v3431_v46, %v3294_v28  ;;  %v3933_v14 = vpop.f32.mrf.mxu0  ;;  %v14344_v28 = vld [vmem:[#allocation119_spill] sm:$0xff] }
 0x4d2   : > { %vm14345_vm6 = vnez %v14344_v28  ;;  %v6900_v28 = vld [vmem:[#allocation8 + $0x210] sm:$0xff] }
 0x4d3   : > { %v3735_v53 = vadd.f32 %v3697_v57, %v3432_v6  ;;  %vm14346_vm3 = vmpackc.low %vm14343_vm9, %vm14345_vm6  ;;  %4995 = vmatpush.bf16.msra.mxu1 %v6900_v28 }
 0x4d5   : > { %v11481_v54 = vadd.f32 %v3931_v31, %v3735_v53 }
 0x4d7   : > { %v3299_v47 = vpop.f32.mrf.mxu1 }
 0x4d8   : > { %v3433_v55 = vpop.f32.mrf.mxu2 }
 0x4d9   : > { %v3699_v24 = vpop.f32.mrf.mxu3  ;;  %v3434_v37 = vadd.f32 %v3433_v55, %v3296_v36  ;;  %v3936_v48 = vpop.f32.mrf.mxu0 }
 0x4da   : > { %4097 = vmatmul.bf16.gmra.mxu1 %v10856_v1 }
 0x4db   : > { %v3736_v8 = vadd.f32 %v3699_v24, %v3434_v37 }
 0x4dc   : > { %6651 = vmatmul.msk.bf16.gmra.mxu0 %vm14349_vm5, %v10877_v49 }
 0x4dd   : > { %6491 = vmatmul.msk.bf16.gmra.mxu2 %vm14341_vm14, %v10873_v41  ;;  %v11493_v31 = vadd.f32 %v3933_v14, %v3736_v8 }
 0x4de   : > { %6571 = vmatmul.msk.bf16.gmra.mxu3 %vm14346_vm3, %v10886_v42 }
 0x4df   : > { %14347 = vst [vmem:[#allocation216_spill] sm:$0xff] %v11493_v31  ;;  %v3301_v1 = vpop.f32.mrf.mxu1  ;;  %v14351_v31 = vld [vmem:[#allocation185_spill] sm:$0xff] }
 0x4e0   : > { %v3436_v36 = vpop.f32.mrf.mxu2  ;;  %vm14352_vm8 = vnez %v14351_v31 }
 0x4e1   : > { %v3702_v46 = vpop.f32.mrf.mxu3  ;;  %v3437_v57 = vadd.f32 %v3436_v36, %v3299_v47  ;;  %v3938_v53 = vpop.f32.mrf.mxu0  ;;  %v14353_v47 = vld [vmem:[#allocation137_spill] sm:$0xff] }
 0x4e2   : > { %vm14354_vm15 = vnez %v14353_v47  ;;  %v14360_v36 = vld [vmem:[#allocation213_spill] sm:$0xff] }
 0x4e3   : > { %v3737_v6 = vadd.f32 %v3702_v46, %v3437_v57 }
 0x4e5   : > { %v11498_v55 = vadd.f32 %v3936_v48, %v3737_v6  ;;  %v14355_v48 = vld [vmem:[#allocation138_spill] sm:$0xff] }
 0x4e6   : > { %vm14356_vm13 = vnez %v14355_v48 }
 0x4e7   : > { %v4063_v24 = vpop.f32.mrf.mxu1  ;;  %vm14357_vm10 = vmpackc.low %vm14354_vm15, %vm14356_vm13 }
 0x4e8   : > { %v4143_v37 = vadd.f32 %v4063_v24, %v11208_v33  ;;  %v3438_v29 = vpop.f32.mrf.mxu2 }
 0x4e9   : > { %v3704_v18 = vpop.f32.mrf.mxu3  ;;  %v3439_v42 = vadd.f32 %v3438_v29, %v3301_v1  ;;  %v4765_v8 = vpop.f32.mrf.mxu0  ;;  %v14358_v1 = vld [vmem:[#allocation170_spill] sm:$0xff] }
 0x4ea   : > { %4102 = vmatmul.bf16.gmra.mxu1 %v10877_v49  ;;  %vm14359_vm14 = vnez %v14358_v1  ;;  %v14361_v1 = vld [vmem:[#allocation189_spill] sm:$0xff] }
 0x4eb   : > { %v3738_v14 = vadd.f32 %v3704_v18, %v3439_v42  ;;  %vm14362_vm9 = vnez %v14361_v1 }
 0x4ec   : > { %6654 = vmatmul.msk.bf16.gmra.mxu0 %vm14359_vm14, %v10898_v0 }
 0x4ed   : > { %6494 = vmatmul.msk.bf16.gmra.mxu2 %vm14352_vm8, %v14350_v44  ;;  %v11511_v33 = vadd.f32 %v3938_v53, %v3738_v14 }
 0x4ee   : > { %6574 = vmatmul.msk.bf16.gmra.mxu3 %vm14357_vm10, %v10907_v25 }
 0x4ef   : > { %v4065_v49 = vpop.f32.mrf.mxu1 }
 0x4f0   : > { %v4144_v46 = vadd.f32 %v4065_v49, %v14360_v36  ;;  %v4297_v57 = vpop.f32.mrf.mxu2  ;;  %v14365_v49 = vld [vmem:[#allocation20_spill] sm:$0xff]  ;;  %v14371_v36 = vld [vmem:[#allocation214_spill] sm:$0xff] }
 0x4f1   : > { %v4531_v31 = vpop.f32.mrf.mxu3  ;;  %v4377_v6 = vadd.f32 %v4297_v57, %v4143_v37  ;;  %v4767_v29 = vpop.f32.mrf.mxu0  ;;  %v14363_v37 = vld [vmem:[#allocation21_spill] sm:$0xff]  ;;  %vm14366_vm3 = vnez %v14365_v49  ;;  %v6899_v49 = vld [vmem:[#allocation8 + $0x208] sm:$0xff] }
 0x4f2   : > { %vm14364_vm6 = vnez %v14363_v37  ;;  %4996 = vmatpush.bf16.msra.mxu1 %v6899_v49  ;;  %v14385_v49 = vld [vmem:[#allocation206_spill] sm:$0xff] }
 0x4f3   : > { %v4611_v24 = vadd.f32 %v4531_v31, %v4377_v6  ;;  %vm14367_vm5 = vmpackc.low %vm14364_vm6, %vm14366_vm3 }
 0x4f5   : > { %v11517_v18 = vadd.f32 %v4765_v8, %v4611_v24 }
 0x4f7   : > { %v4068_v42 = vpop.f32.mrf.mxu1 }
 0x4f8   : > { %v4145_v25 = vadd.f32 %v4068_v42, %v11230_v26  ;;  %v4299_v53 = vpop.f32.mrf.mxu2  ;;  %v14369_v26 = vld [vmem:[#allocation27_spill] sm:$0xff] }
 0x4f9   : > { %v4533_v14 = vpop.f32.mrf.mxu3  ;;  %v4378_v47 = vadd.f32 %v4299_v53, %v4144_v46  ;;  %v4770_v28 = vpop.f32.mrf.mxu0  ;;  %vm14370_vm8 = vnez %v14369_v26 }
 0x4fa   : > { %4107 = vmatmul.bf16.gmra.mxu1 %v10898_v0 }
 0x4fb   : > { %v4612_v48 = vadd.f32 %v4533_v14, %v4378_v47  ;;  %v14372_v47 = vld [vmem:[#allocation210_spill] sm:$0xff] }
 0x4fc   : > { %6657 = vmatmul.msk.bf16.gmra.mxu0 %vm14370_vm8, %v10919_v62 }
 0x4fd   : > { %6497 = vmatmul.msk.bf16.gmra.mxu2 %vm14362_vm9, %v10915_v21  ;;  %v11530_v8 = vadd.f32 %v4767_v29, %v4612_v48 }
 0x4fe   : > { %6577 = vmatmul.msk.bf16.gmra.mxu3 %vm14367_vm5, %v10928_v30 }
 0x4ff   : > { %14368 = vst [vmem:[#allocation220_spill] sm:$0xff] %v11530_v8  ;;  %v4070_v0 = vpop.f32.mrf.mxu1  ;;  %v14373_v8 = vld [vmem:[#allocation205_spill] sm:$0xff] }
 0x500   : > { %v4146_v46 = vadd.f32 %v4070_v0, %v14371_v36  ;;  %v4302_v57 = vpop.f32.mrf.mxu2  ;;  %v14374_v0 = vld [vmem:[#allocation194_spill] sm:$0xff] }
 0x501   : > { %v4536_v31 = vpop.f32.mrf.mxu3  ;;  %v4379_v6 = vadd.f32 %v4302_v57, %v4145_v25  ;;  %v4772_v42 = vpop.f32.mrf.mxu0  ;;  %vm14375_vm15 = vnez %v14374_v0  ;;  %v14376_v25 = vld [vmem:[#allocation175_spill] sm:$0xff]  ;;  %v14383_v57 = vld [vmem:[#allocation212_spill] sm:$0xff]  ;;  %v14384_v0 = vld [vmem:[#allocation209_spill] sm:$0xff] }
 0x502   : > { %vm14377_vm13 = vnez %v14376_v25 }
 0x503   : > { %v4613_v24 = vadd.f32 %v4536_v31, %v4379_v6 }
 0x505   : > { %v11536_v53 = vadd.f32 %v4770_v28, %v4613_v24  ;;  %v14378_v28 = vld [vmem:[#allocation172_spill] sm:$0xff] }
 0x506   : > { %vm14379_vm10 = vnez %v14378_v28 }
 0x507   : > { %v4073_v14 = vpop.f32.mrf.mxu1  ;;  %vm14380_vm14 = vmpackc.low %vm14377_vm13, %vm14379_vm10 }
 0x508   : > { %v4147_v1 = vadd.f32 %v4073_v14, %v14372_v47  ;;  %v4304_v30 = vpop.f32.mrf.mxu2 }
 0x509   : > { %v4538_v29 = vpop.f32.mrf.mxu3  ;;  %v4380_v48 = vadd.f32 %v4304_v30, %v4146_v46  ;;  %v4775_v26 = vpop.f32.mrf.mxu0  ;;  %v14381_v46 = vld [vmem:[#allocation41_spill] sm:$0xff] }
 0x50a   : > { %4112 = vmatmul.bf16.gmra.mxu1 %v10919_v62  ;;  %vm14382_vm9 = vnez %v14381_v46  ;;  %v14386_v46 = vld [vmem:[#allocation199_spill] sm:$0xff] }
 0x50b   : > { %v4614_v37 = vadd.f32 %v4538_v29, %v4380_v48  ;;  %vm14387_vm6 = vnez %v14386_v46 }
 0x50c   : > { %6660 = vmatmul.msk.bf16.gmra.mxu0 %vm14382_vm9, %v10940_v10 }
 0x50d   : > { %6500 = vmatmul.msk.bf16.gmra.mxu2 %vm14375_vm15, %v14373_v8  ;;  %v11549_v36 = vadd.f32 %v4772_v42, %v4614_v37 }
 0x50e   : > { %6580 = vmatmul.msk.bf16.gmra.mxu3 %vm14380_vm14, %v10949_v50 }
 0x50f   : > { %v4075_v62 = vpop.f32.mrf.mxu1 }
 0x510   : > { %v4148_v31 = vadd.f32 %v4075_v62, %v14383_v57  ;;  %v4307_v6 = vpop.f32.mrf.mxu2  ;;  %v14388_v62 = vld [vmem:[#allocation179_spill] sm:$0xff]  ;;  %v14393_v57 = vld [vmem:[#allocation182_spill] sm:$0xff] }
 0x511   : > { %v4541_v24 = vpop.f32.mrf.mxu3  ;;  %v4381_v14 = vadd.f32 %v4307_v6, %v4147_v1  ;;  %v4777_v29 = vpop.f32.mrf.mxu0  ;;  %vm14389_vm3 = vnez %v14388_v62  ;;  %v14390_v1 = vld [vmem:[#allocation187_spill] sm:$0xff]  ;;  %vm14394_vm15 = vnez %v14393_v57  ;;  %v14396_v57 = vld [vmem:[#allocation204_spill] sm:$0xff] }
 0x512   : > { %vm14391_vm5 = vnez %v14390_v1  ;;  %v6898_v62 = vld [vmem:[#allocation8 + $0x200] sm:$0xff] }
 0x513   : > { %v4615_v47 = vadd.f32 %v4541_v24, %v4381_v14  ;;  %vm14392_vm8 = vmpackc.low %vm14389_vm3, %vm14391_vm5  ;;  %4997 = vmatpush.bf16.msra.mxu1 %v6898_v62  ;;  %v14418_v62 = vld [vmem:[#allocation135_spill] sm:$0xff] }
 0x515   : > { %v11555_v30 = vadd.f32 %v4775_v26, %v4615_v47 }
 0x517   : > { %v4078_v48 = vpop.f32.mrf.mxu1 }
 0x518   : > { %v4149_v50 = vadd.f32 %v4078_v48, %v14384_v0  ;;  %v4309_v42 = vpop.f32.mrf.mxu2 }
 0x519   : > { %v4543_v37 = vpop.f32.mrf.mxu3  ;;  %v4382_v25 = vadd.f32 %v4309_v42, %v4148_v31  ;;  %v4780_v48 = vpop.f32.mrf.mxu0 }
 0x51a   : > { %4117 = vmatmul.bf16.gmra.mxu1 %v10940_v10  ;;  %v14395_v10 = vld [vmem:[#allocation31_spill] sm:$0xff] }
 0x51b   : > { %v4616_v28 = vadd.f32 %v4543_v37, %v4382_v25 }
 0x51c   : > { %6663 = vmatmul.msk.bf16.gmra.mxu0 %vm14394_vm15, %v10961_v58 }
 0x51d   : > { %6503 = vmatmul.msk.bf16.gmra.mxu2 %vm14387_vm6, %v14385_v49  ;;  %v11568_v26 = vadd.f32 %v4777_v29, %v4616_v28 }
 0x51e   : > { %6583 = vmatmul.msk.bf16.gmra.mxu3 %vm14392_vm8, %v10970_v56 }
 0x51f   : > { %v4080_v31 = vpop.f32.mrf.mxu1 }
 0x520   : > { %v4150_v6 = vadd.f32 %v4080_v31, %v14395_v10  ;;  %v4312_v24 = vpop.f32.mrf.mxu2  ;;  %v14397_v31 = vld [vmem:[#allocation73_spill] sm:$0xff]  ;;  %v14401_v10 = vld [vmem:[#allocation192_spill] sm:$0xff] }
 0x521   : > { %v4546_v14 = vpop.f32.mrf.mxu3  ;;  %v4383_v47 = vadd.f32 %v4312_v24, %v4149_v50  ;;  %v4782_v1 = vpop.f32.mrf.mxu0  ;;  %vm14398_vm13 = vnez %v14397_v31  ;;  %v14399_v50 = vld [vmem:[#allocation188_spill] sm:$0xff]  ;;  %vm14402_vm14 = vnez %v14401_v10  ;;  %v14406_v24 = vld [vmem:[#allocation30_spill] sm:$0xff] }
 0x522   : > { %vm14400_vm10 = vnez %v14399_v50  ;;  %v14422_v31 = vld [vmem:[#allocation126_spill] sm:$0xff] }
 0x523   : > { %v4617_v0 = vadd.f32 %v4546_v14, %v4383_v47  ;;  %vm14403_vm9 = vmpackc.low %vm14400_vm10, %vm14402_vm14 }
 0x524   : > { %vm14421_vm14 = vmpackc.low %vm10629_vm0, %vm10622_vm2 }
 0x525   : > { %v11574_v42 = vadd.f32 %v4780_v48, %v4617_v0  ;;  %v14407_v0 = vld [vmem:[#allocation87_spill] sm:$0xff] }
 0x526   : > { %vm14408_vm3 = vnez %v14407_v0 }
 0x527   : > { %v4083_v37 = vpop.f32.mrf.mxu1 }
 0x528   : > { %v11577_v25 = vadd.f32 %v4083_v37, %v11296_v2  ;;  %v4314_v56 = vpop.f32.mrf.mxu2  ;;  %v14411_v37 = vld [vmem:[#allocation197_spill] sm:$0xff] }
 0x529   : > { %v4384_v29 = vadd.f32 %v4314_v56, %v4150_v6  ;;  %v4548_v28 = vpop.f32.mrf.mxu3  ;;  %v14404_v6 = vld [vmem:[#allocation190_spill] sm:$0xff]  ;;  %vm14412_vm8 = vnez %v14411_v37  ;;  %v14414_v56 = vld [vmem:[#allocation195_spill] sm:$0xff] }
 0x52a   : > { %4122 = vmatmul.bf16.gmra.mxu1 %v10961_v58  ;;  %vm14405_vm6 = vnez %v14404_v6 }
 0x52b   : > { %v4618_v46 = vadd.f32 %v4548_v28, %v4384_v29 }
 0x52c   : > { %6666 = vmatmul.msk.bf16.gmra.mxu0 %vm14405_vm6, %v10987_v45 }
 0x52d   : > { %6506 = vmatmul.msk.bf16.gmra.mxu2 %vm14398_vm13, %v14396_v57  ;;  %v11589_v2 = vadd.f32 %v4782_v1, %v4618_v46  ;;  %vm14415_vm13 = vnez %v14414_v56  ;;  %v14416_v46 = vld [vmem:[#allocation211_spill] sm:$0xff] }
 0x52e   : > { %6586 = vmatmul.msk.bf16.gmra.mxu3 %vm14403_vm9, %v10997_v61  ;;  %v14409_v61 = vld [vmem:[#allocation193_spill] sm:$0xff]  ;;  %vm14417_vm10 = vnez %v14416_v46  ;;  %v14433_v46 = vld [vmem:[#allocation124_spill] sm:$0xff] }
 0x52f   : > { %v4085_v58 = vpop.f32.mrf.mxu1  ;;  %vm14410_vm5 = vnez %v14409_v61  ;;  %vm14434_vm0 = vnez %v14433_v46 }
 0x530   : > { %v11595_v14 = vadd.f32 %v4085_v58, %v14406_v24  ;;  %vm14413_vm15 = vmpackc.low %vm14410_vm5, %vm14412_vm8  ;;  %v14425_v58 = vld [vmem:[#allocation134_spill] sm:$0xff]  ;;  %v14426_v24 = vld [vmem:[#allocation217_spill] sm:$0xff] }
 0x531   : > { %vm14427_vm9 = vnez %v14426_v24 }
 0x537   : > { %v4088_v47 = vpop.f32.mrf.mxu1 }
 0x538   : > { %v11598_v48 = vadd.f32 %v4088_v47, %v11318_v59  ;;  %v14428_v47 = vld [vmem:[#allocation106_spill] sm:$0xff] }
 0x53a   : > { %4127 = vmatmul.bf16.gmra.mxu1 %v10987_v45 }
 0x53c   : > { %6669 = vmatmul.msk.bf16.gmra.mxu0 %vm14415_vm13, %v11008_v9 }
 0x53d   : > { %6509 = vmatmul.msk.bf16.gmra.mxu2 %vm14408_vm3, %v11005_v3 }
 0x53e   : > { %6589 = vmatmul.msk.bf16.gmra.mxu3 %vm14413_vm15, %v11015_v63 }
 0x53f   : > { %v4090_v29 = vpop.f32.mrf.mxu1 }
 0x540   : > { %v11614_v59 = vadd.f32 %v4090_v29, %v11335_v17 }
 0x547   : > { %v4093_v45 = vpop.f32.mrf.mxu1 }
 0x548   : > { %v11617_v28 = vadd.f32 %v4093_v45, %v11340_v35  ;;  %v14424_v35 = vld [vmem:[#allocation141_spill] sm:$0xff] }
 0x54a   : > { %4132 = vmatmul.bf16.gmra.mxu1 %v11008_v9 }
 0x54c   : > { %6672 = vmatmul.msk.bf16.gmra.mxu0 %vm10654_vm4, %v14422_v31  ;;  %vm14431_vm4 = vmpackc.low %vm10707_vm1, %vm10700_vm12 }
 0x54d   : > { %6512 = vmatmul.msk.bf16.gmra.mxu2 %vm14417_vm10, %v11022_v51 }
 0x54e   : > { %6592 = vmatmul.msk.bf16.gmra.mxu3 %vm14421_vm14, %v14418_v62  ;;  %v14435_v62 = vld [vmem:[#allocation122_spill] sm:$0xff] }
 0x54f   : > { %v4095_v50 = vpop.f32.mrf.mxu1  ;;  %vm14436_vm2 = vnez %v14435_v62 }
 0x550   : > { %v11633_v10 = vadd.f32 %v4095_v50, %v14424_v35  ;;  %vm14437_vm6 = vmpackc.low %vm14434_vm0, %vm14436_vm2 }
 0x557   : > { %v4098_v9 = vpop.f32.mrf.mxu1 }
 0x558   : > { %v11636_v6 = vadd.f32 %v4098_v9, %v11362_v12 }
 0x55a   : > { %4137 = vmatmul.bf16.gmra.mxu1 %v14422_v31 }
 0x55c   : > { %6675 = vmatmul.msk.bf16.gmra.mxu0 %vm10732_vm11, %v14055_v40 }
 0x55d   : > { %6515 = vmatmul.msk.bf16.gmra.mxu2 %vm14427_vm9, %v14425_v58 }
 0x55e   : > { %6595 = vmatmul.msk.bf16.gmra.mxu3 %vm14431_vm4, %v14428_v47 }
 0x55f   : > { %v4100_v56 = vpop.f32.mrf.mxu1 }
 0x560   : > { %v11652_v12 = vadd.f32 %v4100_v56, %v11374_v38  ;;  %v14438_v38 = vld [vmem:[#allocation223_spill] sm:$0xff] }
 0x561   : > { %vm14439_vm1 = vnez %v14438_v38 }
 0x567   : > { %v4103_v29 = vpop.f32.mrf.mxu1 }
 0x568   : > { %v11655_v45 = vadd.f32 %v4103_v29, %v11379_v20  ;;  %v14440_v20 = vld [vmem:[#allocation222_spill] sm:$0xff] }
 0x569   : > { %vm14441_vm12 = vnez %v14440_v20  ;;  %v14468_v20 = vld [vmem:[#allocation216_spill] sm:$0xff] }
 0x56a   : > { %6710 = vmatmul.msk.bf16.vlgmr.msra.gmra.mxu1 %vm14437_vm6, %v10600_v13  ;;  %vm14442_vm11 = vmpackc.low %vm14439_vm1, %vm14441_vm12 }
 0x56f   : > { %v4105_v63 = vpop.f32.mrf.mxu1 }
 0x570   : > { %v11664_v1 = vadd.f32 %v4105_v63, %v11391_v23  ;;  %v14443_v23 = vld [vmem:[#allocation228_spill] sm:$0xff] }
 0x571   : > { %vm14444_vm3 = vnez %v14443_v23 }
 0x577   : > { %v4108_v40 = vpop.f32.mrf.mxu1 }
 0x578   : > { %v11667_v31 = vadd.f32 %v4108_v40, %v11396_v34  ;;  %v14445_v34 = vld [vmem:[#allocation227_spill] sm:$0xff] }
 0x579   : > { %vm14446_vm5 = vnez %v14445_v34  ;;  %v11753_v34 = vld [vmem:[%s12069_s6] ss:$0 sm:$0xff] }
 0x57a   : > { %6713 = vmatmul.msk.bf16.gmra.mxu1 %vm14442_vm11, %v10677_v32  ;;  %vm14447_vm8 = vmpackc.low %vm14444_vm3, %vm14446_vm5 }
 0x57f   : > { %v4110_v17 = vpop.f32.mrf.mxu1 }
 0x580   : > { %v11676_v50 = vadd.f32 %v4110_v17, %v11408_v5  ;;  %v14448_v5 = vld [vmem:[#allocation233_spill] sm:$0xff] }
 0x581   : > { %vm14449_vm15 = vnez %v14448_v5  ;;  %v14474_v5 = vld [vmem:[#allocation168_spill] sm:$0xff] }
 0x587   : > { %v4113_v13 = vpop.f32.mrf.mxu1 }
 0x588   : > { %v11679_v35 = vadd.f32 %v4113_v13, %v11413_v22  ;;  %v14450_v22 = vld [vmem:[#allocation232_spill] sm:$0xff]  ;;  %v14469_v13 = vld [vmem:[#allocation127_spill] sm:$0xff] }
 0x589   : > { %vm14451_vm13 = vnez %v14450_v22  ;;  %vm14470_vm3 = vnez %v14469_v13 }
 0x58a   : > { %6716 = vmatmul.msk.bf16.gmra.mxu1 %vm14447_vm8, %v14106_v43  ;;  %vm14452_vm10 = vmpackc.low %vm14449_vm15, %vm14451_vm13  ;;  %vm14475_vm15 = vnez %v14474_v5 }
 0x58f   : > { %v4115_v9 = vpop.f32.mrf.mxu1 }
 0x590   : > { %v11688_v24 = vadd.f32 %v4115_v9, %v11425_v19  ;;  %v14453_v19 = vld [vmem:[#allocation238_spill] sm:$0xff] }
 0x591   : > { %vm14454_vm14 = vnez %v14453_v19 }
 0x597   : > { %v4118_v32 = vpop.f32.mrf.mxu1 }
 0x598   : > { %v11691_v47 = vadd.f32 %v4118_v32, %v11430_v16  ;;  %v14455_v16 = vld [vmem:[#allocation237_spill] sm:$0xff]  ;;  %v11759_v32 = vld [vmem:[%s12070_s7] ss:$0 sm:$0xff] }
 0x599   : > { %vm14456_vm9 = vnez %v14455_v16 }
 0x59a   : > { %6719 = vmatmul.msk.bf16.gmra.mxu1 %vm14452_vm10, %v10795_v11  ;;  %vm14457_vm4 = vmpackc.low %vm14454_vm14, %vm14456_vm9 }
 0x59f   : > { %v4120_v0 = vpop.f32.mrf.mxu1 }
 0x5a0   : > { %v11700_v61 = vadd.f32 %v4120_v0, %v11442_v7  ;;  %v14458_v7 = vld [vmem:[#allocation160_spill] sm:$0xff]  ;;  %v11769_v0 = vpop.f32.mrf.mxu2 }
 0x5a1   : > { %vm14459_vm0 = vnez %v14458_v7 }
 0x5a7   : > { %v4123_v43 = vpop.f32.mrf.mxu1 }
 0x5a8   : > { %v11703_v37 = vadd.f32 %v4123_v43, %v11447_v60  ;;  %v14460_v60 = vld [vmem:[#allocation100_spill] sm:$0xff] }
 0x5a9   : > { %vm14461_vm2 = vnez %v14460_v60 }
 0x5aa   : > { %6722 = vmatmul.msk.bf16.gmra.mxu1 %vm14457_vm4, %v10831_v52  ;;  %vm14462_vm6 = vmpackc.low %vm14459_vm0, %vm14461_vm2 }
 0x5af   : > { %v4125_v56 = vpop.f32.mrf.mxu1 }
 0x5b0   : > { %v11712_v29 = vadd.f32 %v4125_v56, %v11459_v39  ;;  %v14463_v39 = vld [vmem:[#allocation120_spill] sm:$0xff] }
 0x5b1   : > { %vm14464_vm1 = vnez %v14463_v39  ;;  %v14479_v56 = vld [vmem:[#allocation220_spill] sm:$0xff] }
 0x5b7   : > { %v4128_v11 = vpop.f32.mrf.mxu1 }
 0x5b8   : > { %v11715_v46 = vadd.f32 %v4128_v11, %v11464_v15  ;;  %v14465_v15 = vld [vmem:[#allocation110_spill] sm:$0xff] }
 0x5b9   : > { %vm14466_vm12 = vnez %v14465_v15  ;;  %v11785_v15 = vpop.f32.mrf.mxu2 }
 0x5ba   : > { %6725 = vmatmul.msk.bf16.gmra.mxu1 %vm14462_vm6, %v10852_v27  ;;  %vm14467_vm11 = vmpackc.low %vm14464_vm1, %vm14466_vm12 }
 0x5bf   : > { %v4130_v62 = vpop.f32.mrf.mxu1 }
 0x5c0   : > { %v11724_v63 = vadd.f32 %v4130_v62, %v11476_v4  ;;  %v11782_v62 = vpop.f32.mrf.mxu0 }
 0x5c7   : > { %v4133_v52 = vpop.f32.mrf.mxu1 }
 0x5c8   : > { %v11727_v40 = vadd.f32 %v4133_v52, %v11481_v54  ;;  %v14471_v54 = vld [vmem:[#allocation163_spill] sm:$0xff]  ;;  %v7074_v52 = vld [vmem:[%s7476_s10 + $0x8] sm:$0xff] }
 0x5c9   : > { %vm14472_vm5 = vnez %v14471_v54  ;;  %v14480_v54 = vld [vmem:[#allocation180_spill] sm:$0xff] }
 0x5ca   : > { %6728 = vmatmul.msk.bf16.gmra.mxu1 %vm14467_vm11, %v10873_v41  ;;  %vm14473_vm8 = vmpackc.low %vm14470_vm3, %vm14472_vm5  ;;  %vm14481_vm14 = vnez %v14480_v54  ;;  %v7077_v54 = vld [vmem:[%s7476_s10 + $0x20] sm:$0xff] }
 0x5cf   : > { %v4135_v38 = vpop.f32.mrf.mxu1 }
 0x5d0   : > { %v11736_v17 = vadd.f32 %v4135_v38, %v14468_v20 }
 0x5d7   : > { %v4138_v27 = vpop.f32.mrf.mxu1 }
 0x5d8   : > { %v11739_v4 = vadd.f32 %v4138_v27, %v11498_v55 }
 0x5da   : > { %6731 = vmatmul.msk.bf16.gmra.mxu1 %vm14473_vm8, %v14350_v44 }
 0x5df   : > { %v4140_v23 = vpop.f32.mrf.mxu1 }
 0x5e0   : > { %v11748_v41 = vadd.f32 %v4140_v23, %v11511_v33  ;;  %v14476_v33 = vld [vmem:[#allocation167_spill] sm:$0xff]  ;;  %v14482_v23 = vld [vmem:[#allocation177_spill] sm:$0xff] }
 0x5e1   : > { %vm14477_vm13 = vnez %v14476_v33  ;;  %vm14483_vm9 = vnez %v14482_v23 }
 0x5e2   : > { %vm14478_vm10 = vmpackc.low %vm14475_vm15, %vm14477_vm13 }
 0x5e3   : > { %vm14484_vm4 = vmpackc.low %vm14481_vm14, %vm14483_vm9 }
 0x5e7   : > { %v4999_v9 = vpop.f32.mrf.mxu1 }
 0x5e8   : > { %v5079_v55 = vadd.f32 %v4999_v9, %v11517_v18  ;;  %v7073_v18 = vld [vmem:[%s7476_s10] sm:$0xff] }
 0x5ea   : > { %v5115_v44 = vmul.f32 %v11753_v34, %v5079_v55  ;;  %6734 = vmatmul.msk.bf16.gmra.mxu1 %vm14478_vm10, %v10915_v21  ;;  %v11779_v21 = vpop.f32.mrf.mxu3 }
 0x5ec   : > { %v5151_v22 = vadd.f32 %v11759_v32, %v5115_v44  ;;  %v7075_v44 = vld [vmem:[%s7476_s10 + $0x10] sm:$0xff] }
 0x5ee   : > { %v5183_v43 = vadd.f32 %v7073_v18, %v5151_v22 }
 0x5ef   : > { %v5001_v19 = vpop.f32.mrf.mxu1 }
 0x5f0   : > { %v5215_v16 = vmax.f32 %v5183_v43, 0.0  ;;  %v5080_v11 = vadd.f32 %v5001_v19, %v14479_v56  ;;  %v11803_v43 = vpop.f32.mrf.mxu2 }
 0x5f2   : > { %5247 = vst [vmem:[%s11775_s11] sm:$0xff] %v5215_v16  ;;  %v5116_v7 = vmul.f32 %v11753_v34, %v5080_v11  ;;  %v11797_v55 = vpop.f32.mrf.mxu3  ;;  %v7076_v16 = vld [vmem:[%s7476_s10 + $0x18] sm:$0xff] }
 0x5f4   : > { %v5152_v60 = vadd.f32 %v11759_v32, %v5116_v7 }
 0x5f6   : > { %v5184_v39 = vadd.f32 %v7074_v52, %v5152_v60 }
 0x5f7   : > { %v5004_v38 = vpop.f32.mrf.mxu1 }
 0x5f8   : > { %v5216_v20 = vmax.f32 %v5184_v39, 0.0  ;;  %v5081_v27 = vadd.f32 %v5004_v38, %v11536_v53  ;;  %v11800_v53 = vpop.f32.mrf.mxu0  ;;  %v14485_v38 = vld [vmem:[#allocation186_spill] sm:$0xff] }
 0x5f9   : > { %vm14486_vm0 = vnez %v14485_v38 }
 0x5fa   : > { %5248 = vst [vmem:[%s11775_s11 + $0x8] sm:$0xff] %v5216_v20  ;;  %v5117_v13 = vmul.f32 %v11753_v34, %v5081_v27  ;;  %6737 = vmatmul.msk.bf16.gmra.mxu1 %vm14484_vm4, %v14373_v8  ;;  %v11809_v11 = vpop.f32.mrf.mxu3  ;;  %v14487_v20 = vld [vmem:[#allocation184_spill] sm:$0xff]  ;;  %v11822_v27 = vpop.f32.mrf.mxu2 }
 0x5fb   : > { %vm14488_vm2 = vnez %v14487_v20  ;;  %v4385_v20 = vadd.f32 %v11769_v0, %v11577_v25  ;;  %v4386_v25 = vadd.f32 %v11785_v15, %v11595_v14  ;;  %v7080_v0 = vld [vmem:[%s7476_s10 + $0x38] sm:$0xff]  ;;  %v14497_v14 = vld [vmem:[#allocation68_spill] sm:$0xff]  ;;  %v4387_v15 = vadd.f32 %v11803_v43, %v11598_v48 }
 0x5fc   : > { %v5153_v9 = vadd.f32 %v11759_v32, %v5117_v13  ;;  %vm14489_vm6 = vmpackc.low %vm14486_vm0, %vm14488_vm2  ;;  %vm14498_vm5 = vnez %v14497_v14  ;;  %v4388_v48 = vadd.f32 %v11822_v27, %v11614_v59  ;;  %v7083_v14 = vld [vmem:[%s7476_s10 + $0x50] sm:$0xff] }
 0x5fe   : > { %v5185_v5 = vadd.f32 %v7075_v44, %v5153_v9 }
 0x5ff   : > { %v5006_v33 = vpop.f32.mrf.mxu1 }
 0x600   : > { %v5217_v22 = vmax.f32 %v5185_v5, 0.0  ;;  %v5082_v18 = vadd.f32 %v5006_v33, %v11549_v36  ;;  %v11812_v39 = vpop.f32.mrf.mxu0 }
 0x602   : > { %5249 = vst [vmem:[%s11775_s11 + $0x10] sm:$0xff] %v5217_v22  ;;  %v5118_v19 = vmul.f32 %v11753_v34, %v5082_v18  ;;  %v11827_v5 = vpop.f32.mrf.mxu3  ;;  %v11834_v18 = vpop.f32.mrf.mxu2 }
 0x604   : > { %v5154_v8 = vadd.f32 %v11759_v32, %v5118_v19  ;;  %v7078_v19 = vld [vmem:[%s7476_s10 + $0x28] sm:$0xff] }
 0x606   : > { %v5186_v56 = vadd.f32 %v7076_v16, %v5154_v8 }
 0x607   : > { %v5009_v7 = vpop.f32.mrf.mxu1 }
 0x608   : > { %v5218_v60 = vmax.f32 %v5186_v56, 0.0  ;;  %v5083_v52 = vadd.f32 %v5009_v7, %v11555_v30  ;;  %v11831_v22 = vpop.f32.mrf.mxu0 }
 0x60a   : > { %5250 = vst [vmem:[%s11775_s11 + $0x18] sm:$0xff] %v5218_v60  ;;  %v5119_v36 = vmul.f32 %v11753_v34, %v5083_v52  ;;  %6740 = vmatmul.msk.bf16.gmra.mxu1 %vm14489_vm6, %v14385_v49  ;;  %v14490_v60 = vld [vmem:[#allocation55_spill] sm:$0xff]  ;;  %v14492_v52 = vld [vmem:[#allocation49_spill] sm:$0xff] }
 0x60b   : > { %vm14491_vm1 = vnez %v14490_v60  ;;  %vm14493_vm12 = vnez %v14492_v52  ;;  %v4620_v60 = vadd.f32 %v11797_v55, %v4386_v25 }
 0x60c   : > { %v5155_v13 = vadd.f32 %v11759_v32, %v5119_v36  ;;  %vm14494_vm11 = vmpackc.low %vm14491_vm1, %vm14493_vm12  ;;  %v11846_v36 = vpop.f32.mrf.mxu3 }
 0x60d   : > { %v4854_v55 = vadd.f32 %v11800_v53, %v4620_v60  ;;  %v7082_v53 = vld [vmem:[%s7476_s10 + $0x48] sm:$0xff]  ;;  %v14500_v60 = vld [vmem:[#allocation81_spill] sm:$0xff] }
 0x60e   : > { %v5187_v30 = vadd.f32 %v7077_v54, %v5155_v13  ;;  %vm14501_vm15 = vnez %v14500_v60 }
 0x60f   : > { %v5011_v23 = vpop.f32.mrf.mxu1 }
 0x610   : > { %v5219_v9 = vmax.f32 %v5187_v30, 0.0  ;;  %v5084_v44 = vadd.f32 %v5011_v23, %v11568_v26  ;;  %v11851_v13 = vpop.f32.mrf.mxu0  ;;  %v11854_v30 = vpop.f32.mrf.mxu2 }
 0x612   : > { %5251 = vst [vmem:[%s11775_s11 + $0x20] sm:$0xff] %v5219_v9  ;;  %v5120_v33 = vmul.f32 %v11753_v34, %v5084_v44 }
 0x614   : > { %v5156_v49 = vadd.f32 %v11759_v32, %v5120_v33 }
 0x616   : > { %v5188_v8 = vadd.f32 %v7078_v19, %v5156_v49  ;;  %v11861_v19 = vpop.f32.mrf.mxu3 }
 0x617   : > { %v5014_v16 = vpop.f32.mrf.mxu1 }
 0x618   : > { %v5220_v56 = vmax.f32 %v5188_v8, 0.0  ;;  %v5085_v7 = vadd.f32 %v5014_v16, %v11574_v42  ;;  %v7079_v42 = vld [vmem:[%s7476_s10 + $0x30] sm:$0xff] }
 0x61a   : > { %5252 = vst [vmem:[%s11775_s11 + $0x28] sm:$0xff] %v5220_v56  ;;  %v5121_v26 = vmul.f32 %v11753_v34, %v5085_v7  ;;  %6743 = vmatmul.msk.bf16.gmra.mxu1 %vm14494_vm11, %v14396_v57  ;;  %v4619_v57 = vadd.f32 %v11779_v21, %v4385_v20  ;;  %v7081_v20 = vld [vmem:[%s7476_s10 + $0x40] sm:$0xff] }
 0x61c   : > { %v5157_v38 = vadd.f32 %v11759_v32, %v5121_v26  ;;  %v4853_v16 = vadd.f32 %v11782_v62, %v4619_v57  ;;  %v4332_v26 = vpop.f32.mrf.mxu2  ;;  %v4621_v57 = vadd.f32 %v11809_v11, %v4387_v15 }
 0x61e   : > { %v5189_v54 = vadd.f32 %v7079_v42, %v5157_v38  ;;  %v14495_v38 = vld [vmem:[#allocation67_spill] sm:$0xff] }
 0x61f   : > { %v5016_v23 = vpop.f32.mrf.mxu1  ;;  %vm14496_vm3 = vnez %v14495_v38  ;;  %v4389_v38 = vadd.f32 %v11834_v18, %v11617_v28  ;;  %v7084_v18 = vld [vmem:[%s7476_s10 + $0x58] sm:$0xff] }
 0x620   : > { %v5221_v9 = vmax.f32 %v5189_v54, 0.0  ;;  %v5086_v44 = vadd.f32 %v5016_v23, %v11589_v2  ;;  %v11867_v2 = vpop.f32.mrf.mxu0  ;;  %vm14499_vm8 = vmpackc.low %vm14496_vm3, %vm14498_vm5  ;;  %v4566_v54 = vpop.f32.mrf.mxu3 }
 0x622   : > { %5253 = vst [vmem:[%s11775_s11 + $0x30] sm:$0xff] %v5221_v9  ;;  %v5122_v33 = vmul.f32 %v11753_v34, %v5086_v44 }
 0x624   : > { %v5158_v49 = vadd.f32 %v11759_v32, %v5122_v33 }
 0x626   : > { %v5190_v8 = vadd.f32 %v7080_v0, %v5158_v49  ;;  %v4334_v49 = vpop.f32.mrf.mxu2  ;;  %v4855_v0 = vadd.f32 %v11812_v39, %v4621_v57 }
 0x627   : > { %v5019_v56 = vpop.f32.mrf.mxu1 }
 0x628   : > { %v5222_v7 = vmax.f32 %v5190_v8, 0.0  ;;  %v5087_v21 = vadd.f32 %v5019_v56, %v4853_v16  ;;  %v11884_v33 = vpop.f32.mrf.mxu0  ;;  %v4568_v11 = vpop.f32.mrf.mxu3 }
 0x62a   : > { %5254 = vst [vmem:[%s11775_s11 + $0x38] sm:$0xff] %v5222_v7  ;;  %v5123_v52 = vmul.f32 %v11753_v34, %v5087_v21  ;;  %6746 = vmatmul.msk.bf16.gmra.mxu1 %vm14499_vm8, %v11005_v3  ;;  %v4622_v7 = vadd.f32 %v11827_v5, %v4388_v48 }
 0x62c   : > { %v5159_v62 = vadd.f32 %v11759_v32, %v5123_v52  ;;  %v14502_v52 = vld [vmem:[#allocation82_spill] sm:$0xff] }
 0x62d   : > { %vm14503_vm13 = vnez %v14502_v52 }
 0x62e   : > { %v5191_v42 = vadd.f32 %v7081_v20, %v5159_v62  ;;  %vm14504_vm10 = vmpackc.low %vm14501_vm15, %vm14503_vm13  ;;  %v4337_v27 = vpop.f32.mrf.mxu2  ;;  %v4856_v62 = vadd.f32 %v11831_v22, %v4622_v7 }
 0x62f   : > { %v5021_v23 = vpop.f32.mrf.mxu1 }
 0x630   : > { %v5223_v9 = vmax.f32 %v5191_v42, 0.0  ;;  %v5088_v44 = vadd.f32 %v5021_v23, %v4854_v55  ;;  %v4802_v59 = vpop.f32.mrf.mxu0  ;;  %v4623_v55 = vadd.f32 %v11846_v36, %v4389_v38  ;;  %v4571_v23 = vpop.f32.mrf.mxu3 }
 0x632   : > { %5255 = vst [vmem:[%s11775_s11 + $0x40] sm:$0xff] %v5223_v9  ;;  %v5124_v3 = vmul.f32 %v11753_v34, %v5088_v44  ;;  %v4390_v44 = vadd.f32 %v11854_v30, %v11633_v10  ;;  %v4857_v22 = vadd.f32 %v11851_v13, %v4623_v55  ;;  %v14506_v10 = vld [vmem:[#allocation198_spill] sm:$0xff] }
 0x633   : > { %vm14507_vm14 = vnez %v14506_v10 }
 0x634   : > { %v5160_v25 = vadd.f32 %v11759_v32, %v5124_v3  ;;  %v4624_v36 = vadd.f32 %v11861_v19, %v4390_v44  ;;  %vm14508_vm9 = vmpackc.low %vm10673_vm7, %vm14507_vm14  ;;  %v14510_v44 = vld [vmem:[#allocation117_spill] sm:$0xff] }
 0x635   : > { %vm14511_vm7 = vnez %v14510_v44 }
 0x636   : > { %v5192_v43 = vadd.f32 %v7082_v53, %v5160_v25  ;;  %v4339_v3 = vpop.f32.mrf.mxu2  ;;  %v4858_v19 = vadd.f32 %v11867_v2, %v4624_v36 }
 0x637   : > { %v5024_v8 = vpop.f32.mrf.mxu1 }
 0x638   : > { %v5224_v16 = vmax.f32 %v5192_v43, 0.0  ;;  %v5089_v56 = vadd.f32 %v5024_v8, %v4855_v0  ;;  %v4805_v28 = vpop.f32.mrf.mxu0  ;;  %v4573_v13 = vpop.f32.mrf.mxu3  ;;  %v4391_v8 = vadd.f32 %v4332_v26, %v11636_v6  ;;  %v7086_v6 = vld [vmem:[%s7476_s10 + $0x68] sm:$0xff] }
 0x63a   : > { %5256 = vst [vmem:[%s11775_s11 + $0x48] sm:$0xff] %v5224_v16  ;;  %v5125_v21 = vmul.f32 %v11753_v34, %v5089_v56  ;;  %6749 = vmatmul.msk.bf16.gmra.mxu1 %vm14504_vm10, %v11022_v51  ;;  %v7085_v16 = vld [vmem:[%s7476_s10 + $0x60] sm:$0xff]  ;;  %v4625_v38 = vadd.f32 %v4566_v54, %v4391_v8 }
 0x63c   : > { %v5161_v39 = vadd.f32 %v11759_v32, %v5125_v21 }
 0x63e   : > { %v5193_v5 = vadd.f32 %v7083_v14, %v5161_v39  ;;  %v4342_v39 = vpop.f32.mrf.mxu2 }
 0x63f   : > { %v5026_v15 = vpop.f32.mrf.mxu1 }
 0x640   : > { %v5225_v20 = vmax.f32 %v5193_v5, 0.0  ;;  %v5090_v42 = vadd.f32 %v5026_v15, %v4856_v62  ;;  %v4807_v21 = vpop.f32.mrf.mxu0  ;;  %v4392_v5 = vadd.f32 %v4334_v49, %v11652_v12  ;;  %v4859_v62 = vadd.f32 %v11884_v33, %v4625_v38  ;;  %v4576_v2 = vpop.f32.mrf.mxu3 }
 0x641   : > { %v4393_v49 = vadd.f32 %v4337_v27, %v11655_v45  ;;  %v7088_v45 = vld [vmem:[%s7476_s10 + $0x78] sm:$0xff] }
 0x642   : > { %5257 = vst [vmem:[%s11775_s11 + $0x50] sm:$0xff] %v5225_v20  ;;  %v5126_v51 = vmul.f32 %v11753_v34, %v5090_v42  ;;  %v4626_v55 = vadd.f32 %v4568_v11, %v4392_v5  ;;  %v7089_v5 = vld [vmem:[%s7476_s10 + $0x80] sm:$0xff] }
 0x644   : > { %v5162_v9 = vadd.f32 %v11759_v32, %v5126_v51 }
 0x646   : > { %v5194_v57 = vadd.f32 %v7084_v18, %v5162_v9  ;;  %v14509_v9 = vld [vmem:[#allocation196_spill] sm:$0xff]  ;;  %v14512_v18 = vld [vmem:[#allocation203_spill] sm:$0xff]  ;;  %v4344_v12 = vpop.f32.mrf.mxu2 }
 0x647   : > { %v5029_v25 = vpop.f32.mrf.mxu1  ;;  %vm14513_vm4 = vnez %v14512_v18 }
 0x648   : > { %v5226_v48 = vmax.f32 %v5194_v57, 0.0  ;;  %v5091_v53 = vadd.f32 %v5029_v25, %v4857_v22  ;;  %v4810_v51 = vpop.f32.mrf.mxu0  ;;  %vm14514_vm0 = vmpackc.low %vm14511_vm7, %vm14513_vm4  ;;  %v7087_v57 = vld [vmem:[%s7476_s10 + $0x70] sm:$0xff]  ;;  %v4860_v22 = vadd.f32 %v4802_v59, %v4626_v55  ;;  %v4578_v36 = vpop.f32.mrf.mxu3  ;;  %v4396_v55 = vadd.f32 %v4344_v12, %v11676_v50 }
 0x64a   : > { %5258 = vst [vmem:[%s11775_s11 + $0x58] sm:$0xff] %v5226_v48  ;;  %v5127_v43 = vmul.f32 %v11753_v34, %v5091_v53  ;;  %6752 = vmatmul.msk.bf16.gmra.mxu1 %vm14508_vm9, %v14425_v58 }
 0x64c   : > { %v5163_v30 = vadd.f32 %v11759_v32, %v5127_v43  ;;  %v4627_v43 = vadd.f32 %v4571_v23, %v4393_v49  ;;  %v4630_v49 = vadd.f32 %v4578_v36, %v4396_v55 }
 0x64e   : > { %v5195_v56 = vadd.f32 %v7085_v16, %v5163_v30  ;;  %v4347_v8 = vpop.f32.mrf.mxu2  ;;  %v4394_v16 = vadd.f32 %v4339_v3, %v11664_v1 }
 0x64f   : > { %v5031_v7 = vpop.f32.mrf.mxu1 }
 0x650   : > { %v5227_v60 = vmax.f32 %v5195_v56, 0.0  ;;  %v5092_v52 = vadd.f32 %v5031_v7, %v4858_v19  ;;  %v4812_v10 = vpop.f32.mrf.mxu0  ;;  %v4861_v56 = vadd.f32 %v4805_v28, %v4627_v43 }
 0x651   : > { %v4864_v12 = vadd.f32 %v4812_v10, %v4630_v49 }
 0x652   : > { %5259 = vst [vmem:[%s11775_s11 + $0x60] sm:$0xff] %v5227_v60  ;;  %v5128_v58 = vmul.f32 %v11753_v34, %v5092_v52  ;;  %v4628_v60 = vadd.f32 %v4573_v13, %v4394_v16  ;;  %v4581_v52 = vpop.f32.mrf.mxu3 }
 0x654   : > { %v5164_v14 = vadd.f32 %v11759_v32, %v5128_v58  ;;  %v4395_v58 = vadd.f32 %v4342_v39, %v11667_v31  ;;  %v4862_v3 = vadd.f32 %v4807_v21, %v4628_v60  ;;  %v7090_v31 = vld [vmem:[%s7476_s10 + $0x88] sm:$0xff] }
 0x656   : > { %v5196_v26 = vadd.f32 %v7086_v6, %v5164_v14  ;;  %v4349_v6 = vpop.f32.mrf.mxu2 }
 0x657   : > { %v5034_v15 = vpop.f32.mrf.mxu1 }
 0x658   : > { %v5228_v20 = vmax.f32 %v5196_v26, 0.0  ;;  %v5093_v42 = vadd.f32 %v5034_v15, %v4859_v62  ;;  %v4815_v14 = vpop.f32.mrf.mxu0  ;;  %v4629_v15 = vadd.f32 %v4576_v2, %v4395_v58 }
 0x65a   : > { %5260 = vst [vmem:[%s11775_s11 + $0x68] sm:$0xff] %v5228_v20  ;;  %v5129_v54 = vmul.f32 %v11753_v34, %v5093_v42  ;;  %6755 = vmatmul.msk.bf16.gmra.mxu1 %vm14514_vm0, %v14509_v9  ;;  %v4583_v42 = vpop.f32.mrf.mxu3 }
 0x65c   : > { %v5165_v33 = vadd.f32 %v11759_v32, %v5129_v54  ;;  %v4863_v54 = vadd.f32 %v4810_v51, %v4629_v15 }
 0x65e   : > { %v5197_v11 = vadd.f32 %v7087_v57, %v5165_v33  ;;  %v4352_v33 = vpop.f32.mrf.mxu2 }
 0x65f   : > { %v5036_v25 = vpop.f32.mrf.mxu1  ;;  %v4399_v58 = vadd.f32 %v4352_v33, %v11691_v47 }
 0x660   : > { %v5229_v48 = vmax.f32 %v5197_v11, 0.0  ;;  %v5094_v53 = vadd.f32 %v5036_v25, %v4860_v22  ;;  %v4817_v21 = vpop.f32.mrf.mxu0  ;;  %v4397_v11 = vadd.f32 %v4347_v8, %v11679_v35  ;;  %v7091_v22 = vld [vmem:[%s7476_s10 + $0x90] sm:$0xff]  ;;  %v7092_v35 = vld [vmem:[%s7476_s10 + $0x98] sm:$0xff] }
 0x662   : > { %5261 = vst [vmem:[%s11775_s11 + $0x70] sm:$0xff] %v5229_v48  ;;  %v5130_v0 = vmul.f32 %v11753_v34, %v5094_v53  ;;  %v4586_v25 = vpop.f32.mrf.mxu3  ;;  %v4631_v43 = vadd.f32 %v4581_v52, %v4397_v11 }
 0x664   : > { %v5166_v30 = vadd.f32 %v11759_v32, %v5130_v0 }
 0x666   : > { %v5198_v27 = vadd.f32 %v7088_v45, %v5166_v30  ;;  %v4354_v30 = vpop.f32.mrf.mxu2  ;;  %v4398_v45 = vadd.f32 %v4349_v6, %v11688_v24  ;;  %v7093_v24 = vld [vmem:[%s7476_s10 + $0xa0] sm:$0xff] }
 0x667   : > { %v5039_v59 = vpop.f32.mrf.mxu1 }
 0x668   : > { %v5230_v19 = vmax.f32 %v5198_v27, 0.0  ;;  %v5095_v7 = vadd.f32 %v5039_v59, %v4861_v56  ;;  %v4820_v0 = vpop.f32.mrf.mxu0  ;;  %v4865_v27 = vadd.f32 %v4815_v14, %v4631_v43 }
 0x66a   : > { %5262 = vst [vmem:[%s11775_s11 + $0x78] sm:$0xff] %v5230_v19  ;;  %v5131_v23 = vmul.f32 %v11753_v34, %v5095_v7  ;;  %v4588_v19 = vpop.f32.mrf.mxu3  ;;  %v4632_v7 = vadd.f32 %v4583_v42, %v4398_v45  ;;  %v7094_v42 = vld [vmem:[%s7476_s10 + $0xa8] sm:$0xff] }
 0x66c   : > { %v5167_v38 = vadd.f32 %v11759_v32, %v5131_v23 }
 0x66e   : > { %v5199_v1 = vadd.f32 %v7089_v5, %v5167_v38  ;;  %v4357_v38 = vpop.f32.mrf.mxu2 }
 0x66f   : > { %v5041_v28 = vpop.f32.mrf.mxu1  ;;  %v4401_v49 = vadd.f32 %v4357_v38, %v11703_v37 }
 0x670   : > { %v5231_v26 = vmax.f32 %v5199_v1, 0.0  ;;  %v5096_v62 = vadd.f32 %v5041_v28, %v4862_v3  ;;  %v4822_v23 = vpop.f32.mrf.mxu0  ;;  %v4866_v1 = vadd.f32 %v4817_v21, %v4632_v7  ;;  %v4633_v28 = vadd.f32 %v4586_v25, %v4399_v58 }
 0x672   : > { %5263 = vst [vmem:[%s11775_s11 + $0x80] sm:$0xff] %v5231_v26  ;;  %v5132_v13 = vmul.f32 %v11753_v34, %v5096_v62  ;;  %v4591_v62 = vpop.f32.mrf.mxu3  ;;  %v4867_v55 = vadd.f32 %v4820_v0, %v4633_v28  ;;  %v7096_v0 = vld [vmem:[%s7476_s10 + $0xb8] sm:$0xff] }
 0x674   : > { %v5168_v20 = vadd.f32 %v11759_v32, %v5132_v13  ;;  %v4400_v13 = vadd.f32 %v4354_v30, %v11700_v61  ;;  %v7095_v61 = vld [vmem:[%s7476_s10 + $0xb0] sm:$0xff] }
 0x676   : > { %v5200_v39 = vadd.f32 %v7090_v31, %v5168_v20  ;;  %v4359_v31 = vpop.f32.mrf.mxu2  ;;  %v4634_v21 = vadd.f32 %v4588_v19, %v4400_v13 }
 0x677   : > { %v5044_v9 = vpop.f32.mrf.mxu1  ;;  %v4402_v43 = vadd.f32 %v4359_v31, %v11712_v29  ;;  %v7097_v29 = vld [vmem:[%s7476_s10 + $0xc0] sm:$0xff] }
 0x678   : > { %v5232_v44 = vmax.f32 %v5200_v39, 0.0  ;;  %v5097_v18 = vadd.f32 %v5044_v9, %v4863_v54  ;;  %v4825_v20 = vpop.f32.mrf.mxu0 }
 0x67a   : > { %5264 = vst [vmem:[%s11775_s11 + $0x88] sm:$0xff] %v5232_v44  ;;  %v5133_v2 = vmul.f32 %v11753_v34, %v5097_v18  ;;  %v4593_v33 = vpop.f32.mrf.mxu3 }
 0x67c   : > { %v5169_v57 = vadd.f32 %v11759_v32, %v5133_v2 }
 0x67e   : > { %v5201_v50 = vadd.f32 %v7091_v22, %v5169_v57  ;;  %v4868_v57 = vadd.f32 %v4822_v23, %v4634_v21  ;;  %v4362_v25 = vpop.f32.mrf.mxu2 }
 0x67f   : > { %v5046_v51 = vpop.f32.mrf.mxu1  ;;  %v4403_v19 = vadd.f32 %v4362_v25, %v11715_v46  ;;  %v7098_v46 = vld [vmem:[%s7476_s10 + $0xc8] sm:$0xff] }
 0x680   : > { %v5233_v48 = vmax.f32 %v5201_v50, 0.0  ;;  %v5098_v53 = vadd.f32 %v5046_v51, %v4864_v12  ;;  %v4827_v22 = vpop.f32.mrf.mxu0  ;;  %v4635_v51 = vadd.f32 %v4591_v62, %v4401_v49 }
 0x682   : > { %5265 = vst [vmem:[%s11775_s11 + $0x90] sm:$0xff] %v5233_v48  ;;  %v5134_v36 = vmul.f32 %v11753_v34, %v5098_v53  ;;  %v4596_v30 = vpop.f32.mrf.mxu3 }
 0x684   : > { %v5170_v16 = vadd.f32 %v11759_v32, %v5134_v36  ;;  %v4869_v36 = vadd.f32 %v4825_v20, %v4635_v51 }
 0x686   : > { %v5202_v8 = vadd.f32 %v7092_v35, %v5170_v16 }
 0x687   : > { %v5049_v10 = vpop.f32.mrf.mxu1 }
 0x688   : > { %v5234_v56 = vmax.f32 %v5202_v8, 0.0  ;;  %v5099_v59 = vadd.f32 %v5049_v10, %v4865_v27  ;;  %v4636_v8 = vadd.f32 %v4593_v33, %v4402_v43  ;;  %v4830_v27 = vpop.f32.mrf.mxu0 }
 0x68a   : > { %5266 = vst [vmem:[%s11775_s11 + $0x98] sm:$0xff] %v5234_v56  ;;  %v5135_v60 = vmul.f32 %v11753_v34, %v5099_v59  ;;  %v4364_v56 = vpop.f32.mrf.mxu2  ;;  %v4598_v58 = vpop.f32.mrf.mxu3 }
 0x68c   : > { %v5171_v52 = vadd.f32 %v11759_v32, %v5135_v60  ;;  %v4870_v60 = vadd.f32 %v4827_v22, %v4636_v8  ;;  %v7100_v22 = vld [vmem:[%s7476_s10 + $0xd8] sm:$0xff] }
 0x68e   : > { %v5203_v5 = vadd.f32 %v7093_v24, %v5171_v52  ;;  %v4637_v24 = vadd.f32 %v4596_v30, %v4403_v19  ;;  %v7101_v30 = vld [vmem:[%s7476_s10 + $0xe0] sm:$0xff] }
 0x68f   : > { %v5051_v14 = vpop.f32.mrf.mxu1 }
 0x690   : > { %v5235_v3 = vmax.f32 %v5203_v5, 0.0  ;;  %v5100_v6 = vadd.f32 %v5051_v14, %v4866_v1  ;;  %v4832_v1 = vpop.f32.mrf.mxu0 }
 0x692   : > { %5267 = vst [vmem:[%s11775_s11 + $0xa0] sm:$0xff] %v5235_v3  ;;  %v5136_v26 = vmul.f32 %v11753_v34, %v5100_v6  ;;  %v4367_v3 = vpop.f32.mrf.mxu2  ;;  %v4404_v6 = vadd.f32 %v4364_v56, %v11724_v63 }
 0x694   : > { %v5172_v15 = vadd.f32 %v11759_v32, %v5136_v26  ;;  %v4871_v26 = vadd.f32 %v4830_v27, %v4637_v24  ;;  %v4638_v20 = vadd.f32 %v4598_v58, %v4404_v6  ;;  %v7103_v6 = vld [vmem:[%s7476_s10 + $0xf0] sm:$0xff] }
 0x696   : > { %v5204_v47 = vadd.f32 %v7094_v42, %v5172_v15 }
 0x697   : > { %v5054_v39 = vpop.f32.mrf.mxu1 }
 0x698   : > { %v5236_v54 = vmax.f32 %v5204_v47, 0.0  ;;  %v5101_v9 = vadd.f32 %v5054_v39, %v4867_v55  ;;  %v4601_v47 = vpop.f32.mrf.mxu3  ;;  %v4835_v31 = vpop.f32.mrf.mxu0  ;;  %v4405_v39 = vadd.f32 %v4367_v3, %v11727_v40 }
 0x69a   : > { %5268 = vst [vmem:[%s11775_s11 + $0xa8] sm:$0xff] %v5236_v54  ;;  %v5137_v44 = vmul.f32 %v11753_v34, %v5101_v9  ;;  %v7099_v54 = vld [vmem:[%s7476_s10 + $0xd0] sm:$0xff]  ;;  %v4872_v9 = vadd.f32 %v4832_v1, %v4638_v20  ;;  %v4369_v21 = vpop.f32.mrf.mxu2  ;;  %v4639_v49 = vadd.f32 %v4601_v47, %v4405_v39  ;;  %v7104_v20 = vld [vmem:[%s7476_s10 + $0xf8] sm:$0xff] }
 0x69c   : > { %v5173_v18 = vadd.f32 %v11759_v32, %v5137_v44 }
 0x69e   : > { %v5205_v2 = vadd.f32 %v7095_v61, %v5173_v18 }
 0x69f   : > { %v5056_v11 = vpop.f32.mrf.mxu1 }
 0x6a0   : > { %v5237_v50 = vmax.f32 %v5205_v2, 0.0  ;;  %v5102_v12 = vadd.f32 %v5056_v11, %v4868_v57  ;;  %v4603_v57 = vpop.f32.mrf.mxu3  ;;  %v4406_v11 = vadd.f32 %v4369_v21, %v11736_v17 }
 0x6a2   : > { %5269 = vst [vmem:[%s11775_s11 + $0xb0] sm:$0xff] %v5237_v50  ;;  %v5138_v48 = vmul.f32 %v11753_v34, %v5102_v12  ;;  %v4873_v50 = vadd.f32 %v4835_v31, %v4639_v49  ;;  %v4640_v43 = vadd.f32 %v4603_v57, %v4406_v11 }
 0x6a4   : > { %v5174_v53 = vadd.f32 %v11759_v32, %v5138_v48  ;;  %v4837_v48 = vpop.f32.mrf.mxu0 }
 0x6a6   : > { %v5206_v37 = vadd.f32 %v7096_v0, %v5174_v53  ;;  %v4372_v53 = vpop.f32.mrf.mxu2 }
 0x6a7   : > { %v5059_v16 = vpop.f32.mrf.mxu1 }
 0x6a8   : > { %v5238_v45 = vmax.f32 %v5206_v37, 0.0  ;;  %v5103_v35 = vadd.f32 %v5059_v16, %v4869_v36  ;;  %v4407_v36 = vadd.f32 %v4372_v53, %v11739_v4  ;;  %v4874_v16 = vadd.f32 %v4837_v48, %v4640_v43  ;;  %v7102_v4 = vld [vmem:[%s7476_s10 + $0xe8] sm:$0xff] }
 0x6aa   : > { %5270 = vst [vmem:[%s11775_s11 + $0xb8] sm:$0xff] %v5238_v45  ;;  %v5139_v10 = vmul.f32 %v11753_v34, %v5103_v35  ;;  %v4606_v45 = vpop.f32.mrf.mxu3 }
 0x6ac   : > { %v5175_v59 = vadd.f32 %v11759_v32, %v5139_v10  ;;  %v4641_v10 = vadd.f32 %v4606_v45, %v4407_v36 }
 0x6ae   : > { %v5207_v7 = vadd.f32 %v7097_v29, %v5175_v59  ;;  %v4840_v59 = vpop.f32.mrf.mxu0  ;;  %v4374_v19 = vpop.f32.mrf.mxu2 }
 0x6af   : > { %v5061_v23 = vpop.f32.mrf.mxu1 }
 0x6b0   : > { %v5239_v52 = vmax.f32 %v5207_v7, 0.0  ;;  %v5104_v38 = vadd.f32 %v5061_v23, %v4870_v60  ;;  %v4408_v7 = vadd.f32 %v4374_v19, %v11748_v41  ;;  %v4875_v23 = vadd.f32 %v4840_v59, %v4641_v10 }
 0x6b2   : > { %5271 = vst [vmem:[%s11775_s11 + $0xc0] sm:$0xff] %v5239_v52  ;;  %v5140_v5 = vmul.f32 %v11753_v34, %v5104_v38  ;;  %v4608_v24 = vpop.f32.mrf.mxu3 }
 0x6b4   : > { %v5176_v14 = vadd.f32 %v11759_v32, %v5140_v5  ;;  %v4642_v5 = vadd.f32 %v4608_v24, %v4408_v7 }
 0x6b6   : > { %v5208_v28 = vadd.f32 %v7098_v46, %v5176_v14  ;;  %v4842_v3 = vpop.f32.mrf.mxu0 }
 0x6b7   : > { %v5064_v62 = vpop.f32.mrf.mxu1  ;;  %v4876_v46 = vadd.f32 %v4842_v3, %v4642_v5 }
 0x6b8   : > { %v5240_v15 = vmax.f32 %v5208_v28, 0.0  ;;  %v5105_v13 = vadd.f32 %v5064_v62, %v4871_v26 }
 0x6ba   : > { %5272 = vst [vmem:[%s11775_s11 + $0xc8] sm:$0xff] %v5240_v15  ;;  %v5141_v42 = vmul.f32 %v11753_v34, %v5105_v13 }
 0x6bc   : > { %v5177_v55 = vadd.f32 %v11759_v32, %v5141_v42 }
 0x6be   : > { %v5209_v63 = vadd.f32 %v7099_v54, %v5177_v55 }
 0x6bf   : > { %v5066_v44 = vpop.f32.mrf.mxu1 }
 0x6c0   : > { %v5241_v18 = vmax.f32 %v5209_v63, 0.0  ;;  %v5106_v33 = vadd.f32 %v5066_v44, %v4872_v9 }
 0x6c2   : > { %5273 = vst [vmem:[%s11775_s11 + $0xd0] sm:$0xff] %v5241_v18  ;;  %v5142_v61 = vmul.f32 %v11753_v34, %v5106_v33 }
 0x6c4   : > { %v5178_v2 = vadd.f32 %v11759_v32, %v5142_v61 }
 0x6c6   : > { %v5210_v40 = vadd.f32 %v7100_v22, %v5178_v2 }
 0x6c7   : > { %v5069_v12 = vpop.f32.mrf.mxu1 }
 0x6c8   : > { %v5242_v25 = vmax.f32 %v5210_v40, 0.0  ;;  %v5107_v51 = vadd.f32 %v5069_v12, %v4873_v50 }
 0x6ca   : > { %5274 = vst [vmem:[%s11775_s11 + $0xd8] sm:$0xff] %v5242_v25  ;;  %v5143_v0 = vmul.f32 %v11753_v34, %v5107_v51 }
 0x6cc   : > { %v5179_v37 = vadd.f32 %v11759_v32, %v5143_v0 }
 0x6ce   : > { %v5211_v17 = vadd.f32 %v7101_v30, %v5179_v37 }
 0x6cf   : > { %v5071_v35 = vpop.f32.mrf.mxu1 }
 0x6d0   : > { %v5243_v8 = vmax.f32 %v5211_v17, 0.0  ;;  %v5108_v27 = vadd.f32 %v5071_v35, %v4874_v16 }
 0x6d2   : > { %5275 = vst [vmem:[%s11775_s11 + $0xe0] sm:$0xff] %v5243_v8  ;;  %v5144_v56 = vmul.f32 %v11753_v34, %v5108_v27 }
 0x6d4   : > { %v5180_v29 = vadd.f32 %v11759_v32, %v5144_v56 }
 0x6d6   : > { %v5212_v60 = vadd.f32 %v7102_v4, %v5180_v29 }
 0x6d7   : > { %v5074_v52 = vpop.f32.mrf.mxu1 }
 0x6d8   : > { %v5244_v38 = vmax.f32 %v5212_v60, 0.0  ;;  %v5109_v58 = vadd.f32 %v5074_v52, %v4875_v23 }
 0x6da   : > { %5276 = vst [vmem:[%s11775_s11 + $0xe8] sm:$0xff] %v5244_v38  ;;  %v5145_v1 = vmul.f32 %v11753_v34, %v5109_v58 }
 0x6dc   : > { %v5181_v14 = vadd.f32 %v11759_v32, %v5145_v1 }
 0x6de   : > { %v5213_v41 = vadd.f32 %v7103_v6, %v5181_v14 }
 0x6df   : > { %v5076_v28 = vpop.f32.mrf.mxu1 }
 0x6e0   : > { %v5245_v26 = vmax.f32 %v5213_v41, 0.0  ;;  %v5110_v62 = vadd.f32 %v5076_v28, %v4876_v46 }
 0x6e2   : > { %5277 = vst [vmem:[%s11775_s11 + $0xf0] sm:$0xff] %v5245_v26  ;;  %v5146_v15 = vmul.f32 %v11753_v34, %v5110_v62 }
 0x6e4   : > { %v5182_v13 = vadd.f32 %v11759_v32, %v5146_v15 }
 0x6e6   : > { %v5214_v42 = vadd.f32 %v7104_v20, %v5182_v13 }
 0x6e8   : > { %v5246_v47 = vmax.f32 %v5214_v42, 0.0 }
 0x6ea   : > { %5278 = vst [vmem:[%s11775_s11 + $0xf8] sm:$0xff] %v5246_v47 }
 0x6eb   : > { %7252 = shalt.err (!%p7249_p10)
}
 0x6ec   : > { %s7308_s17 = smov 128   ;;  %s7309_s10 = smov 8  }
 0x6ed   : > { %6937 = dma.vmem_to_hbm [thread:$0]  (%p7440_p3), %s5293_s25, 4096, %s5295_s23, %s5280_s9, %s7308_s17, %s7308_s17, %s7309_s10  }
 0x6ee PF: > { %s5309_s11 = sand.u32 1, %s7287_s27   ;;  %p14515_p12 = scmp.ge.s32.totalorder %s7299_s30, 2 }
 0x6ef   : > { %s5310_s16 = scalar_lea.sflag [#allocation4], %s5309_s11 }
 0x6f0   : > { %p6954_p13 = pnand %p14515_p12, %p7390_p6 }
 0x6f2   : > { %p6955_p0 = pneg %p6954_p13 }
 0x6f4   : > { %7282 = dma.done.wait (%p6955_p0), %s5310_s16, 4096  }
 0x6f5   : > { %7284 = vsyncadd (%p6955_p0), %s5310_s16, 4294963200  ;;  %p23_p5 = scmp.ge.s32.totalorder %s7427_s21, 4   ;;  %s14516_s27 = smov %s7291_s28 }
 0x6f6   : > { %s14517_s28 = smov %s7295_s29  ;;  %s14518_s29 = smov %s7436_s22 }
 0x6f7   : > { %s14519_s30 = smov %s7427_s21  ;;  %25 = sbr.rel (!%p23_p5) target bundleno = 10 (0xa), region = 126 }
 0x6fc   :  { %5316 = vsyncpa [#allocation3], 1 }
 0x6fd   :  { %5318 = vsyncpa [#allocation3 + $0x1], 1 }
 0x6fe   :  { %5319 = vsyncpa [#allocation6], 1 }
 0x6ff   :  { %5320 = vsyncpa [#allocation9], 1 }
 0x700   :  { %5321 = vsyncpa [#allocation4], 1 }
 0x701   :  { %5323 = vsyncpa [#allocation4 + $0x1], 1 }

</bundles_post_ra>
